<compile_context>
chip_gen: v7x
topology: tpu7x:2x2x1
jax: 0.10.0
libtpu: 0.0.40
codegen_flags: <defaults>
</compile_context>

<pallas_src>
import jax
import jax.numpy as jnp
from jax import lax
from jax.experimental import pallas as pl
from jax.experimental.pallas import tpu as pltpu

_EPS = 1e-5          # nn.InstanceNorm2d default eps
_NEG_SLOPE = 0.2     # nn.LeakyReLU(negative_slope=0.2)
_MATMUL_DTYPE = jnp.bfloat16   # MXU operand dtype; jnp.float32 for exact PyTorch parity


def _vmem_limit_bytes():
    """~Half of physical VMEM per TensorCore (v7x: 32 MiB, v5e/v6e: 64 MiB)."""
    try:
        cap = pltpu.get_tpu_info().vmem_capacity_bytes
    except Exception:
        cap = 64 * 1024 * 1024
    return int(min(cap // 2, 64 * 1024 * 1024))


# ----------------------------- in-kernel helpers (values are 2-D: (C, L)) -----------------------------

def _inorm_lrelu(x, count, anchor_mask):
    """InstanceNorm2d (biased var, eps=1e-5, no affine) + LeakyReLU(0.2).

    x is zero on non-anchor lanes, so per-channel sums over all L lanes equal the sums
    over the `count` valid pixels.  anchor_mask re-zeroes the non-anchor lanes after the
    (x - mean) * rstd shift.  Everything stays f32."""
    inv = 1.0 / float(count)
    s1 = jnp.sum(x, axis=-1, keepdims=True) * inv                 # E[x]   (XLU lane reduce)
    s2 = jnp.sum(x * x, axis=-1, keepdims=True) * inv             # E[x^2]
    var = jnp.maximum(s2 - s1 * s1, 0.0)
    rstd = lax.rsqrt(var + _EPS)
    y = (x - s1) * rstd * anchor_mask
    return jnp.where(y >= 0, y, _NEG_SLOPE * y)


def _conv3x3(x, w_ref, mask9, shifts):
    """3x3 / stride 1 / pad 1 conv on the dilated (Cin, L) grid.

    w_ref : (9, Cout, Cin) ref in _MATMUL_DTYPE, tap index = (dy+1)*3 + (dx+1).
    mask9 : (9, L) f32 — zeroes out-of-bound neighbours, roll wrap-around and
            non-anchor lanes (so the output keeps the dilated-grid invariant).
    shifts: 9 static lane-roll amounts (jnp.roll convention, already mod L)."""
    cout, cin = w_ref.shape[1], w_ref.shape[2]
    l = x.shape[1]
    acc = jnp.zeros((cout, l), jnp.float32)
    for t in range(9):
        xs = pltpu.roll(x, shifts[t], axis=1) if shifts[t] else x
        xs = xs * mask9[t:t + 1, :]
        if cin == 1:
            # K=1 contraction: a VPU outer product is cheaper than an MXU push.
            acc = acc + w_ref[t].astype(jnp.float32) * xs
        else:
            acc = acc + jnp.dot(w_ref[t], xs.astype(_MATMUL_DTYPE),
                                preferred_element_type=jnp.float32)
    return acc


def _avg_pool2x2(x, shift_dx, shift_dy, next_mask):
    """2x2 / stride 2 average pool on the dilated grid: 2 rolls + adds + mask."""
    a = x + pltpu.roll(x, shift_dx, axis=1)      # + right neighbour (distance s)
    b = a + pltpu.roll(a, shift_dy, axis=1)      # + lower row       (distance s*W0)
    return 0.25 * b * next_mask                  # keep only the new (2s)-stride anchors


def _up_stage(x, wt_ref, um4, offsets, count_out, out_mask):
    """ConvTranspose2d(k=2, s=2, bias=False) -> InstanceNorm -> LeakyReLU on the dilated grid.

    wt_ref : (4, Co, Ci) ref in _MATMUL_DTYPE, tap = di*2 + dj, wt[tap][co,ci] = W[ci,co,di,dj].
    um4    : (4, L) f32 per-tap output-lane masks (disjoint; union = out anchor set).
    offsets: 4 static lane-roll amounts moving tap results onto their output lanes."""
    co = wt_ref.shape[1]
    l = x.shape[1]
    xb = x.astype(_MATMUL_DTYPE)
    acc = jnp.zeros((co, l), jnp.float32)
    for t in range(4):
        y = jnp.dot(wt_ref[t], xb, preferred_element_type=jnp.float32)
        if offsets[t]:
            y = pltpu.roll(y, offsets[t], axis=1)
        acc = acc + y * um4[t:t + 1, :]
    return _inorm_lrelu(acc, count_out, out_mask)


# ----------------------------- the single fused kernel -----------------------------

def _build_kernel(plan):
    """plan: static per-stage metadata (shifts, counts); ref order must match the wrapper."""

    def kernel(*refs):
        o_ref = refs[-1]
        it = iter(refs[:-1])

        hA = next(it)[0].astype(jnp.float32)      # image      (Cin0, L)
        hB = next(it)[0].astype(jnp.float32)      # aux image  (Cin0, L)

        # ---- down path: ConvBlock -> avg_pool per level, both branches ----
        for lv in plan["down"]:
            cm = next(it)[...]                    # (9, L) conv halo/anchor masks
            am = next(it)[...]                    # (1, L) anchor mask of this level
            pm = next(it)[...]                    # (1, L) anchor mask after pooling
            wA1, wA2, wB1, wB2 = next(it), next(it), next(it), next(it)

            hA = _inorm_lrelu(_conv3x3(hA, wA1, cm, lv["shifts"]), lv["count"], am)
            hA = _inorm_lrelu(_conv3x3(hA, wA2, cm, lv["shifts"]), lv["count"], am)
            hA = _avg_pool2x2(hA, lv["pool_dx"], lv["pool_dy"], pm)

            hB = _inorm_lrelu(_conv3x3(hB, wB1, cm, lv["shifts"]), lv["count"], am)
            hB = _inorm_lrelu(_conv3x3(hB, wB2, cm, lv["shifts"]), lv["count"], am)
            hB = _avg_pool2x2(hB, lv["pool_dx"], lv["pool_dy"], pm)

        # ---- torch.cat([m1, m2], dim=1) then bottleneck ConvBlock ----
        h = jnp.concatenate([hA, hB], axis=0)
        bt = plan["bottleneck"]
        cm = next(it)[...]
        am = next(it)[...]
        wc1, wc2 = next(it), next(it)
        h = _inorm_lrelu(_conv3x3(h, wc1, cm, bt["shifts"]), bt["count"], am)
        h = _inorm_lrelu(_conv3x3(h, wc2, cm, bt["shifts"]), bt["count"], am)

        # ---- up path: TransposeConvBlock per stage ----
        for st in plan["up"]:
            wt = next(it)
            um = next(it)[...]
            om = next(it)[...]
            h = _up_stage(h, wt, um, st["offsets"], st["count"], om)

        # ---- final 1x1 conv (+bias) + tanh ----
        w11 = next(it)[...]
        b11 = next(it)[...]
        y = jnp.dot(w11, h.astype(_MATMUL_DTYPE),
                    preferred_element_type=jnp.float32) + b11
        o_ref[0] = jnp.tanh(y)

    return kernel


# ----------------------------- host-side constants (tiny, jit-folded) -----------------------------

def _fine_coords(h, w):
    q = jnp.arange(h * w)
    return q // w, q % w


def _conv_masks(h, w, s):
    """(9, H*W): 1 on level-s anchor lanes whose (dy,dx) neighbour is in range, else 0."""
    r, c = _fine_coords(h, w)
    hs, ws = h // s, w // s
    on = (r % s == 0) & (c % s == 0)
    ri, ci = r // s, c // s
    rows = []
    for dy in (-1, 0, 1):
        for dx in (-1, 0, 1):
            ok = on & (ri + dy >= 0) & (ri + dy < hs) & (ci + dx >= 0) & (ci + dx < ws)
            rows.append(ok)
    return jnp.stack(rows, axis=0).astype(jnp.float32)


def _anchor_mask(h, w, s):
    """(1, H*W): 1 on lanes whose fine (row, col) are multiples of s."""
    r, c = _fine_coords(h, w)
    return ((r % s == 0) & (c % s == 0)).astype(jnp.float32)[None, :]


def _up_tap_masks(h, w, s_in):
    """(4, H*W): per (di,dj) tap, the output lanes it produces (stride s_in/2 grid)."""
    r, c = _fine_coords(h, w)
    s_out = s_in // 2
    rows = []
    for di in (0, 1):
        for dj in (0, 1):
            rows.append((r % s_in == di * s_out) & (c % s_in == dj * s_out))
    return jnp.stack(rows, axis=0).astype(jnp.float32)


def _conv_shifts(w0, s, l):
    """roll amounts so that roll(x, shift)[q] == x[q + dy*s*w0 + dx*s] (jnp.roll convention)."""
    out = []
    for dy in (-1, 0, 1):
        for dx in (-1, 0, 1):
            out.append((-(dy * s * w0 + dx * s)) % l)
    return tuple(out)


def _up_offsets(w0, s_out, l):
    return tuple((di * s_out * w0 + dj * s_out) % l for di in (0, 1) for dj in (0, 1))


def _conv_w9(w):
    """(Cout, Cin, 3, 3) -> (9, Cout, Cin), tap = ky*3 + kx."""
    return jnp.transpose(w, (2, 3, 0, 1)).reshape(9, w.shape[0], w.shape[1]).astype(_MATMUL_DTYPE)


def _tconv_w4(w):
    """PyTorch ConvTranspose2d (Cin, Cout, 2, 2) -> (4, Cout, Cin), tap = di*2 + dj."""
    return jnp.transpose(w, (2, 3, 1, 0)).reshape(4, w.shape[1], w.shape[0]).astype(_MATMUL_DTYPE)


# ----------------------------- parameter init (mirrors mmUnet.__init__) -----------------------------

def init_params(key, input_dim=1, output_dim=1, chans=4, num_pool_layers=2):
    keys = iter(jax.random.split(key, 128))

    def w(shape):
        return 0.1 * jax.random.normal(next(keys), shape, dtype=jnp.float32)

    def conv_block(cin, cout):
        return (w((cout, cin, 3, 3)), w((cout, cout, 3, 3)))

    down1 = [conv_block(input_dim, chans)]
    down2 = [conv_block(input_dim, chans)]
    ch = chans
    for _ in range(num_pool_layers - 1):
        down1.append(conv_block(ch, ch * 2))
        down2.append(conv_block(ch, ch * 2))
        ch *= 2
    conv = conv_block(ch * 2, ch * 2)
    up_t = []
    for _ in range(num_pool_layers - 1):
        up_t.append(w((ch * 2, ch, 2, 2)))        # ConvTranspose2d weight: (in, out, 2, 2)
        ch //= 2
    up_t.append(w((ch * 2, ch, 2, 2)))
    up_w = w((output_dim, ch, 1, 1))
    up_b = w((output_dim,))
    return dict(down1=down1, down2=down2, conv=conv, up_t=up_t, up_w=up_w, up_b=up_b)


# ----------------------------- forward (mirrors mmUnet.forward) -----------------------------

def mm_unet_forward(params, image, aux_image):
    n, cin, h0, w0 = image.shape
    l = h0 * w0
    num_pool = len(params["down1"])

    # (N, C, H, W) -> (N, C, H*W): row-major spatial lanes, no transpose needed.
    x1 = image.reshape(n, cin, l)
    x2 = aux_image.reshape(n, cin, l)

    args = [x1, x2]
    specs = [pl.BlockSpec((1, cin, l), lambda i: (i, 0, 0)),
             pl.BlockSpec((1, cin, l), lambda i: (i, 0, 0))]

    def add_const(a):
        args.append(a)
        nd = a.ndim
        specs.append(pl.BlockSpec(a.shape, lambda i, _nd=nd: (0,) * _nd))

    plan = {"down": [], "up": []}

    # ---- down levels (both branches share masks / shifts) ----
    for lvl, ((wa1, wa2), (wb1, wb2)) in enumerate(zip(params["down1"], params["down2"])):
        s = 1 << lvl
        add_const(_conv_masks(h0, w0, s))
        add_const(_anchor_mask(h0, w0, s))
        add_const(_anchor_mask(h0, w0, 2 * s))
        add_const(_conv_w9(wa1))
        add_const(_conv_w9(wa2))
        add_const(_conv_w9(wb1))
        add_const(_conv_w9(wb2))
        plan["down"].append(dict(
            shifts=_conv_shifts(w0, s, l),
            count=(h0 // s) * (w0 // s),
            pool_dx=(-s) % l,
            pool_dy=(-s * w0) % l,
        ))

    # ---- bottleneck ----
    s_bot = 1 << num_pool
    wc1, wc2 = params["conv"]
    add_const(_conv_masks(h0, w0, s_bot))
    add_const(_anchor_mask(h0, w0, s_bot))
    add_const(_conv_w9(wc1))
    add_const(_conv_w9(wc2))
    plan["bottleneck"] = dict(shifts=_conv_shifts(w0, s_bot, l),
                              count=(h0 // s_bot) * (w0 // s_bot))

    # ---- up path ----
    for u, wt in enumerate(params["up_t"]):
        s_in = 1 << (num_pool - u)
        s_out = s_in // 2
        add_const(_tconv_w4(wt))
        add_const(_up_tap_masks(h0, w0, s_in))
        add_const(_anchor_mask(h0, w0, s_out))
        plan["up"].append(dict(offsets=_up_offsets(w0, s_out, l),
                               count=(h0 // s_out) * (w0 // s_out)))

    # ---- final 1x1 conv + bias ----
    cout_f, cin_f = params["up_w"].shape[0], params["up_w"].shape[1]
    add_const(params["up_w"].reshape(cout_f, cin_f).astype(_MATMUL_DTYPE))
    add_const(params["up_b"].reshape(cout_f, 1).astype(jnp.float32))

    out = pl.pallas_call(
        _build_kernel(plan),
        out_shape=jax.ShapeDtypeStruct((n, cout_f, l), jnp.float32),
        grid=(n,),
        in_specs=specs,
        out_specs=pl.BlockSpec((1, cout_f, l), lambda i: (i, 0, 0)),
        compiler_params=pltpu.CompilerParams(
            dimension_semantics=("parallel",),
            vmem_limit_bytes=_vmem_limit_bytes()),
    )(*args)

    return out.reshape(n, cout_f, h0, w0)


if __name__ == "__main__":
    key = jax.random.PRNGKey(0)
    kp, ki, ka = jax.random.split(key, 3)

    # Small config consistent with the module: input_dim=1, output_dim=1, chans=4, num_pool_layers=2
    params = init_params(kp, input_dim=1, output_dim=1, chans=4, num_pool_layers=2)

    image = jax.random.normal(ki, (2, 1, 16, 16), dtype=jnp.float32)
    aux_image = jax.random.normal(ka, (2, 1, 16, 16), dtype=jnp.float32)

    fwd = jax.jit(mm_unet_forward)
    out = fwd(params, image, aux_image)
    jax.block_until_ready(out)

    assert out.shape == (2, 1, 16, 16), out.shape
    assert bool(jnp.all(jnp.isfinite(out)))
    print("KERNEL_OK")
</pallas_src>

<mosaic_0001>
module attributes {stable_mosaic.version = 11 : i64} {
  func.func @kernel(%arg0: i32, %arg1: memref<1x1x256xf32, #tpu.memory_space<vmem>>, %arg2: memref<1x1x256xf32, #tpu.memory_space<vmem>>, %arg3: memref<9x256xf32, #tpu.memory_space<vmem>>, %arg4: memref<1x256xf32, #tpu.memory_space<vmem>>, %arg5: memref<1x256xf32, #tpu.memory_space<vmem>>, %arg6: memref<9x4x1xbf16, #tpu.memory_space<vmem>>, %arg7: memref<9x4x4xbf16, #tpu.memory_space<vmem>>, %arg8: memref<9x4x1xbf16, #tpu.memory_space<vmem>>, %arg9: memref<9x4x4xbf16, #tpu.memory_space<vmem>>, %arg10: memref<9x256xf32, #tpu.memory_space<vmem>>, %arg11: memref<1x256xf32, #tpu.memory_space<vmem>>, %arg12: memref<1x256xf32, #tpu.memory_space<vmem>>, %arg13: memref<9x8x4xbf16, #tpu.memory_space<vmem>>, %arg14: memref<9x8x8xbf16, #tpu.memory_space<vmem>>, %arg15: memref<9x8x4xbf16, #tpu.memory_space<vmem>>, %arg16: memref<9x8x8xbf16, #tpu.memory_space<vmem>>, %arg17: memref<9x256xf32, #tpu.memory_space<vmem>>, %arg18: memref<1x256xf32, #tpu.memory_space<vmem>>, %arg19: memref<9x16x16xbf16, #tpu.memory_space<vmem>>, %arg20: memref<9x16x16xbf16, #tpu.memory_space<vmem>>, %arg21: memref<4x8x16xbf16, #tpu.memory_space<vmem>>, %arg22: memref<4x256xf32, #tpu.memory_space<vmem>>, %arg23: memref<1x256xf32, #tpu.memory_space<vmem>>, %arg24: memref<4x4x8xbf16, #tpu.memory_space<vmem>>, %arg25: memref<4x256xf32, #tpu.memory_space<vmem>>, %arg26: memref<1x256xf32, #tpu.memory_space<vmem>>, %arg27: memref<1x4xbf16, #tpu.memory_space<vmem>>, %arg28: memref<1x1xf32, #tpu.memory_space<vmem>>, %arg29: memref<1x1x256xf32, #tpu.memory_space<vmem>>) attributes {dimension_semantics = [#tpu.dimension_semantics<parallel>], iteration_bounds = array<i64: 2>, scalar_prefetch = 0 : i64, scratch_operands = 0 : i64, tpu.core_type = #tpu.core_type<tc>, window_params = [{transform_indices = @transform_0, window_bounds = array<i64: 1, 1, 256>}, {transform_indices = @transform_1, window_bounds = array<i64: 1, 1, 256>}, {pipeline_mode = #tpu.pipeline_mode<synchronous>, transform_indices = @transform_2, window_bounds = array<i64: 9, 256>}, {pipeline_mode = #tpu.pipeline_mode<synchronous>, transform_indices = @transform_3, window_bounds = array<i64: 1, 256>}, {pipeline_mode = #tpu.pipeline_mode<synchronous>, transform_indices = @transform_4, window_bounds = array<i64: 1, 256>}, {pipeline_mode = #tpu.pipeline_mode<synchronous>, transform_indices = @transform_5, window_bounds = array<i64: 9, 4, 1>}, {pipeline_mode = #tpu.pipeline_mode<synchronous>, transform_indices = @transform_6, window_bounds = array<i64: 9, 4, 4>}, {pipeline_mode = #tpu.pipeline_mode<synchronous>, transform_indices = @transform_7, window_bounds = array<i64: 9, 4, 1>}, {pipeline_mode = #tpu.pipeline_mode<synchronous>, transform_indices = @transform_8, window_bounds = array<i64: 9, 4, 4>}, {pipeline_mode = #tpu.pipeline_mode<synchronous>, transform_indices = @transform_9, window_bounds = array<i64: 9, 256>}, {pipeline_mode = #tpu.pipeline_mode<synchronous>, transform_indices = @transform_10, window_bounds = array<i64: 1, 256>}, {pipeline_mode = #tpu.pipeline_mode<synchronous>, transform_indices = @transform_11, window_bounds = array<i64: 1, 256>}, {pipeline_mode = #tpu.pipeline_mode<synchronous>, transform_indices = @transform_12, window_bounds = array<i64: 9, 8, 4>}, {pipeline_mode = #tpu.pipeline_mode<synchronous>, transform_indices = @transform_13, window_bounds = array<i64: 9, 8, 8>}, {pipeline_mode = #tpu.pipeline_mode<synchronous>, transform_indices = @transform_14, window_bounds = array<i64: 9, 8, 4>}, {pipeline_mode = #tpu.pipeline_mode<synchronous>, transform_indices = @transform_15, window_bounds = array<i64: 9, 8, 8>}, {pipeline_mode = #tpu.pipeline_mode<synchronous>, transform_indices = @transform_16, window_bounds = array<i64: 9, 256>}, {pipeline_mode = #tpu.pipeline_mode<synchronous>, transform_indices = @transform_17, window_bounds = array<i64: 1, 256>}, {pipeline_mode = #tpu.pipeline_mode<synchronous>, transform_indices = @transform_18, window_bounds = array<i64: 9, 16, 16>}, {pipeline_mode = #tpu.pipeline_mode<synchronous>, transform_indices = @transform_19, window_bounds = array<i64: 9, 16, 16>}, {pipeline_mode = #tpu.pipeline_mode<synchronous>, transform_indices = @transform_20, window_bounds = array<i64: 4, 8, 16>}, {pipeline_mode = #tpu.pipeline_mode<synchronous>, transform_indices = @transform_21, window_bounds = array<i64: 4, 256>}, {pipeline_mode = #tpu.pipeline_mode<synchronous>, transform_indices = @transform_22, window_bounds = array<i64: 1, 256>}, {pipeline_mode = #tpu.pipeline_mode<synchronous>, transform_indices = @transform_23, window_bounds = array<i64: 4, 4, 8>}, {pipeline_mode = #tpu.pipeline_mode<synchronous>, transform_indices = @transform_24, window_bounds = array<i64: 4, 256>}, {pipeline_mode = #tpu.pipeline_mode<synchronous>, transform_indices = @transform_25, window_bounds = array<i64: 1, 256>}, {pipeline_mode = #tpu.pipeline_mode<synchronous>, transform_indices = @transform_26, window_bounds = array<i64: 1, 4>}, {pipeline_mode = #tpu.pipeline_mode<synchronous>, transform_indices = @transform_27, window_bounds = array<i64: 1, 1>}, {transform_indices = @transform_28, window_bounds = array<i64: 1, 1, 256>}]} {
    %c0 = arith.constant 0 : index
    %c0_0 = arith.constant 0 : index
    %c0_1 = arith.constant 0 : index
    %0 = vector.load %arg1[%c0, %c0_0, %c0_1] : memref<1x1x256xf32, #tpu.memory_space<vmem>>, vector<1x1x256xf32>
    %1 = vector.shape_cast %0 : vector<1x1x256xf32> to vector<1x256xf32>
    %c0_2 = arith.constant 0 : index
    %c0_3 = arith.constant 0 : index
    %c0_4 = arith.constant 0 : index
    %2 = vector.load %arg2[%c0_2, %c0_3, %c0_4] : memref<1x1x256xf32, #tpu.memory_space<vmem>>, vector<1x1x256xf32>
    %3 = vector.shape_cast %2 : vector<1x1x256xf32> to vector<1x256xf32>
    %c0_5 = arith.constant 0 : index
    %c0_6 = arith.constant 0 : index
    %4 = vector.load %arg3[%c0_5, %c0_6] : memref<9x256xf32, #tpu.memory_space<vmem>>, vector<9x256xf32>
    %c0_7 = arith.constant 0 : index
    %c0_8 = arith.constant 0 : index
    %5 = vector.load %arg4[%c0_7, %c0_8] : memref<1x256xf32, #tpu.memory_space<vmem>>, vector<1x256xf32>
    %c0_9 = arith.constant 0 : index
    %c0_10 = arith.constant 0 : index
    %6 = vector.load %arg5[%c0_9, %c0_10] : memref<1x256xf32, #tpu.memory_space<vmem>>, vector<1x256xf32>
    %cst = arith.constant 0.000000e+00 : f32
    %7 = vector.broadcast %cst : f32 to vector<4x256xf32>
    %c17_i32 = arith.constant 17 : i32
    %8 = tpu.dynamic_rotate %1 by %c17_i32 dim 1 : vector<1x256xf32>, i32 -> vector<1x256xf32>
    %9 = vector.extract_strided_slice %4 {offsets = [0, 0], sizes = [1, 256], strides = [1, 1]} : vector<9x256xf32> to vector<1x256xf32>
    %10 = arith.mulf %8, %9 : vector<1x256xf32>
    %c0_11 = arith.constant 0 : index
    %c0_12 = arith.constant 0 : index
    %c0_13 = arith.constant 0 : index
    %11 = vector.load %arg6[%c0_11, %c0_12, %c0_13] : memref<9x4x1xbf16, #tpu.memory_space<vmem>>, vector<1x4x1xbf16>
    %12 = vector.shape_cast %11 : vector<1x4x1xbf16> to vector<4x1xbf16>
    %13 = arith.extf %12 : vector<4x1xbf16> to vector<4x1xf32>
    %14 = vector.broadcast %13 : vector<4x1xf32> to vector<4x256xf32>
    %15 = vector.broadcast %10 : vector<1x256xf32> to vector<4x256xf32>
    %16 = arith.mulf %14, %15 : vector<4x256xf32>
    %17 = arith.addf %7, %16 : vector<4x256xf32>
    %c16_i32 = arith.constant 16 : i32
    %18 = tpu.dynamic_rotate %1 by %c16_i32 dim 1 : vector<1x256xf32>, i32 -> vector<1x256xf32>
    %19 = vector.extract_strided_slice %4 {offsets = [1, 0], sizes = [1, 256], strides = [1, 1]} : vector<9x256xf32> to vector<1x256xf32>
    %20 = arith.mulf %18, %19 : vector<1x256xf32>
    %c1 = arith.constant 1 : index
    %c0_14 = arith.constant 0 : index
    %c0_15 = arith.constant 0 : index
    %21 = vector.load %arg6[%c1, %c0_14, %c0_15] : memref<9x4x1xbf16, #tpu.memory_space<vmem>>, vector<1x4x1xbf16>
    %22 = vector.shape_cast %21 : vector<1x4x1xbf16> to vector<4x1xbf16>
    %23 = arith.extf %22 : vector<4x1xbf16> to vector<4x1xf32>
    %24 = vector.broadcast %23 : vector<4x1xf32> to vector<4x256xf32>
    %25 = vector.broadcast %20 : vector<1x256xf32> to vector<4x256xf32>
    %26 = arith.mulf %24, %25 : vector<4x256xf32>
    %27 = arith.addf %17, %26 : vector<4x256xf32>
    %c15_i32 = arith.constant 15 : i32
    %28 = tpu.dynamic_rotate %1 by %c15_i32 dim 1 : vector<1x256xf32>, i32 -> vector<1x256xf32>
    %29 = vector.extract_strided_slice %4 {offsets = [2, 0], sizes = [1, 256], strides = [1, 1]} : vector<9x256xf32> to vector<1x256xf32>
    %30 = arith.mulf %28, %29 : vector<1x256xf32>
    %c2 = arith.constant 2 : index
    %c0_16 = arith.constant 0 : index
    %c0_17 = arith.constant 0 : index
    %31 = vector.load %arg6[%c2, %c0_16, %c0_17] : memref<9x4x1xbf16, #tpu.memory_space<vmem>>, vector<1x4x1xbf16>
    %32 = vector.shape_cast %31 : vector<1x4x1xbf16> to vector<4x1xbf16>
    %33 = arith.extf %32 : vector<4x1xbf16> to vector<4x1xf32>
    %34 = vector.broadcast %33 : vector<4x1xf32> to vector<4x256xf32>
    %35 = vector.broadcast %30 : vector<1x256xf32> to vector<4x256xf32>
    %36 = arith.mulf %34, %35 : vector<4x256xf32>
    %37 = arith.addf %27, %36 : vector<4x256xf32>
    %c1_i32 = arith.constant 1 : i32
    %38 = tpu.dynamic_rotate %1 by %c1_i32 dim 1 : vector<1x256xf32>, i32 -> vector<1x256xf32>
    %39 = vector.extract_strided_slice %4 {offsets = [3, 0], sizes = [1, 256], strides = [1, 1]} : vector<9x256xf32> to vector<1x256xf32>
    %40 = arith.mulf %38, %39 : vector<1x256xf32>
    %c3 = arith.constant 3 : index
    %c0_18 = arith.constant 0 : index
    %c0_19 = arith.constant 0 : index
    %41 = vector.load %arg6[%c3, %c0_18, %c0_19] : memref<9x4x1xbf16, #tpu.memory_space<vmem>>, vector<1x4x1xbf16>
    %42 = vector.shape_cast %41 : vector<1x4x1xbf16> to vector<4x1xbf16>
    %43 = arith.extf %42 : vector<4x1xbf16> to vector<4x1xf32>
    %44 = vector.broadcast %43 : vector<4x1xf32> to vector<4x256xf32>
    %45 = vector.broadcast %40 : vector<1x256xf32> to vector<4x256xf32>
    %46 = arith.mulf %44, %45 : vector<4x256xf32>
    %47 = arith.addf %37, %46 : vector<4x256xf32>
    %48 = vector.extract_strided_slice %4 {offsets = [4, 0], sizes = [1, 256], strides = [1, 1]} : vector<9x256xf32> to vector<1x256xf32>
    %49 = arith.mulf %1, %48 : vector<1x256xf32>
    %c4 = arith.constant 4 : index
    %c0_20 = arith.constant 0 : index
    %c0_21 = arith.constant 0 : index
    %50 = vector.load %arg6[%c4, %c0_20, %c0_21] : memref<9x4x1xbf16, #tpu.memory_space<vmem>>, vector<1x4x1xbf16>
    %51 = vector.shape_cast %50 : vector<1x4x1xbf16> to vector<4x1xbf16>
    %52 = arith.extf %51 : vector<4x1xbf16> to vector<4x1xf32>
    %53 = vector.broadcast %52 : vector<4x1xf32> to vector<4x256xf32>
    %54 = vector.broadcast %49 : vector<1x256xf32> to vector<4x256xf32>
    %55 = arith.mulf %53, %54 : vector<4x256xf32>
    %56 = arith.addf %47, %55 : vector<4x256xf32>
    %c255_i32 = arith.constant 255 : i32
    %57 = tpu.dynamic_rotate %1 by %c255_i32 dim 1 : vector<1x256xf32>, i32 -> vector<1x256xf32>
    %58 = vector.extract_strided_slice %4 {offsets = [5, 0], sizes = [1, 256], strides = [1, 1]} : vector<9x256xf32> to vector<1x256xf32>
    %59 = arith.mulf %57, %58 : vector<1x256xf32>
    %c5 = arith.constant 5 : index
    %c0_22 = arith.constant 0 : index
    %c0_23 = arith.constant 0 : index
    %60 = vector.load %arg6[%c5, %c0_22, %c0_23] : memref<9x4x1xbf16, #tpu.memory_space<vmem>>, vector<1x4x1xbf16>
    %61 = vector.shape_cast %60 : vector<1x4x1xbf16> to vector<4x1xbf16>
    %62 = arith.extf %61 : vector<4x1xbf16> to vector<4x1xf32>
    %63 = vector.broadcast %62 : vector<4x1xf32> to vector<4x256xf32>
    %64 = vector.broadcast %59 : vector<1x256xf32> to vector<4x256xf32>
    %65 = arith.mulf %63, %64 : vector<4x256xf32>
    %66 = arith.addf %56, %65 : vector<4x256xf32>
    %c241_i32 = arith.constant 241 : i32
    %67 = tpu.dynamic_rotate %1 by %c241_i32 dim 1 : vector<1x256xf32>, i32 -> vector<1x256xf32>
    %68 = vector.extract_strided_slice %4 {offsets = [6, 0], sizes = [1, 256], strides = [1, 1]} : vector<9x256xf32> to vector<1x256xf32>
    %69 = arith.mulf %67, %68 : vector<1x256xf32>
    %c6 = arith.constant 6 : index
    %c0_24 = arith.constant 0 : index
    %c0_25 = arith.constant 0 : index
    %70 = vector.load %arg6[%c6, %c0_24, %c0_25] : memref<9x4x1xbf16, #tpu.memory_space<vmem>>, vector<1x4x1xbf16>
    %71 = vector.shape_cast %70 : vector<1x4x1xbf16> to vector<4x1xbf16>
    %72 = arith.extf %71 : vector<4x1xbf16> to vector<4x1xf32>
    %73 = vector.broadcast %72 : vector<4x1xf32> to vector<4x256xf32>
    %74 = vector.broadcast %69 : vector<1x256xf32> to vector<4x256xf32>
    %75 = arith.mulf %73, %74 : vector<4x256xf32>
    %76 = arith.addf %66, %75 : vector<4x256xf32>
    %c240_i32 = arith.constant 240 : i32
    %77 = tpu.dynamic_rotate %1 by %c240_i32 dim 1 : vector<1x256xf32>, i32 -> vector<1x256xf32>
    %78 = vector.extract_strided_slice %4 {offsets = [7, 0], sizes = [1, 256], strides = [1, 1]} : vector<9x256xf32> to vector<1x256xf32>
    %79 = arith.mulf %77, %78 : vector<1x256xf32>
    %c7 = arith.constant 7 : index
    %c0_26 = arith.constant 0 : index
    %c0_27 = arith.constant 0 : index
    %80 = vector.load %arg6[%c7, %c0_26, %c0_27] : memref<9x4x1xbf16, #tpu.memory_space<vmem>>, vector<1x4x1xbf16>
    %81 = vector.shape_cast %80 : vector<1x4x1xbf16> to vector<4x1xbf16>
    %82 = arith.extf %81 : vector<4x1xbf16> to vector<4x1xf32>
    %83 = vector.broadcast %82 : vector<4x1xf32> to vector<4x256xf32>
    %84 = vector.broadcast %79 : vector<1x256xf32> to vector<4x256xf32>
    %85 = arith.mulf %83, %84 : vector<4x256xf32>
    %86 = arith.addf %76, %85 : vector<4x256xf32>
    %c239_i32 = arith.constant 239 : i32
    %87 = tpu.dynamic_rotate %1 by %c239_i32 dim 1 : vector<1x256xf32>, i32 -> vector<1x256xf32>
    %88 = vector.extract_strided_slice %4 {offsets = [8, 0], sizes = [1, 256], strides = [1, 1]} : vector<9x256xf32> to vector<1x256xf32>
    %89 = arith.mulf %87, %88 : vector<1x256xf32>
    %c8 = arith.constant 8 : index
    %c0_28 = arith.constant 0 : index
    %c0_29 = arith.constant 0 : index
    %90 = vector.load %arg6[%c8, %c0_28, %c0_29] : memref<9x4x1xbf16, #tpu.memory_space<vmem>>, vector<1x4x1xbf16>
    %91 = vector.shape_cast %90 : vector<1x4x1xbf16> to vector<4x1xbf16>
    %92 = arith.extf %91 : vector<4x1xbf16> to vector<4x1xf32>
    %93 = vector.broadcast %92 : vector<4x1xf32> to vector<4x256xf32>
    %94 = vector.broadcast %89 : vector<1x256xf32> to vector<4x256xf32>
    %95 = arith.mulf %93, %94 : vector<4x256xf32>
    %96 = arith.addf %86, %95 : vector<4x256xf32>
    %cst_30 = arith.constant dense<0.000000e+00> : vector<4xf32>
    %97 = vector.multi_reduction <add>, %96, %cst_30 [1] : vector<4x256xf32> to vector<4xf32>
    %98 = vector.shape_cast %97 : vector<4xf32> to vector<4x1xf32>
    %cst_31 = arith.constant 3.906250e-03 : f32
    %99 = vector.broadcast %cst_31 : f32 to vector<4x1xf32>
    %100 = arith.mulf %98, %99 : vector<4x1xf32>
    %101 = arith.mulf %96, %96 : vector<4x256xf32>
    %cst_32 = arith.constant dense<0.000000e+00> : vector<4xf32>
    %102 = vector.multi_reduction <add>, %101, %cst_32 [1] : vector<4x256xf32> to vector<4xf32>
    %103 = vector.shape_cast %102 : vector<4xf32> to vector<4x1xf32>
    %cst_33 = arith.constant 3.906250e-03 : f32
    %104 = vector.broadcast %cst_33 : f32 to vector<4x1xf32>
    %105 = arith.mulf %103, %104 : vector<4x1xf32>
    %106 = arith.mulf %100, %100 : vector<4x1xf32>
    %107 = arith.subf %105, %106 : vector<4x1xf32>
    %cst_34 = arith.constant 0.000000e+00 : f32
    %108 = vector.broadcast %cst_34 : f32 to vector<4x1xf32>
    %109 = arith.maximumf %107, %108 : vector<4x1xf32>
    %cst_35 = arith.constant 9.99999974E-6 : f32
    %110 = vector.broadcast %cst_35 : f32 to vector<4x1xf32>
    %111 = arith.addf %109, %110 : vector<4x1xf32>
    %112 = math.rsqrt %111 : vector<4x1xf32>
    %113 = vector.broadcast %100 : vector<4x1xf32> to vector<4x256xf32>
    %114 = arith.subf %96, %113 : vector<4x256xf32>
    %115 = vector.broadcast %112 : vector<4x1xf32> to vector<4x256xf32>
    %116 = arith.mulf %114, %115 : vector<4x256xf32>
    %117 = vector.broadcast %5 : vector<1x256xf32> to vector<4x256xf32>
    %118 = arith.mulf %116, %117 : vector<4x256xf32>
    %cst_36 = arith.constant 0.000000e+00 : f32
    %119 = vector.broadcast %cst_36 : f32 to vector<4x256xf32>
    %120 = arith.cmpf oge, %118, %119 : vector<4x256xf32>
    %cst_37 = arith.constant 2.000000e-01 : f32
    %121 = vector.broadcast %cst_37 : f32 to vector<4x256xf32>
    %122 = arith.mulf %121, %118 : vector<4x256xf32>
    %123 = arith.select %120, %118, %122 : vector<4x256xi1>, vector<4x256xf32>
    %cst_38 = arith.constant 0.000000e+00 : f32
    %124 = vector.broadcast %cst_38 : f32 to vector<4x256xf32>
    %c17_i32_39 = arith.constant 17 : i32
    %125 = tpu.dynamic_rotate %123 by %c17_i32_39 dim 1 : vector<4x256xf32>, i32 -> vector<4x256xf32>
    %126 = vector.extract_strided_slice %4 {offsets = [0, 0], sizes = [1, 256], strides = [1, 1]} : vector<9x256xf32> to vector<1x256xf32>
    %127 = vector.broadcast %126 : vector<1x256xf32> to vector<4x256xf32>
    %128 = arith.mulf %125, %127 : vector<4x256xf32>
    %c0_40 = arith.constant 0 : index
    %c0_41 = arith.constant 0 : index
    %c0_42 = arith.constant 0 : index
    %129 = vector.load %arg7[%c0_40, %c0_41, %c0_42] : memref<9x4x4xbf16, #tpu.memory_space<vmem>>, vector<1x4x4xbf16>
    %130 = vector.shape_cast %129 : vector<1x4x4xbf16> to vector<4x4xbf16>
    %131 = arith.truncf %128 : vector<4x256xf32> to vector<4x256xbf16>
    %cst_43 = arith.constant dense<0.000000e+00> : vector<4x256xf32>
    %132 = tpu.matmul %130, %131, %cst_43 {dimension_numbers = #tpu.dot_dimension_numbers<[1], [0], [0], [1], [0, 0, 1, 1], [], []>} : vector<4x4xbf16>, vector<4x256xbf16>, vector<4x256xf32> -> vector<4x256xf32>
    %133 = arith.addf %124, %132 : vector<4x256xf32>
    %c16_i32_44 = arith.constant 16 : i32
    %134 = tpu.dynamic_rotate %123 by %c16_i32_44 dim 1 : vector<4x256xf32>, i32 -> vector<4x256xf32>
    %135 = vector.extract_strided_slice %4 {offsets = [1, 0], sizes = [1, 256], strides = [1, 1]} : vector<9x256xf32> to vector<1x256xf32>
    %136 = vector.broadcast %135 : vector<1x256xf32> to vector<4x256xf32>
    %137 = arith.mulf %134, %136 : vector<4x256xf32>
    %c1_45 = arith.constant 1 : index
    %c0_46 = arith.constant 0 : index
    %c0_47 = arith.constant 0 : index
    %138 = vector.load %arg7[%c1_45, %c0_46, %c0_47] : memref<9x4x4xbf16, #tpu.memory_space<vmem>>, vector<1x4x4xbf16>
    %139 = vector.shape_cast %138 : vector<1x4x4xbf16> to vector<4x4xbf16>
    %140 = arith.truncf %137 : vector<4x256xf32> to vector<4x256xbf16>
    %cst_48 = arith.constant dense<0.000000e+00> : vector<4x256xf32>
    %141 = tpu.matmul %139, %140, %cst_48 {dimension_numbers = #tpu.dot_dimension_numbers<[1], [0], [0], [1], [0, 0, 1, 1], [], []>} : vector<4x4xbf16>, vector<4x256xbf16>, vector<4x256xf32> -> vector<4x256xf32>
    %142 = arith.addf %133, %141 : vector<4x256xf32>
    %c15_i32_49 = arith.constant 15 : i32
    %143 = tpu.dynamic_rotate %123 by %c15_i32_49 dim 1 : vector<4x256xf32>, i32 -> vector<4x256xf32>
    %144 = vector.extract_strided_slice %4 {offsets = [2, 0], sizes = [1, 256], strides = [1, 1]} : vector<9x256xf32> to vector<1x256xf32>
    %145 = vector.broadcast %144 : vector<1x256xf32> to vector<4x256xf32>
    %146 = arith.mulf %143, %145 : vector<4x256xf32>
    %c2_50 = arith.constant 2 : index
    %c0_51 = arith.constant 0 : index
    %c0_52 = arith.constant 0 : index
    %147 = vector.load %arg7[%c2_50, %c0_51, %c0_52] : memref<9x4x4xbf16, #tpu.memory_space<vmem>>, vector<1x4x4xbf16>
    %148 = vector.shape_cast %147 : vector<1x4x4xbf16> to vector<4x4xbf16>
    %149 = arith.truncf %146 : vector<4x256xf32> to vector<4x256xbf16>
    %cst_53 = arith.constant dense<0.000000e+00> : vector<4x256xf32>
    %150 = tpu.matmul %148, %149, %cst_53 {dimension_numbers = #tpu.dot_dimension_numbers<[1], [0], [0], [1], [0, 0, 1, 1], [], []>} : vector<4x4xbf16>, vector<4x256xbf16>, vector<4x256xf32> -> vector<4x256xf32>
    %151 = arith.addf %142, %150 : vector<4x256xf32>
    %c1_i32_54 = arith.constant 1 : i32
    %152 = tpu.dynamic_rotate %123 by %c1_i32_54 dim 1 : vector<4x256xf32>, i32 -> vector<4x256xf32>
    %153 = vector.extract_strided_slice %4 {offsets = [3, 0], sizes = [1, 256], strides = [1, 1]} : vector<9x256xf32> to vector<1x256xf32>
    %154 = vector.broadcast %153 : vector<1x256xf32> to vector<4x256xf32>
    %155 = arith.mulf %152, %154 : vector<4x256xf32>
    %c3_55 = arith.constant 3 : index
    %c0_56 = arith.constant 0 : index
    %c0_57 = arith.constant 0 : index
    %156 = vector.load %arg7[%c3_55, %c0_56, %c0_57] : memref<9x4x4xbf16, #tpu.memory_space<vmem>>, vector<1x4x4xbf16>
    %157 = vector.shape_cast %156 : vector<1x4x4xbf16> to vector<4x4xbf16>
    %158 = arith.truncf %155 : vector<4x256xf32> to vector<4x256xbf16>
    %cst_58 = arith.constant dense<0.000000e+00> : vector<4x256xf32>
    %159 = tpu.matmul %157, %158, %cst_58 {dimension_numbers = #tpu.dot_dimension_numbers<[1], [0], [0], [1], [0, 0, 1, 1], [], []>} : vector<4x4xbf16>, vector<4x256xbf16>, vector<4x256xf32> -> vector<4x256xf32>
    %160 = arith.addf %151, %159 : vector<4x256xf32>
    %161 = vector.extract_strided_slice %4 {offsets = [4, 0], sizes = [1, 256], strides = [1, 1]} : vector<9x256xf32> to vector<1x256xf32>
    %162 = vector.broadcast %161 : vector<1x256xf32> to vector<4x256xf32>
    %163 = arith.mulf %123, %162 : vector<4x256xf32>
    %c4_59 = arith.constant 4 : index
    %c0_60 = arith.constant 0 : index
    %c0_61 = arith.constant 0 : index
    %164 = vector.load %arg7[%c4_59, %c0_60, %c0_61] : memref<9x4x4xbf16, #tpu.memory_space<vmem>>, vector<1x4x4xbf16>
    %165 = vector.shape_cast %164 : vector<1x4x4xbf16> to vector<4x4xbf16>
    %166 = arith.truncf %163 : vector<4x256xf32> to vector<4x256xbf16>
    %cst_62 = arith.constant dense<0.000000e+00> : vector<4x256xf32>
    %167 = tpu.matmul %165, %166, %cst_62 {dimension_numbers = #tpu.dot_dimension_numbers<[1], [0], [0], [1], [0, 0, 1, 1], [], []>} : vector<4x4xbf16>, vector<4x256xbf16>, vector<4x256xf32> -> vector<4x256xf32>
    %168 = arith.addf %160, %167 : vector<4x256xf32>
    %c255_i32_63 = arith.constant 255 : i32
    %169 = tpu.dynamic_rotate %123 by %c255_i32_63 dim 1 : vector<4x256xf32>, i32 -> vector<4x256xf32>
    %170 = vector.extract_strided_slice %4 {offsets = [5, 0], sizes = [1, 256], strides = [1, 1]} : vector<9x256xf32> to vector<1x256xf32>
    %171 = vector.broadcast %170 : vector<1x256xf32> to vector<4x256xf32>
    %172 = arith.mulf %169, %171 : vector<4x256xf32>
    %c5_64 = arith.constant 5 : index
    %c0_65 = arith.constant 0 : index
    %c0_66 = arith.constant 0 : index
    %173 = vector.load %arg7[%c5_64, %c0_65, %c0_66] : memref<9x4x4xbf16, #tpu.memory_space<vmem>>, vector<1x4x4xbf16>
    %174 = vector.shape_cast %173 : vector<1x4x4xbf16> to vector<4x4xbf16>
    %175 = arith.truncf %172 : vector<4x256xf32> to vector<4x256xbf16>
    %cst_67 = arith.constant dense<0.000000e+00> : vector<4x256xf32>
    %176 = tpu.matmul %174, %175, %cst_67 {dimension_numbers = #tpu.dot_dimension_numbers<[1], [0], [0], [1], [0, 0, 1, 1], [], []>} : vector<4x4xbf16>, vector<4x256xbf16>, vector<4x256xf32> -> vector<4x256xf32>
    %177 = arith.addf %168, %176 : vector<4x256xf32>
    %c241_i32_68 = arith.constant 241 : i32
    %178 = tpu.dynamic_rotate %123 by %c241_i32_68 dim 1 : vector<4x256xf32>, i32 -> vector<4x256xf32>
    %179 = vector.extract_strided_slice %4 {offsets = [6, 0], sizes = [1, 256], strides = [1, 1]} : vector<9x256xf32> to vector<1x256xf32>
    %180 = vector.broadcast %179 : vector<1x256xf32> to vector<4x256xf32>
    %181 = arith.mulf %178, %180 : vector<4x256xf32>
    %c6_69 = arith.constant 6 : index
    %c0_70 = arith.constant 0 : index
    %c0_71 = arith.constant 0 : index
    %182 = vector.load %arg7[%c6_69, %c0_70, %c0_71] : memref<9x4x4xbf16, #tpu.memory_space<vmem>>, vector<1x4x4xbf16>
    %183 = vector.shape_cast %182 : vector<1x4x4xbf16> to vector<4x4xbf16>
    %184 = arith.truncf %181 : vector<4x256xf32> to vector<4x256xbf16>
    %cst_72 = arith.constant dense<0.000000e+00> : vector<4x256xf32>
    %185 = tpu.matmul %183, %184, %cst_72 {dimension_numbers = #tpu.dot_dimension_numbers<[1], [0], [0], [1], [0, 0, 1, 1], [], []>} : vector<4x4xbf16>, vector<4x256xbf16>, vector<4x256xf32> -> vector<4x256xf32>
    %186 = arith.addf %177, %185 : vector<4x256xf32>
    %c240_i32_73 = arith.constant 240 : i32
    %187 = tpu.dynamic_rotate %123 by %c240_i32_73 dim 1 : vector<4x256xf32>, i32 -> vector<4x256xf32>
    %188 = vector.extract_strided_slice %4 {offsets = [7, 0], sizes = [1, 256], strides = [1, 1]} : vector<9x256xf32> to vector<1x256xf32>
    %189 = vector.broadcast %188 : vector<1x256xf32> to vector<4x256xf32>
    %190 = arith.mulf %187, %189 : vector<4x256xf32>
    %c7_74 = arith.constant 7 : index
    %c0_75 = arith.constant 0 : index
    %c0_76 = arith.constant 0 : index
    %191 = vector.load %arg7[%c7_74, %c0_75, %c0_76] : memref<9x4x4xbf16, #tpu.memory_space<vmem>>, vector<1x4x4xbf16>
    %192 = vector.shape_cast %191 : vector<1x4x4xbf16> to vector<4x4xbf16>
    %193 = arith.truncf %190 : vector<4x256xf32> to vector<4x256xbf16>
    %cst_77 = arith.constant dense<0.000000e+00> : vector<4x256xf32>
    %194 = tpu.matmul %192, %193, %cst_77 {dimension_numbers = #tpu.dot_dimension_numbers<[1], [0], [0], [1], [0, 0, 1, 1], [], []>} : vector<4x4xbf16>, vector<4x256xbf16>, vector<4x256xf32> -> vector<4x256xf32>
    %195 = arith.addf %186, %194 : vector<4x256xf32>
    %c239_i32_78 = arith.constant 239 : i32
    %196 = tpu.dynamic_rotate %123 by %c239_i32_78 dim 1 : vector<4x256xf32>, i32 -> vector<4x256xf32>
    %197 = vector.extract_strided_slice %4 {offsets = [8, 0], sizes = [1, 256], strides = [1, 1]} : vector<9x256xf32> to vector<1x256xf32>
    %198 = vector.broadcast %197 : vector<1x256xf32> to vector<4x256xf32>
    %199 = arith.mulf %196, %198 : vector<4x256xf32>
    %c8_79 = arith.constant 8 : index
    %c0_80 = arith.constant 0 : index
    %c0_81 = arith.constant 0 : index
    %200 = vector.load %arg7[%c8_79, %c0_80, %c0_81] : memref<9x4x4xbf16, #tpu.memory_space<vmem>>, vector<1x4x4xbf16>
    %201 = vector.shape_cast %200 : vector<1x4x4xbf16> to vector<4x4xbf16>
    %202 = arith.truncf %199 : vector<4x256xf32> to vector<4x256xbf16>
    %cst_82 = arith.constant dense<0.000000e+00> : vector<4x256xf32>
    %203 = tpu.matmul %201, %202, %cst_82 {dimension_numbers = #tpu.dot_dimension_numbers<[1], [0], [0], [1], [0, 0, 1, 1], [], []>} : vector<4x4xbf16>, vector<4x256xbf16>, vector<4x256xf32> -> vector<4x256xf32>
    %204 = arith.addf %195, %203 : vector<4x256xf32>
    %cst_83 = arith.constant dense<0.000000e+00> : vector<4xf32>
    %205 = vector.multi_reduction <add>, %204, %cst_83 [1] : vector<4x256xf32> to vector<4xf32>
    %206 = vector.shape_cast %205 : vector<4xf32> to vector<4x1xf32>
    %cst_84 = arith.constant 3.906250e-03 : f32
    %207 = vector.broadcast %cst_84 : f32 to vector<4x1xf32>
    %208 = arith.mulf %206, %207 : vector<4x1xf32>
    %209 = arith.mulf %204, %204 : vector<4x256xf32>
    %cst_85 = arith.constant dense<0.000000e+00> : vector<4xf32>
    %210 = vector.multi_reduction <add>, %209, %cst_85 [1] : vector<4x256xf32> to vector<4xf32>
    %211 = vector.shape_cast %210 : vector<4xf32> to vector<4x1xf32>
    %cst_86 = arith.constant 3.906250e-03 : f32
    %212 = vector.broadcast %cst_86 : f32 to vector<4x1xf32>
    %213 = arith.mulf %211, %212 : vector<4x1xf32>
    %214 = arith.mulf %208, %208 : vector<4x1xf32>
    %215 = arith.subf %213, %214 : vector<4x1xf32>
    %cst_87 = arith.constant 0.000000e+00 : f32
    %216 = vector.broadcast %cst_87 : f32 to vector<4x1xf32>
    %217 = arith.maximumf %215, %216 : vector<4x1xf32>
    %cst_88 = arith.constant 9.99999974E-6 : f32
    %218 = vector.broadcast %cst_88 : f32 to vector<4x1xf32>
    %219 = arith.addf %217, %218 : vector<4x1xf32>
    %220 = math.rsqrt %219 : vector<4x1xf32>
    %221 = vector.broadcast %208 : vector<4x1xf32> to vector<4x256xf32>
    %222 = arith.subf %204, %221 : vector<4x256xf32>
    %223 = vector.broadcast %220 : vector<4x1xf32> to vector<4x256xf32>
    %224 = arith.mulf %222, %223 : vector<4x256xf32>
    %225 = vector.broadcast %5 : vector<1x256xf32> to vector<4x256xf32>
    %226 = arith.mulf %224, %225 : vector<4x256xf32>
    %cst_89 = arith.constant 0.000000e+00 : f32
    %227 = vector.broadcast %cst_89 : f32 to vector<4x256xf32>
    %228 = arith.cmpf oge, %226, %227 : vector<4x256xf32>
    %cst_90 = arith.constant 2.000000e-01 : f32
    %229 = vector.broadcast %cst_90 : f32 to vector<4x256xf32>
    %230 = arith.mulf %229, %226 : vector<4x256xf32>
    %231 = arith.select %228, %226, %230 : vector<4x256xi1>, vector<4x256xf32>
    %c255_i32_91 = arith.constant 255 : i32
    %232 = tpu.dynamic_rotate %231 by %c255_i32_91 dim 1 : vector<4x256xf32>, i32 -> vector<4x256xf32>
    %233 = arith.addf %231, %232 : vector<4x256xf32>
    %c240_i32_92 = arith.constant 240 : i32
    %234 = tpu.dynamic_rotate %233 by %c240_i32_92 dim 1 : vector<4x256xf32>, i32 -> vector<4x256xf32>
    %235 = arith.addf %233, %234 : vector<4x256xf32>
    %cst_93 = arith.constant 2.500000e-01 : f32
    %236 = vector.broadcast %cst_93 : f32 to vector<4x256xf32>
    %237 = arith.mulf %236, %235 : vector<4x256xf32>
    %238 = vector.broadcast %6 : vector<1x256xf32> to vector<4x256xf32>
    %239 = arith.mulf %237, %238 : vector<4x256xf32>
    %cst_94 = arith.constant 0.000000e+00 : f32
    %240 = vector.broadcast %cst_94 : f32 to vector<4x256xf32>
    %c17_i32_95 = arith.constant 17 : i32
    %241 = tpu.dynamic_rotate %3 by %c17_i32_95 dim 1 : vector<1x256xf32>, i32 -> vector<1x256xf32>
    %242 = vector.extract_strided_slice %4 {offsets = [0, 0], sizes = [1, 256], strides = [1, 1]} : vector<9x256xf32> to vector<1x256xf32>
    %243 = arith.mulf %241, %242 : vector<1x256xf32>
    %c0_96 = arith.constant 0 : index
    %c0_97 = arith.constant 0 : index
    %c0_98 = arith.constant 0 : index
    %244 = vector.load %arg8[%c0_96, %c0_97, %c0_98] : memref<9x4x1xbf16, #tpu.memory_space<vmem>>, vector<1x4x1xbf16>
    %245 = vector.shape_cast %244 : vector<1x4x1xbf16> to vector<4x1xbf16>
    %246 = arith.extf %245 : vector<4x1xbf16> to vector<4x1xf32>
    %247 = vector.broadcast %246 : vector<4x1xf32> to vector<4x256xf32>
    %248 = vector.broadcast %243 : vector<1x256xf32> to vector<4x256xf32>
    %249 = arith.mulf %247, %248 : vector<4x256xf32>
    %250 = arith.addf %240, %249 : vector<4x256xf32>
    %c16_i32_99 = arith.constant 16 : i32
    %251 = tpu.dynamic_rotate %3 by %c16_i32_99 dim 1 : vector<1x256xf32>, i32 -> vector<1x256xf32>
    %252 = vector.extract_strided_slice %4 {offsets = [1, 0], sizes = [1, 256], strides = [1, 1]} : vector<9x256xf32> to vector<1x256xf32>
    %253 = arith.mulf %251, %252 : vector<1x256xf32>
    %c1_100 = arith.constant 1 : index
    %c0_101 = arith.constant 0 : index
    %c0_102 = arith.constant 0 : index
    %254 = vector.load %arg8[%c1_100, %c0_101, %c0_102] : memref<9x4x1xbf16, #tpu.memory_space<vmem>>, vector<1x4x1xbf16>
    %255 = vector.shape_cast %254 : vector<1x4x1xbf16> to vector<4x1xbf16>
    %256 = arith.extf %255 : vector<4x1xbf16> to vector<4x1xf32>
    %257 = vector.broadcast %256 : vector<4x1xf32> to vector<4x256xf32>
    %258 = vector.broadcast %253 : vector<1x256xf32> to vector<4x256xf32>
    %259 = arith.mulf %257, %258 : vector<4x256xf32>
    %260 = arith.addf %250, %259 : vector<4x256xf32>
    %c15_i32_103 = arith.constant 15 : i32
    %261 = tpu.dynamic_rotate %3 by %c15_i32_103 dim 1 : vector<1x256xf32>, i32 -> vector<1x256xf32>
    %262 = vector.extract_strided_slice %4 {offsets = [2, 0], sizes = [1, 256], strides = [1, 1]} : vector<9x256xf32> to vector<1x256xf32>
    %263 = arith.mulf %261, %262 : vector<1x256xf32>
    %c2_104 = arith.constant 2 : index
    %c0_105 = arith.constant 0 : index
    %c0_106 = arith.constant 0 : index
    %264 = vector.load %arg8[%c2_104, %c0_105, %c0_106] : memref<9x4x1xbf16, #tpu.memory_space<vmem>>, vector<1x4x1xbf16>
    %265 = vector.shape_cast %264 : vector<1x4x1xbf16> to vector<4x1xbf16>
    %266 = arith.extf %265 : vector<4x1xbf16> to vector<4x1xf32>
    %267 = vector.broadcast %266 : vector<4x1xf32> to vector<4x256xf32>
    %268 = vector.broadcast %263 : vector<1x256xf32> to vector<4x256xf32>
    %269 = arith.mulf %267, %268 : vector<4x256xf32>
    %270 = arith.addf %260, %269 : vector<4x256xf32>
    %c1_i32_107 = arith.constant 1 : i32
    %271 = tpu.dynamic_rotate %3 by %c1_i32_107 dim 1 : vector<1x256xf32>, i32 -> vector<1x256xf32>
    %272 = vector.extract_strided_slice %4 {offsets = [3, 0], sizes = [1, 256], strides = [1, 1]} : vector<9x256xf32> to vector<1x256xf32>
    %273 = arith.mulf %271, %272 : vector<1x256xf32>
    %c3_108 = arith.constant 3 : index
    %c0_109 = arith.constant 0 : index
    %c0_110 = arith.constant 0 : index
    %274 = vector.load %arg8[%c3_108, %c0_109, %c0_110] : memref<9x4x1xbf16, #tpu.memory_space<vmem>>, vector<1x4x1xbf16>
    %275 = vector.shape_cast %274 : vector<1x4x1xbf16> to vector<4x1xbf16>
    %276 = arith.extf %275 : vector<4x1xbf16> to vector<4x1xf32>
    %277 = vector.broadcast %276 : vector<4x1xf32> to vector<4x256xf32>
    %278 = vector.broadcast %273 : vector<1x256xf32> to vector<4x256xf32>
    %279 = arith.mulf %277, %278 : vector<4x256xf32>
    %280 = arith.addf %270, %279 : vector<4x256xf32>
    %281 = vector.extract_strided_slice %4 {offsets = [4, 0], sizes = [1, 256], strides = [1, 1]} : vector<9x256xf32> to vector<1x256xf32>
    %282 = arith.mulf %3, %281 : vector<1x256xf32>
    %c4_111 = arith.constant 4 : index
    %c0_112 = arith.constant 0 : index
    %c0_113 = arith.constant 0 : index
    %283 = vector.load %arg8[%c4_111, %c0_112, %c0_113] : memref<9x4x1xbf16, #tpu.memory_space<vmem>>, vector<1x4x1xbf16>
    %284 = vector.shape_cast %283 : vector<1x4x1xbf16> to vector<4x1xbf16>
    %285 = arith.extf %284 : vector<4x1xbf16> to vector<4x1xf32>
    %286 = vector.broadcast %285 : vector<4x1xf32> to vector<4x256xf32>
    %287 = vector.broadcast %282 : vector<1x256xf32> to vector<4x256xf32>
    %288 = arith.mulf %286, %287 : vector<4x256xf32>
    %289 = arith.addf %280, %288 : vector<4x256xf32>
    %c255_i32_114 = arith.constant 255 : i32
    %290 = tpu.dynamic_rotate %3 by %c255_i32_114 dim 1 : vector<1x256xf32>, i32 -> vector<1x256xf32>
    %291 = vector.extract_strided_slice %4 {offsets = [5, 0], sizes = [1, 256], strides = [1, 1]} : vector<9x256xf32> to vector<1x256xf32>
    %292 = arith.mulf %290, %291 : vector<1x256xf32>
    %c5_115 = arith.constant 5 : index
    %c0_116 = arith.constant 0 : index
    %c0_117 = arith.constant 0 : index
    %293 = vector.load %arg8[%c5_115, %c0_116, %c0_117] : memref<9x4x1xbf16, #tpu.memory_space<vmem>>, vector<1x4x1xbf16>
    %294 = vector.shape_cast %293 : vector<1x4x1xbf16> to vector<4x1xbf16>
    %295 = arith.extf %294 : vector<4x1xbf16> to vector<4x1xf32>
    %296 = vector.broadcast %295 : vector<4x1xf32> to vector<4x256xf32>
    %297 = vector.broadcast %292 : vector<1x256xf32> to vector<4x256xf32>
    %298 = arith.mulf %296, %297 : vector<4x256xf32>
    %299 = arith.addf %289, %298 : vector<4x256xf32>
    %c241_i32_118 = arith.constant 241 : i32
    %300 = tpu.dynamic_rotate %3 by %c241_i32_118 dim 1 : vector<1x256xf32>, i32 -> vector<1x256xf32>
    %301 = vector.extract_strided_slice %4 {offsets = [6, 0], sizes = [1, 256], strides = [1, 1]} : vector<9x256xf32> to vector<1x256xf32>
    %302 = arith.mulf %300, %301 : vector<1x256xf32>
    %c6_119 = arith.constant 6 : index
    %c0_120 = arith.constant 0 : index
    %c0_121 = arith.constant 0 : index
    %303 = vector.load %arg8[%c6_119, %c0_120, %c0_121] : memref<9x4x1xbf16, #tpu.memory_space<vmem>>, vector<1x4x1xbf16>
    %304 = vector.shape_cast %303 : vector<1x4x1xbf16> to vector<4x1xbf16>
    %305 = arith.extf %304 : vector<4x1xbf16> to vector<4x1xf32>
    %306 = vector.broadcast %305 : vector<4x1xf32> to vector<4x256xf32>
    %307 = vector.broadcast %302 : vector<1x256xf32> to vector<4x256xf32>
    %308 = arith.mulf %306, %307 : vector<4x256xf32>
    %309 = arith.addf %299, %308 : vector<4x256xf32>
    %c240_i32_122 = arith.constant 240 : i32
    %310 = tpu.dynamic_rotate %3 by %c240_i32_122 dim 1 : vector<1x256xf32>, i32 -> vector<1x256xf32>
    %311 = vector.extract_strided_slice %4 {offsets = [7, 0], sizes = [1, 256], strides = [1, 1]} : vector<9x256xf32> to vector<1x256xf32>
    %312 = arith.mulf %310, %311 : vector<1x256xf32>
    %c7_123 = arith.constant 7 : index
    %c0_124 = arith.constant 0 : index
    %c0_125 = arith.constant 0 : index
    %313 = vector.load %arg8[%c7_123, %c0_124, %c0_125] : memref<9x4x1xbf16, #tpu.memory_space<vmem>>, vector<1x4x1xbf16>
    %314 = vector.shape_cast %313 : vector<1x4x1xbf16> to vector<4x1xbf16>
    %315 = arith.extf %314 : vector<4x1xbf16> to vector<4x1xf32>
    %316 = vector.broadcast %315 : vector<4x1xf32> to vector<4x256xf32>
    %317 = vector.broadcast %312 : vector<1x256xf32> to vector<4x256xf32>
    %318 = arith.mulf %316, %317 : vector<4x256xf32>
    %319 = arith.addf %309, %318 : vector<4x256xf32>
    %c239_i32_126 = arith.constant 239 : i32
    %320 = tpu.dynamic_rotate %3 by %c239_i32_126 dim 1 : vector<1x256xf32>, i32 -> vector<1x256xf32>
    %321 = vector.extract_strided_slice %4 {offsets = [8, 0], sizes = [1, 256], strides = [1, 1]} : vector<9x256xf32> to vector<1x256xf32>
    %322 = arith.mulf %320, %321 : vector<1x256xf32>
    %c8_127 = arith.constant 8 : index
    %c0_128 = arith.constant 0 : index
    %c0_129 = arith.constant 0 : index
    %323 = vector.load %arg8[%c8_127, %c0_128, %c0_129] : memref<9x4x1xbf16, #tpu.memory_space<vmem>>, vector<1x4x1xbf16>
    %324 = vector.shape_cast %323 : vector<1x4x1xbf16> to vector<4x1xbf16>
    %325 = arith.extf %324 : vector<4x1xbf16> to vector<4x1xf32>
    %326 = vector.broadcast %325 : vector<4x1xf32> to vector<4x256xf32>
    %327 = vector.broadcast %322 : vector<1x256xf32> to vector<4x256xf32>
    %328 = arith.mulf %326, %327 : vector<4x256xf32>
    %329 = arith.addf %319, %328 : vector<4x256xf32>
    %cst_130 = arith.constant dense<0.000000e+00> : vector<4xf32>
    %330 = vector.multi_reduction <add>, %329, %cst_130 [1] : vector<4x256xf32> to vector<4xf32>
    %331 = vector.shape_cast %330 : vector<4xf32> to vector<4x1xf32>
    %cst_131 = arith.constant 3.906250e-03 : f32
    %332 = vector.broadcast %cst_131 : f32 to vector<4x1xf32>
    %333 = arith.mulf %331, %332 : vector<4x1xf32>
    %334 = arith.mulf %329, %329 : vector<4x256xf32>
    %cst_132 = arith.constant dense<0.000000e+00> : vector<4xf32>
    %335 = vector.multi_reduction <add>, %334, %cst_132 [1] : vector<4x256xf32> to vector<4xf32>
    %336 = vector.shape_cast %335 : vector<4xf32> to vector<4x1xf32>
    %cst_133 = arith.constant 3.906250e-03 : f32
    %337 = vector.broadcast %cst_133 : f32 to vector<4x1xf32>
    %338 = arith.mulf %336, %337 : vector<4x1xf32>
    %339 = arith.mulf %333, %333 : vector<4x1xf32>
    %340 = arith.subf %338, %339 : vector<4x1xf32>
    %cst_134 = arith.constant 0.000000e+00 : f32
    %341 = vector.broadcast %cst_134 : f32 to vector<4x1xf32>
    %342 = arith.maximumf %340, %341 : vector<4x1xf32>
    %cst_135 = arith.constant 9.99999974E-6 : f32
    %343 = vector.broadcast %cst_135 : f32 to vector<4x1xf32>
    %344 = arith.addf %342, %343 : vector<4x1xf32>
    %345 = math.rsqrt %344 : vector<4x1xf32>
    %346 = vector.broadcast %333 : vector<4x1xf32> to vector<4x256xf32>
    %347 = arith.subf %329, %346 : vector<4x256xf32>
    %348 = vector.broadcast %345 : vector<4x1xf32> to vector<4x256xf32>
    %349 = arith.mulf %347, %348 : vector<4x256xf32>
    %350 = vector.broadcast %5 : vector<1x256xf32> to vector<4x256xf32>
    %351 = arith.mulf %349, %350 : vector<4x256xf32>
    %cst_136 = arith.constant 0.000000e+00 : f32
    %352 = vector.broadcast %cst_136 : f32 to vector<4x256xf32>
    %353 = arith.cmpf oge, %351, %352 : vector<4x256xf32>
    %cst_137 = arith.constant 2.000000e-01 : f32
    %354 = vector.broadcast %cst_137 : f32 to vector<4x256xf32>
    %355 = arith.mulf %354, %351 : vector<4x256xf32>
    %356 = arith.select %353, %351, %355 : vector<4x256xi1>, vector<4x256xf32>
    %cst_138 = arith.constant 0.000000e+00 : f32
    %357 = vector.broadcast %cst_138 : f32 to vector<4x256xf32>
    %c17_i32_139 = arith.constant 17 : i32
    %358 = tpu.dynamic_rotate %356 by %c17_i32_139 dim 1 : vector<4x256xf32>, i32 -> vector<4x256xf32>
    %359 = vector.extract_strided_slice %4 {offsets = [0, 0], sizes = [1, 256], strides = [1, 1]} : vector<9x256xf32> to vector<1x256xf32>
    %360 = vector.broadcast %359 : vector<1x256xf32> to vector<4x256xf32>
    %361 = arith.mulf %358, %360 : vector<4x256xf32>
    %c0_140 = arith.constant 0 : index
    %c0_141 = arith.constant 0 : index
    %c0_142 = arith.constant 0 : index
    %362 = vector.load %arg9[%c0_140, %c0_141, %c0_142] : memref<9x4x4xbf16, #tpu.memory_space<vmem>>, vector<1x4x4xbf16>
    %363 = vector.shape_cast %362 : vector<1x4x4xbf16> to vector<4x4xbf16>
    %364 = arith.truncf %361 : vector<4x256xf32> to vector<4x256xbf16>
    %cst_143 = arith.constant dense<0.000000e+00> : vector<4x256xf32>
    %365 = tpu.matmul %363, %364, %cst_143 {dimension_numbers = #tpu.dot_dimension_numbers<[1], [0], [0], [1], [0, 0, 1, 1], [], []>} : vector<4x4xbf16>, vector<4x256xbf16>, vector<4x256xf32> -> vector<4x256xf32>
    %366 = arith.addf %357, %365 : vector<4x256xf32>
    %c16_i32_144 = arith.constant 16 : i32
    %367 = tpu.dynamic_rotate %356 by %c16_i32_144 dim 1 : vector<4x256xf32>, i32 -> vector<4x256xf32>
    %368 = vector.extract_strided_slice %4 {offsets = [1, 0], sizes = [1, 256], strides = [1, 1]} : vector<9x256xf32> to vector<1x256xf32>
    %369 = vector.broadcast %368 : vector<1x256xf32> to vector<4x256xf32>
    %370 = arith.mulf %367, %369 : vector<4x256xf32>
    %c1_145 = arith.constant 1 : index
    %c0_146 = arith.constant 0 : index
    %c0_147 = arith.constant 0 : index
    %371 = vector.load %arg9[%c1_145, %c0_146, %c0_147] : memref<9x4x4xbf16, #tpu.memory_space<vmem>>, vector<1x4x4xbf16>
    %372 = vector.shape_cast %371 : vector<1x4x4xbf16> to vector<4x4xbf16>
    %373 = arith.truncf %370 : vector<4x256xf32> to vector<4x256xbf16>
    %cst_148 = arith.constant dense<0.000000e+00> : vector<4x256xf32>
    %374 = tpu.matmul %372, %373, %cst_148 {dimension_numbers = #tpu.dot_dimension_numbers<[1], [0], [0], [1], [0, 0, 1, 1], [], []>} : vector<4x4xbf16>, vector<4x256xbf16>, vector<4x256xf32> -> vector<4x256xf32>
    %375 = arith.addf %366, %374 : vector<4x256xf32>
    %c15_i32_149 = arith.constant 15 : i32
    %376 = tpu.dynamic_rotate %356 by %c15_i32_149 dim 1 : vector<4x256xf32>, i32 -> vector<4x256xf32>
    %377 = vector.extract_strided_slice %4 {offsets = [2, 0], sizes = [1, 256], strides = [1, 1]} : vector<9x256xf32> to vector<1x256xf32>
    %378 = vector.broadcast %377 : vector<1x256xf32> to vector<4x256xf32>
    %379 = arith.mulf %376, %378 : vector<4x256xf32>
    %c2_150 = arith.constant 2 : index
    %c0_151 = arith.constant 0 : index
    %c0_152 = arith.constant 0 : index
    %380 = vector.load %arg9[%c2_150, %c0_151, %c0_152] : memref<9x4x4xbf16, #tpu.memory_space<vmem>>, vector<1x4x4xbf16>
    %381 = vector.shape_cast %380 : vector<1x4x4xbf16> to vector<4x4xbf16>
    %382 = arith.truncf %379 : vector<4x256xf32> to vector<4x256xbf16>
    %cst_153 = arith.constant dense<0.000000e+00> : vector<4x256xf32>
    %383 = tpu.matmul %381, %382, %cst_153 {dimension_numbers = #tpu.dot_dimension_numbers<[1], [0], [0], [1], [0, 0, 1, 1], [], []>} : vector<4x4xbf16>, vector<4x256xbf16>, vector<4x256xf32> -> vector<4x256xf32>
    %384 = arith.addf %375, %383 : vector<4x256xf32>
    %c1_i32_154 = arith.constant 1 : i32
    %385 = tpu.dynamic_rotate %356 by %c1_i32_154 dim 1 : vector<4x256xf32>, i32 -> vector<4x256xf32>
    %386 = vector.extract_strided_slice %4 {offsets = [3, 0], sizes = [1, 256], strides = [1, 1]} : vector<9x256xf32> to vector<1x256xf32>
    %387 = vector.broadcast %386 : vector<1x256xf32> to vector<4x256xf32>
    %388 = arith.mulf %385, %387 : vector<4x256xf32>
    %c3_155 = arith.constant 3 : index
    %c0_156 = arith.constant 0 : index
    %c0_157 = arith.constant 0 : index
    %389 = vector.load %arg9[%c3_155, %c0_156, %c0_157] : memref<9x4x4xbf16, #tpu.memory_space<vmem>>, vector<1x4x4xbf16>
    %390 = vector.shape_cast %389 : vector<1x4x4xbf16> to vector<4x4xbf16>
    %391 = arith.truncf %388 : vector<4x256xf32> to vector<4x256xbf16>
    %cst_158 = arith.constant dense<0.000000e+00> : vector<4x256xf32>
    %392 = tpu.matmul %390, %391, %cst_158 {dimension_numbers = #tpu.dot_dimension_numbers<[1], [0], [0], [1], [0, 0, 1, 1], [], []>} : vector<4x4xbf16>, vector<4x256xbf16>, vector<4x256xf32> -> vector<4x256xf32>
    %393 = arith.addf %384, %392 : vector<4x256xf32>
    %394 = vector.extract_strided_slice %4 {offsets = [4, 0], sizes = [1, 256], strides = [1, 1]} : vector<9x256xf32> to vector<1x256xf32>
    %395 = vector.broadcast %394 : vector<1x256xf32> to vector<4x256xf32>
    %396 = arith.mulf %356, %395 : vector<4x256xf32>
    %c4_159 = arith.constant 4 : index
    %c0_160 = arith.constant 0 : index
    %c0_161 = arith.constant 0 : index
    %397 = vector.load %arg9[%c4_159, %c0_160, %c0_161] : memref<9x4x4xbf16, #tpu.memory_space<vmem>>, vector<1x4x4xbf16>
    %398 = vector.shape_cast %397 : vector<1x4x4xbf16> to vector<4x4xbf16>
    %399 = arith.truncf %396 : vector<4x256xf32> to vector<4x256xbf16>
    %cst_162 = arith.constant dense<0.000000e+00> : vector<4x256xf32>
    %400 = tpu.matmul %398, %399, %cst_162 {dimension_numbers = #tpu.dot_dimension_numbers<[1], [0], [0], [1], [0, 0, 1, 1], [], []>} : vector<4x4xbf16>, vector<4x256xbf16>, vector<4x256xf32> -> vector<4x256xf32>
    %401 = arith.addf %393, %400 : vector<4x256xf32>
    %c255_i32_163 = arith.constant 255 : i32
    %402 = tpu.dynamic_rotate %356 by %c255_i32_163 dim 1 : vector<4x256xf32>, i32 -> vector<4x256xf32>
    %403 = vector.extract_strided_slice %4 {offsets = [5, 0], sizes = [1, 256], strides = [1, 1]} : vector<9x256xf32> to vector<1x256xf32>
    %404 = vector.broadcast %403 : vector<1x256xf32> to vector<4x256xf32>
    %405 = arith.mulf %402, %404 : vector<4x256xf32>
    %c5_164 = arith.constant 5 : index
    %c0_165 = arith.constant 0 : index
    %c0_166 = arith.constant 0 : index
    %406 = vector.load %arg9[%c5_164, %c0_165, %c0_166] : memref<9x4x4xbf16, #tpu.memory_space<vmem>>, vector<1x4x4xbf16>
    %407 = vector.shape_cast %406 : vector<1x4x4xbf16> to vector<4x4xbf16>
    %408 = arith.truncf %405 : vector<4x256xf32> to vector<4x256xbf16>
    %cst_167 = arith.constant dense<0.000000e+00> : vector<4x256xf32>
    %409 = tpu.matmul %407, %408, %cst_167 {dimension_numbers = #tpu.dot_dimension_numbers<[1], [0], [0], [1], [0, 0, 1, 1], [], []>} : vector<4x4xbf16>, vector<4x256xbf16>, vector<4x256xf32> -> vector<4x256xf32>
    %410 = arith.addf %401, %409 : vector<4x256xf32>
    %c241_i32_168 = arith.constant 241 : i32
    %411 = tpu.dynamic_rotate %356 by %c241_i32_168 dim 1 : vector<4x256xf32>, i32 -> vector<4x256xf32>
    %412 = vector.extract_strided_slice %4 {offsets = [6, 0], sizes = [1, 256], strides = [1, 1]} : vector<9x256xf32> to vector<1x256xf32>
    %413 = vector.broadcast %412 : vector<1x256xf32> to vector<4x256xf32>
    %414 = arith.mulf %411, %413 : vector<4x256xf32>
    %c6_169 = arith.constant 6 : index
    %c0_170 = arith.constant 0 : index
    %c0_171 = arith.constant 0 : index
    %415 = vector.load %arg9[%c6_169, %c0_170, %c0_171] : memref<9x4x4xbf16, #tpu.memory_space<vmem>>, vector<1x4x4xbf16>
    %416 = vector.shape_cast %415 : vector<1x4x4xbf16> to vector<4x4xbf16>
    %417 = arith.truncf %414 : vector<4x256xf32> to vector<4x256xbf16>
    %cst_172 = arith.constant dense<0.000000e+00> : vector<4x256xf32>
    %418 = tpu.matmul %416, %417, %cst_172 {dimension_numbers = #tpu.dot_dimension_numbers<[1], [0], [0], [1], [0, 0, 1, 1], [], []>} : vector<4x4xbf16>, vector<4x256xbf16>, vector<4x256xf32> -> vector<4x256xf32>
    %419 = arith.addf %410, %418 : vector<4x256xf32>
    %c240_i32_173 = arith.constant 240 : i32
    %420 = tpu.dynamic_rotate %356 by %c240_i32_173 dim 1 : vector<4x256xf32>, i32 -> vector<4x256xf32>
    %421 = vector.extract_strided_slice %4 {offsets = [7, 0], sizes = [1, 256], strides = [1, 1]} : vector<9x256xf32> to vector<1x256xf32>
    %422 = vector.broadcast %421 : vector<1x256xf32> to vector<4x256xf32>
    %423 = arith.mulf %420, %422 : vector<4x256xf32>
    %c7_174 = arith.constant 7 : index
    %c0_175 = arith.constant 0 : index
    %c0_176 = arith.constant 0 : index
    %424 = vector.load %arg9[%c7_174, %c0_175, %c0_176] : memref<9x4x4xbf16, #tpu.memory_space<vmem>>, vector<1x4x4xbf16>
    %425 = vector.shape_cast %424 : vector<1x4x4xbf16> to vector<4x4xbf16>
    %426 = arith.truncf %423 : vector<4x256xf32> to vector<4x256xbf16>
    %cst_177 = arith.constant dense<0.000000e+00> : vector<4x256xf32>
    %427 = tpu.matmul %425, %426, %cst_177 {dimension_numbers = #tpu.dot_dimension_numbers<[1], [0], [0], [1], [0, 0, 1, 1], [], []>} : vector<4x4xbf16>, vector<4x256xbf16>, vector<4x256xf32> -> vector<4x256xf32>
    %428 = arith.addf %419, %427 : vector<4x256xf32>
    %c239_i32_178 = arith.constant 239 : i32
    %429 = tpu.dynamic_rotate %356 by %c239_i32_178 dim 1 : vector<4x256xf32>, i32 -> vector<4x256xf32>
    %430 = vector.extract_strided_slice %4 {offsets = [8, 0], sizes = [1, 256], strides = [1, 1]} : vector<9x256xf32> to vector<1x256xf32>
    %431 = vector.broadcast %430 : vector<1x256xf32> to vector<4x256xf32>
    %432 = arith.mulf %429, %431 : vector<4x256xf32>
    %c8_179 = arith.constant 8 : index
    %c0_180 = arith.constant 0 : index
    %c0_181 = arith.constant 0 : index
    %433 = vector.load %arg9[%c8_179, %c0_180, %c0_181] : memref<9x4x4xbf16, #tpu.memory_space<vmem>>, vector<1x4x4xbf16>
    %434 = vector.shape_cast %433 : vector<1x4x4xbf16> to vector<4x4xbf16>
    %435 = arith.truncf %432 : vector<4x256xf32> to vector<4x256xbf16>
    %cst_182 = arith.constant dense<0.000000e+00> : vector<4x256xf32>
    %436 = tpu.matmul %434, %435, %cst_182 {dimension_numbers = #tpu.dot_dimension_numbers<[1], [0], [0], [1], [0, 0, 1, 1], [], []>} : vector<4x4xbf16>, vector<4x256xbf16>, vector<4x256xf32> -> vector<4x256xf32>
    %437 = arith.addf %428, %436 : vector<4x256xf32>
    %cst_183 = arith.constant dense<0.000000e+00> : vector<4xf32>
    %438 = vector.multi_reduction <add>, %437, %cst_183 [1] : vector<4x256xf32> to vector<4xf32>
    %439 = vector.shape_cast %438 : vector<4xf32> to vector<4x1xf32>
    %cst_184 = arith.constant 3.906250e-03 : f32
    %440 = vector.broadcast %cst_184 : f32 to vector<4x1xf32>
    %441 = arith.mulf %439, %440 : vector<4x1xf32>
    %442 = arith.mulf %437, %437 : vector<4x256xf32>
    %cst_185 = arith.constant dense<0.000000e+00> : vector<4xf32>
    %443 = vector.multi_reduction <add>, %442, %cst_185 [1] : vector<4x256xf32> to vector<4xf32>
    %444 = vector.shape_cast %443 : vector<4xf32> to vector<4x1xf32>
    %cst_186 = arith.constant 3.906250e-03 : f32
    %445 = vector.broadcast %cst_186 : f32 to vector<4x1xf32>
    %446 = arith.mulf %444, %445 : vector<4x1xf32>
    %447 = arith.mulf %441, %441 : vector<4x1xf32>
    %448 = arith.subf %446, %447 : vector<4x1xf32>
    %cst_187 = arith.constant 0.000000e+00 : f32
    %449 = vector.broadcast %cst_187 : f32 to vector<4x1xf32>
    %450 = arith.maximumf %448, %449 : vector<4x1xf32>
    %cst_188 = arith.constant 9.99999974E-6 : f32
    %451 = vector.broadcast %cst_188 : f32 to vector<4x1xf32>
    %452 = arith.addf %450, %451 : vector<4x1xf32>
    %453 = math.rsqrt %452 : vector<4x1xf32>
    %454 = vector.broadcast %441 : vector<4x1xf32> to vector<4x256xf32>
    %455 = arith.subf %437, %454 : vector<4x256xf32>
    %456 = vector.broadcast %453 : vector<4x1xf32> to vector<4x256xf32>
    %457 = arith.mulf %455, %456 : vector<4x256xf32>
    %458 = vector.broadcast %5 : vector<1x256xf32> to vector<4x256xf32>
    %459 = arith.mulf %457, %458 : vector<4x256xf32>
    %cst_189 = arith.constant 0.000000e+00 : f32
    %460 = vector.broadcast %cst_189 : f32 to vector<4x256xf32>
    %461 = arith.cmpf oge, %459, %460 : vector<4x256xf32>
    %cst_190 = arith.constant 2.000000e-01 : f32
    %462 = vector.broadcast %cst_190 : f32 to vector<4x256xf32>
    %463 = arith.mulf %462, %459 : vector<4x256xf32>
    %464 = arith.select %461, %459, %463 : vector<4x256xi1>, vector<4x256xf32>
    %c255_i32_191 = arith.constant 255 : i32
    %465 = tpu.dynamic_rotate %464 by %c255_i32_191 dim 1 : vector<4x256xf32>, i32 -> vector<4x256xf32>
    %466 = arith.addf %464, %465 : vector<4x256xf32>
    %c240_i32_192 = arith.constant 240 : i32
    %467 = tpu.dynamic_rotate %466 by %c240_i32_192 dim 1 : vector<4x256xf32>, i32 -> vector<4x256xf32>
    %468 = arith.addf %466, %467 : vector<4x256xf32>
    %cst_193 = arith.constant 2.500000e-01 : f32
    %469 = vector.broadcast %cst_193 : f32 to vector<4x256xf32>
    %470 = arith.mulf %469, %468 : vector<4x256xf32>
    %471 = vector.broadcast %6 : vector<1x256xf32> to vector<4x256xf32>
    %472 = arith.mulf %470, %471 : vector<4x256xf32>
    %c0_194 = arith.constant 0 : index
    %c0_195 = arith.constant 0 : index
    %473 = vector.load %arg10[%c0_194, %c0_195] : memref<9x256xf32, #tpu.memory_space<vmem>>, vector<9x256xf32>
    %c0_196 = arith.constant 0 : index
    %c0_197 = arith.constant 0 : index
    %474 = vector.load %arg11[%c0_196, %c0_197] : memref<1x256xf32, #tpu.memory_space<vmem>>, vector<1x256xf32>
    %c0_198 = arith.constant 0 : index
    %c0_199 = arith.constant 0 : index
    %475 = vector.load %arg12[%c0_198, %c0_199] : memref<1x256xf32, #tpu.memory_space<vmem>>, vector<1x256xf32>
    %cst_200 = arith.constant 0.000000e+00 : f32
    %476 = vector.broadcast %cst_200 : f32 to vector<8x256xf32>
    %c34_i32 = arith.constant 34 : i32
    %477 = tpu.dynamic_rotate %239 by %c34_i32 dim 1 : vector<4x256xf32>, i32 -> vector<4x256xf32>
    %478 = vector.extract_strided_slice %473 {offsets = [0, 0], sizes = [1, 256], strides = [1, 1]} : vector<9x256xf32> to vector<1x256xf32>
    %479 = vector.broadcast %478 : vector<1x256xf32> to vector<4x256xf32>
    %480 = arith.mulf %477, %479 : vector<4x256xf32>
    %c0_201 = arith.constant 0 : index
    %c0_202 = arith.constant 0 : index
    %c0_203 = arith.constant 0 : index
    %481 = vector.load %arg13[%c0_201, %c0_202, %c0_203] : memref<9x8x4xbf16, #tpu.memory_space<vmem>>, vector<1x8x4xbf16>
    %482 = vector.shape_cast %481 : vector<1x8x4xbf16> to vector<8x4xbf16>
    %483 = arith.truncf %480 : vector<4x256xf32> to vector<4x256xbf16>
    %cst_204 = arith.constant dense<0.000000e+00> : vector<8x256xf32>
    %484 = tpu.matmul %482, %483, %cst_204 {dimension_numbers = #tpu.dot_dimension_numbers<[1], [0], [0], [1], [0, 0, 1, 1], [], []>} : vector<8x4xbf16>, vector<4x256xbf16>, vector<8x256xf32> -> vector<8x256xf32>
    %485 = arith.addf %476, %484 : vector<8x256xf32>
    %c32_i32 = arith.constant 32 : i32
    %486 = tpu.dynamic_rotate %239 by %c32_i32 dim 1 : vector<4x256xf32>, i32 -> vector<4x256xf32>
    %487 = vector.extract_strided_slice %473 {offsets = [1, 0], sizes = [1, 256], strides = [1, 1]} : vector<9x256xf32> to vector<1x256xf32>
    %488 = vector.broadcast %487 : vector<1x256xf32> to vector<4x256xf32>
    %489 = arith.mulf %486, %488 : vector<4x256xf32>
    %c1_205 = arith.constant 1 : index
    %c0_206 = arith.constant 0 : index
    %c0_207 = arith.constant 0 : index
    %490 = vector.load %arg13[%c1_205, %c0_206, %c0_207] : memref<9x8x4xbf16, #tpu.memory_space<vmem>>, vector<1x8x4xbf16>
    %491 = vector.shape_cast %490 : vector<1x8x4xbf16> to vector<8x4xbf16>
    %492 = arith.truncf %489 : vector<4x256xf32> to vector<4x256xbf16>
    %cst_208 = arith.constant dense<0.000000e+00> : vector<8x256xf32>
    %493 = tpu.matmul %491, %492, %cst_208 {dimension_numbers = #tpu.dot_dimension_numbers<[1], [0], [0], [1], [0, 0, 1, 1], [], []>} : vector<8x4xbf16>, vector<4x256xbf16>, vector<8x256xf32> -> vector<8x256xf32>
    %494 = arith.addf %485, %493 : vector<8x256xf32>
    %c30_i32 = arith.constant 30 : i32
    %495 = tpu.dynamic_rotate %239 by %c30_i32 dim 1 : vector<4x256xf32>, i32 -> vector<4x256xf32>
    %496 = vector.extract_strided_slice %473 {offsets = [2, 0], sizes = [1, 256], strides = [1, 1]} : vector<9x256xf32> to vector<1x256xf32>
    %497 = vector.broadcast %496 : vector<1x256xf32> to vector<4x256xf32>
    %498 = arith.mulf %495, %497 : vector<4x256xf32>
    %c2_209 = arith.constant 2 : index
    %c0_210 = arith.constant 0 : index
    %c0_211 = arith.constant 0 : index
    %499 = vector.load %arg13[%c2_209, %c0_210, %c0_211] : memref<9x8x4xbf16, #tpu.memory_space<vmem>>, vector<1x8x4xbf16>
    %500 = vector.shape_cast %499 : vector<1x8x4xbf16> to vector<8x4xbf16>
    %501 = arith.truncf %498 : vector<4x256xf32> to vector<4x256xbf16>
    %cst_212 = arith.constant dense<0.000000e+00> : vector<8x256xf32>
    %502 = tpu.matmul %500, %501, %cst_212 {dimension_numbers = #tpu.dot_dimension_numbers<[1], [0], [0], [1], [0, 0, 1, 1], [], []>} : vector<8x4xbf16>, vector<4x256xbf16>, vector<8x256xf32> -> vector<8x256xf32>
    %503 = arith.addf %494, %502 : vector<8x256xf32>
    %c2_i32 = arith.constant 2 : i32
    %504 = tpu.dynamic_rotate %239 by %c2_i32 dim 1 : vector<4x256xf32>, i32 -> vector<4x256xf32>
    %505 = vector.extract_strided_slice %473 {offsets = [3, 0], sizes = [1, 256], strides = [1, 1]} : vector<9x256xf32> to vector<1x256xf32>
    %506 = vector.broadcast %505 : vector<1x256xf32> to vector<4x256xf32>
    %507 = arith.mulf %504, %506 : vector<4x256xf32>
    %c3_213 = arith.constant 3 : index
    %c0_214 = arith.constant 0 : index
    %c0_215 = arith.constant 0 : index
    %508 = vector.load %arg13[%c3_213, %c0_214, %c0_215] : memref<9x8x4xbf16, #tpu.memory_space<vmem>>, vector<1x8x4xbf16>
    %509 = vector.shape_cast %508 : vector<1x8x4xbf16> to vector<8x4xbf16>
    %510 = arith.truncf %507 : vector<4x256xf32> to vector<4x256xbf16>
    %cst_216 = arith.constant dense<0.000000e+00> : vector<8x256xf32>
    %511 = tpu.matmul %509, %510, %cst_216 {dimension_numbers = #tpu.dot_dimension_numbers<[1], [0], [0], [1], [0, 0, 1, 1], [], []>} : vector<8x4xbf16>, vector<4x256xbf16>, vector<8x256xf32> -> vector<8x256xf32>
    %512 = arith.addf %503, %511 : vector<8x256xf32>
    %513 = vector.extract_strided_slice %473 {offsets = [4, 0], sizes = [1, 256], strides = [1, 1]} : vector<9x256xf32> to vector<1x256xf32>
    %514 = vector.broadcast %513 : vector<1x256xf32> to vector<4x256xf32>
    %515 = arith.mulf %239, %514 : vector<4x256xf32>
    %c4_217 = arith.constant 4 : index
    %c0_218 = arith.constant 0 : index
    %c0_219 = arith.constant 0 : index
    %516 = vector.load %arg13[%c4_217, %c0_218, %c0_219] : memref<9x8x4xbf16, #tpu.memory_space<vmem>>, vector<1x8x4xbf16>
    %517 = vector.shape_cast %516 : vector<1x8x4xbf16> to vector<8x4xbf16>
    %518 = arith.truncf %515 : vector<4x256xf32> to vector<4x256xbf16>
    %cst_220 = arith.constant dense<0.000000e+00> : vector<8x256xf32>
    %519 = tpu.matmul %517, %518, %cst_220 {dimension_numbers = #tpu.dot_dimension_numbers<[1], [0], [0], [1], [0, 0, 1, 1], [], []>} : vector<8x4xbf16>, vector<4x256xbf16>, vector<8x256xf32> -> vector<8x256xf32>
    %520 = arith.addf %512, %519 : vector<8x256xf32>
    %c254_i32 = arith.constant 254 : i32
    %521 = tpu.dynamic_rotate %239 by %c254_i32 dim 1 : vector<4x256xf32>, i32 -> vector<4x256xf32>
    %522 = vector.extract_strided_slice %473 {offsets = [5, 0], sizes = [1, 256], strides = [1, 1]} : vector<9x256xf32> to vector<1x256xf32>
    %523 = vector.broadcast %522 : vector<1x256xf32> to vector<4x256xf32>
    %524 = arith.mulf %521, %523 : vector<4x256xf32>
    %c5_221 = arith.constant 5 : index
    %c0_222 = arith.constant 0 : index
    %c0_223 = arith.constant 0 : index
    %525 = vector.load %arg13[%c5_221, %c0_222, %c0_223] : memref<9x8x4xbf16, #tpu.memory_space<vmem>>, vector<1x8x4xbf16>
    %526 = vector.shape_cast %525 : vector<1x8x4xbf16> to vector<8x4xbf16>
    %527 = arith.truncf %524 : vector<4x256xf32> to vector<4x256xbf16>
    %cst_224 = arith.constant dense<0.000000e+00> : vector<8x256xf32>
    %528 = tpu.matmul %526, %527, %cst_224 {dimension_numbers = #tpu.dot_dimension_numbers<[1], [0], [0], [1], [0, 0, 1, 1], [], []>} : vector<8x4xbf16>, vector<4x256xbf16>, vector<8x256xf32> -> vector<8x256xf32>
    %529 = arith.addf %520, %528 : vector<8x256xf32>
    %c226_i32 = arith.constant 226 : i32
    %530 = tpu.dynamic_rotate %239 by %c226_i32 dim 1 : vector<4x256xf32>, i32 -> vector<4x256xf32>
    %531 = vector.extract_strided_slice %473 {offsets = [6, 0], sizes = [1, 256], strides = [1, 1]} : vector<9x256xf32> to vector<1x256xf32>
    %532 = vector.broadcast %531 : vector<1x256xf32> to vector<4x256xf32>
    %533 = arith.mulf %530, %532 : vector<4x256xf32>
    %c6_225 = arith.constant 6 : index
    %c0_226 = arith.constant 0 : index
    %c0_227 = arith.constant 0 : index
    %534 = vector.load %arg13[%c6_225, %c0_226, %c0_227] : memref<9x8x4xbf16, #tpu.memory_space<vmem>>, vector<1x8x4xbf16>
    %535 = vector.shape_cast %534 : vector<1x8x4xbf16> to vector<8x4xbf16>
    %536 = arith.truncf %533 : vector<4x256xf32> to vector<4x256xbf16>
    %cst_228 = arith.constant dense<0.000000e+00> : vector<8x256xf32>
    %537 = tpu.matmul %535, %536, %cst_228 {dimension_numbers = #tpu.dot_dimension_numbers<[1], [0], [0], [1], [0, 0, 1, 1], [], []>} : vector<8x4xbf16>, vector<4x256xbf16>, vector<8x256xf32> -> vector<8x256xf32>
    %538 = arith.addf %529, %537 : vector<8x256xf32>
    %c224_i32 = arith.constant 224 : i32
    %539 = tpu.dynamic_rotate %239 by %c224_i32 dim 1 : vector<4x256xf32>, i32 -> vector<4x256xf32>
    %540 = vector.extract_strided_slice %473 {offsets = [7, 0], sizes = [1, 256], strides = [1, 1]} : vector<9x256xf32> to vector<1x256xf32>
    %541 = vector.broadcast %540 : vector<1x256xf32> to vector<4x256xf32>
    %542 = arith.mulf %539, %541 : vector<4x256xf32>
    %c7_229 = arith.constant 7 : index
    %c0_230 = arith.constant 0 : index
    %c0_231 = arith.constant 0 : index
    %543 = vector.load %arg13[%c7_229, %c0_230, %c0_231] : memref<9x8x4xbf16, #tpu.memory_space<vmem>>, vector<1x8x4xbf16>
    %544 = vector.shape_cast %543 : vector<1x8x4xbf16> to vector<8x4xbf16>
    %545 = arith.truncf %542 : vector<4x256xf32> to vector<4x256xbf16>
    %cst_232 = arith.constant dense<0.000000e+00> : vector<8x256xf32>
    %546 = tpu.matmul %544, %545, %cst_232 {dimension_numbers = #tpu.dot_dimension_numbers<[1], [0], [0], [1], [0, 0, 1, 1], [], []>} : vector<8x4xbf16>, vector<4x256xbf16>, vector<8x256xf32> -> vector<8x256xf32>
    %547 = arith.addf %538, %546 : vector<8x256xf32>
    %c222_i32 = arith.constant 222 : i32
    %548 = tpu.dynamic_rotate %239 by %c222_i32 dim 1 : vector<4x256xf32>, i32 -> vector<4x256xf32>
    %549 = vector.extract_strided_slice %473 {offsets = [8, 0], sizes = [1, 256], strides = [1, 1]} : vector<9x256xf32> to vector<1x256xf32>
    %550 = vector.broadcast %549 : vector<1x256xf32> to vector<4x256xf32>
    %551 = arith.mulf %548, %550 : vector<4x256xf32>
    %c8_233 = arith.constant 8 : index
    %c0_234 = arith.constant 0 : index
    %c0_235 = arith.constant 0 : index
    %552 = vector.load %arg13[%c8_233, %c0_234, %c0_235] : memref<9x8x4xbf16, #tpu.memory_space<vmem>>, vector<1x8x4xbf16>
    %553 = vector.shape_cast %552 : vector<1x8x4xbf16> to vector<8x4xbf16>
    %554 = arith.truncf %551 : vector<4x256xf32> to vector<4x256xbf16>
    %cst_236 = arith.constant dense<0.000000e+00> : vector<8x256xf32>
    %555 = tpu.matmul %553, %554, %cst_236 {dimension_numbers = #tpu.dot_dimension_numbers<[1], [0], [0], [1], [0, 0, 1, 1], [], []>} : vector<8x4xbf16>, vector<4x256xbf16>, vector<8x256xf32> -> vector<8x256xf32>
    %556 = arith.addf %547, %555 : vector<8x256xf32>
    %cst_237 = arith.constant dense<0.000000e+00> : vector<8xf32>
    %557 = vector.multi_reduction <add>, %556, %cst_237 [1] : vector<8x256xf32> to vector<8xf32>
    %558 = vector.shape_cast %557 : vector<8xf32> to vector<8x1xf32>
    %cst_238 = arith.constant 1.562500e-02 : f32
    %559 = vector.broadcast %cst_238 : f32 to vector<8x1xf32>
    %560 = arith.mulf %558, %559 : vector<8x1xf32>
    %561 = arith.mulf %556, %556 : vector<8x256xf32>
    %cst_239 = arith.constant dense<0.000000e+00> : vector<8xf32>
    %562 = vector.multi_reduction <add>, %561, %cst_239 [1] : vector<8x256xf32> to vector<8xf32>
    %563 = vector.shape_cast %562 : vector<8xf32> to vector<8x1xf32>
    %cst_240 = arith.constant 1.562500e-02 : f32
    %564 = vector.broadcast %cst_240 : f32 to vector<8x1xf32>
    %565 = arith.mulf %563, %564 : vector<8x1xf32>
    %566 = arith.mulf %560, %560 : vector<8x1xf32>
    %567 = arith.subf %565, %566 : vector<8x1xf32>
    %cst_241 = arith.constant 0.000000e+00 : f32
    %568 = vector.broadcast %cst_241 : f32 to vector<8x1xf32>
    %569 = arith.maximumf %567, %568 : vector<8x1xf32>
    %cst_242 = arith.constant 9.99999974E-6 : f32
    %570 = vector.broadcast %cst_242 : f32 to vector<8x1xf32>
    %571 = arith.addf %569, %570 : vector<8x1xf32>
    %572 = math.rsqrt %571 : vector<8x1xf32>
    %573 = vector.broadcast %560 : vector<8x1xf32> to vector<8x256xf32>
    %574 = arith.subf %556, %573 : vector<8x256xf32>
    %575 = vector.broadcast %572 : vector<8x1xf32> to vector<8x256xf32>
    %576 = arith.mulf %574, %575 : vector<8x256xf32>
    %577 = vector.broadcast %474 : vector<1x256xf32> to vector<8x256xf32>
    %578 = arith.mulf %576, %577 : vector<8x256xf32>
    %cst_243 = arith.constant 0.000000e+00 : f32
    %579 = vector.broadcast %cst_243 : f32 to vector<8x256xf32>
    %580 = arith.cmpf oge, %578, %579 : vector<8x256xf32>
    %cst_244 = arith.constant 2.000000e-01 : f32
    %581 = vector.broadcast %cst_244 : f32 to vector<8x256xf32>
    %582 = arith.mulf %581, %578 : vector<8x256xf32>
    %583 = arith.select %580, %578, %582 : vector<8x256xi1>, vector<8x256xf32>
    %cst_245 = arith.constant 0.000000e+00 : f32
    %584 = vector.broadcast %cst_245 : f32 to vector<8x256xf32>
    %c34_i32_246 = arith.constant 34 : i32
    %585 = tpu.dynamic_rotate %583 by %c34_i32_246 dim 1 : vector<8x256xf32>, i32 -> vector<8x256xf32>
    %586 = vector.extract_strided_slice %473 {offsets = [0, 0], sizes = [1, 256], strides = [1, 1]} : vector<9x256xf32> to vector<1x256xf32>
    %587 = vector.broadcast %586 : vector<1x256xf32> to vector<8x256xf32>
    %588 = arith.mulf %585, %587 : vector<8x256xf32>
    %c0_247 = arith.constant 0 : index
    %c0_248 = arith.constant 0 : index
    %c0_249 = arith.constant 0 : index
    %589 = vector.load %arg14[%c0_247, %c0_248, %c0_249] : memref<9x8x8xbf16, #tpu.memory_space<vmem>>, vector<1x8x8xbf16>
    %590 = vector.shape_cast %589 : vector<1x8x8xbf16> to vector<8x8xbf16>
    %591 = arith.truncf %588 : vector<8x256xf32> to vector<8x256xbf16>
    %cst_250 = arith.constant dense<0.000000e+00> : vector<8x256xf32>
    %592 = tpu.matmul %590, %591, %cst_250 {dimension_numbers = #tpu.dot_dimension_numbers<[1], [0], [0], [1], [0, 0, 1, 1], [], []>} : vector<8x8xbf16>, vector<8x256xbf16>, vector<8x256xf32> -> vector<8x256xf32>
    %593 = arith.addf %584, %592 : vector<8x256xf32>
    %c32_i32_251 = arith.constant 32 : i32
    %594 = tpu.dynamic_rotate %583 by %c32_i32_251 dim 1 : vector<8x256xf32>, i32 -> vector<8x256xf32>
    %595 = vector.extract_strided_slice %473 {offsets = [1, 0], sizes = [1, 256], strides = [1, 1]} : vector<9x256xf32> to vector<1x256xf32>
    %596 = vector.broadcast %595 : vector<1x256xf32> to vector<8x256xf32>
    %597 = arith.mulf %594, %596 : vector<8x256xf32>
    %c1_252 = arith.constant 1 : index
    %c0_253 = arith.constant 0 : index
    %c0_254 = arith.constant 0 : index
    %598 = vector.load %arg14[%c1_252, %c0_253, %c0_254] : memref<9x8x8xbf16, #tpu.memory_space<vmem>>, vector<1x8x8xbf16>
    %599 = vector.shape_cast %598 : vector<1x8x8xbf16> to vector<8x8xbf16>
    %600 = arith.truncf %597 : vector<8x256xf32> to vector<8x256xbf16>
    %cst_255 = arith.constant dense<0.000000e+00> : vector<8x256xf32>
    %601 = tpu.matmul %599, %600, %cst_255 {dimension_numbers = #tpu.dot_dimension_numbers<[1], [0], [0], [1], [0, 0, 1, 1], [], []>} : vector<8x8xbf16>, vector<8x256xbf16>, vector<8x256xf32> -> vector<8x256xf32>
    %602 = arith.addf %593, %601 : vector<8x256xf32>
    %c30_i32_256 = arith.constant 30 : i32
    %603 = tpu.dynamic_rotate %583 by %c30_i32_256 dim 1 : vector<8x256xf32>, i32 -> vector<8x256xf32>
    %604 = vector.extract_strided_slice %473 {offsets = [2, 0], sizes = [1, 256], strides = [1, 1]} : vector<9x256xf32> to vector<1x256xf32>
    %605 = vector.broadcast %604 : vector<1x256xf32> to vector<8x256xf32>
    %606 = arith.mulf %603, %605 : vector<8x256xf32>
    %c2_257 = arith.constant 2 : index
    %c0_258 = arith.constant 0 : index
    %c0_259 = arith.constant 0 : index
    %607 = vector.load %arg14[%c2_257, %c0_258, %c0_259] : memref<9x8x8xbf16, #tpu.memory_space<vmem>>, vector<1x8x8xbf16>
    %608 = vector.shape_cast %607 : vector<1x8x8xbf16> to vector<8x8xbf16>
    %609 = arith.truncf %606 : vector<8x256xf32> to vector<8x256xbf16>
    %cst_260 = arith.constant dense<0.000000e+00> : vector<8x256xf32>
    %610 = tpu.matmul %608, %609, %cst_260 {dimension_numbers = #tpu.dot_dimension_numbers<[1], [0], [0], [1], [0, 0, 1, 1], [], []>} : vector<8x8xbf16>, vector<8x256xbf16>, vector<8x256xf32> -> vector<8x256xf32>
    %611 = arith.addf %602, %610 : vector<8x256xf32>
    %c2_i32_261 = arith.constant 2 : i32
    %612 = tpu.dynamic_rotate %583 by %c2_i32_261 dim 1 : vector<8x256xf32>, i32 -> vector<8x256xf32>
    %613 = vector.extract_strided_slice %473 {offsets = [3, 0], sizes = [1, 256], strides = [1, 1]} : vector<9x256xf32> to vector<1x256xf32>
    %614 = vector.broadcast %613 : vector<1x256xf32> to vector<8x256xf32>
    %615 = arith.mulf %612, %614 : vector<8x256xf32>
    %c3_262 = arith.constant 3 : index
    %c0_263 = arith.constant 0 : index
    %c0_264 = arith.constant 0 : index
    %616 = vector.load %arg14[%c3_262, %c0_263, %c0_264] : memref<9x8x8xbf16, #tpu.memory_space<vmem>>, vector<1x8x8xbf16>
    %617 = vector.shape_cast %616 : vector<1x8x8xbf16> to vector<8x8xbf16>
    %618 = arith.truncf %615 : vector<8x256xf32> to vector<8x256xbf16>
    %cst_265 = arith.constant dense<0.000000e+00> : vector<8x256xf32>
    %619 = tpu.matmul %617, %618, %cst_265 {dimension_numbers = #tpu.dot_dimension_numbers<[1], [0], [0], [1], [0, 0, 1, 1], [], []>} : vector<8x8xbf16>, vector<8x256xbf16>, vector<8x256xf32> -> vector<8x256xf32>
    %620 = arith.addf %611, %619 : vector<8x256xf32>
    %621 = vector.extract_strided_slice %473 {offsets = [4, 0], sizes = [1, 256], strides = [1, 1]} : vector<9x256xf32> to vector<1x256xf32>
    %622 = vector.broadcast %621 : vector<1x256xf32> to vector<8x256xf32>
    %623 = arith.mulf %583, %622 : vector<8x256xf32>
    %c4_266 = arith.constant 4 : index
    %c0_267 = arith.constant 0 : index
    %c0_268 = arith.constant 0 : index
    %624 = vector.load %arg14[%c4_266, %c0_267, %c0_268] : memref<9x8x8xbf16, #tpu.memory_space<vmem>>, vector<1x8x8xbf16>
    %625 = vector.shape_cast %624 : vector<1x8x8xbf16> to vector<8x8xbf16>
    %626 = arith.truncf %623 : vector<8x256xf32> to vector<8x256xbf16>
    %cst_269 = arith.constant dense<0.000000e+00> : vector<8x256xf32>
    %627 = tpu.matmul %625, %626, %cst_269 {dimension_numbers = #tpu.dot_dimension_numbers<[1], [0], [0], [1], [0, 0, 1, 1], [], []>} : vector<8x8xbf16>, vector<8x256xbf16>, vector<8x256xf32> -> vector<8x256xf32>
    %628 = arith.addf %620, %627 : vector<8x256xf32>
    %c254_i32_270 = arith.constant 254 : i32
    %629 = tpu.dynamic_rotate %583 by %c254_i32_270 dim 1 : vector<8x256xf32>, i32 -> vector<8x256xf32>
    %630 = vector.extract_strided_slice %473 {offsets = [5, 0], sizes = [1, 256], strides = [1, 1]} : vector<9x256xf32> to vector<1x256xf32>
    %631 = vector.broadcast %630 : vector<1x256xf32> to vector<8x256xf32>
    %632 = arith.mulf %629, %631 : vector<8x256xf32>
    %c5_271 = arith.constant 5 : index
    %c0_272 = arith.constant 0 : index
    %c0_273 = arith.constant 0 : index
    %633 = vector.load %arg14[%c5_271, %c0_272, %c0_273] : memref<9x8x8xbf16, #tpu.memory_space<vmem>>, vector<1x8x8xbf16>
    %634 = vector.shape_cast %633 : vector<1x8x8xbf16> to vector<8x8xbf16>
    %635 = arith.truncf %632 : vector<8x256xf32> to vector<8x256xbf16>
    %cst_274 = arith.constant dense<0.000000e+00> : vector<8x256xf32>
    %636 = tpu.matmul %634, %635, %cst_274 {dimension_numbers = #tpu.dot_dimension_numbers<[1], [0], [0], [1], [0, 0, 1, 1], [], []>} : vector<8x8xbf16>, vector<8x256xbf16>, vector<8x256xf32> -> vector<8x256xf32>
    %637 = arith.addf %628, %636 : vector<8x256xf32>
    %c226_i32_275 = arith.constant 226 : i32
    %638 = tpu.dynamic_rotate %583 by %c226_i32_275 dim 1 : vector<8x256xf32>, i32 -> vector<8x256xf32>
    %639 = vector.extract_strided_slice %473 {offsets = [6, 0], sizes = [1, 256], strides = [1, 1]} : vector<9x256xf32> to vector<1x256xf32>
    %640 = vector.broadcast %639 : vector<1x256xf32> to vector<8x256xf32>
    %641 = arith.mulf %638, %640 : vector<8x256xf32>
    %c6_276 = arith.constant 6 : index
    %c0_277 = arith.constant 0 : index
    %c0_278 = arith.constant 0 : index
    %642 = vector.load %arg14[%c6_276, %c0_277, %c0_278] : memref<9x8x8xbf16, #tpu.memory_space<vmem>>, vector<1x8x8xbf16>
    %643 = vector.shape_cast %642 : vector<1x8x8xbf16> to vector<8x8xbf16>
    %644 = arith.truncf %641 : vector<8x256xf32> to vector<8x256xbf16>
    %cst_279 = arith.constant dense<0.000000e+00> : vector<8x256xf32>
    %645 = tpu.matmul %643, %644, %cst_279 {dimension_numbers = #tpu.dot_dimension_numbers<[1], [0], [0], [1], [0, 0, 1, 1], [], []>} : vector<8x8xbf16>, vector<8x256xbf16>, vector<8x256xf32> -> vector<8x256xf32>
    %646 = arith.addf %637, %645 : vector<8x256xf32>
    %c224_i32_280 = arith.constant 224 : i32
    %647 = tpu.dynamic_rotate %583 by %c224_i32_280 dim 1 : vector<8x256xf32>, i32 -> vector<8x256xf32>
    %648 = vector.extract_strided_slice %473 {offsets = [7, 0], sizes = [1, 256], strides = [1, 1]} : vector<9x256xf32> to vector<1x256xf32>
    %649 = vector.broadcast %648 : vector<1x256xf32> to vector<8x256xf32>
    %650 = arith.mulf %647, %649 : vector<8x256xf32>
    %c7_281 = arith.constant 7 : index
    %c0_282 = arith.constant 0 : index
    %c0_283 = arith.constant 0 : index
    %651 = vector.load %arg14[%c7_281, %c0_282, %c0_283] : memref<9x8x8xbf16, #tpu.memory_space<vmem>>, vector<1x8x8xbf16>
    %652 = vector.shape_cast %651 : vector<1x8x8xbf16> to vector<8x8xbf16>
    %653 = arith.truncf %650 : vector<8x256xf32> to vector<8x256xbf16>
    %cst_284 = arith.constant dense<0.000000e+00> : vector<8x256xf32>
    %654 = tpu.matmul %652, %653, %cst_284 {dimension_numbers = #tpu.dot_dimension_numbers<[1], [0], [0], [1], [0, 0, 1, 1], [], []>} : vector<8x8xbf16>, vector<8x256xbf16>, vector<8x256xf32> -> vector<8x256xf32>
    %655 = arith.addf %646, %654 : vector<8x256xf32>
    %c222_i32_285 = arith.constant 222 : i32
    %656 = tpu.dynamic_rotate %583 by %c222_i32_285 dim 1 : vector<8x256xf32>, i32 -> vector<8x256xf32>
    %657 = vector.extract_strided_slice %473 {offsets = [8, 0], sizes = [1, 256], strides = [1, 1]} : vector<9x256xf32> to vector<1x256xf32>
    %658 = vector.broadcast %657 : vector<1x256xf32> to vector<8x256xf32>
    %659 = arith.mulf %656, %658 : vector<8x256xf32>
    %c8_286 = arith.constant 8 : index
    %c0_287 = arith.constant 0 : index
    %c0_288 = arith.constant 0 : index
    %660 = vector.load %arg14[%c8_286, %c0_287, %c0_288] : memref<9x8x8xbf16, #tpu.memory_space<vmem>>, vector<1x8x8xbf16>
    %661 = vector.shape_cast %660 : vector<1x8x8xbf16> to vector<8x8xbf16>
    %662 = arith.truncf %659 : vector<8x256xf32> to vector<8x256xbf16>
    %cst_289 = arith.constant dense<0.000000e+00> : vector<8x256xf32>
    %663 = tpu.matmul %661, %662, %cst_289 {dimension_numbers = #tpu.dot_dimension_numbers<[1], [0], [0], [1], [0, 0, 1, 1], [], []>} : vector<8x8xbf16>, vector<8x256xbf16>, vector<8x256xf32> -> vector<8x256xf32>
    %664 = arith.addf %655, %663 : vector<8x256xf32>
    %cst_290 = arith.constant dense<0.000000e+00> : vector<8xf32>
    %665 = vector.multi_reduction <add>, %664, %cst_290 [1] : vector<8x256xf32> to vector<8xf32>
    %666 = vector.shape_cast %665 : vector<8xf32> to vector<8x1xf32>
    %cst_291 = arith.constant 1.562500e-02 : f32
    %667 = vector.broadcast %cst_291 : f32 to vector<8x1xf32>
    %668 = arith.mulf %666, %667 : vector<8x1xf32>
    %669 = arith.mulf %664, %664 : vector<8x256xf32>
    %cst_292 = arith.constant dense<0.000000e+00> : vector<8xf32>
    %670 = vector.multi_reduction <add>, %669, %cst_292 [1] : vector<8x256xf32> to vector<8xf32>
    %671 = vector.shape_cast %670 : vector<8xf32> to vector<8x1xf32>
    %cst_293 = arith.constant 1.562500e-02 : f32
    %672 = vector.broadcast %cst_293 : f32 to vector<8x1xf32>
    %673 = arith.mulf %671, %672 : vector<8x1xf32>
    %674 = arith.mulf %668, %668 : vector<8x1xf32>
    %675 = arith.subf %673, %674 : vector<8x1xf32>
    %cst_294 = arith.constant 0.000000e+00 : f32
    %676 = vector.broadcast %cst_294 : f32 to vector<8x1xf32>
    %677 = arith.maximumf %675, %676 : vector<8x1xf32>
    %cst_295 = arith.constant 9.99999974E-6 : f32
    %678 = vector.broadcast %cst_295 : f32 to vector<8x1xf32>
    %679 = arith.addf %677, %678 : vector<8x1xf32>
    %680 = math.rsqrt %679 : vector<8x1xf32>
    %681 = vector.broadcast %668 : vector<8x1xf32> to vector<8x256xf32>
    %682 = arith.subf %664, %681 : vector<8x256xf32>
    %683 = vector.broadcast %680 : vector<8x1xf32> to vector<8x256xf32>
    %684 = arith.mulf %682, %683 : vector<8x256xf32>
    %685 = vector.broadcast %474 : vector<1x256xf32> to vector<8x256xf32>
    %686 = arith.mulf %684, %685 : vector<8x256xf32>
    %cst_296 = arith.constant 0.000000e+00 : f32
    %687 = vector.broadcast %cst_296 : f32 to vector<8x256xf32>
    %688 = arith.cmpf oge, %686, %687 : vector<8x256xf32>
    %cst_297 = arith.constant 2.000000e-01 : f32
    %689 = vector.broadcast %cst_297 : f32 to vector<8x256xf32>
    %690 = arith.mulf %689, %686 : vector<8x256xf32>
    %691 = arith.select %688, %686, %690 : vector<8x256xi1>, vector<8x256xf32>
    %c254_i32_298 = arith.constant 254 : i32
    %692 = tpu.dynamic_rotate %691 by %c254_i32_298 dim 1 : vector<8x256xf32>, i32 -> vector<8x256xf32>
    %693 = arith.addf %691, %692 : vector<8x256xf32>
    %c224_i32_299 = arith.constant 224 : i32
    %694 = tpu.dynamic_rotate %693 by %c224_i32_299 dim 1 : vector<8x256xf32>, i32 -> vector<8x256xf32>
    %695 = arith.addf %693, %694 : vector<8x256xf32>
    %cst_300 = arith.constant 2.500000e-01 : f32
    %696 = vector.broadcast %cst_300 : f32 to vector<8x256xf32>
    %697 = arith.mulf %696, %695 : vector<8x256xf32>
    %698 = vector.broadcast %475 : vector<1x256xf32> to vector<8x256xf32>
    %699 = arith.mulf %697, %698 : vector<8x256xf32>
    %cst_301 = arith.constant 0.000000e+00 : f32
    %700 = vector.broadcast %cst_301 : f32 to vector<8x256xf32>
    %c34_i32_302 = arith.constant 34 : i32
    %701 = tpu.dynamic_rotate %472 by %c34_i32_302 dim 1 : vector<4x256xf32>, i32 -> vector<4x256xf32>
    %702 = vector.extract_strided_slice %473 {offsets = [0, 0], sizes = [1, 256], strides = [1, 1]} : vector<9x256xf32> to vector<1x256xf32>
    %703 = vector.broadcast %702 : vector<1x256xf32> to vector<4x256xf32>
    %704 = arith.mulf %701, %703 : vector<4x256xf32>
    %c0_303 = arith.constant 0 : index
    %c0_304 = arith.constant 0 : index
    %c0_305 = arith.constant 0 : index
    %705 = vector.load %arg15[%c0_303, %c0_304, %c0_305] : memref<9x8x4xbf16, #tpu.memory_space<vmem>>, vector<1x8x4xbf16>
    %706 = vector.shape_cast %705 : vector<1x8x4xbf16> to vector<8x4xbf16>
    %707 = arith.truncf %704 : vector<4x256xf32> to vector<4x256xbf16>
    %cst_306 = arith.constant dense<0.000000e+00> : vector<8x256xf32>
    %708 = tpu.matmul %706, %707, %cst_306 {dimension_numbers = #tpu.dot_dimension_numbers<[1], [0], [0], [1], [0, 0, 1, 1], [], []>} : vector<8x4xbf16>, vector<4x256xbf16>, vector<8x256xf32> -> vector<8x256xf32>
    %709 = arith.addf %700, %708 : vector<8x256xf32>
    %c32_i32_307 = arith.constant 32 : i32
    %710 = tpu.dynamic_rotate %472 by %c32_i32_307 dim 1 : vector<4x256xf32>, i32 -> vector<4x256xf32>
    %711 = vector.extract_strided_slice %473 {offsets = [1, 0], sizes = [1, 256], strides = [1, 1]} : vector<9x256xf32> to vector<1x256xf32>
    %712 = vector.broadcast %711 : vector<1x256xf32> to vector<4x256xf32>
    %713 = arith.mulf %710, %712 : vector<4x256xf32>
    %c1_308 = arith.constant 1 : index
    %c0_309 = arith.constant 0 : index
    %c0_310 = arith.constant 0 : index
    %714 = vector.load %arg15[%c1_308, %c0_309, %c0_310] : memref<9x8x4xbf16, #tpu.memory_space<vmem>>, vector<1x8x4xbf16>
    %715 = vector.shape_cast %714 : vector<1x8x4xbf16> to vector<8x4xbf16>
    %716 = arith.truncf %713 : vector<4x256xf32> to vector<4x256xbf16>
    %cst_311 = arith.constant dense<0.000000e+00> : vector<8x256xf32>
    %717 = tpu.matmul %715, %716, %cst_311 {dimension_numbers = #tpu.dot_dimension_numbers<[1], [0], [0], [1], [0, 0, 1, 1], [], []>} : vector<8x4xbf16>, vector<4x256xbf16>, vector<8x256xf32> -> vector<8x256xf32>
    %718 = arith.addf %709, %717 : vector<8x256xf32>
    %c30_i32_312 = arith.constant 30 : i32
    %719 = tpu.dynamic_rotate %472 by %c30_i32_312 dim 1 : vector<4x256xf32>, i32 -> vector<4x256xf32>
    %720 = vector.extract_strided_slice %473 {offsets = [2, 0], sizes = [1, 256], strides = [1, 1]} : vector<9x256xf32> to vector<1x256xf32>
    %721 = vector.broadcast %720 : vector<1x256xf32> to vector<4x256xf32>
    %722 = arith.mulf %719, %721 : vector<4x256xf32>
    %c2_313 = arith.constant 2 : index
    %c0_314 = arith.constant 0 : index
    %c0_315 = arith.constant 0 : index
    %723 = vector.load %arg15[%c2_313, %c0_314, %c0_315] : memref<9x8x4xbf16, #tpu.memory_space<vmem>>, vector<1x8x4xbf16>
    %724 = vector.shape_cast %723 : vector<1x8x4xbf16> to vector<8x4xbf16>
    %725 = arith.truncf %722 : vector<4x256xf32> to vector<4x256xbf16>
    %cst_316 = arith.constant dense<0.000000e+00> : vector<8x256xf32>
    %726 = tpu.matmul %724, %725, %cst_316 {dimension_numbers = #tpu.dot_dimension_numbers<[1], [0], [0], [1], [0, 0, 1, 1], [], []>} : vector<8x4xbf16>, vector<4x256xbf16>, vector<8x256xf32> -> vector<8x256xf32>
    %727 = arith.addf %718, %726 : vector<8x256xf32>
    %c2_i32_317 = arith.constant 2 : i32
    %728 = tpu.dynamic_rotate %472 by %c2_i32_317 dim 1 : vector<4x256xf32>, i32 -> vector<4x256xf32>
    %729 = vector.extract_strided_slice %473 {offsets = [3, 0], sizes = [1, 256], strides = [1, 1]} : vector<9x256xf32> to vector<1x256xf32>
    %730 = vector.broadcast %729 : vector<1x256xf32> to vector<4x256xf32>
    %731 = arith.mulf %728, %730 : vector<4x256xf32>
    %c3_318 = arith.constant 3 : index
    %c0_319 = arith.constant 0 : index
    %c0_320 = arith.constant 0 : index
    %732 = vector.load %arg15[%c3_318, %c0_319, %c0_320] : memref<9x8x4xbf16, #tpu.memory_space<vmem>>, vector<1x8x4xbf16>
    %733 = vector.shape_cast %732 : vector<1x8x4xbf16> to vector<8x4xbf16>
    %734 = arith.truncf %731 : vector<4x256xf32> to vector<4x256xbf16>
    %cst_321 = arith.constant dense<0.000000e+00> : vector<8x256xf32>
    %735 = tpu.matmul %733, %734, %cst_321 {dimension_numbers = #tpu.dot_dimension_numbers<[1], [0], [0], [1], [0, 0, 1, 1], [], []>} : vector<8x4xbf16>, vector<4x256xbf16>, vector<8x256xf32> -> vector<8x256xf32>
    %736 = arith.addf %727, %735 : vector<8x256xf32>
    %737 = vector.extract_strided_slice %473 {offsets = [4, 0], sizes = [1, 256], strides = [1, 1]} : vector<9x256xf32> to vector<1x256xf32>
    %738 = vector.broadcast %737 : vector<1x256xf32> to vector<4x256xf32>
    %739 = arith.mulf %472, %738 : vector<4x256xf32>
    %c4_322 = arith.constant 4 : index
    %c0_323 = arith.constant 0 : index
    %c0_324 = arith.constant 0 : index
    %740 = vector.load %arg15[%c4_322, %c0_323, %c0_324] : memref<9x8x4xbf16, #tpu.memory_space<vmem>>, vector<1x8x4xbf16>
    %741 = vector.shape_cast %740 : vector<1x8x4xbf16> to vector<8x4xbf16>
    %742 = arith.truncf %739 : vector<4x256xf32> to vector<4x256xbf16>
    %cst_325 = arith.constant dense<0.000000e+00> : vector<8x256xf32>
    %743 = tpu.matmul %741, %742, %cst_325 {dimension_numbers = #tpu.dot_dimension_numbers<[1], [0], [0], [1], [0, 0, 1, 1], [], []>} : vector<8x4xbf16>, vector<4x256xbf16>, vector<8x256xf32> -> vector<8x256xf32>
    %744 = arith.addf %736, %743 : vector<8x256xf32>
    %c254_i32_326 = arith.constant 254 : i32
    %745 = tpu.dynamic_rotate %472 by %c254_i32_326 dim 1 : vector<4x256xf32>, i32 -> vector<4x256xf32>
    %746 = vector.extract_strided_slice %473 {offsets = [5, 0], sizes = [1, 256], strides = [1, 1]} : vector<9x256xf32> to vector<1x256xf32>
    %747 = vector.broadcast %746 : vector<1x256xf32> to vector<4x256xf32>
    %748 = arith.mulf %745, %747 : vector<4x256xf32>
    %c5_327 = arith.constant 5 : index
    %c0_328 = arith.constant 0 : index
    %c0_329 = arith.constant 0 : index
    %749 = vector.load %arg15[%c5_327, %c0_328, %c0_329] : memref<9x8x4xbf16, #tpu.memory_space<vmem>>, vector<1x8x4xbf16>
    %750 = vector.shape_cast %749 : vector<1x8x4xbf16> to vector<8x4xbf16>
    %751 = arith.truncf %748 : vector<4x256xf32> to vector<4x256xbf16>
    %cst_330 = arith.constant dense<0.000000e+00> : vector<8x256xf32>
    %752 = tpu.matmul %750, %751, %cst_330 {dimension_numbers = #tpu.dot_dimension_numbers<[1], [0], [0], [1], [0, 0, 1, 1], [], []>} : vector<8x4xbf16>, vector<4x256xbf16>, vector<8x256xf32> -> vector<8x256xf32>
    %753 = arith.addf %744, %752 : vector<8x256xf32>
    %c226_i32_331 = arith.constant 226 : i32
    %754 = tpu.dynamic_rotate %472 by %c226_i32_331 dim 1 : vector<4x256xf32>, i32 -> vector<4x256xf32>
    %755 = vector.extract_strided_slice %473 {offsets = [6, 0], sizes = [1, 256], strides = [1, 1]} : vector<9x256xf32> to vector<1x256xf32>
    %756 = vector.broadcast %755 : vector<1x256xf32> to vector<4x256xf32>
    %757 = arith.mulf %754, %756 : vector<4x256xf32>
    %c6_332 = arith.constant 6 : index
    %c0_333 = arith.constant 0 : index
    %c0_334 = arith.constant 0 : index
    %758 = vector.load %arg15[%c6_332, %c0_333, %c0_334] : memref<9x8x4xbf16, #tpu.memory_space<vmem>>, vector<1x8x4xbf16>
    %759 = vector.shape_cast %758 : vector<1x8x4xbf16> to vector<8x4xbf16>
    %760 = arith.truncf %757 : vector<4x256xf32> to vector<4x256xbf16>
    %cst_335 = arith.constant dense<0.000000e+00> : vector<8x256xf32>
    %761 = tpu.matmul %759, %760, %cst_335 {dimension_numbers = #tpu.dot_dimension_numbers<[1], [0], [0], [1], [0, 0, 1, 1], [], []>} : vector<8x4xbf16>, vector<4x256xbf16>, vector<8x256xf32> -> vector<8x256xf32>
    %762 = arith.addf %753, %761 : vector<8x256xf32>
    %c224_i32_336 = arith.constant 224 : i32
    %763 = tpu.dynamic_rotate %472 by %c224_i32_336 dim 1 : vector<4x256xf32>, i32 -> vector<4x256xf32>
    %764 = vector.extract_strided_slice %473 {offsets = [7, 0], sizes = [1, 256], strides = [1, 1]} : vector<9x256xf32> to vector<1x256xf32>
    %765 = vector.broadcast %764 : vector<1x256xf32> to vector<4x256xf32>
    %766 = arith.mulf %763, %765 : vector<4x256xf32>
    %c7_337 = arith.constant 7 : index
    %c0_338 = arith.constant 0 : index
    %c0_339 = arith.constant 0 : index
    %767 = vector.load %arg15[%c7_337, %c0_338, %c0_339] : memref<9x8x4xbf16, #tpu.memory_space<vmem>>, vector<1x8x4xbf16>
    %768 = vector.shape_cast %767 : vector<1x8x4xbf16> to vector<8x4xbf16>
    %769 = arith.truncf %766 : vector<4x256xf32> to vector<4x256xbf16>
    %cst_340 = arith.constant dense<0.000000e+00> : vector<8x256xf32>
    %770 = tpu.matmul %768, %769, %cst_340 {dimension_numbers = #tpu.dot_dimension_numbers<[1], [0], [0], [1], [0, 0, 1, 1], [], []>} : vector<8x4xbf16>, vector<4x256xbf16>, vector<8x256xf32> -> vector<8x256xf32>
    %771 = arith.addf %762, %770 : vector<8x256xf32>
    %c222_i32_341 = arith.constant 222 : i32
    %772 = tpu.dynamic_rotate %472 by %c222_i32_341 dim 1 : vector<4x256xf32>, i32 -> vector<4x256xf32>
    %773 = vector.extract_strided_slice %473 {offsets = [8, 0], sizes = [1, 256], strides = [1, 1]} : vector<9x256xf32> to vector<1x256xf32>
    %774 = vector.broadcast %773 : vector<1x256xf32> to vector<4x256xf32>
    %775 = arith.mulf %772, %774 : vector<4x256xf32>
    %c8_342 = arith.constant 8 : index
    %c0_343 = arith.constant 0 : index
    %c0_344 = arith.constant 0 : index
    %776 = vector.load %arg15[%c8_342, %c0_343, %c0_344] : memref<9x8x4xbf16, #tpu.memory_space<vmem>>, vector<1x8x4xbf16>
    %777 = vector.shape_cast %776 : vector<1x8x4xbf16> to vector<8x4xbf16>
    %778 = arith.truncf %775 : vector<4x256xf32> to vector<4x256xbf16>
    %cst_345 = arith.constant dense<0.000000e+00> : vector<8x256xf32>
    %779 = tpu.matmul %777, %778, %cst_345 {dimension_numbers = #tpu.dot_dimension_numbers<[1], [0], [0], [1], [0, 0, 1, 1], [], []>} : vector<8x4xbf16>, vector<4x256xbf16>, vector<8x256xf32> -> vector<8x256xf32>
    %780 = arith.addf %771, %779 : vector<8x256xf32>
    %cst_346 = arith.constant dense<0.000000e+00> : vector<8xf32>
    %781 = vector.multi_reduction <add>, %780, %cst_346 [1] : vector<8x256xf32> to vector<8xf32>
    %782 = vector.shape_cast %781 : vector<8xf32> to vector<8x1xf32>
    %cst_347 = arith.constant 1.562500e-02 : f32
    %783 = vector.broadcast %cst_347 : f32 to vector<8x1xf32>
    %784 = arith.mulf %782, %783 : vector<8x1xf32>
    %785 = arith.mulf %780, %780 : vector<8x256xf32>
    %cst_348 = arith.constant dense<0.000000e+00> : vector<8xf32>
    %786 = vector.multi_reduction <add>, %785, %cst_348 [1] : vector<8x256xf32> to vector<8xf32>
    %787 = vector.shape_cast %786 : vector<8xf32> to vector<8x1xf32>
    %cst_349 = arith.constant 1.562500e-02 : f32
    %788 = vector.broadcast %cst_349 : f32 to vector<8x1xf32>
    %789 = arith.mulf %787, %788 : vector<8x1xf32>
    %790 = arith.mulf %784, %784 : vector<8x1xf32>
    %791 = arith.subf %789, %790 : vector<8x1xf32>
    %cst_350 = arith.constant 0.000000e+00 : f32
    %792 = vector.broadcast %cst_350 : f32 to vector<8x1xf32>
    %793 = arith.maximumf %791, %792 : vector<8x1xf32>
    %cst_351 = arith.constant 9.99999974E-6 : f32
    %794 = vector.broadcast %cst_351 : f32 to vector<8x1xf32>
    %795 = arith.addf %793, %794 : vector<8x1xf32>
    %796 = math.rsqrt %795 : vector<8x1xf32>
    %797 = vector.broadcast %784 : vector<8x1xf32> to vector<8x256xf32>
    %798 = arith.subf %780, %797 : vector<8x256xf32>
    %799 = vector.broadcast %796 : vector<8x1xf32> to vector<8x256xf32>
    %800 = arith.mulf %798, %799 : vector<8x256xf32>
    %801 = vector.broadcast %474 : vector<1x256xf32> to vector<8x256xf32>
    %802 = arith.mulf %800, %801 : vector<8x256xf32>
    %cst_352 = arith.constant 0.000000e+00 : f32
    %803 = vector.broadcast %cst_352 : f32 to vector<8x256xf32>
    %804 = arith.cmpf oge, %802, %803 : vector<8x256xf32>
    %cst_353 = arith.constant 2.000000e-01 : f32
    %805 = vector.broadcast %cst_353 : f32 to vector<8x256xf32>
    %806 = arith.mulf %805, %802 : vector<8x256xf32>
    %807 = arith.select %804, %802, %806 : vector<8x256xi1>, vector<8x256xf32>
    %cst_354 = arith.constant 0.000000e+00 : f32
    %808 = vector.broadcast %cst_354 : f32 to vector<8x256xf32>
    %c34_i32_355 = arith.constant 34 : i32
    %809 = tpu.dynamic_rotate %807 by %c34_i32_355 dim 1 : vector<8x256xf32>, i32 -> vector<8x256xf32>
    %810 = vector.extract_strided_slice %473 {offsets = [0, 0], sizes = [1, 256], strides = [1, 1]} : vector<9x256xf32> to vector<1x256xf32>
    %811 = vector.broadcast %810 : vector<1x256xf32> to vector<8x256xf32>
    %812 = arith.mulf %809, %811 : vector<8x256xf32>
    %c0_356 = arith.constant 0 : index
    %c0_357 = arith.constant 0 : index
    %c0_358 = arith.constant 0 : index
    %813 = vector.load %arg16[%c0_356, %c0_357, %c0_358] : memref<9x8x8xbf16, #tpu.memory_space<vmem>>, vector<1x8x8xbf16>
    %814 = vector.shape_cast %813 : vector<1x8x8xbf16> to vector<8x8xbf16>
    %815 = arith.truncf %812 : vector<8x256xf32> to vector<8x256xbf16>
    %cst_359 = arith.constant dense<0.000000e+00> : vector<8x256xf32>
    %816 = tpu.matmul %814, %815, %cst_359 {dimension_numbers = #tpu.dot_dimension_numbers<[1], [0], [0], [1], [0, 0, 1, 1], [], []>} : vector<8x8xbf16>, vector<8x256xbf16>, vector<8x256xf32> -> vector<8x256xf32>
    %817 = arith.addf %808, %816 : vector<8x256xf32>
    %c32_i32_360 = arith.constant 32 : i32
    %818 = tpu.dynamic_rotate %807 by %c32_i32_360 dim 1 : vector<8x256xf32>, i32 -> vector<8x256xf32>
    %819 = vector.extract_strided_slice %473 {offsets = [1, 0], sizes = [1, 256], strides = [1, 1]} : vector<9x256xf32> to vector<1x256xf32>
    %820 = vector.broadcast %819 : vector<1x256xf32> to vector<8x256xf32>
    %821 = arith.mulf %818, %820 : vector<8x256xf32>
    %c1_361 = arith.constant 1 : index
    %c0_362 = arith.constant 0 : index
    %c0_363 = arith.constant 0 : index
    %822 = vector.load %arg16[%c1_361, %c0_362, %c0_363] : memref<9x8x8xbf16, #tpu.memory_space<vmem>>, vector<1x8x8xbf16>
    %823 = vector.shape_cast %822 : vector<1x8x8xbf16> to vector<8x8xbf16>
    %824 = arith.truncf %821 : vector<8x256xf32> to vector<8x256xbf16>
    %cst_364 = arith.constant dense<0.000000e+00> : vector<8x256xf32>
    %825 = tpu.matmul %823, %824, %cst_364 {dimension_numbers = #tpu.dot_dimension_numbers<[1], [0], [0], [1], [0, 0, 1, 1], [], []>} : vector<8x8xbf16>, vector<8x256xbf16>, vector<8x256xf32> -> vector<8x256xf32>
    %826 = arith.addf %817, %825 : vector<8x256xf32>
    %c30_i32_365 = arith.constant 30 : i32
    %827 = tpu.dynamic_rotate %807 by %c30_i32_365 dim 1 : vector<8x256xf32>, i32 -> vector<8x256xf32>
    %828 = vector.extract_strided_slice %473 {offsets = [2, 0], sizes = [1, 256], strides = [1, 1]} : vector<9x256xf32> to vector<1x256xf32>
    %829 = vector.broadcast %828 : vector<1x256xf32> to vector<8x256xf32>
    %830 = arith.mulf %827, %829 : vector<8x256xf32>
    %c2_366 = arith.constant 2 : index
    %c0_367 = arith.constant 0 : index
    %c0_368 = arith.constant 0 : index
    %831 = vector.load %arg16[%c2_366, %c0_367, %c0_368] : memref<9x8x8xbf16, #tpu.memory_space<vmem>>, vector<1x8x8xbf16>
    %832 = vector.shape_cast %831 : vector<1x8x8xbf16> to vector<8x8xbf16>
    %833 = arith.truncf %830 : vector<8x256xf32> to vector<8x256xbf16>
    %cst_369 = arith.constant dense<0.000000e+00> : vector<8x256xf32>
    %834 = tpu.matmul %832, %833, %cst_369 {dimension_numbers = #tpu.dot_dimension_numbers<[1], [0], [0], [1], [0, 0, 1, 1], [], []>} : vector<8x8xbf16>, vector<8x256xbf16>, vector<8x256xf32> -> vector<8x256xf32>
    %835 = arith.addf %826, %834 : vector<8x256xf32>
    %c2_i32_370 = arith.constant 2 : i32
    %836 = tpu.dynamic_rotate %807 by %c2_i32_370 dim 1 : vector<8x256xf32>, i32 -> vector<8x256xf32>
    %837 = vector.extract_strided_slice %473 {offsets = [3, 0], sizes = [1, 256], strides = [1, 1]} : vector<9x256xf32> to vector<1x256xf32>
    %838 = vector.broadcast %837 : vector<1x256xf32> to vector<8x256xf32>
    %839 = arith.mulf %836, %838 : vector<8x256xf32>
    %c3_371 = arith.constant 3 : index
    %c0_372 = arith.constant 0 : index
    %c0_373 = arith.constant 0 : index
    %840 = vector.load %arg16[%c3_371, %c0_372, %c0_373] : memref<9x8x8xbf16, #tpu.memory_space<vmem>>, vector<1x8x8xbf16>
    %841 = vector.shape_cast %840 : vector<1x8x8xbf16> to vector<8x8xbf16>
    %842 = arith.truncf %839 : vector<8x256xf32> to vector<8x256xbf16>
    %cst_374 = arith.constant dense<0.000000e+00> : vector<8x256xf32>
    %843 = tpu.matmul %841, %842, %cst_374 {dimension_numbers = #tpu.dot_dimension_numbers<[1], [0], [0], [1], [0, 0, 1, 1], [], []>} : vector<8x8xbf16>, vector<8x256xbf16>, vector<8x256xf32> -> vector<8x256xf32>
    %844 = arith.addf %835, %843 : vector<8x256xf32>
    %845 = vector.extract_strided_slice %473 {offsets = [4, 0], sizes = [1, 256], strides = [1, 1]} : vector<9x256xf32> to vector<1x256xf32>
    %846 = vector.broadcast %845 : vector<1x256xf32> to vector<8x256xf32>
    %847 = arith.mulf %807, %846 : vector<8x256xf32>
    %c4_375 = arith.constant 4 : index
    %c0_376 = arith.constant 0 : index
    %c0_377 = arith.constant 0 : index
    %848 = vector.load %arg16[%c4_375, %c0_376, %c0_377] : memref<9x8x8xbf16, #tpu.memory_space<vmem>>, vector<1x8x8xbf16>
    %849 = vector.shape_cast %848 : vector<1x8x8xbf16> to vector<8x8xbf16>
    %850 = arith.truncf %847 : vector<8x256xf32> to vector<8x256xbf16>
    %cst_378 = arith.constant dense<0.000000e+00> : vector<8x256xf32>
    %851 = tpu.matmul %849, %850, %cst_378 {dimension_numbers = #tpu.dot_dimension_numbers<[1], [0], [0], [1], [0, 0, 1, 1], [], []>} : vector<8x8xbf16>, vector<8x256xbf16>, vector<8x256xf32> -> vector<8x256xf32>
    %852 = arith.addf %844, %851 : vector<8x256xf32>
    %c254_i32_379 = arith.constant 254 : i32
    %853 = tpu.dynamic_rotate %807 by %c254_i32_379 dim 1 : vector<8x256xf32>, i32 -> vector<8x256xf32>
    %854 = vector.extract_strided_slice %473 {offsets = [5, 0], sizes = [1, 256], strides = [1, 1]} : vector<9x256xf32> to vector<1x256xf32>
    %855 = vector.broadcast %854 : vector<1x256xf32> to vector<8x256xf32>
    %856 = arith.mulf %853, %855 : vector<8x256xf32>
    %c5_380 = arith.constant 5 : index
    %c0_381 = arith.constant 0 : index
    %c0_382 = arith.constant 0 : index
    %857 = vector.load %arg16[%c5_380, %c0_381, %c0_382] : memref<9x8x8xbf16, #tpu.memory_space<vmem>>, vector<1x8x8xbf16>
    %858 = vector.shape_cast %857 : vector<1x8x8xbf16> to vector<8x8xbf16>
    %859 = arith.truncf %856 : vector<8x256xf32> to vector<8x256xbf16>
    %cst_383 = arith.constant dense<0.000000e+00> : vector<8x256xf32>
    %860 = tpu.matmul %858, %859, %cst_383 {dimension_numbers = #tpu.dot_dimension_numbers<[1], [0], [0], [1], [0, 0, 1, 1], [], []>} : vector<8x8xbf16>, vector<8x256xbf16>, vector<8x256xf32> -> vector<8x256xf32>
    %861 = arith.addf %852, %860 : vector<8x256xf32>
    %c226_i32_384 = arith.constant 226 : i32
    %862 = tpu.dynamic_rotate %807 by %c226_i32_384 dim 1 : vector<8x256xf32>, i32 -> vector<8x256xf32>
    %863 = vector.extract_strided_slice %473 {offsets = [6, 0], sizes = [1, 256], strides = [1, 1]} : vector<9x256xf32> to vector<1x256xf32>
    %864 = vector.broadcast %863 : vector<1x256xf32> to vector<8x256xf32>
    %865 = arith.mulf %862, %864 : vector<8x256xf32>
    %c6_385 = arith.constant 6 : index
    %c0_386 = arith.constant 0 : index
    %c0_387 = arith.constant 0 : index
    %866 = vector.load %arg16[%c6_385, %c0_386, %c0_387] : memref<9x8x8xbf16, #tpu.memory_space<vmem>>, vector<1x8x8xbf16>
    %867 = vector.shape_cast %866 : vector<1x8x8xbf16> to vector<8x8xbf16>
    %868 = arith.truncf %865 : vector<8x256xf32> to vector<8x256xbf16>
    %cst_388 = arith.constant dense<0.000000e+00> : vector<8x256xf32>
    %869 = tpu.matmul %867, %868, %cst_388 {dimension_numbers = #tpu.dot_dimension_numbers<[1], [0], [0], [1], [0, 0, 1, 1], [], []>} : vector<8x8xbf16>, vector<8x256xbf16>, vector<8x256xf32> -> vector<8x256xf32>
    %870 = arith.addf %861, %869 : vector<8x256xf32>
    %c224_i32_389 = arith.constant 224 : i32
    %871 = tpu.dynamic_rotate %807 by %c224_i32_389 dim 1 : vector<8x256xf32>, i32 -> vector<8x256xf32>
    %872 = vector.extract_strided_slice %473 {offsets = [7, 0], sizes = [1, 256], strides = [1, 1]} : vector<9x256xf32> to vector<1x256xf32>
    %873 = vector.broadcast %872 : vector<1x256xf32> to vector<8x256xf32>
    %874 = arith.mulf %871, %873 : vector<8x256xf32>
    %c7_390 = arith.constant 7 : index
    %c0_391 = arith.constant 0 : index
    %c0_392 = arith.constant 0 : index
    %875 = vector.load %arg16[%c7_390, %c0_391, %c0_392] : memref<9x8x8xbf16, #tpu.memory_space<vmem>>, vector<1x8x8xbf16>
    %876 = vector.shape_cast %875 : vector<1x8x8xbf16> to vector<8x8xbf16>
    %877 = arith.truncf %874 : vector<8x256xf32> to vector<8x256xbf16>
    %cst_393 = arith.constant dense<0.000000e+00> : vector<8x256xf32>
    %878 = tpu.matmul %876, %877, %cst_393 {dimension_numbers = #tpu.dot_dimension_numbers<[1], [0], [0], [1], [0, 0, 1, 1], [], []>} : vector<8x8xbf16>, vector<8x256xbf16>, vector<8x256xf32> -> vector<8x256xf32>
    %879 = arith.addf %870, %878 : vector<8x256xf32>
    %c222_i32_394 = arith.constant 222 : i32
    %880 = tpu.dynamic_rotate %807 by %c222_i32_394 dim 1 : vector<8x256xf32>, i32 -> vector<8x256xf32>
    %881 = vector.extract_strided_slice %473 {offsets = [8, 0], sizes = [1, 256], strides = [1, 1]} : vector<9x256xf32> to vector<1x256xf32>
    %882 = vector.broadcast %881 : vector<1x256xf32> to vector<8x256xf32>
    %883 = arith.mulf %880, %882 : vector<8x256xf32>
    %c8_395 = arith.constant 8 : index
    %c0_396 = arith.constant 0 : index
    %c0_397 = arith.constant 0 : index
    %884 = vector.load %arg16[%c8_395, %c0_396, %c0_397] : memref<9x8x8xbf16, #tpu.memory_space<vmem>>, vector<1x8x8xbf16>
    %885 = vector.shape_cast %884 : vector<1x8x8xbf16> to vector<8x8xbf16>
    %886 = arith.truncf %883 : vector<8x256xf32> to vector<8x256xbf16>
    %cst_398 = arith.constant dense<0.000000e+00> : vector<8x256xf32>
    %887 = tpu.matmul %885, %886, %cst_398 {dimension_numbers = #tpu.dot_dimension_numbers<[1], [0], [0], [1], [0, 0, 1, 1], [], []>} : vector<8x8xbf16>, vector<8x256xbf16>, vector<8x256xf32> -> vector<8x256xf32>
    %888 = arith.addf %879, %887 : vector<8x256xf32>
    %cst_399 = arith.constant dense<0.000000e+00> : vector<8xf32>
    %889 = vector.multi_reduction <add>, %888, %cst_399 [1] : vector<8x256xf32> to vector<8xf32>
    %890 = vector.shape_cast %889 : vector<8xf32> to vector<8x1xf32>
    %cst_400 = arith.constant 1.562500e-02 : f32
    %891 = vector.broadcast %cst_400 : f32 to vector<8x1xf32>
    %892 = arith.mulf %890, %891 : vector<8x1xf32>
    %893 = arith.mulf %888, %888 : vector<8x256xf32>
    %cst_401 = arith.constant dense<0.000000e+00> : vector<8xf32>
    %894 = vector.multi_reduction <add>, %893, %cst_401 [1] : vector<8x256xf32> to vector<8xf32>
    %895 = vector.shape_cast %894 : vector<8xf32> to vector<8x1xf32>
    %cst_402 = arith.constant 1.562500e-02 : f32
    %896 = vector.broadcast %cst_402 : f32 to vector<8x1xf32>
    %897 = arith.mulf %895, %896 : vector<8x1xf32>
    %898 = arith.mulf %892, %892 : vector<8x1xf32>
    %899 = arith.subf %897, %898 : vector<8x1xf32>
    %cst_403 = arith.constant 0.000000e+00 : f32
    %900 = vector.broadcast %cst_403 : f32 to vector<8x1xf32>
    %901 = arith.maximumf %899, %900 : vector<8x1xf32>
    %cst_404 = arith.constant 9.99999974E-6 : f32
    %902 = vector.broadcast %cst_404 : f32 to vector<8x1xf32>
    %903 = arith.addf %901, %902 : vector<8x1xf32>
    %904 = math.rsqrt %903 : vector<8x1xf32>
    %905 = vector.broadcast %892 : vector<8x1xf32> to vector<8x256xf32>
    %906 = arith.subf %888, %905 : vector<8x256xf32>
    %907 = vector.broadcast %904 : vector<8x1xf32> to vector<8x256xf32>
    %908 = arith.mulf %906, %907 : vector<8x256xf32>
    %909 = vector.broadcast %474 : vector<1x256xf32> to vector<8x256xf32>
    %910 = arith.mulf %908, %909 : vector<8x256xf32>
    %cst_405 = arith.constant 0.000000e+00 : f32
    %911 = vector.broadcast %cst_405 : f32 to vector<8x256xf32>
    %912 = arith.cmpf oge, %910, %911 : vector<8x256xf32>
    %cst_406 = arith.constant 2.000000e-01 : f32
    %913 = vector.broadcast %cst_406 : f32 to vector<8x256xf32>
    %914 = arith.mulf %913, %910 : vector<8x256xf32>
    %915 = arith.select %912, %910, %914 : vector<8x256xi1>, vector<8x256xf32>
    %c254_i32_407 = arith.constant 254 : i32
    %916 = tpu.dynamic_rotate %915 by %c254_i32_407 dim 1 : vector<8x256xf32>, i32 -> vector<8x256xf32>
    %917 = arith.addf %915, %916 : vector<8x256xf32>
    %c224_i32_408 = arith.constant 224 : i32
    %918 = tpu.dynamic_rotate %917 by %c224_i32_408 dim 1 : vector<8x256xf32>, i32 -> vector<8x256xf32>
    %919 = arith.addf %917, %918 : vector<8x256xf32>
    %cst_409 = arith.constant 2.500000e-01 : f32
    %920 = vector.broadcast %cst_409 : f32 to vector<8x256xf32>
    %921 = arith.mulf %920, %919 : vector<8x256xf32>
    %922 = vector.broadcast %475 : vector<1x256xf32> to vector<8x256xf32>
    %923 = arith.mulf %921, %922 : vector<8x256xf32>
    %924 = tpu.concatenate %699, %923 in 0 : vector<8x256xf32>, vector<8x256xf32> -> vector<16x256xf32>
    %c0_410 = arith.constant 0 : index
    %c0_411 = arith.constant 0 : index
    %925 = vector.load %arg17[%c0_410, %c0_411] : memref<9x256xf32, #tpu.memory_space<vmem>>, vector<9x256xf32>
    %c0_412 = arith.constant 0 : index
    %c0_413 = arith.constant 0 : index
    %926 = vector.load %arg18[%c0_412, %c0_413] : memref<1x256xf32, #tpu.memory_space<vmem>>, vector<1x256xf32>
    %cst_414 = arith.constant 0.000000e+00 : f32
    %927 = vector.broadcast %cst_414 : f32 to vector<16x256xf32>
    %c68_i32 = arith.constant 68 : i32
    %928 = tpu.dynamic_rotate %924 by %c68_i32 dim 1 : vector<16x256xf32>, i32 -> vector<16x256xf32>
    %929 = vector.extract_strided_slice %925 {offsets = [0, 0], sizes = [1, 256], strides = [1, 1]} : vector<9x256xf32> to vector<1x256xf32>
    %930 = vector.broadcast %929 : vector<1x256xf32> to vector<16x256xf32>
    %931 = arith.mulf %928, %930 : vector<16x256xf32>
    %c0_415 = arith.constant 0 : index
    %c0_416 = arith.constant 0 : index
    %c0_417 = arith.constant 0 : index
    %932 = vector.load %arg19[%c0_415, %c0_416, %c0_417] : memref<9x16x16xbf16, #tpu.memory_space<vmem>>, vector<1x16x16xbf16>
    %933 = vector.shape_cast %932 : vector<1x16x16xbf16> to vector<16x16xbf16>
    %934 = arith.truncf %931 : vector<16x256xf32> to vector<16x256xbf16>
    %cst_418 = arith.constant dense<0.000000e+00> : vector<16x256xf32>
    %935 = tpu.matmul %933, %934, %cst_418 {dimension_numbers = #tpu.dot_dimension_numbers<[1], [0], [0], [1], [0, 0, 1, 1], [], []>} : vector<16x16xbf16>, vector<16x256xbf16>, vector<16x256xf32> -> vector<16x256xf32>
    %936 = arith.addf %927, %935 : vector<16x256xf32>
    %c64_i32 = arith.constant 64 : i32
    %937 = tpu.dynamic_rotate %924 by %c64_i32 dim 1 : vector<16x256xf32>, i32 -> vector<16x256xf32>
    %938 = vector.extract_strided_slice %925 {offsets = [1, 0], sizes = [1, 256], strides = [1, 1]} : vector<9x256xf32> to vector<1x256xf32>
    %939 = vector.broadcast %938 : vector<1x256xf32> to vector<16x256xf32>
    %940 = arith.mulf %937, %939 : vector<16x256xf32>
    %c1_419 = arith.constant 1 : index
    %c0_420 = arith.constant 0 : index
    %c0_421 = arith.constant 0 : index
    %941 = vector.load %arg19[%c1_419, %c0_420, %c0_421] : memref<9x16x16xbf16, #tpu.memory_space<vmem>>, vector<1x16x16xbf16>
    %942 = vector.shape_cast %941 : vector<1x16x16xbf16> to vector<16x16xbf16>
    %943 = arith.truncf %940 : vector<16x256xf32> to vector<16x256xbf16>
    %cst_422 = arith.constant dense<0.000000e+00> : vector<16x256xf32>
    %944 = tpu.matmul %942, %943, %cst_422 {dimension_numbers = #tpu.dot_dimension_numbers<[1], [0], [0], [1], [0, 0, 1, 1], [], []>} : vector<16x16xbf16>, vector<16x256xbf16>, vector<16x256xf32> -> vector<16x256xf32>
    %945 = arith.addf %936, %944 : vector<16x256xf32>
    %c60_i32 = arith.constant 60 : i32
    %946 = tpu.dynamic_rotate %924 by %c60_i32 dim 1 : vector<16x256xf32>, i32 -> vector<16x256xf32>
    %947 = vector.extract_strided_slice %925 {offsets = [2, 0], sizes = [1, 256], strides = [1, 1]} : vector<9x256xf32> to vector<1x256xf32>
    %948 = vector.broadcast %947 : vector<1x256xf32> to vector<16x256xf32>
    %949 = arith.mulf %946, %948 : vector<16x256xf32>
    %c2_423 = arith.constant 2 : index
    %c0_424 = arith.constant 0 : index
    %c0_425 = arith.constant 0 : index
    %950 = vector.load %arg19[%c2_423, %c0_424, %c0_425] : memref<9x16x16xbf16, #tpu.memory_space<vmem>>, vector<1x16x16xbf16>
    %951 = vector.shape_cast %950 : vector<1x16x16xbf16> to vector<16x16xbf16>
    %952 = arith.truncf %949 : vector<16x256xf32> to vector<16x256xbf16>
    %cst_426 = arith.constant dense<0.000000e+00> : vector<16x256xf32>
    %953 = tpu.matmul %951, %952, %cst_426 {dimension_numbers = #tpu.dot_dimension_numbers<[1], [0], [0], [1], [0, 0, 1, 1], [], []>} : vector<16x16xbf16>, vector<16x256xbf16>, vector<16x256xf32> -> vector<16x256xf32>
    %954 = arith.addf %945, %953 : vector<16x256xf32>
    %c4_i32 = arith.constant 4 : i32
    %955 = tpu.dynamic_rotate %924 by %c4_i32 dim 1 : vector<16x256xf32>, i32 -> vector<16x256xf32>
    %956 = vector.extract_strided_slice %925 {offsets = [3, 0], sizes = [1, 256], strides = [1, 1]} : vector<9x256xf32> to vector<1x256xf32>
    %957 = vector.broadcast %956 : vector<1x256xf32> to vector<16x256xf32>
    %958 = arith.mulf %955, %957 : vector<16x256xf32>
    %c3_427 = arith.constant 3 : index
    %c0_428 = arith.constant 0 : index
    %c0_429 = arith.constant 0 : index
    %959 = vector.load %arg19[%c3_427, %c0_428, %c0_429] : memref<9x16x16xbf16, #tpu.memory_space<vmem>>, vector<1x16x16xbf16>
    %960 = vector.shape_cast %959 : vector<1x16x16xbf16> to vector<16x16xbf16>
    %961 = arith.truncf %958 : vector<16x256xf32> to vector<16x256xbf16>
    %cst_430 = arith.constant dense<0.000000e+00> : vector<16x256xf32>
    %962 = tpu.matmul %960, %961, %cst_430 {dimension_numbers = #tpu.dot_dimension_numbers<[1], [0], [0], [1], [0, 0, 1, 1], [], []>} : vector<16x16xbf16>, vector<16x256xbf16>, vector<16x256xf32> -> vector<16x256xf32>
    %963 = arith.addf %954, %962 : vector<16x256xf32>
    %964 = vector.extract_strided_slice %925 {offsets = [4, 0], sizes = [1, 256], strides = [1, 1]} : vector<9x256xf32> to vector<1x256xf32>
    %965 = vector.broadcast %964 : vector<1x256xf32> to vector<16x256xf32>
    %966 = arith.mulf %924, %965 : vector<16x256xf32>
    %c4_431 = arith.constant 4 : index
    %c0_432 = arith.constant 0 : index
    %c0_433 = arith.constant 0 : index
    %967 = vector.load %arg19[%c4_431, %c0_432, %c0_433] : memref<9x16x16xbf16, #tpu.memory_space<vmem>>, vector<1x16x16xbf16>
    %968 = vector.shape_cast %967 : vector<1x16x16xbf16> to vector<16x16xbf16>
    %969 = arith.truncf %966 : vector<16x256xf32> to vector<16x256xbf16>
    %cst_434 = arith.constant dense<0.000000e+00> : vector<16x256xf32>
    %970 = tpu.matmul %968, %969, %cst_434 {dimension_numbers = #tpu.dot_dimension_numbers<[1], [0], [0], [1], [0, 0, 1, 1], [], []>} : vector<16x16xbf16>, vector<16x256xbf16>, vector<16x256xf32> -> vector<16x256xf32>
    %971 = arith.addf %963, %970 : vector<16x256xf32>
    %c252_i32 = arith.constant 252 : i32
    %972 = tpu.dynamic_rotate %924 by %c252_i32 dim 1 : vector<16x256xf32>, i32 -> vector<16x256xf32>
    %973 = vector.extract_strided_slice %925 {offsets = [5, 0], sizes = [1, 256], strides = [1, 1]} : vector<9x256xf32> to vector<1x256xf32>
    %974 = vector.broadcast %973 : vector<1x256xf32> to vector<16x256xf32>
    %975 = arith.mulf %972, %974 : vector<16x256xf32>
    %c5_435 = arith.constant 5 : index
    %c0_436 = arith.constant 0 : index
    %c0_437 = arith.constant 0 : index
    %976 = vector.load %arg19[%c5_435, %c0_436, %c0_437] : memref<9x16x16xbf16, #tpu.memory_space<vmem>>, vector<1x16x16xbf16>
    %977 = vector.shape_cast %976 : vector<1x16x16xbf16> to vector<16x16xbf16>
    %978 = arith.truncf %975 : vector<16x256xf32> to vector<16x256xbf16>
    %cst_438 = arith.constant dense<0.000000e+00> : vector<16x256xf32>
    %979 = tpu.matmul %977, %978, %cst_438 {dimension_numbers = #tpu.dot_dimension_numbers<[1], [0], [0], [1], [0, 0, 1, 1], [], []>} : vector<16x16xbf16>, vector<16x256xbf16>, vector<16x256xf32> -> vector<16x256xf32>
    %980 = arith.addf %971, %979 : vector<16x256xf32>
    %c196_i32 = arith.constant 196 : i32
    %981 = tpu.dynamic_rotate %924 by %c196_i32 dim 1 : vector<16x256xf32>, i32 -> vector<16x256xf32>
    %982 = vector.extract_strided_slice %925 {offsets = [6, 0], sizes = [1, 256], strides = [1, 1]} : vector<9x256xf32> to vector<1x256xf32>
    %983 = vector.broadcast %982 : vector<1x256xf32> to vector<16x256xf32>
    %984 = arith.mulf %981, %983 : vector<16x256xf32>
    %c6_439 = arith.constant 6 : index
    %c0_440 = arith.constant 0 : index
    %c0_441 = arith.constant 0 : index
    %985 = vector.load %arg19[%c6_439, %c0_440, %c0_441] : memref<9x16x16xbf16, #tpu.memory_space<vmem>>, vector<1x16x16xbf16>
    %986 = vector.shape_cast %985 : vector<1x16x16xbf16> to vector<16x16xbf16>
    %987 = arith.truncf %984 : vector<16x256xf32> to vector<16x256xbf16>
    %cst_442 = arith.constant dense<0.000000e+00> : vector<16x256xf32>
    %988 = tpu.matmul %986, %987, %cst_442 {dimension_numbers = #tpu.dot_dimension_numbers<[1], [0], [0], [1], [0, 0, 1, 1], [], []>} : vector<16x16xbf16>, vector<16x256xbf16>, vector<16x256xf32> -> vector<16x256xf32>
    %989 = arith.addf %980, %988 : vector<16x256xf32>
    %c192_i32 = arith.constant 192 : i32
    %990 = tpu.dynamic_rotate %924 by %c192_i32 dim 1 : vector<16x256xf32>, i32 -> vector<16x256xf32>
    %991 = vector.extract_strided_slice %925 {offsets = [7, 0], sizes = [1, 256], strides = [1, 1]} : vector<9x256xf32> to vector<1x256xf32>
    %992 = vector.broadcast %991 : vector<1x256xf32> to vector<16x256xf32>
    %993 = arith.mulf %990, %992 : vector<16x256xf32>
    %c7_443 = arith.constant 7 : index
    %c0_444 = arith.constant 0 : index
    %c0_445 = arith.constant 0 : index
    %994 = vector.load %arg19[%c7_443, %c0_444, %c0_445] : memref<9x16x16xbf16, #tpu.memory_space<vmem>>, vector<1x16x16xbf16>
    %995 = vector.shape_cast %994 : vector<1x16x16xbf16> to vector<16x16xbf16>
    %996 = arith.truncf %993 : vector<16x256xf32> to vector<16x256xbf16>
    %cst_446 = arith.constant dense<0.000000e+00> : vector<16x256xf32>
    %997 = tpu.matmul %995, %996, %cst_446 {dimension_numbers = #tpu.dot_dimension_numbers<[1], [0], [0], [1], [0, 0, 1, 1], [], []>} : vector<16x16xbf16>, vector<16x256xbf16>, vector<16x256xf32> -> vector<16x256xf32>
    %998 = arith.addf %989, %997 : vector<16x256xf32>
    %c188_i32 = arith.constant 188 : i32
    %999 = tpu.dynamic_rotate %924 by %c188_i32 dim 1 : vector<16x256xf32>, i32 -> vector<16x256xf32>
    %1000 = vector.extract_strided_slice %925 {offsets = [8, 0], sizes = [1, 256], strides = [1, 1]} : vector<9x256xf32> to vector<1x256xf32>
    %1001 = vector.broadcast %1000 : vector<1x256xf32> to vector<16x256xf32>
    %1002 = arith.mulf %999, %1001 : vector<16x256xf32>
    %c8_447 = arith.constant 8 : index
    %c0_448 = arith.constant 0 : index
    %c0_449 = arith.constant 0 : index
    %1003 = vector.load %arg19[%c8_447, %c0_448, %c0_449] : memref<9x16x16xbf16, #tpu.memory_space<vmem>>, vector<1x16x16xbf16>
    %1004 = vector.shape_cast %1003 : vector<1x16x16xbf16> to vector<16x16xbf16>
    %1005 = arith.truncf %1002 : vector<16x256xf32> to vector<16x256xbf16>
    %cst_450 = arith.constant dense<0.000000e+00> : vector<16x256xf32>
    %1006 = tpu.matmul %1004, %1005, %cst_450 {dimension_numbers = #tpu.dot_dimension_numbers<[1], [0], [0], [1], [0, 0, 1, 1], [], []>} : vector<16x16xbf16>, vector<16x256xbf16>, vector<16x256xf32> -> vector<16x256xf32>
    %1007 = arith.addf %998, %1006 : vector<16x256xf32>
    %cst_451 = arith.constant dense<0.000000e+00> : vector<16xf32>
    %1008 = vector.multi_reduction <add>, %1007, %cst_451 [1] : vector<16x256xf32> to vector<16xf32>
    %1009 = vector.shape_cast %1008 : vector<16xf32> to vector<16x1xf32>
    %cst_452 = arith.constant 6.250000e-02 : f32
    %1010 = vector.broadcast %cst_452 : f32 to vector<16x1xf32>
    %1011 = arith.mulf %1009, %1010 : vector<16x1xf32>
    %1012 = arith.mulf %1007, %1007 : vector<16x256xf32>
    %cst_453 = arith.constant dense<0.000000e+00> : vector<16xf32>
    %1013 = vector.multi_reduction <add>, %1012, %cst_453 [1] : vector<16x256xf32> to vector<16xf32>
    %1014 = vector.shape_cast %1013 : vector<16xf32> to vector<16x1xf32>
    %cst_454 = arith.constant 6.250000e-02 : f32
    %1015 = vector.broadcast %cst_454 : f32 to vector<16x1xf32>
    %1016 = arith.mulf %1014, %1015 : vector<16x1xf32>
    %1017 = arith.mulf %1011, %1011 : vector<16x1xf32>
    %1018 = arith.subf %1016, %1017 : vector<16x1xf32>
    %cst_455 = arith.constant 0.000000e+00 : f32
    %1019 = vector.broadcast %cst_455 : f32 to vector<16x1xf32>
    %1020 = arith.maximumf %1018, %1019 : vector<16x1xf32>
    %cst_456 = arith.constant 9.99999974E-6 : f32
    %1021 = vector.broadcast %cst_456 : f32 to vector<16x1xf32>
    %1022 = arith.addf %1020, %1021 : vector<16x1xf32>
    %1023 = math.rsqrt %1022 : vector<16x1xf32>
    %1024 = vector.broadcast %1011 : vector<16x1xf32> to vector<16x256xf32>
    %1025 = arith.subf %1007, %1024 : vector<16x256xf32>
    %1026 = vector.broadcast %1023 : vector<16x1xf32> to vector<16x256xf32>
    %1027 = arith.mulf %1025, %1026 : vector<16x256xf32>
    %1028 = vector.broadcast %926 : vector<1x256xf32> to vector<16x256xf32>
    %1029 = arith.mulf %1027, %1028 : vector<16x256xf32>
    %cst_457 = arith.constant 0.000000e+00 : f32
    %1030 = vector.broadcast %cst_457 : f32 to vector<16x256xf32>
    %1031 = arith.cmpf oge, %1029, %1030 : vector<16x256xf32>
    %cst_458 = arith.constant 2.000000e-01 : f32
    %1032 = vector.broadcast %cst_458 : f32 to vector<16x256xf32>
    %1033 = arith.mulf %1032, %1029 : vector<16x256xf32>
    %1034 = arith.select %1031, %1029, %1033 : vector<16x256xi1>, vector<16x256xf32>
    %cst_459 = arith.constant 0.000000e+00 : f32
    %1035 = vector.broadcast %cst_459 : f32 to vector<16x256xf32>
    %c68_i32_460 = arith.constant 68 : i32
    %1036 = tpu.dynamic_rotate %1034 by %c68_i32_460 dim 1 : vector<16x256xf32>, i32 -> vector<16x256xf32>
    %1037 = vector.extract_strided_slice %925 {offsets = [0, 0], sizes = [1, 256], strides = [1, 1]} : vector<9x256xf32> to vector<1x256xf32>
    %1038 = vector.broadcast %1037 : vector<1x256xf32> to vector<16x256xf32>
    %1039 = arith.mulf %1036, %1038 : vector<16x256xf32>
    %c0_461 = arith.constant 0 : index
    %c0_462 = arith.constant 0 : index
    %c0_463 = arith.constant 0 : index
    %1040 = vector.load %arg20[%c0_461, %c0_462, %c0_463] : memref<9x16x16xbf16, #tpu.memory_space<vmem>>, vector<1x16x16xbf16>
    %1041 = vector.shape_cast %1040 : vector<1x16x16xbf16> to vector<16x16xbf16>
    %1042 = arith.truncf %1039 : vector<16x256xf32> to vector<16x256xbf16>
    %cst_464 = arith.constant dense<0.000000e+00> : vector<16x256xf32>
    %1043 = tpu.matmul %1041, %1042, %cst_464 {dimension_numbers = #tpu.dot_dimension_numbers<[1], [0], [0], [1], [0, 0, 1, 1], [], []>} : vector<16x16xbf16>, vector<16x256xbf16>, vector<16x256xf32> -> vector<16x256xf32>
    %1044 = arith.addf %1035, %1043 : vector<16x256xf32>
    %c64_i32_465 = arith.constant 64 : i32
    %1045 = tpu.dynamic_rotate %1034 by %c64_i32_465 dim 1 : vector<16x256xf32>, i32 -> vector<16x256xf32>
    %1046 = vector.extract_strided_slice %925 {offsets = [1, 0], sizes = [1, 256], strides = [1, 1]} : vector<9x256xf32> to vector<1x256xf32>
    %1047 = vector.broadcast %1046 : vector<1x256xf32> to vector<16x256xf32>
    %1048 = arith.mulf %1045, %1047 : vector<16x256xf32>
    %c1_466 = arith.constant 1 : index
    %c0_467 = arith.constant 0 : index
    %c0_468 = arith.constant 0 : index
    %1049 = vector.load %arg20[%c1_466, %c0_467, %c0_468] : memref<9x16x16xbf16, #tpu.memory_space<vmem>>, vector<1x16x16xbf16>
    %1050 = vector.shape_cast %1049 : vector<1x16x16xbf16> to vector<16x16xbf16>
    %1051 = arith.truncf %1048 : vector<16x256xf32> to vector<16x256xbf16>
    %cst_469 = arith.constant dense<0.000000e+00> : vector<16x256xf32>
    %1052 = tpu.matmul %1050, %1051, %cst_469 {dimension_numbers = #tpu.dot_dimension_numbers<[1], [0], [0], [1], [0, 0, 1, 1], [], []>} : vector<16x16xbf16>, vector<16x256xbf16>, vector<16x256xf32> -> vector<16x256xf32>
    %1053 = arith.addf %1044, %1052 : vector<16x256xf32>
    %c60_i32_470 = arith.constant 60 : i32
    %1054 = tpu.dynamic_rotate %1034 by %c60_i32_470 dim 1 : vector<16x256xf32>, i32 -> vector<16x256xf32>
    %1055 = vector.extract_strided_slice %925 {offsets = [2, 0], sizes = [1, 256], strides = [1, 1]} : vector<9x256xf32> to vector<1x256xf32>
    %1056 = vector.broadcast %1055 : vector<1x256xf32> to vector<16x256xf32>
    %1057 = arith.mulf %1054, %1056 : vector<16x256xf32>
    %c2_471 = arith.constant 2 : index
    %c0_472 = arith.constant 0 : index
    %c0_473 = arith.constant 0 : index
    %1058 = vector.load %arg20[%c2_471, %c0_472, %c0_473] : memref<9x16x16xbf16, #tpu.memory_space<vmem>>, vector<1x16x16xbf16>
    %1059 = vector.shape_cast %1058 : vector<1x16x16xbf16> to vector<16x16xbf16>
    %1060 = arith.truncf %1057 : vector<16x256xf32> to vector<16x256xbf16>
    %cst_474 = arith.constant dense<0.000000e+00> : vector<16x256xf32>
    %1061 = tpu.matmul %1059, %1060, %cst_474 {dimension_numbers = #tpu.dot_dimension_numbers<[1], [0], [0], [1], [0, 0, 1, 1], [], []>} : vector<16x16xbf16>, vector<16x256xbf16>, vector<16x256xf32> -> vector<16x256xf32>
    %1062 = arith.addf %1053, %1061 : vector<16x256xf32>
    %c4_i32_475 = arith.constant 4 : i32
    %1063 = tpu.dynamic_rotate %1034 by %c4_i32_475 dim 1 : vector<16x256xf32>, i32 -> vector<16x256xf32>
    %1064 = vector.extract_strided_slice %925 {offsets = [3, 0], sizes = [1, 256], strides = [1, 1]} : vector<9x256xf32> to vector<1x256xf32>
    %1065 = vector.broadcast %1064 : vector<1x256xf32> to vector<16x256xf32>
    %1066 = arith.mulf %1063, %1065 : vector<16x256xf32>
    %c3_476 = arith.constant 3 : index
    %c0_477 = arith.constant 0 : index
    %c0_478 = arith.constant 0 : index
    %1067 = vector.load %arg20[%c3_476, %c0_477, %c0_478] : memref<9x16x16xbf16, #tpu.memory_space<vmem>>, vector<1x16x16xbf16>
    %1068 = vector.shape_cast %1067 : vector<1x16x16xbf16> to vector<16x16xbf16>
    %1069 = arith.truncf %1066 : vector<16x256xf32> to vector<16x256xbf16>
    %cst_479 = arith.constant dense<0.000000e+00> : vector<16x256xf32>
    %1070 = tpu.matmul %1068, %1069, %cst_479 {dimension_numbers = #tpu.dot_dimension_numbers<[1], [0], [0], [1], [0, 0, 1, 1], [], []>} : vector<16x16xbf16>, vector<16x256xbf16>, vector<16x256xf32> -> vector<16x256xf32>
    %1071 = arith.addf %1062, %1070 : vector<16x256xf32>
    %1072 = vector.extract_strided_slice %925 {offsets = [4, 0], sizes = [1, 256], strides = [1, 1]} : vector<9x256xf32> to vector<1x256xf32>
    %1073 = vector.broadcast %1072 : vector<1x256xf32> to vector<16x256xf32>
    %1074 = arith.mulf %1034, %1073 : vector<16x256xf32>
    %c4_480 = arith.constant 4 : index
    %c0_481 = arith.constant 0 : index
    %c0_482 = arith.constant 0 : index
    %1075 = vector.load %arg20[%c4_480, %c0_481, %c0_482] : memref<9x16x16xbf16, #tpu.memory_space<vmem>>, vector<1x16x16xbf16>
    %1076 = vector.shape_cast %1075 : vector<1x16x16xbf16> to vector<16x16xbf16>
    %1077 = arith.truncf %1074 : vector<16x256xf32> to vector<16x256xbf16>
    %cst_483 = arith.constant dense<0.000000e+00> : vector<16x256xf32>
    %1078 = tpu.matmul %1076, %1077, %cst_483 {dimension_numbers = #tpu.dot_dimension_numbers<[1], [0], [0], [1], [0, 0, 1, 1], [], []>} : vector<16x16xbf16>, vector<16x256xbf16>, vector<16x256xf32> -> vector<16x256xf32>
    %1079 = arith.addf %1071, %1078 : vector<16x256xf32>
    %c252_i32_484 = arith.constant 252 : i32
    %1080 = tpu.dynamic_rotate %1034 by %c252_i32_484 dim 1 : vector<16x256xf32>, i32 -> vector<16x256xf32>
    %1081 = vector.extract_strided_slice %925 {offsets = [5, 0], sizes = [1, 256], strides = [1, 1]} : vector<9x256xf32> to vector<1x256xf32>
    %1082 = vector.broadcast %1081 : vector<1x256xf32> to vector<16x256xf32>
    %1083 = arith.mulf %1080, %1082 : vector<16x256xf32>
    %c5_485 = arith.constant 5 : index
    %c0_486 = arith.constant 0 : index
    %c0_487 = arith.constant 0 : index
    %1084 = vector.load %arg20[%c5_485, %c0_486, %c0_487] : memref<9x16x16xbf16, #tpu.memory_space<vmem>>, vector<1x16x16xbf16>
    %1085 = vector.shape_cast %1084 : vector<1x16x16xbf16> to vector<16x16xbf16>
    %1086 = arith.truncf %1083 : vector<16x256xf32> to vector<16x256xbf16>
    %cst_488 = arith.constant dense<0.000000e+00> : vector<16x256xf32>
    %1087 = tpu.matmul %1085, %1086, %cst_488 {dimension_numbers = #tpu.dot_dimension_numbers<[1], [0], [0], [1], [0, 0, 1, 1], [], []>} : vector<16x16xbf16>, vector<16x256xbf16>, vector<16x256xf32> -> vector<16x256xf32>
    %1088 = arith.addf %1079, %1087 : vector<16x256xf32>
    %c196_i32_489 = arith.constant 196 : i32
    %1089 = tpu.dynamic_rotate %1034 by %c196_i32_489 dim 1 : vector<16x256xf32>, i32 -> vector<16x256xf32>
    %1090 = vector.extract_strided_slice %925 {offsets = [6, 0], sizes = [1, 256], strides = [1, 1]} : vector<9x256xf32> to vector<1x256xf32>
    %1091 = vector.broadcast %1090 : vector<1x256xf32> to vector<16x256xf32>
    %1092 = arith.mulf %1089, %1091 : vector<16x256xf32>
    %c6_490 = arith.constant 6 : index
    %c0_491 = arith.constant 0 : index
    %c0_492 = arith.constant 0 : index
    %1093 = vector.load %arg20[%c6_490, %c0_491, %c0_492] : memref<9x16x16xbf16, #tpu.memory_space<vmem>>, vector<1x16x16xbf16>
    %1094 = vector.shape_cast %1093 : vector<1x16x16xbf16> to vector<16x16xbf16>
    %1095 = arith.truncf %1092 : vector<16x256xf32> to vector<16x256xbf16>
    %cst_493 = arith.constant dense<0.000000e+00> : vector<16x256xf32>
    %1096 = tpu.matmul %1094, %1095, %cst_493 {dimension_numbers = #tpu.dot_dimension_numbers<[1], [0], [0], [1], [0, 0, 1, 1], [], []>} : vector<16x16xbf16>, vector<16x256xbf16>, vector<16x256xf32> -> vector<16x256xf32>
    %1097 = arith.addf %1088, %1096 : vector<16x256xf32>
    %c192_i32_494 = arith.constant 192 : i32
    %1098 = tpu.dynamic_rotate %1034 by %c192_i32_494 dim 1 : vector<16x256xf32>, i32 -> vector<16x256xf32>
    %1099 = vector.extract_strided_slice %925 {offsets = [7, 0], sizes = [1, 256], strides = [1, 1]} : vector<9x256xf32> to vector<1x256xf32>
    %1100 = vector.broadcast %1099 : vector<1x256xf32> to vector<16x256xf32>
    %1101 = arith.mulf %1098, %1100 : vector<16x256xf32>
    %c7_495 = arith.constant 7 : index
    %c0_496 = arith.constant 0 : index
    %c0_497 = arith.constant 0 : index
    %1102 = vector.load %arg20[%c7_495, %c0_496, %c0_497] : memref<9x16x16xbf16, #tpu.memory_space<vmem>>, vector<1x16x16xbf16>
    %1103 = vector.shape_cast %1102 : vector<1x16x16xbf16> to vector<16x16xbf16>
    %1104 = arith.truncf %1101 : vector<16x256xf32> to vector<16x256xbf16>
    %cst_498 = arith.constant dense<0.000000e+00> : vector<16x256xf32>
    %1105 = tpu.matmul %1103, %1104, %cst_498 {dimension_numbers = #tpu.dot_dimension_numbers<[1], [0], [0], [1], [0, 0, 1, 1], [], []>} : vector<16x16xbf16>, vector<16x256xbf16>, vector<16x256xf32> -> vector<16x256xf32>
    %1106 = arith.addf %1097, %1105 : vector<16x256xf32>
    %c188_i32_499 = arith.constant 188 : i32
    %1107 = tpu.dynamic_rotate %1034 by %c188_i32_499 dim 1 : vector<16x256xf32>, i32 -> vector<16x256xf32>
    %1108 = vector.extract_strided_slice %925 {offsets = [8, 0], sizes = [1, 256], strides = [1, 1]} : vector<9x256xf32> to vector<1x256xf32>
    %1109 = vector.broadcast %1108 : vector<1x256xf32> to vector<16x256xf32>
    %1110 = arith.mulf %1107, %1109 : vector<16x256xf32>
    %c8_500 = arith.constant 8 : index
    %c0_501 = arith.constant 0 : index
    %c0_502 = arith.constant 0 : index
    %1111 = vector.load %arg20[%c8_500, %c0_501, %c0_502] : memref<9x16x16xbf16, #tpu.memory_space<vmem>>, vector<1x16x16xbf16>
    %1112 = vector.shape_cast %1111 : vector<1x16x16xbf16> to vector<16x16xbf16>
    %1113 = arith.truncf %1110 : vector<16x256xf32> to vector<16x256xbf16>
    %cst_503 = arith.constant dense<0.000000e+00> : vector<16x256xf32>
    %1114 = tpu.matmul %1112, %1113, %cst_503 {dimension_numbers = #tpu.dot_dimension_numbers<[1], [0], [0], [1], [0, 0, 1, 1], [], []>} : vector<16x16xbf16>, vector<16x256xbf16>, vector<16x256xf32> -> vector<16x256xf32>
    %1115 = arith.addf %1106, %1114 : vector<16x256xf32>
    %cst_504 = arith.constant dense<0.000000e+00> : vector<16xf32>
    %1116 = vector.multi_reduction <add>, %1115, %cst_504 [1] : vector<16x256xf32> to vector<16xf32>
    %1117 = vector.shape_cast %1116 : vector<16xf32> to vector<16x1xf32>
    %cst_505 = arith.constant 6.250000e-02 : f32
    %1118 = vector.broadcast %cst_505 : f32 to vector<16x1xf32>
    %1119 = arith.mulf %1117, %1118 : vector<16x1xf32>
    %1120 = arith.mulf %1115, %1115 : vector<16x256xf32>
    %cst_506 = arith.constant dense<0.000000e+00> : vector<16xf32>
    %1121 = vector.multi_reduction <add>, %1120, %cst_506 [1] : vector<16x256xf32> to vector<16xf32>
    %1122 = vector.shape_cast %1121 : vector<16xf32> to vector<16x1xf32>
    %cst_507 = arith.constant 6.250000e-02 : f32
    %1123 = vector.broadcast %cst_507 : f32 to vector<16x1xf32>
    %1124 = arith.mulf %1122, %1123 : vector<16x1xf32>
    %1125 = arith.mulf %1119, %1119 : vector<16x1xf32>
    %1126 = arith.subf %1124, %1125 : vector<16x1xf32>
    %cst_508 = arith.constant 0.000000e+00 : f32
    %1127 = vector.broadcast %cst_508 : f32 to vector<16x1xf32>
    %1128 = arith.maximumf %1126, %1127 : vector<16x1xf32>
    %cst_509 = arith.constant 9.99999974E-6 : f32
    %1129 = vector.broadcast %cst_509 : f32 to vector<16x1xf32>
    %1130 = arith.addf %1128, %1129 : vector<16x1xf32>
    %1131 = math.rsqrt %1130 : vector<16x1xf32>
    %1132 = vector.broadcast %1119 : vector<16x1xf32> to vector<16x256xf32>
    %1133 = arith.subf %1115, %1132 : vector<16x256xf32>
    %1134 = vector.broadcast %1131 : vector<16x1xf32> to vector<16x256xf32>
    %1135 = arith.mulf %1133, %1134 : vector<16x256xf32>
    %1136 = vector.broadcast %926 : vector<1x256xf32> to vector<16x256xf32>
    %1137 = arith.mulf %1135, %1136 : vector<16x256xf32>
    %cst_510 = arith.constant 0.000000e+00 : f32
    %1138 = vector.broadcast %cst_510 : f32 to vector<16x256xf32>
    %1139 = arith.cmpf oge, %1137, %1138 : vector<16x256xf32>
    %cst_511 = arith.constant 2.000000e-01 : f32
    %1140 = vector.broadcast %cst_511 : f32 to vector<16x256xf32>
    %1141 = arith.mulf %1140, %1137 : vector<16x256xf32>
    %1142 = arith.select %1139, %1137, %1141 : vector<16x256xi1>, vector<16x256xf32>
    %c0_512 = arith.constant 0 : index
    %c0_513 = arith.constant 0 : index
    %1143 = vector.load %arg22[%c0_512, %c0_513] : memref<4x256xf32, #tpu.memory_space<vmem>>, vector<4x256xf32>
    %c0_514 = arith.constant 0 : index
    %c0_515 = arith.constant 0 : index
    %1144 = vector.load %arg23[%c0_514, %c0_515] : memref<1x256xf32, #tpu.memory_space<vmem>>, vector<1x256xf32>
    %1145 = arith.truncf %1142 : vector<16x256xf32> to vector<16x256xbf16>
    %cst_516 = arith.constant 0.000000e+00 : f32
    %1146 = vector.broadcast %cst_516 : f32 to vector<8x256xf32>
    %c0_517 = arith.constant 0 : index
    %c0_518 = arith.constant 0 : index
    %c0_519 = arith.constant 0 : index
    %1147 = vector.load %arg21[%c0_517, %c0_518, %c0_519] : memref<4x8x16xbf16, #tpu.memory_space<vmem>>, vector<1x8x16xbf16>
    %1148 = vector.shape_cast %1147 : vector<1x8x16xbf16> to vector<8x16xbf16>
    %cst_520 = arith.constant dense<0.000000e+00> : vector<8x256xf32>
    %1149 = tpu.matmul %1148, %1145, %cst_520 {dimension_numbers = #tpu.dot_dimension_numbers<[1], [0], [0], [1], [0, 0, 1, 1], [], []>} : vector<8x16xbf16>, vector<16x256xbf16>, vector<8x256xf32> -> vector<8x256xf32>
    %1150 = vector.extract_strided_slice %1143 {offsets = [0, 0], sizes = [1, 256], strides = [1, 1]} : vector<4x256xf32> to vector<1x256xf32>
    %1151 = vector.broadcast %1150 : vector<1x256xf32> to vector<8x256xf32>
    %1152 = arith.mulf %1149, %1151 : vector<8x256xf32>
    %1153 = arith.addf %1146, %1152 : vector<8x256xf32>
    %c1_521 = arith.constant 1 : index
    %c0_522 = arith.constant 0 : index
    %c0_523 = arith.constant 0 : index
    %1154 = vector.load %arg21[%c1_521, %c0_522, %c0_523] : memref<4x8x16xbf16, #tpu.memory_space<vmem>>, vector<1x8x16xbf16>
    %1155 = vector.shape_cast %1154 : vector<1x8x16xbf16> to vector<8x16xbf16>
    %cst_524 = arith.constant dense<0.000000e+00> : vector<8x256xf32>
    %1156 = tpu.matmul %1155, %1145, %cst_524 {dimension_numbers = #tpu.dot_dimension_numbers<[1], [0], [0], [1], [0, 0, 1, 1], [], []>} : vector<8x16xbf16>, vector<16x256xbf16>, vector<8x256xf32> -> vector<8x256xf32>
    %c2_i32_525 = arith.constant 2 : i32
    %1157 = tpu.dynamic_rotate %1156 by %c2_i32_525 dim 1 : vector<8x256xf32>, i32 -> vector<8x256xf32>
    %1158 = vector.extract_strided_slice %1143 {offsets = [1, 0], sizes = [1, 256], strides = [1, 1]} : vector<4x256xf32> to vector<1x256xf32>
    %1159 = vector.broadcast %1158 : vector<1x256xf32> to vector<8x256xf32>
    %1160 = arith.mulf %1157, %1159 : vector<8x256xf32>
    %1161 = arith.addf %1153, %1160 : vector<8x256xf32>
    %c2_526 = arith.constant 2 : index
    %c0_527 = arith.constant 0 : index
    %c0_528 = arith.constant 0 : index
    %1162 = vector.load %arg21[%c2_526, %c0_527, %c0_528] : memref<4x8x16xbf16, #tpu.memory_space<vmem>>, vector<1x8x16xbf16>
    %1163 = vector.shape_cast %1162 : vector<1x8x16xbf16> to vector<8x16xbf16>
    %cst_529 = arith.constant dense<0.000000e+00> : vector<8x256xf32>
    %1164 = tpu.matmul %1163, %1145, %cst_529 {dimension_numbers = #tpu.dot_dimension_numbers<[1], [0], [0], [1], [0, 0, 1, 1], [], []>} : vector<8x16xbf16>, vector<16x256xbf16>, vector<8x256xf32> -> vector<8x256xf32>
    %c32_i32_530 = arith.constant 32 : i32
    %1165 = tpu.dynamic_rotate %1164 by %c32_i32_530 dim 1 : vector<8x256xf32>, i32 -> vector<8x256xf32>
    %1166 = vector.extract_strided_slice %1143 {offsets = [2, 0], sizes = [1, 256], strides = [1, 1]} : vector<4x256xf32> to vector<1x256xf32>
    %1167 = vector.broadcast %1166 : vector<1x256xf32> to vector<8x256xf32>
    %1168 = arith.mulf %1165, %1167 : vector<8x256xf32>
    %1169 = arith.addf %1161, %1168 : vector<8x256xf32>
    %c3_531 = arith.constant 3 : index
    %c0_532 = arith.constant 0 : index
    %c0_533 = arith.constant 0 : index
    %1170 = vector.load %arg21[%c3_531, %c0_532, %c0_533] : memref<4x8x16xbf16, #tpu.memory_space<vmem>>, vector<1x8x16xbf16>
    %1171 = vector.shape_cast %1170 : vector<1x8x16xbf16> to vector<8x16xbf16>
    %cst_534 = arith.constant dense<0.000000e+00> : vector<8x256xf32>
    %1172 = tpu.matmul %1171, %1145, %cst_534 {dimension_numbers = #tpu.dot_dimension_numbers<[1], [0], [0], [1], [0, 0, 1, 1], [], []>} : vector<8x16xbf16>, vector<16x256xbf16>, vector<8x256xf32> -> vector<8x256xf32>
    %c34_i32_535 = arith.constant 34 : i32
    %1173 = tpu.dynamic_rotate %1172 by %c34_i32_535 dim 1 : vector<8x256xf32>, i32 -> vector<8x256xf32>
    %1174 = vector.extract_strided_slice %1143 {offsets = [3, 0], sizes = [1, 256], strides = [1, 1]} : vector<4x256xf32> to vector<1x256xf32>
    %1175 = vector.broadcast %1174 : vector<1x256xf32> to vector<8x256xf32>
    %1176 = arith.mulf %1173, %1175 : vector<8x256xf32>
    %1177 = arith.addf %1169, %1176 : vector<8x256xf32>
    %cst_536 = arith.constant dense<0.000000e+00> : vector<8xf32>
    %1178 = vector.multi_reduction <add>, %1177, %cst_536 [1] : vector<8x256xf32> to vector<8xf32>
    %1179 = vector.shape_cast %1178 : vector<8xf32> to vector<8x1xf32>
    %cst_537 = arith.constant 1.562500e-02 : f32
    %1180 = vector.broadcast %cst_537 : f32 to vector<8x1xf32>
    %1181 = arith.mulf %1179, %1180 : vector<8x1xf32>
    %1182 = arith.mulf %1177, %1177 : vector<8x256xf32>
    %cst_538 = arith.constant dense<0.000000e+00> : vector<8xf32>
    %1183 = vector.multi_reduction <add>, %1182, %cst_538 [1] : vector<8x256xf32> to vector<8xf32>
    %1184 = vector.shape_cast %1183 : vector<8xf32> to vector<8x1xf32>
    %cst_539 = arith.constant 1.562500e-02 : f32
    %1185 = vector.broadcast %cst_539 : f32 to vector<8x1xf32>
    %1186 = arith.mulf %1184, %1185 : vector<8x1xf32>
    %1187 = arith.mulf %1181, %1181 : vector<8x1xf32>
    %1188 = arith.subf %1186, %1187 : vector<8x1xf32>
    %cst_540 = arith.constant 0.000000e+00 : f32
    %1189 = vector.broadcast %cst_540 : f32 to vector<8x1xf32>
    %1190 = arith.maximumf %1188, %1189 : vector<8x1xf32>
    %cst_541 = arith.constant 9.99999974E-6 : f32
    %1191 = vector.broadcast %cst_541 : f32 to vector<8x1xf32>
    %1192 = arith.addf %1190, %1191 : vector<8x1xf32>
    %1193 = math.rsqrt %1192 : vector<8x1xf32>
    %1194 = vector.broadcast %1181 : vector<8x1xf32> to vector<8x256xf32>
    %1195 = arith.subf %1177, %1194 : vector<8x256xf32>
    %1196 = vector.broadcast %1193 : vector<8x1xf32> to vector<8x256xf32>
    %1197 = arith.mulf %1195, %1196 : vector<8x256xf32>
    %1198 = vector.broadcast %1144 : vector<1x256xf32> to vector<8x256xf32>
    %1199 = arith.mulf %1197, %1198 : vector<8x256xf32>
    %cst_542 = arith.constant 0.000000e+00 : f32
    %1200 = vector.broadcast %cst_542 : f32 to vector<8x256xf32>
    %1201 = arith.cmpf oge, %1199, %1200 : vector<8x256xf32>
    %cst_543 = arith.constant 2.000000e-01 : f32
    %1202 = vector.broadcast %cst_543 : f32 to vector<8x256xf32>
    %1203 = arith.mulf %1202, %1199 : vector<8x256xf32>
    %1204 = arith.select %1201, %1199, %1203 : vector<8x256xi1>, vector<8x256xf32>
    %c0_544 = arith.constant 0 : index
    %c0_545 = arith.constant 0 : index
    %1205 = vector.load %arg25[%c0_544, %c0_545] : memref<4x256xf32, #tpu.memory_space<vmem>>, vector<4x256xf32>
    %c0_546 = arith.constant 0 : index
    %c0_547 = arith.constant 0 : index
    %1206 = vector.load %arg26[%c0_546, %c0_547] : memref<1x256xf32, #tpu.memory_space<vmem>>, vector<1x256xf32>
    %1207 = arith.truncf %1204 : vector<8x256xf32> to vector<8x256xbf16>
    %cst_548 = arith.constant 0.000000e+00 : f32
    %1208 = vector.broadcast %cst_548 : f32 to vector<4x256xf32>
    %c0_549 = arith.constant 0 : index
    %c0_550 = arith.constant 0 : index
    %c0_551 = arith.constant 0 : index
    %1209 = vector.load %arg24[%c0_549, %c0_550, %c0_551] : memref<4x4x8xbf16, #tpu.memory_space<vmem>>, vector<1x4x8xbf16>
    %1210 = vector.shape_cast %1209 : vector<1x4x8xbf16> to vector<4x8xbf16>
    %cst_552 = arith.constant dense<0.000000e+00> : vector<4x256xf32>
    %1211 = tpu.matmul %1210, %1207, %cst_552 {dimension_numbers = #tpu.dot_dimension_numbers<[1], [0], [0], [1], [0, 0, 1, 1], [], []>} : vector<4x8xbf16>, vector<8x256xbf16>, vector<4x256xf32> -> vector<4x256xf32>
    %1212 = vector.extract_strided_slice %1205 {offsets = [0, 0], sizes = [1, 256], strides = [1, 1]} : vector<4x256xf32> to vector<1x256xf32>
    %1213 = vector.broadcast %1212 : vector<1x256xf32> to vector<4x256xf32>
    %1214 = arith.mulf %1211, %1213 : vector<4x256xf32>
    %1215 = arith.addf %1208, %1214 : vector<4x256xf32>
    %c1_553 = arith.constant 1 : index
    %c0_554 = arith.constant 0 : index
    %c0_555 = arith.constant 0 : index
    %1216 = vector.load %arg24[%c1_553, %c0_554, %c0_555] : memref<4x4x8xbf16, #tpu.memory_space<vmem>>, vector<1x4x8xbf16>
    %1217 = vector.shape_cast %1216 : vector<1x4x8xbf16> to vector<4x8xbf16>
    %cst_556 = arith.constant dense<0.000000e+00> : vector<4x256xf32>
    %1218 = tpu.matmul %1217, %1207, %cst_556 {dimension_numbers = #tpu.dot_dimension_numbers<[1], [0], [0], [1], [0, 0, 1, 1], [], []>} : vector<4x8xbf16>, vector<8x256xbf16>, vector<4x256xf32> -> vector<4x256xf32>
    %c1_i32_557 = arith.constant 1 : i32
    %1219 = tpu.dynamic_rotate %1218 by %c1_i32_557 dim 1 : vector<4x256xf32>, i32 -> vector<4x256xf32>
    %1220 = vector.extract_strided_slice %1205 {offsets = [1, 0], sizes = [1, 256], strides = [1, 1]} : vector<4x256xf32> to vector<1x256xf32>
    %1221 = vector.broadcast %1220 : vector<1x256xf32> to vector<4x256xf32>
    %1222 = arith.mulf %1219, %1221 : vector<4x256xf32>
    %1223 = arith.addf %1215, %1222 : vector<4x256xf32>
    %c2_558 = arith.constant 2 : index
    %c0_559 = arith.constant 0 : index
    %c0_560 = arith.constant 0 : index
    %1224 = vector.load %arg24[%c2_558, %c0_559, %c0_560] : memref<4x4x8xbf16, #tpu.memory_space<vmem>>, vector<1x4x8xbf16>
    %1225 = vector.shape_cast %1224 : vector<1x4x8xbf16> to vector<4x8xbf16>
    %cst_561 = arith.constant dense<0.000000e+00> : vector<4x256xf32>
    %1226 = tpu.matmul %1225, %1207, %cst_561 {dimension_numbers = #tpu.dot_dimension_numbers<[1], [0], [0], [1], [0, 0, 1, 1], [], []>} : vector<4x8xbf16>, vector<8x256xbf16>, vector<4x256xf32> -> vector<4x256xf32>
    %c16_i32_562 = arith.constant 16 : i32
    %1227 = tpu.dynamic_rotate %1226 by %c16_i32_562 dim 1 : vector<4x256xf32>, i32 -> vector<4x256xf32>
    %1228 = vector.extract_strided_slice %1205 {offsets = [2, 0], sizes = [1, 256], strides = [1, 1]} : vector<4x256xf32> to vector<1x256xf32>
    %1229 = vector.broadcast %1228 : vector<1x256xf32> to vector<4x256xf32>
    %1230 = arith.mulf %1227, %1229 : vector<4x256xf32>
    %1231 = arith.addf %1223, %1230 : vector<4x256xf32>
    %c3_563 = arith.constant 3 : index
    %c0_564 = arith.constant 0 : index
    %c0_565 = arith.constant 0 : index
    %1232 = vector.load %arg24[%c3_563, %c0_564, %c0_565] : memref<4x4x8xbf16, #tpu.memory_space<vmem>>, vector<1x4x8xbf16>
    %1233 = vector.shape_cast %1232 : vector<1x4x8xbf16> to vector<4x8xbf16>
    %cst_566 = arith.constant dense<0.000000e+00> : vector<4x256xf32>
    %1234 = tpu.matmul %1233, %1207, %cst_566 {dimension_numbers = #tpu.dot_dimension_numbers<[1], [0], [0], [1], [0, 0, 1, 1], [], []>} : vector<4x8xbf16>, vector<8x256xbf16>, vector<4x256xf32> -> vector<4x256xf32>
    %c17_i32_567 = arith.constant 17 : i32
    %1235 = tpu.dynamic_rotate %1234 by %c17_i32_567 dim 1 : vector<4x256xf32>, i32 -> vector<4x256xf32>
    %1236 = vector.extract_strided_slice %1205 {offsets = [3, 0], sizes = [1, 256], strides = [1, 1]} : vector<4x256xf32> to vector<1x256xf32>
    %1237 = vector.broadcast %1236 : vector<1x256xf32> to vector<4x256xf32>
    %1238 = arith.mulf %1235, %1237 : vector<4x256xf32>
    %1239 = arith.addf %1231, %1238 : vector<4x256xf32>
    %cst_568 = arith.constant dense<0.000000e+00> : vector<4xf32>
    %1240 = vector.multi_reduction <add>, %1239, %cst_568 [1] : vector<4x256xf32> to vector<4xf32>
    %1241 = vector.shape_cast %1240 : vector<4xf32> to vector<4x1xf32>
    %cst_569 = arith.constant 3.906250e-03 : f32
    %1242 = vector.broadcast %cst_569 : f32 to vector<4x1xf32>
    %1243 = arith.mulf %1241, %1242 : vector<4x1xf32>
    %1244 = arith.mulf %1239, %1239 : vector<4x256xf32>
    %cst_570 = arith.constant dense<0.000000e+00> : vector<4xf32>
    %1245 = vector.multi_reduction <add>, %1244, %cst_570 [1] : vector<4x256xf32> to vector<4xf32>
    %1246 = vector.shape_cast %1245 : vector<4xf32> to vector<4x1xf32>
    %cst_571 = arith.constant 3.906250e-03 : f32
    %1247 = vector.broadcast %cst_571 : f32 to vector<4x1xf32>
    %1248 = arith.mulf %1246, %1247 : vector<4x1xf32>
    %1249 = arith.mulf %1243, %1243 : vector<4x1xf32>
    %1250 = arith.subf %1248, %1249 : vector<4x1xf32>
    %cst_572 = arith.constant 0.000000e+00 : f32
    %1251 = vector.broadcast %cst_572 : f32 to vector<4x1xf32>
    %1252 = arith.maximumf %1250, %1251 : vector<4x1xf32>
    %cst_573 = arith.constant 9.99999974E-6 : f32
    %1253 = vector.broadcast %cst_573 : f32 to vector<4x1xf32>
    %1254 = arith.addf %1252, %1253 : vector<4x1xf32>
    %1255 = math.rsqrt %1254 : vector<4x1xf32>
    %1256 = vector.broadcast %1243 : vector<4x1xf32> to vector<4x256xf32>
    %1257 = arith.subf %1239, %1256 : vector<4x256xf32>
    %1258 = vector.broadcast %1255 : vector<4x1xf32> to vector<4x256xf32>
    %1259 = arith.mulf %1257, %1258 : vector<4x256xf32>
    %1260 = vector.broadcast %1206 : vector<1x256xf32> to vector<4x256xf32>
    %1261 = arith.mulf %1259, %1260 : vector<4x256xf32>
    %cst_574 = arith.constant 0.000000e+00 : f32
    %1262 = vector.broadcast %cst_574 : f32 to vector<4x256xf32>
    %1263 = arith.cmpf oge, %1261, %1262 : vector<4x256xf32>
    %cst_575 = arith.constant 2.000000e-01 : f32
    %1264 = vector.broadcast %cst_575 : f32 to vector<4x256xf32>
    %1265 = arith.mulf %1264, %1261 : vector<4x256xf32>
    %1266 = arith.select %1263, %1261, %1265 : vector<4x256xi1>, vector<4x256xf32>
    %c0_576 = arith.constant 0 : index
    %c0_577 = arith.constant 0 : index
    %1267 = vector.load %arg27[%c0_576, %c0_577] : memref<1x4xbf16, #tpu.memory_space<vmem>>, vector<1x4xbf16>
    %c0_578 = arith.constant 0 : index
    %c0_579 = arith.constant 0 : index
    %1268 = vector.load %arg28[%c0_578, %c0_579] : memref<1x1xf32, #tpu.memory_space<vmem>>, vector<1x1xf32>
    %1269 = arith.truncf %1266 : vector<4x256xf32> to vector<4x256xbf16>
    %cst_580 = arith.constant dense<0.000000e+00> : vector<1x256xf32>
    %1270 = tpu.matmul %1267, %1269, %cst_580 {dimension_numbers = #tpu.dot_dimension_numbers<[1], [0], [0], [1], [0, 0, 1, 1], [], []>} : vector<1x4xbf16>, vector<4x256xbf16>, vector<1x256xf32> -> vector<1x256xf32>
    %1271 = vector.broadcast %1268 : vector<1x1xf32> to vector<1x256xf32>
    %1272 = arith.addf %1270, %1271 : vector<1x256xf32>
    %1273 = math.tanh %1272 : vector<1x256xf32>
    %c0_581 = arith.constant 0 : index
    %c0_582 = arith.constant 0 : index
    %c0_583 = arith.constant 0 : index
    %1274 = vector.load %arg29[%c0_581, %c0_582, %c0_583] : memref<1x1x256xf32, #tpu.memory_space<vmem>>, vector<1x1x256xf32>
    %1275 = vector.shape_cast %1274 : vector<1x1x256xf32> to vector<1x256xf32>
    %1276 = vector.shape_cast %1273 : vector<1x256xf32> to vector<1x1x256xf32>
    tpu.vector_store %arg29[%c0_581, %c0_582, %c0_583], %1276 {strides = array<i32>} : memref<1x1x256xf32, #tpu.memory_space<vmem>>, vector<1x1x256xf32>,
    return
  }
  func.func @transform_0(%arg0: i32) -> (i32, i32, i32) {
    %c0_i32 = arith.constant 0 : i32
    %c0_i32_0 = arith.constant 0 : i32
    %c0_i32_1 = arith.constant 0 : i32
    return %arg0, %c0_i32, %c0_i32_0 : i32, i32, i32
  }
  func.func @transform_1(%arg0: i32) -> (i32, i32, i32) {
    %c0_i32 = arith.constant 0 : i32
    %c0_i32_0 = arith.constant 0 : i32
    %c0_i32_1 = arith.constant 0 : i32
    return %arg0, %c0_i32, %c0_i32_0 : i32, i32, i32
  }
  func.func @transform_2(%arg0: i32) -> (i32, i32) {
    %c0_i32 = arith.constant 0 : i32
    %c0_i32_0 = arith.constant 0 : i32
    %c0_i32_1 = arith.constant 0 : i32
    return %c0_i32, %c0_i32_0 : i32, i32
  }
  func.func @transform_3(%arg0: i32) -> (i32, i32) {
    %c0_i32 = arith.constant 0 : i32
    %c0_i32_0 = arith.constant 0 : i32
    %c0_i32_1 = arith.constant 0 : i32
    return %c0_i32, %c0_i32_0 : i32, i32
  }
  func.func @transform_4(%arg0: i32) -> (i32, i32) {
    %c0_i32 = arith.constant 0 : i32
    %c0_i32_0 = arith.constant 0 : i32
    %c0_i32_1 = arith.constant 0 : i32
    return %c0_i32, %c0_i32_0 : i32, i32
  }
  func.func @transform_5(%arg0: i32) -> (i32, i32, i32) {
    %c0_i32 = arith.constant 0 : i32
    %c0_i32_0 = arith.constant 0 : i32
    %c0_i32_1 = arith.constant 0 : i32
    %c0_i32_2 = arith.constant 0 : i32
    return %c0_i32, %c0_i32_0, %c0_i32_1 : i32, i32, i32
  }
  func.func @transform_6(%arg0: i32) -> (i32, i32, i32) {
    %c0_i32 = arith.constant 0 : i32
    %c0_i32_0 = arith.constant 0 : i32
    %c0_i32_1 = arith.constant 0 : i32
    %c0_i32_2 = arith.constant 0 : i32
    return %c0_i32, %c0_i32_0, %c0_i32_1 : i32, i32, i32
  }
  func.func @transform_7(%arg0: i32) -> (i32, i32, i32) {
    %c0_i32 = arith.constant 0 : i32
    %c0_i32_0 = arith.constant 0 : i32
    %c0_i32_1 = arith.constant 0 : i32
    %c0_i32_2 = arith.constant 0 : i32
    return %c0_i32, %c0_i32_0, %c0_i32_1 : i32, i32, i32
  }
  func.func @transform_8(%arg0: i32) -> (i32, i32, i32) {
    %c0_i32 = arith.constant 0 : i32
    %c0_i32_0 = arith.constant 0 : i32
    %c0_i32_1 = arith.constant 0 : i32
    %c0_i32_2 = arith.constant 0 : i32
    return %c0_i32, %c0_i32_0, %c0_i32_1 : i32, i32, i32
  }
  func.func @transform_9(%arg0: i32) -> (i32, i32) {
    %c0_i32 = arith.constant 0 : i32
    %c0_i32_0 = arith.constant 0 : i32
    %c0_i32_1 = arith.constant 0 : i32
    return %c0_i32, %c0_i32_0 : i32, i32
  }
  func.func @transform_10(%arg0: i32) -> (i32, i32) {
    %c0_i32 = arith.constant 0 : i32
    %c0_i32_0 = arith.constant 0 : i32
    %c0_i32_1 = arith.constant 0 : i32
    return %c0_i32, %c0_i32_0 : i32, i32
  }
  func.func @transform_11(%arg0: i32) -> (i32, i32) {
    %c0_i32 = arith.constant 0 : i32
    %c0_i32_0 = arith.constant 0 : i32
    %c0_i32_1 = arith.constant 0 : i32
    return %c0_i32, %c0_i32_0 : i32, i32
  }
  func.func @transform_12(%arg0: i32) -> (i32, i32, i32) {
    %c0_i32 = arith.constant 0 : i32
    %c0_i32_0 = arith.constant 0 : i32
    %c0_i32_1 = arith.constant 0 : i32
    %c0_i32_2 = arith.constant 0 : i32
    return %c0_i32, %c0_i32_0, %c0_i32_1 : i32, i32, i32
  }
  func.func @transform_13(%arg0: i32) -> (i32, i32, i32) {
    %c0_i32 = arith.constant 0 : i32
    %c0_i32_0 = arith.constant 0 : i32
    %c0_i32_1 = arith.constant 0 : i32
    %c0_i32_2 = arith.constant 0 : i32
    return %c0_i32, %c0_i32_0, %c0_i32_1 : i32, i32, i32
  }
  func.func @transform_14(%arg0: i32) -> (i32, i32, i32) {
    %c0_i32 = arith.constant 0 : i32
    %c0_i32_0 = arith.constant 0 : i32
    %c0_i32_1 = arith.constant 0 : i32
    %c0_i32_2 = arith.constant 0 : i32
    return %c0_i32, %c0_i32_0, %c0_i32_1 : i32, i32, i32
  }
  func.func @transform_15(%arg0: i32) -> (i32, i32, i32) {
    %c0_i32 = arith.constant 0 : i32
    %c0_i32_0 = arith.constant 0 : i32
    %c0_i32_1 = arith.constant 0 : i32
    %c0_i32_2 = arith.constant 0 : i32
    return %c0_i32, %c0_i32_0, %c0_i32_1 : i32, i32, i32
  }
  func.func @transform_16(%arg0: i32) -> (i32, i32) {
    %c0_i32 = arith.constant 0 : i32
    %c0_i32_0 = arith.constant 0 : i32
    %c0_i32_1 = arith.constant 0 : i32
    return %c0_i32, %c0_i32_0 : i32, i32
  }
  func.func @transform_17(%arg0: i32) -> (i32, i32) {
    %c0_i32 = arith.constant 0 : i32
    %c0_i32_0 = arith.constant 0 : i32
    %c0_i32_1 = arith.constant 0 : i32
    return %c0_i32, %c0_i32_0 : i32, i32
  }
  func.func @transform_18(%arg0: i32) -> (i32, i32, i32) {
    %c0_i32 = arith.constant 0 : i32
    %c0_i32_0 = arith.constant 0 : i32
    %c0_i32_1 = arith.constant 0 : i32
    %c0_i32_2 = arith.constant 0 : i32
    return %c0_i32, %c0_i32_0, %c0_i32_1 : i32, i32, i32
  }
  func.func @transform_19(%arg0: i32) -> (i32, i32, i32) {
    %c0_i32 = arith.constant 0 : i32
    %c0_i32_0 = arith.constant 0 : i32
    %c0_i32_1 = arith.constant 0 : i32
    %c0_i32_2 = arith.constant 0 : i32
    return %c0_i32, %c0_i32_0, %c0_i32_1 : i32, i32, i32
  }
  func.func @transform_20(%arg0: i32) -> (i32, i32, i32) {
    %c0_i32 = arith.constant 0 : i32
    %c0_i32_0 = arith.constant 0 : i32
    %c0_i32_1 = arith.constant 0 : i32
    %c0_i32_2 = arith.constant 0 : i32
    return %c0_i32, %c0_i32_0, %c0_i32_1 : i32, i32, i32
  }
  func.func @transform_21(%arg0: i32) -> (i32, i32) {
    %c0_i32 = arith.constant 0 : i32
    %c0_i32_0 = arith.constant 0 : i32
    %c0_i32_1 = arith.constant 0 : i32
    return %c0_i32, %c0_i32_0 : i32, i32
  }
  func.func @transform_22(%arg0: i32) -> (i32, i32) {
    %c0_i32 = arith.constant 0 : i32
    %c0_i32_0 = arith.constant 0 : i32
    %c0_i32_1 = arith.constant 0 : i32
    return %c0_i32, %c0_i32_0 : i32, i32
  }
  func.func @transform_23(%arg0: i32) -> (i32, i32, i32) {
    %c0_i32 = arith.constant 0 : i32
    %c0_i32_0 = arith.constant 0 : i32
    %c0_i32_1 = arith.constant 0 : i32
    %c0_i32_2 = arith.constant 0 : i32
    return %c0_i32, %c0_i32_0, %c0_i32_1 : i32, i32, i32
  }
  func.func @transform_24(%arg0: i32) -> (i32, i32) {
    %c0_i32 = arith.constant 0 : i32
    %c0_i32_0 = arith.constant 0 : i32
    %c0_i32_1 = arith.constant 0 : i32
    return %c0_i32, %c0_i32_0 : i32, i32
  }
  func.func @transform_25(%arg0: i32) -> (i32, i32) {
    %c0_i32 = arith.constant 0 : i32
    %c0_i32_0 = arith.constant 0 : i32
    %c0_i32_1 = arith.constant 0 : i32
    return %c0_i32, %c0_i32_0 : i32, i32
  }
  func.func @transform_26(%arg0: i32) -> (i32, i32) {
    %c0_i32 = arith.constant 0 : i32
    %c0_i32_0 = arith.constant 0 : i32
    %c0_i32_1 = arith.constant 0 : i32
    return %c0_i32, %c0_i32_0 : i32, i32
  }
  func.func @transform_27(%arg0: i32) -> (i32, i32) {
    %c0_i32 = arith.constant 0 : i32
    %c0_i32_0 = arith.constant 0 : i32
    %c0_i32_1 = arith.constant 0 : i32
    return %c0_i32, %c0_i32_0 : i32, i32
  }
  func.func @transform_28(%arg0: i32) -> (i32, i32, i32) {
    %c0_i32 = arith.constant 0 : i32
    %c0_i32_0 = arith.constant 0 : i32
    %c0_i32_1 = arith.constant 0 : i32
    return %arg0, %c0_i32, %c0_i32_0 : i32, i32, i32
  }
}

</mosaic_0001>

<bundles_post_ra>
// kernel: mm_unet_forward.1
= control target key start
LH: loop header
LB: loop body
LE: loop exit
PB: predicated region body
PF: predicated region fallthrough
CT: control target
= control target key end

     0   :  { %s10963_s0 = inlined_call_operand.vmem [shape: f32[2,1,256], index: 0, kind: input, shape index: {}]   ;;  %s10964_s1 = inlined_call_operand.vmem [shape: f32[2,1,256], index: 1, kind: input, shape index: {}]   ;;  %s10965_s2 = inlined_call_operand.vmem [shape: f32[9,256], index: 2, kind: input, shape index: {}]   ;;  %s10966_s3 = inlined_call_operand.vmem [shape: f32[1,256], index: 3, kind: input, shape index: {}, may-alias: {3,25}]   ;;  %s10967_s4 = inlined_call_operand.vmem [shape: f32[1,256], index: 4, kind: input, shape index: {}, may-alias: {4,10,22}]   ;;  %s10968_s5 = inlined_call_operand.vmem [shape: bf16[9,4,1], index: 5, kind: input, shape index: {}]   ;;  %s10969_s6 = inlined_call_operand.vmem [shape: bf16[9,4,4], index: 6, kind: input, shape index: {}]   ;;  %s10970_s7 = inlined_call_operand.vmem [shape: bf16[9,4,1], index: 7, kind: input, shape index: {}]   ;;  %s10971_s8 = inlined_call_operand.vmem [shape: bf16[9,4,4], index: 8, kind: input, shape index: {}]   ;;  %s10972_s9 = inlined_call_operand.vmem [shape: f32[9,256], index: 9, kind: input, shape index: {}]   ;;  %s10973_s10 = inlined_call_operand.vmem [shape: f32[1,256], index: 10, kind: input, shape index: {}, may-alias: {4,10,22}]   ;;  %s10974_s11 = inlined_call_operand.vmem [shape: f32[1,256], index: 11, kind: input, shape index: {}, may-alias: {11,17}]   ;;  %s10975_s12 = inlined_call_operand.vmem [shape: bf16[9,8,4], index: 12, kind: input, shape index: {}]   ;;  %s10976_s13 = inlined_call_operand.vmem [shape: bf16[9,8,8], index: 13, kind: input, shape index: {}]   ;;  %s10977_s14 = inlined_call_operand.vmem [shape: bf16[9,8,4], index: 14, kind: input, shape index: {}]   ;;  %s10978_s15 = inlined_call_operand.vmem [shape: bf16[9,8,8], index: 15, kind: input, shape index: {}]   ;;  %s10979_s16 = inlined_call_operand.vmem [shape: f32[9,256], index: 16, kind: input, shape index: {}]   ;;  %s10980_s17 = inlined_call_operand.vmem [shape: f32[1,256], index: 17, kind: input, shape index: {}, may-alias: {11,17}]   ;;  %s10981_s18 = inlined_call_operand.vmem [shape: bf16[9,16,16], index: 18, kind: input, shape index: {}]   ;;  %s10982_s19 = inlined_call_operand.vmem [shape: bf16[9,16,16], index: 19, kind: input, shape index: {}]   ;;  %s10983_s20 = inlined_call_operand.vmem [shape: bf16[4,8,16], index: 20, kind: input, shape index: {}]   ;;  %s10984_s21 = inlined_call_operand.vmem [shape: f32[4,256], index: 21, kind: input, shape index: {}]   ;;  %s10985_s22 = inlined_call_operand.vmem [shape: f32[1,256], index: 22, kind: input, shape index: {}, may-alias: {4,10,22}]   ;;  %s10986_s23 = inlined_call_operand.vmem [shape: bf16[4,4,8], index: 23, kind: input, shape index: {}]   ;;  %s10987_s24 = inlined_call_operand.vmem [shape: f32[4,256], index: 24, kind: input, shape index: {}]   ;;  %s10988_s25 = inlined_call_operand.vmem [shape: f32[1,256], index: 25, kind: input, shape index: {}, may-alias: {3,25}]   ;;  %s10989_s26 = inlined_call_operand.vmem [shape: bf16[1,4], index: 26, kind: input, shape index: {}]   ;;  %s10990_s27 = inlined_call_operand.<no memory space> [shape: f32[1,1], index: 27, kind: input, shape index: {}]   ;;  %s10991_s28 = inlined_call_operand.vmem [shape: f32[2,1,256], index: 28, kind: output, shape index: {}]  }
   0x1   :  { %11038 = sst [smem:[#allocation4_spill]] %s10963_s0  ;;  %v33_v0 = vstv %s10990_s27 }
   0x2   :  { %11039 = sst [smem:[#allocation5_spill]] %s10964_s1  ;;  %34 = vst [vmem:[#allocation2] sm:$0x1] %v33_v0 }
   0x3   :  { %11040 = sst [smem:[#allocation6_spill]] %s10965_s2 }
   0x4   :  { %11041 = sst [smem:[#allocation7_spill]] %s10966_s3 }
   0x5   :  { %11042 = sst [smem:[#allocation8_spill]] %s10967_s4 }
   0x6   :  { %11043 = sst [smem:[#allocation9_spill]] %s10968_s5 }
   0x7   :  { %11044 = sst [smem:[#allocation10_spill]] %s10969_s6 }
   0x8   :  { %11045 = sst [smem:[#allocation11_spill]] %s10970_s7 }
   0x9   :  { %11046 = sst [smem:[#allocation12_spill]] %s10971_s8 }
   0xa   :  { %11047 = sst [smem:[#allocation13_spill]] %s10972_s9  ;;  %s8667_s9 = smov 0  }
   0xb   :  { %11048 = sst [smem:[#allocation14_spill]] %s10973_s10 }
   0xc   :  { %11049 = sst [smem:[#allocation15_spill]] %s10974_s11 }
   0xd   :  { %11050 = sst [smem:[#allocation16_spill]] %s10975_s12 }
   0xe   :  { %11051 = sst [smem:[#allocation17_spill]] %s10991_s28 }
   0xf LB: > { %11052 = sst [smem:[#allocation3_spill]] %s8493_s9  ;;  %s7832_s30 = sadd.s32 4294967295, %s8493_s9   ;;  %s8493_s9 = sphi %s8667_s9, %s40_s9  }
  0x10   : > { %p7836_p0 = scmp.ge.s32.totalorder %s8493_s9, 1  ;;  %p772_p1 = scmp.lt.s32.totalorder %s8493_s9, 3 }
  0x12   : > { %p773_p2 = pnand %p7836_p0, %p772_p1 }
  0x13   : > { %s11053_s10 = sld [smem:[#allocation9_spill]] (!%p773_p2)  ;;  %p848_p3 = scmp.lt.s32.totalorder (!%p773_p2), %s7832_s30, 1  ;;  %v870_v3 = vlaneseq (!%p773_p2)  ;;  %v8495_v4 = vmov (!%p773_p2), 0   ;;  %v8504_v41 = vmov (!%p773_p2), 1966171168   ;;  %vm1259_vm8 = vcmask (!%p773_p2), 1043456  }
  0x14   : > { %776 = sbr.rel (%p773_p2) target bundleno = 5494 (0x1576), region = 132  ;;  %8400 = vset.pattern.permute.xlu1 (!%p773_p2), %v8495_v4  ;;  %8394 = vset.pattern.permute.xlu0 (!%p773_p2), %v8495_v4  ;;  %s11054_s8 = sld [smem:[#allocation4_spill]] (!%p773_p2)  ;;  %v1049_v42 = vunpack.c.l.s4 (!%p773_p2), %v8504_v41  ;;  %vm11035_vm10 = vcmask (!%p773_p2), 1041408   ;;  %vm11034_vm11 = vcmask (!%p773_p2), 31744  }
  0x15   : > { %v8690_v11 = vshrl.u32 (!%p773_p2), %v870_v3, 7  ;;  %1403 = vmatprep.mubr.bf16.mxu0 (!%p773_p2), %v8495_v4  ;;  %2478 = vmatprep.mubr.bf16.mxu1 (!%p773_p2), %v8495_v4  ;;  %s11007_s3 = smov (!%p773_p2), 16   ;;  %s11003_s29 = smov (!%p773_p2), 15  }
  0x16   : > { %s11005_s6 = smov (!%p773_p2), 113   ;;  %s11055_s7 = sld [smem:[#allocation5_spill]] (!%p773_p2)  ;;  %v1050_v45 = vunpack.c.0.s8 (!%p773_p2), %v1049_v42 }
  0x17   : > { %v8697_v14 = vsub.s32 (!%p773_p2), 0, %v8690_v11  ;;  %v8700_v15 = vsub.s32 (!%p773_p2), 1, %v8690_v11  ;;  %s8502_s4 = smov (!%p773_p2), 112   ;;  %s8503_s27 = smov (!%p773_p2), 111  }
  0x18   : > { %s11057_s0 = smov (!%p773_p2), 16   ;;  %v8792_v52 = vsub.s32 (!%p773_p2), %v1050_v45, %v8690_v11  ;;  %s11059_s11 = smov (!%p773_p2), 15  }
  0x19   : > { %v7841_v1 = vld [vmem:[%s11053_s10 + $0x4] sm:$0x3] (!%p773_p2)  ;;  %v7842_v2 = vld [vmem:[%s11053_s10 + $0x6] sm:$0x3] (!%p773_p2)  ;;  %v891_v7 = vld [vmem:[%s11053_s10] sm:$0x3] (!%p773_p2) }
  0x1a   : > { %v978_v5 = vunpack.c.l.bf16 (!%p773_p2), %v7841_v1  ;;  %v1020_v6 = vunpack.c.l.bf16 (!%p773_p2), %v7842_v2  ;;  %v7840_v8 = vld [vmem:[%s11053_s10 + $0x2] sm:$0x3] (!%p773_p2)  ;;  %v892_v9 = vunpack.c.l.bf16 (!%p773_p2), %v891_v7  ;;  %v7843_v19 = vld [vmem:[%s11053_s10 + $0x8] sm:$0x3] (!%p773_p2)  ;;  %v7844_v20 = vld [vmem:[%s11053_s10 + $0xa] sm:$0x3] (!%p773_p2) }
  0x1b   : > { %v936_v10 = vunpack.c.l.bf16 %v7840_v8  ;;  %s11090_s30 = smov (!%p848_p3, %s7832_s30), 1  ;;  %v7845_v21 = vld [vmem:[%s11053_s10 + $0xc] sm:$0x3]  ;;  %v7846_v22 = vld [vmem:[%s11053_s10 + $0xe] sm:$0x3]  ;;  %v1066_v23 = vunpack.c.l.bf16 %v7843_v19  ;;  %v1107_v24 = vunpack.c.l.bf16 %v7844_v20  ;;  %s11060_s2 = smov 1  }
  0x1c   : > { %v8401_v12 = vpack.i.bf16 %v1020_v6, %v978_v5  ;;  %s8694_s12 = sshll.u32 %s11090_s30, 1  ;;  %s11009_s30 = smov 17   ;;  %v1149_v25 = vunpack.c.l.bf16 %v7845_v21  ;;  %v1191_v26 = vunpack.c.l.bf16 %v7846_v22  ;;  %v7847_v29 = vld [vmem:[%s11053_s10 + $0x10] sm:$0x3] }
  0x1d   : > { %v8395_v13 = vpack.i.bf16 %v936_v10, %v892_v9  ;;  %s851_s5 = scalar_lea.vmem %s11054_s8, %s8694_s12  ;;  %s11001_s8 = smov 1   ;;  %v8406_v27 = vpack.i.bf16 %v1107_v24, %v1066_v23  ;;  %v1229_v30 = vunpack.c.l.bf16 %v7847_v29  ;;  %v8832_v9 = vand.u32 127, %v870_v3 }
  0x1e   : > { %8402 = vperm.xlu1 %8400, %v8401_v12   ;;  %v8706_v16 = vld [vmem:[%s851_s5] sm:$0x3]  ;;  %s10999_s5 = smov 127   ;;  %v8411_v28 = vpack.i.bf16 %v1191_v26, %v1149_v25  ;;  %s855_s1 = scalar_lea.vmem %s11055_s7, %s8694_s12  ;;  %v8505_v12 = vmov 839922192  }
  0x1f   : > { %8396 = vperm.xlu0 %8394, %v8395_v13   ;;  %v877_v17 = vrot.slane %v8706_v16, %v8700_v15  ;;  %v873_v18 = vrot.slane %v8706_v16, %v8697_v14  ;;  %v862_v31 = vld [vmem:[%s855_s1] sm:$0x3]  ;;  %v899_v13 = vunpack.c.l.s4 %v8505_v12  ;;  %vm11037_vm0 = vcmp.lt.s32.totalorder %v8832_v9, 16  ;;  %s11064_s7 = smov 17   ;;  %s11017_s1 = smov 34  }
  0x20   : > { %v8753_v34 = vrot.slane %v862_v31, %v8697_v14  ;;  %v8758_v37 = vrot.slane %v862_v31, %v8700_v15  ;;  %vm11036_vm1 = vcmp.lt.s32.totalorder %v8832_v9, 17  ;;  %vm967_vm2 = vcmp.lt.s32.totalorder %v8832_v9, 15  ;;  %s11075_s10 = smov 98   ;;  %s11078_s28 = sld [smem:[#allocation14_spill]] }
  0x21   : > { %v900_v23 = vunpack.c.0.s8 %v899_v13  ;;  %vm1009_vm3 = vcmp.lt.s32.totalorder %v8832_v9, 1  ;;  %vm1096_vm4 = vcmp.lt.s32.totalorder %v8832_v9, 127  ;;  %vm1138_vm5 = vcmp.lt.s32.totalorder %v8832_v9, 113 }
  0x22   : > { %882 = vrot.lane.b32.xlu1 %v877_v17, %s11009_s30  ;;  %vm1180_vm6 = vcmp.lt.s32.totalorder %v8832_v9, 112  ;;  %vm1222_vm7 = vcmp.lt.s32.totalorder %v8832_v9, 111 }
  0x23   : > { %880 = vrot.lane.b32.xlu0 %v873_v18, %s11009_s30  ;;  %v8874_v45 = vsub.s32 %v900_v23, %v8690_v11 }
  0x26   : > { %919 = vrot.lane.b32.xlu1 %v873_v18, %s11007_s3 }
  0x27   : > { %921 = vrot.lane.b32.xlu0 %v877_v17, %s11007_s3  ;;  %s11013_s3 = smov 30  }
  0x2a   : > { %965 = vrot.lane.b32.xlu1 %v877_v17, %s11003_s29 }
  0x2b   : > { %963 = vrot.lane.b32.xlu0 %v873_v18, %s11003_s29  ;;  %s11056_s29 = sld [smem:[#allocation11_spill]] }
  0x2e   : > { %1007 = vrot.lane.b32.xlu1 %v877_v17, %s11001_s8 }
  0x2f   : > { %1005 = vrot.lane.b32.xlu0 %v873_v18, %s11001_s8  ;;  %s11061_s8 = smov 127  }
  0x31   : > { %v2047_v32 = vld [vmem:[%s11056_s29] sm:$0x3]  ;;  %v7874_v33 = vld [vmem:[%s11056_s29 + $0x2] sm:$0x3]  ;;  %v7875_v39 = vld [vmem:[%s11056_s29 + $0x4] sm:$0x3] }
  0x32   : > { %1092 = vrot.lane.b32.xlu1 %v873_v18, %s10999_s5  ;;  %v2048_v35 = vunpack.c.l.bf16 %v2047_v32  ;;  %v2085_v36 = vunpack.c.l.bf16 %v7874_v33  ;;  %v7876_v40 = vld [vmem:[%s11056_s29 + $0x6] sm:$0x3]  ;;  %v2122_v43 = vunpack.c.l.bf16 %v7875_v39  ;;  %v7877_v47 = vld [vmem:[%s11056_s29 + $0x8] sm:$0x3]  ;;  %v7878_v48 = vld [vmem:[%s11056_s29 + $0xa] sm:$0x3] }
  0x33   : > { %8407 = vperm.xlu0 %8394, %v8406_v27   ;;  %v2159_v44 = vunpack.c.l.bf16 %v7876_v40  ;;  %v2189_v53 = vunpack.c.l.bf16 %v7877_v47  ;;  %v2225_v54 = vunpack.c.l.bf16 %v7878_v48  ;;  %v7879_v57 = vld [vmem:[%s11056_s29 + $0xc] sm:$0x3]  ;;  %v7880_v58 = vld [vmem:[%s11056_s29 + $0xe] sm:$0x3]  ;;  %v7881_v0 = vld [vmem:[%s11056_s29 + $0x10] sm:$0x3] }
  0x34   : > { %v8416_v38 = vpack.i.bf16 %v2085_v36, %v2048_v35  ;;  %v2262_v60 = vunpack.c.l.bf16 %v7879_v57  ;;  %v2299_v61 = vunpack.c.l.bf16 %v7880_v58  ;;  %v2336_v1 = vunpack.c.l.bf16 %v7881_v0  ;;  %s11076_s29 = smov 96  }
  0x35   : > { %v8421_v46 = vpack.i.bf16 %v2159_v44, %v2122_v43  ;;  %v8426_v56 = vpack.i.bf16 %v2225_v54, %v2189_v53 }
  0x36   : > { %8412 = vperm.xlu1 %8400, %v8411_v28   ;;  %v8431_v63 = vpack.i.bf16 %v2299_v61, %v2262_v60 }
  0x37   : > { %1094 = vrot.lane.b32.xlu0 %v877_v17, %s10999_s5  ;;  %s11058_s5 = sld [smem:[#allocation6_spill]] }
  0x3a   : > { %1136 = vrot.lane.b32.xlu1 %v877_v17, %s11005_s6 }
  0x3b   : > { %1134 = vrot.lane.b32.xlu0 %v873_v18, %s11005_s6  ;;  %s11062_s6 = smov 113  }
  0x3d   : > { %v8782_v49 = vld [vmem:[%s11058_s5] sm:$0xff]  ;;  %v8787_v50 = vld [vmem:[%s11058_s5 + $0x8] sm:$0xff] }
  0x3e   : > { %1178 = vrot.lane.b32.xlu1 %v877_v17, %s8502_s4  ;;  %v1047_v51 = vcombine.high %v8782_v49, %v8787_v50  ;;  %v929_v19 = vrot.slane %v8787_v50, 1  ;;  %v970_v24 = vrot.slane %v8782_v49, 2  ;;  %v971_v25 = vrot.slane %v8787_v50, 2 }
  0x3f   : > { %1176 = vrot.lane.b32.xlu0 %v873_v18, %s8502_s4  ;;  %v1012_v36 = vrot.slane %v8782_v49, 3  ;;  %v1100_v0 = vrot.slane %v8787_v50, 5  ;;  %v1142_v23 = vrot.slane %v8787_v50, 6 }
  0x40   : > { %v1054_v55 = vrot.slane %v1047_v51, %v8792_v52 }
  0x42   : > { %1218 = vrot.lane.b32.xlu1 %v873_v18, %s8503_s27  ;;  %v1061_v59 = vrot.slane %v1054_v55, %v8792_v52  ;;  %v928_v18 = vrot.slane %v8782_v49, 1 }
  0x43   : > { %1232 = vperm.xlu0 %8394, %v1229_v30  }
  0x44   : > { %v8810_v62 = vmul.f32 %v1061_v59, %v862_v31  ;;  %v8851_v29 = vmul.f32 %v1061_v59, %v8706_v16  ;;  %v1099_v59 = vrot.slane %v8782_v49, 5 }
  0x46   : > { %2039 = vrot.lane.b32.xlu1 %v8753_v34, %s11009_s30  ;;  %v1083_v48 = vrot.slane %v8851_v29, %v8697_v14  ;;  %v1087_v55 = vrot.slane %v8851_v29, %v8700_v15 }
  0x47   : > { %1220 = vrot.lane.b32.xlu0 %v877_v17, %s8503_s27 }
  0x4a   : > { %2041 = vrot.lane.b32.xlu1 %v8758_v37, %s11009_s30  ;;  %s11063_s30 = sld [smem:[#allocation7_spill]] }
  0x4b   : > { %8417 = vperm.xlu0 %8394, %v8416_v38   ;;  %v1013_v38 = vrot.slane %v8787_v50, 3 }
  0x4e   : > { %2077 = vrot.lane.b32.xlu1 %v8758_v37, %s11057_s0 }
  0x4f   : > { %2075 = vrot.lane.b32.xlu0 %v8753_v34, %s11057_s0 }
  0x52   : > { %2112 = vrot.lane.b32.xlu1 %v8753_v34, %s11059_s11 }
  0x53   : > { %8422 = vperm.xlu0 %8394, %v8421_v46  }
  0x56   : > { %2149 = vrot.lane.b32.xlu1 %v8753_v34, %s11060_s2 }
  0x57   : > { %2114 = vrot.lane.b32.xlu0 %v8758_v37, %s11059_s11 }
  0x5a   : > { %8427 = vperm.xlu1 %8400, %v8426_v56  }
  0x5b   : > { %2151 = vrot.lane.b32.xlu0 %v8758_v37, %s11060_s2 }
  0x5e   : > { %2217 = vrot.lane.b32.xlu1 %v8758_v37, %s11061_s8 }
  0x5f   : > { %2215 = vrot.lane.b32.xlu0 %v8753_v34, %s11061_s8 }
  0x62   : > { %2252 = vrot.lane.b32.xlu1 %v8753_v34, %s11062_s6 }
  0x63   : > { %8432 = vperm.xlu0 %8394, %v8431_v63  }
  0x66   : > { %2289 = vrot.lane.b32.xlu1 %v8753_v34, %s8502_s4 }
  0x67   : > { %2254 = vrot.lane.b32.xlu0 %v8758_v37, %s11062_s6 }
  0x6a   : > { %2339 = vperm.xlu1 %8400, %v2336_v1  }
  0x6b   : > { %2291 = vrot.lane.b32.xlu0 %v8758_v37, %s8502_s4 }
  0x9d   : > { %v8827_v2 = vpop.permute.xlu1 %8402 }
  0x9e   : > { %v8829_v5 = vpop.permute.xlu0 %8396  ;;  %v8404_v1 = vunpack.i.l.bf16 %v8827_v2 }
  0x9f   : > { %v8399_v56 = vunpack.i.h.bf16 %v8829_v5 }
  0xa1   : > { %v883_v6 = vpop.permute.xlu1 %882 }
  0xa2   : > { %v881_v7 = vpop.permute.xlu0 %880 }
  0xa3   : > { %v887_v26 = vsel %vm11036_vm1, %v881_v7, %v883_v6  ;;  %v888_v27 = vsel %vm11036_vm1, %v883_v6, %v881_v7  ;;  %v8398_v6 = vunpack.i.l.bf16 %v8829_v5  ;;  %v8405_v5 = vunpack.i.h.bf16 %v8827_v2 }
  0xa4   : > { %v889_v16 = vmul.f32 %v888_v27, %v8782_v49  ;;  %v890_v39 = vmul.f32 %v887_v26, %v8787_v50 }
  0xa5   : > { %v920_v8 = vpop.permute.xlu1 %919 }
  0xa6   : > { %v922_v10 = vpop.permute.xlu0 %921  ;;  %v908_v57 = vrot.slane %v889_v16, %v8697_v14  ;;  %v912_v58 = vrot.slane %v890_v39, %v8697_v14 }
  0xa7   : > { %v924_v21 = vsel %vm11037_vm0, %v920_v8, %v922_v10  ;;  %v925_v22 = vsel %vm11037_vm0, %v922_v10, %v920_v8  ;;  %v1141_v10 = vrot.slane %v8782_v49, 6 }
  0xa8   : > { %v932_v30 = vmul.f32 %v928_v18, %v925_v22  ;;  %v933_v31 = vmul.f32 %v929_v19, %v924_v21  ;;  %v948_v21 = vrot.slane %v8399_v56, %v8874_v45  ;;  %v915_v22 = vcombine.low %v908_v57, %v912_v58 }
  0xa9   : > { %v966_v17 = vpop.permute.xlu1 %965  ;;  %v1088_v58 = vcombine.low %v1083_v48, %v1087_v55 }
  0xaa   : > { %v964_v20 = vpop.permute.xlu0 %963  ;;  %v952_v46 = vrot.slane %v932_v30, %v8697_v14  ;;  %v956_v47 = vrot.slane %v933_v31, %v8697_v14  ;;  %v990_v30 = vrot.slane %v8404_v1, %v8874_v45  ;;  %v904_v31 = vrot.slane %v8398_v6, %v8874_v45 }
  0xab   : > { %v968_v32 = vsel %vm967_vm2, %v964_v20, %v966_v17  ;;  %v969_v33 = vsel %vm967_vm2, %v966_v17, %v964_v20 }
  0xac   : > { %v974_v42 = vmul.f32 %v970_v24, %v969_v33  ;;  %v975_v43 = vmul.f32 %v971_v25, %v968_v32  ;;  %v959_v7 = vcombine.low %v952_v46, %v956_v47  ;;  %v1032_v46 = vrot.slane %v8405_v5, %v8874_v45 }
  0xad   : > { %v1008_v28 = vpop.permute.xlu1 %1007 }
  0xae   : > { %v1006_v35 = vpop.permute.xlu0 %1005  ;;  %v994_v60 = vrot.slane %v974_v42, %v8697_v14  ;;  %v998_v61 = vrot.slane %v975_v43, %v8697_v14  ;;  %v961_v32 = vmul.f32 %v959_v7, %v948_v21 }
  0xaf   : > { %v1010_v40 = vsel %vm1009_vm3, %v1006_v35, %v1008_v28  ;;  %v1011_v41 = vsel %vm1009_vm3, %v1008_v28, %v1006_v35  ;;  %v1183_v35 = vrot.slane %v8782_v49, 7 }
  0xb0   : > { %v1016_v53 = vmul.f32 %v1012_v36, %v1011_v41  ;;  %v1017_v54 = vmul.f32 %v1013_v38, %v1010_v40  ;;  %v1001_v26 = vcombine.low %v994_v60, %v998_v61  ;;  %v917_v41 = vmul.f32 %v915_v22, %v904_v31 }
  0xb1   : > { %v1093_v44 = vpop.permute.xlu1 %1092 }
  0xb2   : > { %v8880_v51 = vpop.permute.xlu0 %8407  ;;  %v1036_v12 = vrot.slane %v1016_v53, %v8697_v14  ;;  %v1040_v13 = vrot.slane %v1017_v54, %v8697_v14  ;;  %v1003_v47 = vmul.f32 %v1001_v26, %v990_v30  ;;  %v962_v57 = vadd.f32 %v961_v32, %v917_v41 }
  0xb3   : > { %v8409_v39 = vunpack.i.l.bf16 %v8880_v51  ;;  %v8410_v60 = vunpack.i.h.bf16 %v8880_v51 }
  0xb4   : > { %v1043_v16 = vcombine.low %v1036_v12, %v1040_v13  ;;  %v1004_v51 = vadd.f32 %v1003_v47, %v962_v57 }
  0xb5   : > { %v8895_v63 = vpop.permute.xlu1 %8412  ;;  %v1078_v6 = vrot.slane %v8409_v39, %v8874_v45  ;;  %v8958_v39 = vld [vmem:[%s11058_s5 + $0x18] sm:$0x1] }
  0xb6   : > { %v1095_v8 = vpop.permute.xlu0 %1094  ;;  %v1045_v1 = vmul.f32 %v1043_v16, %v1032_v46  ;;  %v8414_v21 = vunpack.i.l.bf16 %v8895_v63  ;;  %v8415_v30 = vunpack.i.h.bf16 %v8895_v63  ;;  %v8953_v16 = vld [vmem:[%s11058_s5 + $0x10] sm:$0x1]  ;;  %s11072_s5 = smov 30  }
  0xb7   : > { %v1097_v17 = vsel %vm1096_vm4, %v1093_v44, %v1095_v8  ;;  %v1098_v20 = vsel %vm1096_vm4, %v1095_v8, %v1093_v44  ;;  %v1184_v44 = vrot.slane %v8787_v50, 7 }
  0xb8   : > { %v1103_v27 = vmul.f32 %v1099_v59, %v1097_v17  ;;  %v1104_v28 = vmul.f32 %v1100_v0, %v1098_v20  ;;  %v1203_v46 = vrot.slane %v8415_v30, %v8874_v45 }
  0xb9   : > { %v1137_v29 = vpop.permute.xlu1 %1136 }
  0xba   : > { %v1135_v33 = vpop.permute.xlu0 %1134  ;;  %v1123_v53 = vrot.slane %v1103_v27, %v8697_v14  ;;  %v1127_v54 = vrot.slane %v1104_v28, %v8697_v14  ;;  %v1046_v27 = vadd.f32 %v1045_v1, %v1004_v51  ;;  %v1119_v28 = vrot.slane %v8410_v60, %v8874_v45 }
  0xbb   : > { %v1139_v2 = vsel %vm1138_vm5, %v1135_v33, %v1137_v29  ;;  %v1140_v40 = vsel %vm1138_vm5, %v1137_v29, %v1135_v33  ;;  %v1090_v29 = vmul.f32 %v1088_v58, %v1078_v6 }
  0xbc   : > { %v1145_v42 = vmul.f32 %v1141_v10, %v1139_v2  ;;  %v1146_v43 = vmul.f32 %v1142_v23, %v1140_v40  ;;  %v1130_v55 = vcombine.low %v1123_v53, %v1127_v54  ;;  %v1161_v2 = vrot.slane %v8414_v21, %v8874_v45 }
  0xbd   : > { %v1179_v56 = vpop.permute.xlu1 %1178  ;;  %v1091_v63 = vadd.f32 %v1090_v29, %v1046_v27 }
  0xbe   : > { %v1177_v61 = vpop.permute.xlu0 %1176  ;;  %v1165_v12 = vrot.slane %v1145_v42, %v8697_v14  ;;  %v1169_v13 = vrot.slane %v1146_v43, %v8697_v14  ;;  %v1132_v32 = vmul.f32 %v1130_v55, %v1119_v28 }
  0xbf   : > { %v1181_v7 = vsel %vm1180_vm6, %v1177_v61, %v1179_v56  ;;  %v1182_v8 = vsel %vm1180_vm6, %v1179_v56, %v1177_v61 }
  0xc0   : > { %v1187_v17 = vmul.f32 %v1183_v35, %v1181_v7  ;;  %v1188_v48 = vmul.f32 %v1184_v44, %v1182_v8  ;;  %v1172_v31 = vcombine.low %v1165_v12, %v1169_v13  ;;  %v1133_v56 = vadd.f32 %v1132_v32, %v1091_v63 }
  0xc1   : > { %v1219_v20 = vpop.permute.xlu1 %1218 }
  0xc2   : > { %v1207_v22 = vrot.slane %v1187_v17, %v8697_v14  ;;  %v1211_v5 = vrot.slane %v1188_v48, %v8697_v14  ;;  %v1233_v26 = vpop.permute.xlu0 %1232  ;;  %v1174_v47 = vmul.f32 %v1172_v31, %v1161_v2 }
  0xc3   : > { %v1241_v12 = vrot.slane %v1233_v26, %v8874_v45 }
  0xc4   : > { %v1214_v40 = vcombine.low %v1207_v22, %v1211_v5  ;;  %v1175_v8 = vadd.f32 %v1174_v47, %v1133_v56 }
  0xc5   : > { %v2040_v33 = vpop.permute.xlu1 %2039 }
  0xc6   : > { %v1221_v41 = vpop.permute.xlu0 %1220  ;;  %v1216_v58 = vmul.f32 %v1214_v40, %v1203_v46 }
  0xc7   : > { %v1223_v42 = vsel %vm1222_vm7, %v1219_v20, %v1221_v41  ;;  %v1224_v43 = vsel %vm1222_vm7, %v1221_v41, %v1219_v20 }
  0xc8   : > { %v1225_v53 = vmul.f32 %v1223_v42, %v8953_v16  ;;  %v1226_v54 = vmul.f32 %v1224_v43, %v8958_v39  ;;  %v1217_v21 = vadd.f32 %v1216_v58, %v1175_v8 }
  0xc9   : > { %v2042_v57 = vpop.permute.xlu1 %2041 }
  0xca   : > { %v1245_v60 = vrot.slane %v1225_v53, %v8697_v14  ;;  %v1249_v61 = vrot.slane %v1226_v54, %v8697_v14  ;;  %v2044_v1 = vsel %vm11036_vm1, %v2042_v57, %v2040_v33  ;;  %v8418_v6 = vpop.permute.xlu0 %8417  ;;  %v2043_v7 = vsel %vm11036_vm1, %v2040_v33, %v2042_v57 }
  0xcb   : > { %v2045_v17 = vmul.f32 %v2044_v1, %v8782_v49  ;;  %v2046_v55 = vmul.f32 %v2043_v7, %v8787_v50  ;;  %v8420_v30 = vunpack.i.h.bf16 %v8418_v6  ;;  %v8419_v56 = vunpack.i.l.bf16 %v8418_v6 }
  0xcc   : > { %v1252_v13 = vcombine.low %v1245_v60, %v1249_v61 }
  0xcd   : > { %v2078_v48 = vpop.permute.xlu1 %2077  ;;  %v2064_v29 = vrot.slane %v2045_v17, %v8697_v14  ;;  %v2068_v32 = vrot.slane %v2046_v55, %v8697_v14  ;;  %v2097_v54 = vrot.slane %v8420_v30, %v8874_v45  ;;  %v2060_v17 = vrot.slane %v8419_v56, %v8874_v45 }
  0xce   : > { %v1254_v51 = vmul.f32 %v1252_v13, %v1241_v12  ;;  %v2076_v20 = vpop.permute.xlu0 %2075  ;;  %v2210_v30 = vrot.slane %v8810_v62, %v8700_v15 }
  0xcf   : > { %v2079_v22 = vsel %vm11037_vm0, %v2076_v20, %v2078_v48  ;;  %v2080_v5 = vsel %vm11037_vm0, %v2078_v48, %v2076_v20  ;;  %v2071_v53 = vcombine.low %v2064_v29, %v2068_v32 }
  0xd0   : > { %v2081_v27 = vmul.f32 %v2080_v5, %v928_v18  ;;  %v2082_v26 = vmul.f32 %v2079_v22, %v929_v19  ;;  %v8985_v28 = vadd.f32 %v1254_v51, %v1217_v21  ;;  %v2206_v21 = vrot.slane %v8810_v62, %v8697_v14 }
  0xd1   : > { %v2113_v31 = vpop.permute.xlu1 %2112  ;;  %v2073_v22 = vmul.f32 %v2071_v53, %v2060_v17 }
  0xd2   : > { %v2101_v33 = vrot.slane %v2081_v27, %v8697_v14  ;;  %v2105_v2 = vrot.slane %v2082_v26, %v8697_v14  ;;  %v8423_v40 = vpop.permute.xlu0 %8422  ;;  %v1257_v18 = vcombine.high %v8985_v28, %v8985_v28  ;;  %v1266_v19 = vmul.f32 %v8985_v28, %v8985_v28 }
  0xd3   : > { %v1260_v63 = vsel %vm1259_vm8, %v8985_v28, 0.0  ;;  %v8424_v7 = vunpack.i.l.bf16 %v8423_v40  ;;  %v8425_v29 = vunpack.i.h.bf16 %v8423_v40 }
  0xd4   : > { %v2108_v41 = vcombine.low %v2101_v33, %v2105_v2  ;;  %v1261_v42 = vsel %vm1259_vm8, %v1257_v18, 0.0  ;;  %v1268_v47 = vcombine.high %v1266_v19, %v1266_v19  ;;  %v1270_v61 = vsel %vm1259_vm8, %v1266_v19, 0.0 }
  0xd5   : > { %v2150_v43 = vpop.permute.xlu1 %2149  ;;  %v1262_v46 = vadd.f32 %v1261_v42, %v1260_v63  ;;  %v2134_v5 = vrot.slane %v8424_v7, %v8874_v45 }
  0xd6   : > { %v2115_v57 = vpop.permute.xlu0 %2114  ;;  %v1271_v1 = vsel %vm1259_vm8, %v1268_v47, 0.0  ;;  %v2110_v48 = vmul.f32 %v2108_v41, %v2097_v54  ;;  %v2211_v47 = vcombine.low %v2206_v21, %v2210_v30 }
  0xd7   : > { %v2116_v58 = vsel %vm967_vm2, %v2113_v31, %v2115_v57  ;;  %v2117_v60 = vsel %vm967_vm2, %v2115_v57, %v2113_v31  ;;  %1263 = vadd.xlane.f32.xlu1 %v1262_v46  ;;  %v1272_v6 = vadd.f32 %v1271_v1, %v1270_v61  ;;  %v2171_v46 = vrot.slane %v8425_v29, %v8874_v45 }
  0xd8   : > { %v2118_v8 = vmul.f32 %v2117_v60, %v970_v24  ;;  %v2119_v12 = vmul.f32 %v2116_v58, %v971_v25  ;;  %v2111_v2 = vadd.f32 %v2110_v48, %v2073_v22 }
  0xd9   : > { %v8428_v13 = vpop.permute.xlu1 %8427  ;;  %1273 = vadd.xlane.f32.xlu0 %v1272_v6 }
  0xda   : > { %v2138_v51 = vrot.slane %v2118_v8, %v8697_v14  ;;  %v2142_v55 = vrot.slane %v2119_v12, %v8697_v14  ;;  %v2152_v20 = vpop.permute.xlu0 %2151  ;;  %v8429_v31 = vunpack.i.l.bf16 %v8428_v13  ;;  %v8430_v62 = vunpack.i.h.bf16 %v8428_v13 }
  0xdb   : > { %v2153_v24 = vsel %vm1009_vm3, %v2150_v43, %v2152_v20  ;;  %v2154_v25 = vsel %vm1009_vm3, %v2152_v20, %v2150_v43 }
  0xdc   : > { %v2145_v27 = vcombine.low %v2138_v51, %v2142_v55  ;;  %v2155_v26 = vmul.f32 %v2154_v25, %v1012_v36  ;;  %v2156_v32 = vmul.f32 %v2153_v24, %v1013_v38  ;;  %v2201_v53 = vrot.slane %v8429_v31, %v8874_v45 }
  0xdd   : > { %v2218_v33 = vpop.permute.xlu1 %2217  ;;  %v2237_v61 = vrot.slane %v8430_v62, %v8874_v45 }
  0xde   : > { %v2147_v18 = vmul.f32 %v2145_v27, %v2134_v5  ;;  %v2175_v19 = vrot.slane %v2155_v26, %v8697_v14  ;;  %v2216_v41 = vpop.permute.xlu0 %2215  ;;  %v2179_v63 = vrot.slane %v2156_v32, %v8697_v14 }
  0xdf   : > { %v2219_v42 = vsel %vm1096_vm4, %v2216_v41, %v2218_v33  ;;  %v2220_v36 = vsel %vm1096_vm4, %v2218_v33, %v2216_v41 }
  0xe0   : > { %v2148_v40 = vadd.f32 %v2147_v18, %v2111_v2  ;;  %v2221_v43 = vmul.f32 %v2219_v42, %v1099_v59  ;;  %v2222_v38 = vmul.f32 %v2220_v36, %v1100_v0  ;;  %v2182_v54 = vcombine.low %v2175_v19, %v2179_v63 }
  0xe1   : > { %v2253_v7 = vpop.permute.xlu1 %2252  ;;  %v2213_v59 = vmul.f32 %v2211_v47, %v2201_v53 }
  0xe2   : > { %v2241_v56 = vrot.slane %v2221_v43, %v8697_v14  ;;  %v2245_v57 = vrot.slane %v2222_v38, %v8697_v14  ;;  %v8433_v58 = vpop.permute.xlu0 %8432  ;;  %v2184_v60 = vmul.f32 %v2182_v54, %v2171_v46  ;;  %v867_v46 = vld [vmem:[%s11063_s30] sm:$0x3]  ;;  %s11065_s30 = sld [smem:[#allocation10_spill]] }
  0xe3   : > { %v8434_v48 = vunpack.i.l.bf16 %v8433_v58  ;;  %v8435_v5 = vunpack.i.h.bf16 %v8433_v58  ;;  %v9074_v53 = vrot.slane %v867_v46, %v8700_v15 }
  0xe4   : > { %v2248_v1 = vcombine.low %v2241_v56, %v2245_v57  ;;  %v2185_v8 = vadd.f32 %v2184_v60, %v2148_v40 }
  0xe5   : > { %v2290_v21 = vpop.permute.xlu1 %2289  ;;  %v2274_v26 = vrot.slane %v8434_v48, %v8874_v45  ;;  %v2311_v33 = vrot.slane %v8435_v5, %v8874_v45 }
  0xe6   : > { %v2250_v12 = vmul.f32 %v2248_v1, %v2237_v61  ;;  %v2255_v0 = vpop.permute.xlu0 %2254  ;;  %v2214_v6 = vadd.f32 %v2213_v59, %v2185_v8 }
  0xe7   : > { %v2256_v13 = vsel %vm1138_vm5, %v2253_v7, %v2255_v0  ;;  %v2257_v17 = vsel %vm1138_vm5, %v2255_v0, %v2253_v7 }
  0xe8   : > { %v2258_v51 = vmul.f32 %v2256_v13, %v1141_v10  ;;  %v2259_v55 = vmul.f32 %v2257_v17, %v1142_v23  ;;  %2328 = vrot.lane.b32.xlu1 %v8758_v37, %s8503_s27  ;;  %v2251_v20 = vadd.f32 %v2250_v12, %v2214_v6 }
  0xe9   : > { %v2340_v63 = vpop.permute.xlu1 %2339 }
  0xea   : > { %v2278_v24 = vrot.slane %v2258_v51, %v8697_v14  ;;  %v2282_v25 = vrot.slane %v2259_v55, %v8697_v14  ;;  %v2292_v22 = vpop.permute.xlu0 %2291  ;;  %v2348_v55 = vrot.slane %v2340_v63, %v8874_v45 }
  0xeb   : > { %v2293_v27 = vsel %vm1180_vm6, %v2290_v21, %v2292_v22  ;;  %v2294_v10 = vsel %vm1180_vm6, %v2292_v22, %v2290_v21 }
  0xec   : > { %v2285_v23 = vcombine.low %v2278_v24, %v2282_v25  ;;  %v2295_v37 = vmul.f32 %v2293_v27, %v1183_v35  ;;  %v2296_v29 = vmul.f32 %v2294_v10, %v1184_v44 }
  0xee   : > { %v2287_v30 = vmul.f32 %v2285_v23, %v2274_v26  ;;  %v2315_v31 = vrot.slane %v2295_v37, %v8697_v14  ;;  %v2319_v32 = vrot.slane %v2296_v29, %v8697_v14  ;;  %v9133_v29 = vrot.slane %v8787_v50, %v8700_v15 }
  0xef   : > { %2326 = vrot.lane.b32.xlu0 %v8753_v34, %s8503_s27  ;;  %v9071_v34 = vrot.slane %v867_v46, %v8697_v14  ;;  %v9153_v46 = vsub.s32 2, %v8690_v11 }
  0xf0   : > { %v2288_v2 = vadd.f32 %v2287_v30, %v2251_v20  ;;  %v2322_v18 = vcombine.low %v2315_v31, %v2319_v32  ;;  %v9137_v30 = vrot.slane %v8782_v49, %v8700_v15 }
  0xf1   : > { %v9079_v57 = vcombine.low %v9071_v34, %v9074_v53 }
  0xf2   : > { %v2324_v19 = vmul.f32 %v2322_v18, %v2311_v33 }
  0xf4   : > { %v2325_v41 = vadd.f32 %v2324_v19, %v2288_v2 }
 0x164   : > { %v1264_v42 = vpop.xlane.xlu1 %1263 }
 0x165   : > { %v1265_v35 = vmul.f32 0.00390625, %v1264_v42 }
 0x166   : > { %v1274_v40 = vpop.xlane.xlu0 %1273 }
 0x167   : > { %v1276_v36 = vmul.f32 %v1265_v35, %v1265_v35  ;;  %v1275_v44 = vmul.f32 0.00390625, %v1274_v40  ;;  %v1288_v47 = vrot.slane %v1265_v35, %v8874_v45  ;;  %v7848_v35 = vld [vmem:[%s11065_s30 + $0x2] sm:$0x3] }
 0x168   : > { %v2329_v7 = vpop.permute.xlu1 %2328 }
 0x169   : > { %v1277_v62 = vsub.f32 %v1275_v44, %v1276_v36  ;;  %v1290_v56 = vsub.f32 %v8985_v28, %v1288_v47  ;;  %v9157_v47 = vrot.slane %v8782_v49, %v8697_v14 }
 0x16a   : > { %v2327_v1 = vpop.permute.xlu0 %2326 }
 0x16b   : > { %v1278_v43 = vmax.f32 %v1277_v62, 0.0  ;;  %v2330_v8 = vsel %vm1222_vm7, %v2327_v1, %v2329_v7  ;;  %v2331_v12 = vsel %vm1222_vm7, %v2329_v7, %v2327_v1 }
 0x16c   : > { %v2332_v6 = vmul.f32 %v2330_v8, %v8953_v16  ;;  %v2333_v13 = vmul.f32 %v2331_v12, %v8958_v39 }
 0x16d   : > { %v1279_v38 = vadd.f32 1e-05, %v1278_v43 }
 0x16e   : > { %v2352_v17 = vrot.slane %v2332_v6, %v8697_v14  ;;  %v2356_v48 = vrot.slane %v2333_v13, %v8697_v14  ;;  %v9178_v6 = vrot.slane %v8787_v50, %v9153_v46  ;;  %v9181_v13 = vsub.s32 3, %v8690_v11 }
 0x16f   : > { %8455 = vrsqrt.f32 %v1279_v38 }
 0x170   : > { %v2359_v51 = vcombine.low %v2352_v17, %v2356_v48 }
 0x172   : > { %v2361_v20 = vmul.f32 %v2359_v51, %v2348_v55 }
 0x174   : > { %v9099_v21 = vadd.f32 %v2361_v20, %v2325_v41 }
 0x176   : > { %v2364_v24 = vcombine.high %v9099_v21, %v9099_v21  ;;  %v2372_v25 = vmul.f32 %v9099_v21, %v9099_v21  ;;  %v2366_v5 = vsel %vm1259_vm8, %v9099_v21, 0.0 }
 0x178   : > { %v2367_v22 = vsel %vm1259_vm8, %v2364_v24, 0.0  ;;  %v2374_v10 = vcombine.high %v2372_v25, %v2372_v25  ;;  %v2376_v23 = vsel %vm1259_vm8, %v2372_v25, 0.0 }
 0x179   : > { %v8456_v54 = vpop.eup %8455  ;;  %v2368_v27 = vadd.f32 %v2367_v22, %v2366_v5 }
 0x17a   : > { %v1298_v58 = vrot.slane %v8456_v54, %v8874_v45  ;;  %v2377_v26 = vsel %vm1259_vm8, %v2374_v10, 0.0  ;;  %v9161_v54 = vrot.slane %v8787_v50, %v8697_v14 }
 0x17b   : > { %v2378_v37 = vadd.f32 %v2377_v26, %v2376_v23  ;;  %v9197_v26 = vrot.slane %v8787_v50, %v9181_v13  ;;  %v1337_v23 = vld [vmem:[%s11065_s30] sm:$0x3] }
 0x17c   : > { %v1300_v60 = vmul.f32 %v1298_v58, %v1290_v56 }
 0x17e   : > { %v1314_v61 = vmul.f32 %v9079_v57, %v1300_v60  ;;  %v9164_v60 = vsub.s32 4, %v8690_v11 }
 0x180   : > { %vm1315_vm9 = vcmp.ge.f32.partialorder %v1314_v61, 0.0  ;;  %v1316_v59 = vmul.f32 0.2, %v1314_v61  ;;  %v1609_v20 = vrot.slane %v8782_v49, %v9164_v60  ;;  %v1613_v22 = vrot.slane %v8787_v50, %v9164_v60 }
 0x182   : > { %v9087_v28 = vsel %vm1315_vm9, %v1314_v61, %v1316_v59  ;;  %v9172_v59 = vrot.slane %v8782_v49, %v9153_v46  ;;  %vm3256_vm9 = vcmp.lt.s32.totalorder %v8832_v9, 2 }
 0x183   : > { %1340 = vrot.lane.b32.xlu0 %v9087_v28, %s11057_s0  ;;  %v1319_v0 = vcombine.high %v9087_v28, %v9087_v28 }
 0x185   : > { %1342 = vrot.lane.b32.xlu1 %v1319_v0, %s11057_s0 }
 0x1a2   : > { %2369 = vadd.xlane.f32.xlu0 %v2368_v27 }
 0x1a9   : > { %2379 = vadd.xlane.f32.xlu1 %v2378_v37 }
 0x1b8   : > { %1321 = vrot.lane.b32.xlu0 %v9087_v28, %s11064_s7 }
 0x1ba   : > { %1323 = vrot.lane.b32.xlu1 %v1319_v0, %s11064_s7 }
 0x1bc   : > { %1462 = vrot.lane.b32.xlu0 %v9087_v28, %s11059_s11 }
 0x1be   : > { %1464 = vrot.lane.b32.xlu1 %v1319_v0, %s11059_s11 }
 0x1c0   : > { %1534 = vrot.lane.b32.xlu0 %v9087_v28, %s11060_s2 }
 0x1c2   : > { %1536 = vrot.lane.b32.xlu1 %v1319_v0, %s11060_s2 }
 0x1c4   : > { %1678 = vrot.lane.b32.xlu0 %v9087_v28, %s11061_s8 }
 0x1c6   : > { %1680 = vrot.lane.b32.xlu1 %v1319_v0, %s11061_s8 }
 0x1c8   : > { %1750 = vrot.lane.b32.xlu0 %v9087_v28, %s11062_s6 }
 0x1ca   : > { %1752 = vrot.lane.b32.xlu1 %v1319_v0, %s11062_s6 }
 0x1cc   : > { %1822 = vrot.lane.b32.xlu0 %v9087_v28, %s8502_s4 }
 0x1ce   : > { %1824 = vrot.lane.b32.xlu1 %v1319_v0, %s8502_s4 }
 0x1d0   : > { %1894 = vrot.lane.b32.xlu0 %v9087_v28, %s8503_s27 }
 0x1d2   : > { %1896 = vrot.lane.b32.xlu1 %v1319_v0, %s8503_s27 }
 0x1f5   : > { %v1341_v31 = vpop.permute.xlu0 %1340 }
 0x1f7   : > { %v1343_v32 = vpop.permute.xlu1 %1342 }
 0x1f8   : > { %v1345_v33 = vsel %vm11037_vm0, %v1343_v32, %v1341_v31  ;;  %v1344_v2 = vsel %vm11037_vm0, %v1341_v31, %v1343_v32 }
 0x1f9   : > { %v1355_v18 = vmul.f32 %v9133_v29, %v1344_v2  ;;  %v1354_v19 = vmul.f32 %v9137_v30, %v1345_v33 }
 0x1fb   : > { %v1359_v41 = vpack.c.bf16 %v1355_v18, %v1355_v18  ;;  %v1358_v63 = vpack.c.bf16 %v1354_v19, %v1354_v19  ;;  %v9204_v18 = vcombine.low %v1609_v20, %v1613_v22  ;;  %v9208_v19 = vrot.slane %v8782_v49, %v9181_v13 }
 0x1fd   : > { %7849 = vmatprep.subr.msk.bf16.mxu0 %vm11035_vm10, %v1359_v41  ;;  %v1366_v42 = vsel %vm11035_vm10, %v1358_v63, 0 }
 0x1fe   : > { %1372 = vmatpush1.bf16.msra.mxu0 %v1366_v42 }
 0x201   : > { %7850 = vmatmul.mubr.msk.bf16.vlgmr.msra.gmra.mrb[0].mxu0 %vm11034_vm11, %v7848_v35 }
 0x202   : > { %1453 = vmatprep.mubr.bf16.mxu0 %v8495_v4 }
 0x22f   : > { %v2370_v36 = vpop.xlane.xlu0 %2369 }
 0x230   : > { %v2371_v40 = vmul.f32 0.00390625, %v2370_v36 }
 0x232   : > { %v2382_v43 = vmul.f32 %v2371_v40, %v2371_v40  ;;  %v2394_v35 = vrot.slane %v2371_v40, %v8874_v45  ;;  %v7853_v40 = vld [vmem:[%s11065_s30 + $0x4] sm:$0x3] }
 0x233   : > { %v1322_v44 = vpop.permute.xlu0 %1321 }
 0x236   : > { %v2380_v62 = vpop.xlane.xlu1 %2379 }
 0x237   : > { %v2381_v38 = vmul.f32 0.00390625, %v2380_v62  ;;  %v1463_v8 = vpop.permute.xlu0 %1462 }
 0x239   : > { %v2383_v56 = vsub.f32 %v2381_v38, %v2382_v43  ;;  %v2396_v38 = vsub.f32 %v9099_v21, %v2394_v35 }
 0x23a   : > { %v1324_v58 = vpop.permute.xlu1 %1323 }
 0x23b   : > { %v2384_v61 = vmax.f32 %v2383_v56, 0.0  ;;  %v1325_v1 = vsel %vm11036_vm1, %v1322_v44, %v1324_v58  ;;  %v1326_v7 = vsel %vm11036_vm1, %v1324_v58, %v1322_v44  ;;  %v1535_v37 = vpop.permute.xlu0 %1534  ;;  %v1618_v44 = vmul.f32 %v9204_v18, %v9087_v28 }
 0x23c   : > { %v1335_v12 = vmul.f32 %v9157_v47, %v1326_v7  ;;  %v1336_v0 = vmul.f32 %v9161_v54, %v1325_v1 }
 0x23d   : > { %v2385_v17 = vadd.f32 1e-05, %v2384_v61  ;;  %v1622_v58 = vcombine.high %v1618_v44, %v1618_v44  ;;  %v1624_v20 = vpack.c.bf16 %v1618_v44, %v1618_v44 }
 0x23e   : > { %v1338_v48 = vpack.c.bf16 %v1335_v12, %v1335_v12  ;;  %v1339_v51 = vpack.c.bf16 %v1336_v0, %v1336_v0  ;;  %v1465_v55 = vpop.permute.xlu1 %1464  ;;  %v9229_v12 = vsub.s32 5, %v8690_v11 }
 0x23f   : > { %8457 = vrsqrt.f32 %v2385_v17  ;;  %v1466_v24 = vsel %vm967_vm2, %v1463_v8, %v1465_v55  ;;  %v1467_v25 = vsel %vm967_vm2, %v1465_v55, %v1463_v8  ;;  %v1625_v8 = vpack.c.bf16 %v1622_v58, %v1622_v58  ;;  %v1679_v17 = vpop.permute.xlu0 %1678 }
 0x240   : > { %v1476_v5 = vmul.f32 %v9172_v59, %v1467_v25  ;;  %v1477_v27 = vmul.f32 %v9178_v6, %v1466_v24  ;;  %7851 = vmatprep.subr.msk.bf16.mxu0 %vm11035_vm10, %v1339_v51  ;;  %v1416_v10 = vsel %vm11035_vm10, %v1338_v48, 0  ;;  %v9243_v48 = vrot.slane %v8787_v50, %v9229_v12  ;;  %v7856_v24 = vld [vmem:[%s11065_s30 + $0x6] sm:$0x3] }
 0x241   : > { %1422 = vmatpush1.bf16.msra.mxu0 %v1416_v10  ;;  %v9259_v25 = vrot.slane %v8782_v49, %v9229_v12 }
 0x242   : > { %v1480_v31 = vpack.c.bf16 %v1476_v5, %v1476_v5  ;;  %v1481_v32 = vpack.c.bf16 %v1477_v27, %v1477_v27  ;;  %v1537_v33 = vpop.permute.xlu1 %1536  ;;  %v9262_v5 = vsub.s32 6, %v8690_v11  ;;  %v1630_v27 = vsel %vm11035_vm10, %v1624_v20, 0  ;;  %v7865_v20 = vld [vmem:[%s11065_s30 + $0xc] sm:$0x3] }
 0x243   : > { %v1538_v2 = vsel %vm1009_vm3, %v1535_v37, %v1537_v33  ;;  %v1539_v42 = vsel %vm1009_vm3, %v1537_v33, %v1535_v37  ;;  %v1751_v37 = vpop.permute.xlu0 %1750 }
 0x244   : > { %v1549_v41 = vmul.f32 %v9197_v26, %v1538_v2  ;;  %7852 = vmatmul.mubr.msk.bf16.vlgmr.msra.gmra.mrb[0].mxu0 %vm11034_vm11, %v1337_v23  ;;  %7854 = vmatprep.subr.msk.bf16.mxu0 %vm11035_vm10, %v1481_v32  ;;  %v1486_v63 = vsel %vm11035_vm10, %v1480_v31, 0  ;;  %v1548_v62 = vmul.f32 %v9208_v19, %v1539_v42  ;;  %v9276_v32 = vrot.slane %v8787_v50, %v9262_v5 }
 0x245   : > { %1492 = vmatpush1.bf16.msra.mxu0 %v1486_v63  ;;  %1523 = vmatprep.mubr.bf16.mxu0 %v8495_v4  ;;  %v7859_v63 = vld [vmem:[%s11065_s30 + $0x8] sm:$0x3]  ;;  %v9292_v42 = vrot.slane %v8782_v49, %v9262_v5 }
 0x246   : > { %v1553_v36 = vpack.c.bf16 %v1549_v41, %v1549_v41  ;;  %v1552_v1 = vpack.c.bf16 %v1548_v62, %v1548_v62 }
 0x248   : > { %7857 = vmatprep.subr.msk.bf16.mxu0 %vm11035_vm10, %v1553_v36  ;;  %v1558_v21 = vsel %vm11035_vm10, %v1552_v1, 0  ;;  %v9295_v36 = vsub.s32 7, %v8690_v11  ;;  %v1823_v11 = vpop.permute.xlu0 %1822 }
 0x249   : > { %v8458_v43 = vpop.eup %8457 }
 0x24a   : > { %v2404_v56 = vrot.slane %v8458_v43, %v8874_v45  ;;  %v1681_v45 = vpop.permute.xlu1 %1680 }
 0x24b   : > { %v1683_v51 = vsel %vm1096_vm4, %v1681_v45, %v1679_v17  ;;  %v1682_v10 = vsel %vm1096_vm4, %v1679_v17, %v1681_v45 }
 0x24c   : > { %v2406_v61 = vmul.f32 %v2404_v56, %v2396_v38  ;;  %v1693_v55 = vmul.f32 %v9243_v48, %v1683_v51  ;;  %v1692_v31 = vmul.f32 %v9259_v25, %v1682_v10  ;;  %v9309_v56 = vrot.slane %v8787_v50, %v9295_v36  ;;  %v1895_v45 = vpop.permute.xlu0 %1894 }
 0x24d   : > { %v9323_v50 = vrot.slane %v8782_v49, %v9295_v36  ;;  %v9334_v49 = vrot.slane %v8958_v39, %v8697_v14 }
 0x24e   : > { %v2407_v7 = vmul.f32 %v2406_v61, %v9079_v57  ;;  %v1697_v22 = vpack.c.bf16 %v1693_v55, %v1693_v55  ;;  %v1753_v23 = vpop.permute.xlu1 %1752  ;;  %v1696_v2 = vpack.c.bf16 %v1692_v31, %v1692_v31  ;;  %v7871_v31 = vld [vmem:[%s11065_s30 + $0x10] sm:$0x3] }
 0x24f   : > { %v1755_v33 = vsel %vm1138_vm5, %v1753_v23, %v1751_v37  ;;  %v1754_v62 = vsel %vm1138_vm5, %v1751_v37, %v1753_v23 }
 0x250   : > { %vm2408_vm12 = vcmp.ge.f32.partialorder %v2407_v7, 0.0  ;;  %v2409_v28 = vmul.f32 0.2, %v2407_v7  ;;  %7855 = vmatmul.mubr.msk.bf16.vlgmr.msra.gmra.mrb[0].mxu0 %vm11034_vm11, %v7853_v40  ;;  %v1765_v41 = vmul.f32 %v9276_v32, %v1755_v33  ;;  %v1702_v44 = vsel %vm11035_vm10, %v1696_v2, 0  ;;  %v7862_v40 = vld [vmem:[%s11065_s30 + $0xa] sm:$0x3] }
 0x251   : > { %1564 = vmatpush1.bf16.msra.mxu0 %v1558_v21  ;;  %1595 = vmatprep.mubr.bf16.mxu0 %v8495_v4  ;;  %v1764_v38 = vmul.f32 %v9292_v42, %v1754_v62 }
 0x252   : > { %7860 = vmatprep.subr.msk.bf16.mxu0 %vm11035_vm10, %v1625_v8  ;;  %v9235_v0 = vsel %vm2408_vm12, %v2407_v7, %v2409_v28  ;;  %v1769_v35 = vpack.c.bf16 %v1765_v41, %v1765_v41  ;;  %v1825_v43 = vpop.permute.xlu1 %1824  ;;  %vm3395_vm12 = vcmp.lt.s32.totalorder %v8832_v9, 126 }
 0x253   : > { %2425 = vrot.lane.b32.xlu0 %v9235_v0, %s11057_s0  ;;  %v2412_v57 = vcombine.high %v9235_v0, %v9235_v0  ;;  %v1827_v58 = vsel %vm1180_vm6, %v1825_v43, %v1823_v11  ;;  %v1768_v61 = vpack.c.bf16 %v1764_v38, %v1764_v38  ;;  %v1826_v28 = vsel %vm1180_vm6, %v1823_v11, %v1825_v43 }
 0x254   : > { %v1837_v1 = vmul.f32 %v9309_v56, %v1827_v58 }
 0x255   : > { %2427 = vrot.lane.b32.xlu1 %v2412_v57, %s11057_s0  ;;  %v1774_v8 = vsel %vm11035_vm10, %v1768_v61, 0 }
 0x256   : > { %v1841_v7 = vpack.c.bf16 %v1837_v1, %v1837_v1  ;;  %v1897_v21 = vpop.permute.xlu1 %1896 }
 0x257   : > { %2414 = vrot.lane.b32.xlu0 %v9235_v0, %s11064_s7  ;;  %v1899_v17 = vsel %vm1222_vm7, %v1897_v21, %v1895_v45 }
 0x258   : > { %v1909_v55 = vmul.f32 %v9334_v49, %v1899_v17 }
 0x259   : > { %2416 = vrot.lane.b32.xlu1 %v2412_v57, %s11064_s7 }
 0x25b   : > { %2537 = vrot.lane.b32.xlu0 %v9235_v0, %s11059_s11 }
 0x25c   : > { %7858 = vmatmul.mubr.msk.bf16.vlgmr.msra.gmra.mrb[0].mxu0 %vm11034_vm11, %v7856_v24  ;;  %v9344_v24 = vrot.slane %v8953_v16, %v8697_v14  ;;  %v7868_v16 = vld [vmem:[%s11065_s30 + $0xe] sm:$0x3]  ;;  %s11074_s30 = smov 126  }
 0x25d   : > { %1636 = vmatpush1.bf16.msra.mxu0 %v1630_v27  ;;  %2539 = vrot.lane.b32.xlu1 %v2412_v57, %s11059_s11  ;;  %v1898_v27 = vsel %vm1222_vm7, %v1895_v45, %v1897_v21  ;;  %s11067_s11 = sld [smem:[#allocation8_spill]] }
 0x25e   : > { %7863 = vmatprep.subr.msk.bf16.mxu0 %vm11035_vm10, %v1697_v22  ;;  %1667 = vmatprep.mubr.bf16.mxu0 %v8495_v4  ;;  %v1913_v22 = vpack.c.bf16 %v1909_v55, %v1909_v55  ;;  %v1908_v10 = vmul.f32 %v9344_v24, %v1898_v27 }
 0x25f   : > { %2601 = vrot.lane.b32.xlu0 %v9235_v0, %s11060_s2 }
 0x260   : > { %v1912_v23 = vpack.c.bf16 %v1908_v10, %v1908_v10 }
 0x261   : > { %2603 = vrot.lane.b32.xlu1 %v2412_v57, %s11060_s2 }
 0x262   : > { %v1918_v37 = vsel %vm11035_vm10, %v1912_v23, 0 }
 0x263   : > { %2725 = vrot.lane.b32.xlu0 %v9235_v0, %s11061_s8 }
 0x265   : > { %2727 = vrot.lane.b32.xlu1 %v2412_v57, %s11061_s8 }
 0x267   : > { %2789 = vrot.lane.b32.xlu0 %v9235_v0, %s11062_s6 }
 0x268   : > { %7861 = vmatmul.mubr.msk.bf16.vlgmr.msra.gmra.mrb[0].mxu0 %vm11034_vm11, %v7859_v63 }
 0x269   : > { %1708 = vmatpush1.bf16.msra.mxu0 %v1702_v44  ;;  %2791 = vrot.lane.b32.xlu1 %v2412_v57, %s11062_s6  ;;  %s11066_s6 = sld [smem:[#allocation12_spill]] }
 0x26a   : > { %7866 = vmatprep.subr.msk.bf16.mxu0 %vm11035_vm10, %v1769_v35  ;;  %1739 = vmatprep.mubr.bf16.mxu0 %v8495_v4 }
 0x26b   : > { %2853 = vrot.lane.b32.xlu0 %v9235_v0, %s8502_s4 }
 0x26d   : > { %2855 = vrot.lane.b32.xlu1 %v2412_v57, %s8502_s4 }
 0x26f   : > { %2917 = vrot.lane.b32.xlu0 %v9235_v0, %s8503_s27  ;;  %v2422_v27 = vld [vmem:[%s11066_s6] sm:$0x3] }
 0x271   : > { %2919 = vrot.lane.b32.xlu1 %v2412_v57, %s8503_s27  ;;  %v1836_v57 = vmul.f32 %v9323_v50, %v1826_v28  ;;  %s11011_s27 = smov 2  }
 0x273   : > { %v1840_v51 = vpack.c.bf16 %v1836_v57, %v1836_v57 }
 0x274   : > { %7864 = vmatmul.mubr.msk.bf16.vlgmr.msra.gmra.mrb[0].mxu0 %vm11034_vm11, %v7862_v40 }
 0x275   : > { %1780 = vmatpush1.bf16.msra.mxu0 %v1774_v8  ;;  %1811 = vmatprep.mubr.bf16.mxu0 %v8495_v4  ;;  %v1846_v39 = vsel %vm11035_vm10, %v1840_v51, 0 }
 0x276   : > { %7869 = vmatprep.subr.msk.bf16.mxu0 %vm11035_vm10, %v1841_v7 }
 0x280   : > { %7867 = vmatmul.mubr.msk.bf16.vlgmr.msra.gmra.mrb[0].mxu0 %vm11034_vm11, %v7865_v20 }
 0x281   : > { %1852 = vmatpush1.bf16.msra.mxu0 %v1846_v39  ;;  %1883 = vmatprep.mubr.bf16.mxu0 %v8495_v4 }
 0x282   : > { %7872 = vmatprep.subr.msk.bf16.mxu0 %vm11035_vm10, %v1913_v22 }
 0x28c   : > { %7870 = vmatmul.mubr.msk.bf16.vlgmr.msra.gmra.mrb[0].mxu0 %vm11034_vm11, %v7868_v16 }
 0x28d   : > { %1924 = vmatpush1.bf16.msra.mxu0 %v1918_v37  ;;  %1955 = vmatprep.mubr.bf16.mxu0 %v8495_v4 }
 0x298   : > { %7873 = vmatmul.mubr.msk.bf16.vlgmr.msra.gmra.mrb[0].mxu0 %vm11034_vm11, %v7871_v31 }
 0x299   : > { %3120 = vmatprep.mubr.bf16.mxu0 %v8495_v4 }
 0x2c5   : > { %v2426_v33 = vpop.permute.xlu0 %2425 }
 0x2c7   : > { %v2428_v2 = vpop.permute.xlu1 %2427 }
 0x2c8   : > { %v2430_v41 = vsel %vm11037_vm0, %v2428_v2, %v2426_v33  ;;  %v2429_v63 = vsel %vm11037_vm0, %v2426_v33, %v2428_v2  ;;  %v7887_v33 = vld [vmem:[%s11066_s6 + $0x4] sm:$0x3] }
 0x2c9   : > { %v2415_v35 = vpop.permute.xlu0 %2414  ;;  %v2432_v44 = vmul.f32 %v2429_v63, %v9133_v29  ;;  %v2431_v62 = vmul.f32 %v2430_v41, %v9137_v30  ;;  %v7882_v29 = vld [vmem:[%s11066_s6 + $0x2] sm:$0x3] }
 0x2cb   : > { %v2417_v43 = vpop.permute.xlu1 %2416  ;;  %v2436_v11 = vpack.c.bf16 %v2432_v44, %v2432_v44  ;;  %v2435_v38 = vpack.c.bf16 %v2431_v62, %v2431_v62  ;;  %v7890_v44 = vld [vmem:[%s11066_s6 + $0x6] sm:$0x3] }
 0x2cc   : > { %v2418_v58 = vsel %vm11036_vm1, %v2415_v35, %v2417_v43  ;;  %v2419_v61 = vsel %vm11036_vm1, %v2417_v43, %v2415_v35 }
 0x2cd   : > { %v2420_v1 = vmul.f32 %v2419_v61, %v9157_v47  ;;  %v2421_v40 = vmul.f32 %v2418_v58, %v9161_v54  ;;  %7883 = vmatprep.subr.msk.bf16.mxu1 %vm11035_vm10, %v2436_v11  ;;  %v2441_v7 = vsel %vm11035_vm10, %v2435_v38, 0  ;;  %v2538_v28 = vpop.permute.xlu0 %2537 }
 0x2ce   : > { %2447 = vmatpush1.bf16.msra.mxu1 %v2441_v7  ;;  %v7893_v7 = vld [vmem:[%s11066_s6 + $0x8] sm:$0x3] }
 0x2cf   : > { %v2423_v30 = vpack.c.bf16 %v2420_v1, %v2420_v1  ;;  %v2424_v8 = vpack.c.bf16 %v2421_v40, %v2421_v40  ;;  %v2540_v21 = vpop.permute.xlu1 %2539 }
 0x2d0   : > { %v2541_v45 = vsel %vm967_vm2, %v2538_v28, %v2540_v21  ;;  %v2542_v57 = vsel %vm967_vm2, %v2540_v21, %v2538_v28 }
 0x2d1   : > { %v2544_v47 = vmul.f32 %v2541_v45, %v9178_v6  ;;  %7884 = vmatmul.mubr.msk.bf16.vlgmr.msra.gmra.mrb[0].mxu1 %vm11034_vm11, %v7882_v29  ;;  %7885 = vmatprep.subr.msk.bf16.mxu1 %vm11035_vm10, %v2424_v8  ;;  %v2491_v54 = vsel %vm11035_vm10, %v2423_v30, 0  ;;  %v2543_v55 = vmul.f32 %v2542_v57, %v9172_v59  ;;  %v2602_v20 = vpop.permute.xlu0 %2601 }
 0x2d2   : > { %2497 = vmatpush1.bf16.msra.mxu1 %v2491_v54  ;;  %2528 = vmatprep.mubr.bf16.mxu1 %v8495_v4  ;;  %v7896_v54 = vld [vmem:[%s11066_s6 + $0xa] sm:$0x3] }
 0x2d3   : > { %v2548_v17 = vpack.c.bf16 %v2544_v47, %v2544_v47  ;;  %v2604_v51 = vpop.permute.xlu1 %2603  ;;  %v2547_v22 = vpack.c.bf16 %v2543_v55, %v2543_v55 }
 0x2d4   : > { %v2605_v6 = vsel %vm1009_vm3, %v2602_v20, %v2604_v51  ;;  %v2606_v59 = vsel %vm1009_vm3, %v2604_v51, %v2602_v20 }
 0x2d5   : > { %7888 = vmatprep.subr.msk.bf16.mxu1 %vm11035_vm10, %v2548_v17  ;;  %v2608_v39 = vmul.f32 %v2605_v6, %v9197_v26  ;;  %v2553_v23 = vsel %vm11035_vm10, %v2547_v22, 0  ;;  %v2607_v16 = vmul.f32 %v2606_v59, %v9208_v19  ;;  %v2665_v26 = vmul.f32 %v9235_v0, %v9204_v18  ;;  %v2726_v19 = vpop.permute.xlu0 %2725  ;;  %v7902_v59 = vld [vmem:[%s11066_s6 + $0xe] sm:$0x3] }
 0x2d7   : > { %v2612_v10 = vpack.c.bf16 %v2608_v39, %v2608_v39  ;;  %v2611_v37 = vpack.c.bf16 %v2607_v16, %v2607_v16  ;;  %v2669_v31 = vcombine.high %v2665_v26, %v2665_v26  ;;  %v2728_v63 = vpop.permute.xlu1 %2727  ;;  %v2671_v35 = vpack.c.bf16 %v2665_v26, %v2665_v26  ;;  %v7899_v39 = vld [vmem:[%s11066_s6 + $0xc] sm:$0x3]  ;;  %v7905_v26 = vld [vmem:[%s11066_s6 + $0x10] sm:$0x3]  ;;  %s11073_s6 = smov 2  }
 0x2d8   : > { %v2730_v18 = vsel %vm1096_vm4, %v2728_v63, %v2726_v19  ;;  %v2729_v11 = vsel %vm1096_vm4, %v2726_v19, %v2728_v63 }
 0x2d9   : > { %v2617_v2 = vsel %vm11035_vm10, %v2611_v37, 0  ;;  %v2672_v41 = vpack.c.bf16 %v2669_v31, %v2669_v31  ;;  %v2732_v0 = vmul.f32 %v2730_v18, %v9243_v48  ;;  %v2677_v43 = vsel %vm11035_vm10, %v2671_v35, 0  ;;  %v2790_v58 = vpop.permute.xlu0 %2789 }
 0x2da   : > { %v2731_v48 = vmul.f32 %v2729_v11, %v9259_v25 }
 0x2db   : > { %v2736_v62 = vpack.c.bf16 %v2732_v0, %v2732_v0  ;;  %v2792_v38 = vpop.permute.xlu1 %2791 }
 0x2dc   : > { %v2794_v61 = vsel %vm1138_vm5, %v2792_v38, %v2790_v58  ;;  %v2735_v1 = vpack.c.bf16 %v2731_v48, %v2731_v48  ;;  %v2793_v8 = vsel %vm1138_vm5, %v2790_v58, %v2792_v38  ;;  %vm3042_vm5 = vcmp.lt.s32.totalorder %v8832_v9, 34 }
 0x2dd   : > { %7886 = vmatmul.mubr.msk.bf16.vlgmr.msra.gmra.mrb[0].mxu1 %vm11034_vm11, %v2422_v27  ;;  %v2796_v40 = vmul.f32 %v2794_v61, %v9276_v32  ;;  %v2795_v32 = vmul.f32 %v2793_v8, %v9292_v42  ;;  %v2854_v28 = vpop.permute.xlu0 %2853 }
 0x2de   : > { %2559 = vmatpush1.bf16.msra.mxu1 %v2553_v23  ;;  %2590 = vmatprep.mubr.bf16.mxu1 %v8495_v4  ;;  %v2741_v30 = vsel %vm11035_vm10, %v2735_v1, 0 }
 0x2df   : > { %7891 = vmatprep.subr.msk.bf16.mxu1 %vm11035_vm10, %v2612_v10  ;;  %v2800_v29 = vpack.c.bf16 %v2796_v40, %v2796_v40  ;;  %v2856_v25 = vpop.permute.xlu1 %2855  ;;  %v2799_v45 = vpack.c.bf16 %v2795_v32, %v2795_v32 }
 0x2e0   : > { %v2858_v21 = vsel %vm1180_vm6, %v2856_v25, %v2854_v28  ;;  %v2857_v51 = vsel %vm1180_vm6, %v2854_v28, %v2856_v25 }
 0x2e1   : > { %v2860_v47 = vmul.f32 %v2858_v21, %v9309_v56  ;;  %v2805_v17 = vsel %vm11035_vm10, %v2799_v45, 0  ;;  %v2859_v56 = vmul.f32 %v2857_v51, %v9323_v50  ;;  %v2918_v55 = vpop.permute.xlu0 %2917 }
 0x2e3   : > { %v2864_v57 = vpack.c.bf16 %v2860_v47, %v2860_v47  ;;  %v2920_v42 = vpop.permute.xlu1 %2919  ;;  %v2863_v6 = vpack.c.bf16 %v2859_v56, %v2859_v56 }
 0x2e4   : > { %v2922_v20 = vsel %vm1222_vm7, %v2920_v42, %v2918_v55  ;;  %v2921_v23 = vsel %vm1222_vm7, %v2918_v55, %v2920_v42  ;;  %vm3183_vm7 = vcmp.lt.s32.totalorder %v8832_v9, 30 }
 0x2e5   : > { %v2924_v22 = vmul.f32 %v2922_v20, %v9334_v49  ;;  %v2869_v10 = vsel %vm11035_vm10, %v2863_v6, 0  ;;  %v2923_v50 = vmul.f32 %v2921_v23, %v9344_v24 }
 0x2e7   : > { %v2928_v27 = vpack.c.bf16 %v2924_v22, %v2924_v22  ;;  %v2927_v49 = vpack.c.bf16 %v2923_v50, %v2923_v50 }
 0x2e9   : > { %7889 = vmatmul.mubr.msk.bf16.vlgmr.msra.gmra.mrb[0].mxu1 %vm11034_vm11, %v7887_v33  ;;  %v2933_v16 = vsel %vm11035_vm10, %v2927_v49, 0 }
 0x2ea   : > { %2623 = vmatpush1.bf16.msra.mxu1 %v2617_v2  ;;  %2654 = vmatprep.mubr.bf16.mxu1 %v8495_v4 }
 0x2eb   : > { %7894 = vmatprep.subr.msk.bf16.mxu1 %vm11035_vm10, %v2672_v41 }
 0x2f5   : > { %7892 = vmatmul.mubr.msk.bf16.vlgmr.msra.gmra.mrb[0].mxu1 %vm11034_vm11, %v7890_v44 }
 0x2f6   : > { %2683 = vmatpush1.bf16.msra.mxu1 %v2677_v43  ;;  %2714 = vmatprep.mubr.bf16.mxu1 %v8495_v4 }
 0x2f7   : > { %7897 = vmatprep.subr.msk.bf16.mxu1 %vm11035_vm10, %v2736_v62 }
 0x301   : > { %7895 = vmatmul.mubr.msk.bf16.vlgmr.msra.gmra.mrb[0].mxu1 %vm11034_vm11, %v7893_v7 }
 0x302   : > { %2747 = vmatpush1.bf16.msra.mxu1 %v2741_v30  ;;  %2778 = vmatprep.mubr.bf16.mxu1 %v8495_v4 }
 0x303   : > { %7900 = vmatprep.subr.msk.bf16.mxu1 %vm11035_vm10, %v2800_v29 }
 0x30d   : > { %7898 = vmatmul.mubr.msk.bf16.vlgmr.msra.gmra.mrb[0].mxu1 %vm11034_vm11, %v7896_v54 }
 0x30e   : > { %2811 = vmatpush1.bf16.msra.mxu1 %v2805_v17  ;;  %2842 = vmatprep.mubr.bf16.mxu1 %v8495_v4 }
 0x30f   : > { %7903 = vmatprep.subr.msk.bf16.mxu1 %vm11035_vm10, %v2864_v57 }
 0x319   : > { %7901 = vmatmul.mubr.msk.bf16.vlgmr.msra.gmra.mrb[0].mxu1 %vm11034_vm11, %v7899_v39 }
 0x31a   : > { %2875 = vmatpush1.bf16.msra.mxu1 %v2869_v10  ;;  %2906 = vmatprep.mubr.bf16.mxu1 %v8495_v4 }
 0x31b   : > { %7906 = vmatprep.subr.msk.bf16.mxu1 %vm11035_vm10, %v2928_v27 }
 0x325   : > { %7904 = vmatmul.mubr.msk.bf16.vlgmr.msra.gmra.mrb[0].mxu1 %vm11034_vm11, %v7902_v59 }
 0x326   : > { %2939 = vmatpush1.bf16.msra.mxu1 %v2933_v16  ;;  %2970 = vmatprep.mubr.bf16.mxu1 %v8495_v4 }
 0x331   : > { %7907 = vmatmul.mubr.msk.bf16.vlgmr.msra.gmra.mrb[0].mxu1 %vm11034_vm11, %v7905_v26 }
 0x332   : > { %3786 = vmatprep.mubr.bf16.mxu1 %v8495_v4 }
 0x36b   : > { %v1957_v24 = vpop.f32.mrb[0].mxu0 }
 0x36c   : > { %v1972_v37 = vmul.f32 %v1957_v24, %v1957_v24  ;;  %v1959_v31 = vpop.f32.mrb[1].mxu0  ;;  %v1966_v33 = vsel %vm1259_vm8, %v1957_v24, 0.0 }
 0x36d   : > { %v1973_v2 = vmul.f32 %v1959_v31, %v1959_v31  ;;  %v1961_v41 = vpop.f32.mrb[2].mxu0  ;;  %v1967_v63 = vsel %vm1259_vm8, %v1959_v31, 0.0 }
 0x36e   : > { %v1962_v19 = vpop.f32.mrb[3].mxu0  ;;  %v1968_v18 = vadd.f32 %v1967_v63, %v1966_v33  ;;  %v1974_v0 = vsel %vm1259_vm8, %v1972_v37, 0.0 }
 0x36f   : > { %v1975_v35 = vsel %vm1259_vm8, %v1973_v2, 0.0 }
 0x370   : > { %1969 = vadd.xlane.f32.xlu0 %v1968_v18  ;;  %v1976_v44 = vadd.f32 %v1975_v35, %v1974_v0 }
 0x372   : > { %1977 = vadd.xlane.f32.xlu1 %v1976_v44 }
 0x3fd   : > { %v1970_v62 = vpop.xlane.xlu0 %1969 }
 0x3fe   : > { %v1971_v43 = vmul.f32 0.00390625, %v1970_v62 }
 0x3ff   : > { %v1978_v11 = vpop.xlane.xlu1 %1977 }
 0x400   : > { %v1980_v38 = vmul.f32 %v1971_v43, %v1971_v43  ;;  %v1979_v48 = vmul.f32 0.00390625, %v1978_v11  ;;  %v1985_v57 = vsub.f32 %v1957_v24, %v1971_v43  ;;  %v1986_v17 = vsub.f32 %v1959_v31, %v1971_v43 }
 0x402   : > { %v1981_v58 = vsub.f32 %v1979_v48, %v1980_v38 }
 0x404   : > { %v1982_v61 = vmax.f32 %v1981_v58, 0.0  ;;  %v2972_v1 = vpop.f32.mrb[0].mxu1 }
 0x405   : > { %v2987_v40 = vmul.f32 %v2972_v1, %v2972_v1  ;;  %v2974_v7 = vpop.f32.mrb[1].mxu1  ;;  %v2981_v29 = vsel %vm1259_vm8, %v2972_v1, 0.0 }
 0x406   : > { %v1983_v30 = vadd.f32 1e-05, %v1982_v61  ;;  %v2988_v8 = vmul.f32 %v2974_v7, %v2974_v7  ;;  %v2976_v25 = vpop.f32.mrb[2].mxu1  ;;  %v2982_v32 = vsel %vm1259_vm8, %v2974_v7, 0.0  ;;  %v868_v61 = vld [vmem:[%s11067_s11] sm:$0x3] }
 0x407   : > { %v2977_v28 = vpop.f32.mrb[3].mxu1  ;;  %v2983_v21 = vadd.f32 %v2982_v32, %v2981_v29  ;;  %v2989_v45 = vsel %vm1259_vm8, %v2987_v40, 0.0  ;;  %v9510_v29 = vrot.slane %v868_v61, %v8700_v15  ;;  %s11015_s11 = smov 126  }
 0x408   : > { %8459 = vrsqrt.f32 %v1983_v30  ;;  %v2990_v47 = vsel %vm1259_vm8, %v2988_v8, 0.0 }
 0x409   : > { %v2991_v54 = vadd.f32 %v2990_v47, %v2989_v45 }
 0x412   : > { %v8460_v51 = vpop.eup %8459 }
 0x413   : > { %v1988_v42 = vmul.f32 %v8460_v51, %v1986_v17  ;;  %v1987_v56 = vmul.f32 %v8460_v51, %v1985_v57 }
 0x415   : > { %v1990_v55 = vmul.f32 %v1988_v42, %v9074_v53  ;;  %v1989_v20 = vmul.f32 %v1987_v56, %v9071_v34 }
 0x417   : > { %vm1992_vm13 = vcmp.ge.f32.partialorder %v1990_v55, 0.0  ;;  %v1994_v6 = vmul.f32 0.2, %v1990_v55  ;;  %vm1991_vm14 = vcmp.ge.f32.partialorder %v1989_v20, 0.0  ;;  %v1993_v22 = vmul.f32 0.2, %v1989_v20 }
 0x419   : > { %v1996_v39 = vsel %vm1992_vm13, %v1990_v55, %v1994_v6  ;;  %v1995_v27 = vsel %vm1991_vm14, %v1989_v20, %v1993_v22  ;;  %vm3541_vm13 = vcmp.lt.s32.totalorder %v8832_v9, 96  ;;  %vm3614_vm14 = vcmp.lt.s32.totalorder %v8832_v9, 94 }
 0x41a   : > { %1999 = vrot.lane.b32.xlu1 %v1996_v39, %s11061_s8  ;;  %1997 = vrot.lane.b32.xlu0 %v1995_v27, %s11061_s8 }
 0x439   : > { %2984 = vadd.xlane.f32.xlu0 %v2983_v21 }
 0x43e   : > { %2992 = vadd.xlane.f32.xlu1 %v2991_v54 }
 0x48c   : > { %v2000_v10 = vpop.permute.xlu1 %1999  ;;  %v1998_v23 = vpop.permute.xlu0 %1997 }
 0x48d   : > { %v2001_v50 = vsel %vm1096_vm4, %v1998_v23, %v2000_v10  ;;  %v2002_v49 = vsel %vm1096_vm4, %v2000_v10, %v1998_v23 }
 0x48e   : > { %v2004_v59 = vadd.f32 %v2002_v49, %v1996_v39  ;;  %v2003_v16 = vadd.f32 %v2001_v50, %v1995_v27 }
 0x490   : > { %2007 = vrot.lane.b32.xlu1 %v2004_v59, %s8502_s4  ;;  %2005 = vrot.lane.b32.xlu0 %v2003_v16, %s8502_s4 }
 0x4c6   : > { %v2985_v26 = vpop.xlane.xlu0 %2984 }
 0x4c7   : > { %v2986_v24 = vmul.f32 0.00390625, %v2985_v26 }
 0x4c9   : > { %v2995_v33 = vmul.f32 %v2986_v24, %v2986_v24  ;;  %v3000_v19 = vsub.f32 %v2972_v1, %v2986_v24  ;;  %v3001_v18 = vsub.f32 %v2974_v7, %v2986_v24  ;;  %v9507_v7 = vrot.slane %v868_v61, %v8697_v14 }
 0x4cb   : > { %v2993_v37 = vpop.xlane.xlu1 %2992 }
 0x4cc   : > { %v2994_v31 = vmul.f32 0.00390625, %v2993_v37 }
 0x4ce   : > { %v2996_v2 = vsub.f32 %v2994_v31, %v2995_v33 }
 0x4d0   : > { %v2997_v41 = vmax.f32 %v2996_v2, 0.0 }
 0x4d2   : > { %v2998_v63 = vadd.f32 1e-05, %v2997_v41 }
 0x4d4   : > { %8461 = vrsqrt.f32 %v2998_v63 }
 0x4de   : > { %v8462_v0 = vpop.eup %8461 }
 0x4df   : > { %v3003_v35 = vmul.f32 %v8462_v0, %v3001_v18  ;;  %v3002_v44 = vmul.f32 %v8462_v0, %v3000_v19 }
 0x4e1   : > { %v3005_v62 = vmul.f32 %v3003_v35, %v9074_v53  ;;  %v3004_v43 = vmul.f32 %v3002_v44, %v9071_v34 }
 0x4e3   : > { %vm3007_vm15 = vcmp.ge.f32.partialorder %v3005_v62, 0.0  ;;  %v3009_v11 = vmul.f32 0.2, %v3005_v62  ;;  %vm3006_vm2 = vcmp.ge.f32.partialorder %v3004_v43, 0.0  ;;  %v3008_v38 = vmul.f32 0.2, %v3004_v43 }
 0x4e5   : > { %v3011_v48 = vsel %vm3007_vm15, %v3005_v62, %v3009_v11  ;;  %v3010_v58 = vsel %vm3006_vm2, %v3004_v43, %v3008_v38 }
 0x4e6   : > { %3014 = vrot.lane.b32.xlu1 %v3011_v48, %s11061_s8  ;;  %3012 = vrot.lane.b32.xlu0 %v3010_v58, %s11061_s8  ;;  %s11019_s8 = smov 32  }
 0x502   : > { %v2008_v1 = vpop.permute.xlu1 %2007  ;;  %v2006_v40 = vpop.permute.xlu0 %2005 }
 0x503   : > { %v2009_v53 = vsel %vm1180_vm6, %v2006_v40, %v2008_v1  ;;  %v2010_v34 = vsel %vm1180_vm6, %v2008_v1, %v2006_v40 }
 0x504   : > { %v2011_v30 = vadd.f32 %v2009_v53, %v2003_v16  ;;  %v2012_v8 = vadd.f32 %v2010_v34, %v2004_v59 }
 0x506   : > { %v2013_v25 = vmul.f32 0.25, %v2011_v30  ;;  %v2014_v32 = vmul.f32 0.25, %v2012_v8 }
 0x508   : > { %v9513_v28 = vmul.f32 %v9507_v7, %v2013_v25  ;;  %v9516_v21 = vmul.f32 %v9510_v29, %v2014_v32 }
 0x50a   : > { %3060 = vrot.lane.b32.xlu1 %v9516_v21, %s11019_s8  ;;  %3058 = vrot.lane.b32.xlu0 %v9513_v28, %s11019_s8  ;;  %s11068_s8 = sld [smem:[#allocation13_spill]] }
 0x50e   : > { %3040 = vrot.lane.b32.xlu1 %v9516_v21, %s11017_s1  ;;  %3038 = vrot.lane.b32.xlu0 %v9513_v28, %s11017_s1  ;;  %s8518_s1 = smov 124  }
 0x510   : > { %v9565_v42 = vld [vmem:[%s11068_s8] sm:$0xff]  ;;  %v9570_v56 = vld [vmem:[%s11068_s8 + $0x8] sm:$0xff] }
 0x511   : > { %v9575_v55 = vrot.slane %v9565_v42, %v8700_v15  ;;  %v9579_v20 = vrot.slane %v9570_v56, %v8700_v15  ;;  %v9590_v50 = vrot.slane %v9565_v42, %v8697_v14  ;;  %v9594_v49 = vrot.slane %v9570_v56, %v8697_v14 }
 0x512   : > { %3181 = vrot.lane.b32.xlu1 %v9516_v21, %s11013_s3  ;;  %3179 = vrot.lane.b32.xlu0 %v9513_v28, %s11013_s3  ;;  %s11026_s3 = smov 96   ;;  %v9607_v63 = vrot.slane %v9570_v56, %v9153_v46  ;;  %v9616_v43 = vrot.slane %v9565_v42, %v9153_v46  ;;  %v9629_v53 = vrot.slane %v9570_v56, %v9181_v13 }
 0x513   : > { %v9640_v32 = vrot.slane %v9565_v42, %v9181_v13 }
 0x516   : > { %3254 = vrot.lane.b32.xlu1 %v9516_v21, %s11011_s27  ;;  %3252 = vrot.lane.b32.xlu0 %v9513_v28, %s11011_s27  ;;  %s11021_s27 = smov 98  }
 0x558   : > { %v3015_v45 = vpop.permute.xlu1 %3014  ;;  %v3013_v47 = vpop.permute.xlu0 %3012 }
 0x559   : > { %v3016_v54 = vsel %vm1096_vm4, %v3013_v47, %v3015_v45  ;;  %v3017_v57 = vsel %vm1096_vm4, %v3015_v45, %v3013_v47  ;;  %vm3062_vm4 = vcmp.lt.s32.totalorder %v8832_v9, 32 }
 0x55a   : > { %v9538_v17 = vadd.f32 %v3017_v57, %v3011_v48  ;;  %v9540_v51 = vadd.f32 %v3016_v54, %v3010_v58 }
 0x55c   : > { %3022 = vrot.lane.b32.xlu1 %v9538_v17, %s8502_s4  ;;  %3020 = vrot.lane.b32.xlu0 %v9540_v51, %s8502_s4  ;;  %s11024_s4 = smov 94  }
 0x560   : > { %3393 = vrot.lane.b32.xlu1 %v9516_v21, %s11015_s11  ;;  %3391 = vrot.lane.b32.xlu0 %v9513_v28, %s11015_s11  ;;  %s11071_s11 = smov 34  }
 0x564   : > { %3466 = vrot.lane.b32.xlu1 %v9516_v21, %s11021_s27  ;;  %3464 = vrot.lane.b32.xlu0 %v9513_v28, %s11021_s27  ;;  %s11069_s27 = sld [smem:[#allocation16_spill]] }
 0x568   : > { %3539 = vrot.lane.b32.xlu1 %v9516_v21, %s11026_s3  ;;  %3537 = vrot.lane.b32.xlu0 %v9513_v28, %s11026_s3  ;;  %s8516_s3 = smov 60  }
 0x56a   : > { %v7908_v19 = vld [vmem:[%s11069_s27 + $0x4] sm:$0xf]  ;;  %v3055_v25 = vld [vmem:[%s11069_s27] sm:$0xf] }
 0x56c   : > { %3612 = vrot.lane.b32.xlu1 %v9516_v21, %s11024_s4  ;;  %3610 = vrot.lane.b32.xlu0 %v9513_v28, %s11024_s4  ;;  %s11070_s4 = smov 32  }
 0x57c   : > { %v3061_v6 = vpop.permute.xlu1 %3060  ;;  %v3059_v22 = vpop.permute.xlu0 %3058 }
 0x57d   : > { %v3063_v39 = vsel %vm3062_vm4, %v3059_v22, %v3061_v6  ;;  %v3064_v27 = vsel %vm3062_vm4, %v3061_v6, %v3059_v22  ;;  %v9651_v6 = vrot.slane %v9570_v56, %v9164_v60 }
 0x57e   : > { %v3073_v10 = vmul.f32 %v9575_v55, %v3064_v27  ;;  %v3074_v23 = vmul.f32 %v9579_v20, %v3063_v39  ;;  %v7913_v27 = vld [vmem:[%s11069_s27 + $0x8] sm:$0xf] }
 0x57f   : > { %v3334_v39 = vmul.f32 %v9651_v6, %v9516_v21 }
 0x580   : > { %v3077_v59 = vpack.c.bf16 %v3073_v10, %v3073_v10  ;;  %v3078_v16 = vpack.c.bf16 %v3074_v23, %v3074_v23  ;;  %v3041_v26 = vpop.permute.xlu1 %3040  ;;  %v3039_v24 = vpop.permute.xlu0 %3038 }
 0x581   : > { %v3043_v37 = vsel %vm3042_vm5, %v3039_v24, %v3041_v26  ;;  %v3044_v31 = vsel %vm3042_vm5, %v3041_v26, %v3039_v24  ;;  %v3338_v23 = vpack.c.bf16 %v3334_v39, %v3334_v39  ;;  %v7916_v26 = vld [vmem:[%s11069_s27 + $0xc] sm:$0xf] }
 0x582   : > { %v3053_v33 = vmul.f32 %v9590_v50, %v3044_v31  ;;  %v3054_v2 = vmul.f32 %v9594_v49, %v3043_v37  ;;  %7909 = vmatprep.subr.msk.bf16.mxu0 %vm11035_vm10, %v3078_v16  ;;  %v3083_v41 = vsel %vm11035_vm10, %v3077_v59, 0  ;;  %v9662_v59 = vrot.slane %v9565_v42, %v9164_v60  ;;  %v7919_v37 = vld [vmem:[%s11069_s27 + $0x10] sm:$0xf] }
 0x583   : > { %3089 = vmatpush1.bf16.msra.mxu0 %v3083_v41 }
 0x584   : > { %v3056_v18 = vpack.c.bf16 %v3053_v33, %v3053_v33  ;;  %v3057_v0 = vpack.c.bf16 %v3054_v2, %v3054_v2  ;;  %v3182_v35 = vpop.permute.xlu1 %3181  ;;  %v3180_v44 = vpop.permute.xlu0 %3179  ;;  %v3333_v21 = vmul.f32 %v9662_v59, %v9513_v28 }
 0x585   : > { %v3184_v62 = vsel %vm3183_vm7, %v3180_v44, %v3182_v35  ;;  %v3185_v48 = vsel %vm3183_vm7, %v3182_v35, %v3180_v44 }
 0x586   : > { %v3195_v11 = vmul.f32 %v9607_v63, %v3184_v62  ;;  %7910 = vmatmul.mubr.msk.bf16.vlgmr.msra.gmra.mrb[4].mxu0 %vm11034_vm11, %v7908_v19  ;;  %7911 = vmatprep.subr.msk.bf16.mxu0 %vm11035_vm10, %v3057_v0  ;;  %v3133_v38 = vsel %vm11035_vm10, %v3056_v18, 0  ;;  %v3194_v40 = vmul.f32 %v9616_v43, %v3185_v48  ;;  %v3337_v16 = vpack.c.bf16 %v3333_v21, %v3333_v21 }
 0x587   : > { %3139 = vmatpush1.bf16.msra.mxu0 %v3133_v38  ;;  %3170 = vmatprep.mubr.bf16.mxu0 %v8495_v4  ;;  %v9688_v18 = vrot.slane %v9565_v42, %v9229_v12  ;;  %v9692_v0 = vrot.slane %v9570_v56, %v9229_v12  ;;  %v9705_v48 = vrot.slane %v9570_v56, %v9262_v5 }
 0x588   : > { %v3199_v58 = vpack.c.bf16 %v3195_v11, %v3195_v11  ;;  %v3255_v61 = vpop.permute.xlu1 %3254  ;;  %v3253_v1 = vpop.permute.xlu0 %3252  ;;  %v3198_v30 = vpack.c.bf16 %v3194_v40, %v3194_v40  ;;  %v3343_v24 = vsel %vm11035_vm10, %v3337_v16, 0 }
 0x589   : > { %v3257_v34 = vsel %vm3256_vm9, %v3253_v1, %v3255_v61  ;;  %v3258_v54 = vsel %vm3256_vm9, %v3255_v61, %v3253_v1 }
 0x58a   : > { %7914 = vmatprep.subr.msk.bf16.mxu0 %vm11035_vm10, %v3199_v58  ;;  %v3268_v8 = vmul.f32 %v9629_v53, %v3257_v34  ;;  %v3204_v47 = vsel %vm11035_vm10, %v3198_v30, 0  ;;  %v3267_v57 = vmul.f32 %v9640_v32, %v3258_v54 }
 0x58c   : > { %v3272_v45 = vpack.c.bf16 %v3268_v8, %v3268_v8  ;;  %v3271_v22 = vpack.c.bf16 %v3267_v57, %v3267_v57  ;;  %v9730_v57 = vrot.slane %v9570_v56, %v9295_v36  ;;  %v9743_v56 = vrot.slane %v9565_v42, %v9295_v36 }
 0x58e   : > { %v3277_v10 = vsel %vm11035_vm10, %v3271_v22, 0  ;;  %v7922_v22 = vld [vmem:[%s11069_s27 + $0x14] sm:$0xf] }
 0x592   : > { %7912 = vmatmul.mubr.msk.bf16.vlgmr.msra.gmra.mrb[4].mxu0 %vm11034_vm11, %v3055_v25 }
 0x593   : > { %3210 = vmatpush1.bf16.msra.mxu0 %v3204_v47  ;;  %3241 = vmatprep.mubr.bf16.mxu0 %v8495_v4 }
 0x594   : > { %7917 = vmatprep.subr.msk.bf16.mxu0 %vm11035_vm10, %v3272_v45 }
 0x59e   : > { %7915 = vmatmul.mubr.msk.bf16.vlgmr.msra.gmra.mrb[4].mxu0 %vm11034_vm11, %v7913_v27 }
 0x59f   : > { %3283 = vmatpush1.bf16.msra.mxu0 %v3277_v10  ;;  %3314 = vmatprep.mubr.bf16.mxu0 %v8495_v4 }
 0x5a0   : > { %7920 = vmatprep.subr.msk.bf16.mxu0 %vm11035_vm10, %v3338_v23 }
 0x5aa   : > { %7918 = vmatmul.mubr.msk.bf16.vlgmr.msra.gmra.mrb[4].mxu0 %vm11034_vm11, %v7916_v26 }
 0x5ab   : > { %3349 = vmatpush1.bf16.msra.mxu0 %v3343_v24  ;;  %3380 = vmatprep.mubr.bf16.mxu0 %v8495_v4 }
 0x5b6   : > { %7921 = vmatmul.mubr.msk.bf16.vlgmr.msra.gmra.mrb[4].mxu0 %vm11034_vm11, %v7919_v37 }
 0x5b7   : > { %3453 = vmatprep.mubr.bf16.mxu0 %v8495_v4 }
 0x5ce   : > { %v3023_v28 = vpop.permute.xlu1 %3022  ;;  %v3021_v31 = vpop.permute.xlu0 %3020 }
 0x5cf   : > { %v3024_v33 = vsel %vm1180_vm6, %v3021_v31, %v3023_v28  ;;  %v3025_v2 = vsel %vm1180_vm6, %v3023_v28, %v3021_v31  ;;  %vm3468_vm6 = vcmp.lt.s32.totalorder %v8832_v9, 98 }
 0x5d0   : > { %v3026_v41 = vadd.f32 %v3024_v33, %v9540_v51  ;;  %v3027_v19 = vadd.f32 %v3025_v2, %v9538_v17  ;;  %v9701_v51 = vrot.slane %v9565_v42, %v9262_v5  ;;  %v9762_v33 = vld [vmem:[%s11068_s8 + $0x18] ss:$0 sm:$0xff] }
 0x5d2   : > { %v3028_v35 = vmul.f32 0.25, %v3026_v41  ;;  %v3029_v44 = vmul.f32 0.25, %v3027_v19  ;;  %v3394_v62 = vpop.permute.xlu1 %3393  ;;  %v3392_v11 = vpop.permute.xlu0 %3391 }
 0x5d3   : > { %v3396_v38 = vsel %vm3395_vm12, %v3392_v11, %v3394_v62  ;;  %v3397_v17 = vsel %vm3395_vm12, %v3394_v62, %v3392_v11  ;;  %v9783_v11 = vld [vmem:[%s11068_s8 + $0x10] ss:$0 sm:$0xff]  ;;  %s11077_s8 = smov 94  }
 0x5d4   : > { %v9708_v58 = vmul.f32 %v3028_v35, %v9507_v7  ;;  %v9711_v61 = vmul.f32 %v3029_v44, %v9510_v29  ;;  %v3406_v1 = vmul.f32 %v9688_v18, %v3396_v38  ;;  %v3407_v40 = vmul.f32 %v9692_v0, %v3397_v17  ;;  %v7925_v35 = vld [vmem:[%s11069_s27 + $0x18] sm:$0xf] }
 0x5d6   : > { %v3410_v34 = vpack.c.bf16 %v3406_v1, %v3406_v1  ;;  %v3411_v30 = vpack.c.bf16 %v3407_v40, %v3407_v40  ;;  %v3467_v8 = vpop.permute.xlu1 %3466  ;;  %4358 = vrot.lane.b32.xlu1 %v9711_v61, %s11070_s4  ;;  %4356 = vrot.lane.b32.xlu0 %v9708_v58, %s11070_s4  ;;  %v3465_v25 = vpop.permute.xlu0 %3464  ;;  %v7928_v40 = vld [vmem:[%s11069_s27 + $0x1c] sm:$0xf] }
 0x5d7   : > { %v3469_v7 = vsel %vm3468_vm6, %v3465_v25, %v3467_v8  ;;  %v3470_v29 = vsel %vm3468_vm6, %v3467_v8, %v3465_v25 }
 0x5d8   : > { %v3479_v45 = vmul.f32 %v9701_v51, %v3469_v7  ;;  %v3480_v47 = vmul.f32 %v9705_v48, %v3470_v29  ;;  %7923 = vmatprep.subr.msk.bf16.mxu0 %vm11035_vm10, %v3411_v30  ;;  %v3416_v54 = vsel %vm11035_vm10, %v3410_v34, 0  ;;  %v7933_v30 = vld [vmem:[%s11069_s27 + $0x20] sm:$0xf] }
 0x5d9   : > { %3422 = vmatpush1.bf16.msra.mxu0 %v3416_v54 }
 0x5da   : > { %v3483_v39 = vpack.c.bf16 %v3479_v45, %v3479_v45  ;;  %v3484_v27 = vpack.c.bf16 %v3480_v47, %v3480_v47  ;;  %v3540_v10 = vpop.permute.xlu1 %3539  ;;  %4347 = vrot.lane.b32.xlu1 %v9711_v61, %s11071_s11  ;;  %4345 = vrot.lane.b32.xlu0 %v9708_v58, %s11071_s11  ;;  %v3538_v23 = vpop.permute.xlu0 %3537 }
 0x5db   : > { %v3543_v21 = vsel %vm3541_vm13, %v3540_v10, %v3538_v23  ;;  %v3542_v24 = vsel %vm3541_vm13, %v3538_v23, %v3540_v10 }
 0x5dc   : > { %v3553_v16 = vmul.f32 %v9730_v57, %v3543_v21  ;;  %7924 = vmatmul.mubr.msk.bf16.vlgmr.msra.gmra.mrb[4].mxu0 %vm11034_vm11, %v7922_v22  ;;  %7926 = vmatprep.subr.msk.bf16.mxu0 %vm11035_vm10, %v3484_v27  ;;  %v3489_v26 = vsel %vm11035_vm10, %v3483_v39, 0  ;;  %v3552_v31 = vmul.f32 %v9743_v56, %v3542_v24  ;;  %v7962_v24 = vld [vmem:[%s10977_s14 + $0x4] sm:$0xf] }
 0x5dd   : > { %3495 = vmatpush1.bf16.msra.mxu0 %v3489_v26  ;;  %3526 = vmatprep.mubr.bf16.mxu0 %v8495_v4 }
 0x5de   : > { %v3557_v37 = vpack.c.bf16 %v3553_v16, %v3553_v16  ;;  %v3613_v28 = vpop.permute.xlu1 %3612  ;;  %4470 = vrot.lane.b32.xlu1 %v9711_v61, %s11072_s5  ;;  %4468 = vrot.lane.b32.xlu0 %v9708_v58, %s11072_s5  ;;  %v3611_v42 = vpop.permute.xlu0 %3610  ;;  %v3556_v41 = vpack.c.bf16 %v3552_v31, %v3552_v31 }
 0x5df   : > { %v3616_v2 = vsel %vm3614_vm14, %v3613_v28, %v3611_v42  ;;  %v3615_v38 = vsel %vm3614_vm14, %v3611_v42, %v3613_v28 }
 0x5e0   : > { %7929 = vmatprep.subr.msk.bf16.mxu0 %vm11035_vm10, %v3557_v37  ;;  %v3626_v19 = vmul.f32 %v9762_v33, %v3616_v2  ;;  %v3562_v62 = vsel %vm11035_vm10, %v3556_v41, 0  ;;  %v3625_v17 = vmul.f32 %v9783_v11, %v3615_v38 }
 0x5e2   : > { %4534 = vrot.lane.b32.xlu1 %v9711_v61, %s11073_s6  ;;  %4532 = vrot.lane.b32.xlu0 %v9708_v58, %s11073_s6  ;;  %v3630_v44 = vpack.c.bf16 %v3626_v19, %v3626_v19  ;;  %v3629_v1 = vpack.c.bf16 %v3625_v17, %v3625_v17 }
 0x5e4   : > { %v3635_v34 = vsel %vm11035_vm10, %v3629_v1, 0 }
 0x5e6   : > { %4656 = vrot.lane.b32.xlu1 %v9711_v61, %s11074_s30  ;;  %4654 = vrot.lane.b32.xlu0 %v9708_v58, %s11074_s30 }
 0x5e8   : > { %7927 = vmatmul.mubr.msk.bf16.vlgmr.msra.gmra.mrb[4].mxu0 %vm11034_vm11, %v7925_v35 }
 0x5e9   : > { %3568 = vmatpush1.bf16.msra.mxu0 %v3562_v62  ;;  %3599 = vmatprep.mubr.bf16.mxu0 %v8495_v4 }
 0x5ea   : > { %7934 = vmatprep.subr.msk.bf16.mxu0 %vm11035_vm10, %v3630_v44  ;;  %4720 = vrot.lane.b32.xlu1 %v9711_v61, %s11075_s10 }
 0x5eb   : > { %4718 = vrot.lane.b32.xlu0 %v9708_v58, %s11075_s10 }
 0x5ee   : > { %4784 = vrot.lane.b32.xlu1 %v9711_v61, %s11076_s29 }
 0x5ef   : > { %4782 = vrot.lane.b32.xlu0 %v9708_v58, %s11076_s29 }
 0x5f2   : > { %4848 = vrot.lane.b32.xlu1 %v9711_v61, %s11077_s8 }
 0x5f3   : > { %4846 = vrot.lane.b32.xlu0 %v9708_v58, %s11077_s8 }
 0x5f4   : > { %7930 = vmatmul.mubr.msk.bf16.vlgmr.msra.gmra.mrb[4].mxu0 %vm11034_vm11, %v7928_v40 }
 0x5f5   : > { %3641 = vmatpush1.bf16.msra.mxu0 %v3635_v34  ;;  %3672 = vmatprep.mubr.bf16.mxu0 %v8495_v4 }
 0x600   : > { %7935 = vmatmul.mubr.msk.bf16.vlgmr.msra.gmra.mrb[4].mxu0 %vm11034_vm11, %v7933_v30  ;;  %v4353_v30 = vld [vmem:[%s10977_s14] sm:$0xf] }
 0x601   : > { %4409 = vmatprep.mubr.bf16.mxu0 %v8495_v4 }
 0x648   : > { %v4359_v8 = vpop.permute.xlu1 %4358  ;;  %v4357_v25 = vpop.permute.xlu0 %4356 }
 0x649   : > { %v4360_v7 = vsel %vm3062_vm4, %v4357_v25, %v4359_v8  ;;  %v4361_v29 = vsel %vm3062_vm4, %v4359_v8, %v4357_v25 }
 0x64a   : > { %v4362_v45 = vmul.f32 %v4361_v29, %v9575_v55  ;;  %v4363_v47 = vmul.f32 %v4360_v7, %v9579_v20 }
 0x64c   : > { %v4366_v54 = vpack.c.bf16 %v4362_v45, %v4362_v45  ;;  %v4367_v22 = vpack.c.bf16 %v4363_v47, %v4363_v47  ;;  %v4348_v39 = vpop.permute.xlu1 %4347  ;;  %v4346_v27 = vpop.permute.xlu0 %4345  ;;  %v4597_v47 = vmul.f32 %v9651_v6, %v9711_v61 }
 0x64d   : > { %v4349_v10 = vsel %vm3042_vm5, %v4346_v27, %v4348_v39  ;;  %v4350_v23 = vsel %vm3042_vm5, %v4348_v39, %v4346_v27 }
 0x64e   : > { %v4351_v21 = vmul.f32 %v4350_v23, %v9590_v50  ;;  %v4352_v16 = vmul.f32 %v4349_v10, %v9594_v49  ;;  %7963 = vmatprep.subr.msk.bf16.mxu0 %vm11035_vm10, %v4367_v22  ;;  %v4372_v26 = vsel %vm11035_vm10, %v4366_v54, 0  ;;  %v7967_v54 = vld [vmem:[%s10977_s14 + $0x8] sm:$0xf]  ;;  %v4601_v39 = vpack.c.bf16 %v4597_v47, %v4597_v47 }
 0x64f   : > { %4378 = vmatpush1.bf16.msra.mxu0 %v4372_v26  ;;  %v4596_v23 = vmul.f32 %v9662_v59, %v9708_v58  ;;  %v7970_v26 = vld [vmem:[%s10977_s14 + $0xc] sm:$0xf] }
 0x650   : > { %v4354_v37 = vpack.c.bf16 %v4351_v21, %v4351_v21  ;;  %v4355_v28 = vpack.c.bf16 %v4352_v16, %v4352_v16  ;;  %v4471_v42 = vpop.permute.xlu1 %4470  ;;  %v4469_v31 = vpop.permute.xlu0 %4468 }
 0x651   : > { %v4472_v2 = vsel %vm3183_vm7, %v4469_v31, %v4471_v42  ;;  %v4473_v35 = vsel %vm3183_vm7, %v4471_v42, %v4469_v31  ;;  %v4600_v16 = vpack.c.bf16 %v4596_v23, %v4596_v23  ;;  %v7979_v23 = vld [vmem:[%s10977_s14 + $0x18] sm:$0xf] }
 0x652   : > { %v4475_v41 = vmul.f32 %v4472_v2, %v9607_v63  ;;  %7964 = vmatmul.mubr.msk.bf16.vlgmr.msra.gmra.mrb[8].mxu0 %vm11034_vm11, %v7962_v24  ;;  %7965 = vmatprep.subr.msk.bf16.mxu0 %vm11035_vm10, %v4355_v28  ;;  %v4422_v19 = vsel %vm11035_vm10, %v4354_v37, 0  ;;  %v4474_v17 = vmul.f32 %v4473_v35, %v9616_v43  ;;  %v7973_v35 = vld [vmem:[%s10977_s14 + $0x10] sm:$0xf] }
 0x653   : > { %4428 = vmatpush1.bf16.msra.mxu0 %v4422_v19  ;;  %4459 = vmatprep.mubr.bf16.mxu0 %v8495_v4  ;;  %v4606_v37 = vsel %vm11035_vm10, %v4600_v16, 0 }
 0x654   : > { %v4479_v44 = vpack.c.bf16 %v4475_v41, %v4475_v41  ;;  %v4535_v62 = vpop.permute.xlu1 %4534  ;;  %v4533_v38 = vpop.permute.xlu0 %4532  ;;  %v4478_v40 = vpack.c.bf16 %v4474_v17, %v4474_v17 }
 0x655   : > { %v4536_v1 = vsel %vm3256_vm9, %v4533_v38, %v4535_v62  ;;  %v4537_v7 = vsel %vm3256_vm9, %v4535_v62, %v4533_v38 }
 0x656   : > { %7968 = vmatprep.subr.msk.bf16.mxu0 %vm11035_vm10, %v4479_v44  ;;  %v4539_v34 = vmul.f32 %v4536_v1, %v9629_v53  ;;  %v4484_v25 = vsel %vm11035_vm10, %v4478_v40, 0  ;;  %v4538_v29 = vmul.f32 %v4537_v7, %v9640_v32 }
 0x658   : > { %v4543_v8 = vpack.c.bf16 %v4539_v34, %v4539_v34  ;;  %v4542_v45 = vpack.c.bf16 %v4538_v29, %v4538_v29  ;;  %v4657_v27 = vpop.permute.xlu1 %4656  ;;  %v4655_v10 = vpop.permute.xlu0 %4654 }
 0x659   : > { %v4659_v61 = vsel %vm3395_vm12, %v4657_v27, %v4655_v10  ;;  %v4658_v28 = vsel %vm3395_vm12, %v4655_v10, %v4657_v27 }
 0x65a   : > { %v4548_v22 = vsel %vm11035_vm10, %v4542_v45, 0  ;;  %v4661_v21 = vmul.f32 %v4659_v61, %v9692_v0  ;;  %v4660_v31 = vmul.f32 %v4658_v28, %v9688_v18 }
 0x65c   : > { %v4665_v24 = vpack.c.bf16 %v4661_v21, %v4661_v21  ;;  %v4721_v58 = vpop.permute.xlu1 %4720  ;;  %v4664_v41 = vpack.c.bf16 %v4660_v31, %v4660_v31 }
 0x65d   : > { %v4719_v42 = vpop.permute.xlu0 %4718 }
 0x65e   : > { %7966 = vmatmul.mubr.msk.bf16.vlgmr.msra.gmra.mrb[8].mxu0 %vm11034_vm11, %v4353_v30  ;;  %v4723_v2 = vsel %vm3468_vm6, %v4721_v58, %v4719_v42  ;;  %v4670_v62 = vsel %vm11035_vm10, %v4664_v41, 0  ;;  %v4722_v38 = vsel %vm3468_vm6, %v4719_v42, %v4721_v58  ;;  %v7985_v58 = vld [vmem:[%s10977_s14 + $0x20] sm:$0xf] }
 0x65f   : > { %4490 = vmatpush1.bf16.msra.mxu0 %v4484_v25  ;;  %4521 = vmatprep.mubr.bf16.mxu0 %v8495_v4  ;;  %v4725_v19 = vmul.f32 %v4723_v2, %v9705_v48  ;;  %v4724_v40 = vmul.f32 %v4722_v38, %v9701_v51  ;;  %v7976_v25 = vld [vmem:[%s10977_s14 + $0x14] sm:$0xf] }
 0x660   : > { %7971 = vmatprep.subr.msk.bf16.mxu0 %vm11035_vm10, %v4543_v8  ;;  %v4785_v17 = vpop.permute.xlu1 %4784 }
 0x661   : > { %v4729_v44 = vpack.c.bf16 %v4725_v19, %v4725_v19  ;;  %v4783_v1 = vpop.permute.xlu0 %4782  ;;  %v4728_v30 = vpack.c.bf16 %v4724_v40, %v4724_v40 }
 0x662   : > { %v4787_v34 = vsel %vm3541_vm13, %v4785_v17, %v4783_v1  ;;  %v4786_v45 = vsel %vm3541_vm13, %v4783_v1, %v4785_v17 }
 0x663   : > { %v4789_v8 = vmul.f32 %v4787_v34, %v9730_v57  ;;  %v4734_v29 = vsel %vm11035_vm10, %v4728_v30, 0 }
 0x664   : > { %v4849_v47 = vpop.permute.xlu1 %4848 }
 0x665   : > { %v4793_v7 = vpack.c.bf16 %v4789_v8, %v4789_v8 }
 0x66a   : > { %7969 = vmatmul.mubr.msk.bf16.vlgmr.msra.gmra.mrb[8].mxu0 %vm11034_vm11, %v7967_v54  ;;  %v4847_v54 = vpop.permute.xlu0 %4846 }
 0x66b   : > { %4554 = vmatpush1.bf16.msra.mxu0 %v4548_v22  ;;  %4585 = vmatprep.mubr.bf16.mxu0 %v8495_v4  ;;  %v4788_v22 = vmul.f32 %v4786_v45, %v9743_v56  ;;  %v4850_v16 = vsel %vm3614_vm14, %v4847_v54, %v4849_v47 }
 0x66c   : > { %7974 = vmatprep.subr.msk.bf16.mxu0 %vm11035_vm10, %v4601_v39  ;;  %v4851_v39 = vsel %vm3614_vm14, %v4849_v47, %v4847_v54 }
 0x66d   : > { %v4792_v27 = vpack.c.bf16 %v4788_v22, %v4788_v22  ;;  %v4853_v10 = vmul.f32 %v9762_v33, %v4851_v39 }
 0x66f   : > { %v4857_v61 = vpack.c.bf16 %v4853_v10, %v4853_v10  ;;  %v4798_v21 = vsel %vm11035_vm10, %v4792_v27, 0 }
 0x676   : > { %7972 = vmatmul.mubr.msk.bf16.vlgmr.msra.gmra.mrb[8].mxu0 %vm11034_vm11, %v7970_v26  ;;  %v4852_v26 = vmul.f32 %v9783_v11, %v4850_v16 }
 0x677   : > { %4612 = vmatpush1.bf16.msra.mxu0 %v4606_v37  ;;  %4643 = vmatprep.mubr.bf16.mxu0 %v8495_v4  ;;  %v7982_v37 = vld [vmem:[%s10977_s14 + $0x1c] sm:$0xf] }
 0x678   : > { %7977 = vmatprep.subr.msk.bf16.mxu0 %vm11035_vm10, %v4665_v24  ;;  %v4856_v24 = vpack.c.bf16 %v4852_v26, %v4852_v26 }
 0x67a   : > { %v4862_v28 = vsel %vm11035_vm10, %v4856_v24, 0 }
 0x682   : > { %7975 = vmatmul.mubr.msk.bf16.vlgmr.msra.gmra.mrb[8].mxu0 %vm11034_vm11, %v7973_v35 }
 0x683   : > { %4676 = vmatpush1.bf16.msra.mxu0 %v4670_v62  ;;  %4707 = vmatprep.mubr.bf16.mxu0 %v8495_v4 }
 0x684   : > { %7980 = vmatprep.subr.msk.bf16.mxu0 %vm11035_vm10, %v4729_v44 }
 0x68e   : > { %7978 = vmatmul.mubr.msk.bf16.vlgmr.msra.gmra.mrb[8].mxu0 %vm11034_vm11, %v7976_v25 }
 0x68f   : > { %4740 = vmatpush1.bf16.msra.mxu0 %v4734_v29  ;;  %4771 = vmatprep.mubr.bf16.mxu0 %v8495_v4 }
 0x690   : > { %7983 = vmatprep.subr.msk.bf16.mxu0 %vm11035_vm10, %v4793_v7  ;;  %v3036_v7 = vld [vmem:[%s11078_s28] sm:$0x3] }
 0x691   : > { %v9932_v47 = vrot.slane %v3036_v7, %v8697_v14  ;;  %v9935_v54 = vrot.slane %v3036_v7, %v8700_v15 }
 0x69a   : > { %7981 = vmatmul.mubr.msk.bf16.vlgmr.msra.gmra.mrb[8].mxu0 %vm11034_vm11, %v7979_v23 }
 0x69b   : > { %4804 = vmatpush1.bf16.msra.mxu0 %v4798_v21  ;;  %4835 = vmatprep.mubr.bf16.mxu0 %v8495_v4 }
 0x69c   : > { %7986 = vmatprep.subr.msk.bf16.mxu0 %vm11035_vm10, %v4857_v61 }
 0x6a6   : > { %7984 = vmatmul.mubr.msk.bf16.vlgmr.msra.gmra.mrb[8].mxu0 %vm11034_vm11, %v7982_v37 }
 0x6a7   : > { %4868 = vmatpush1.bf16.msra.mxu0 %v4862_v28  ;;  %4899 = vmatprep.mubr.bf16.mxu0 %v8495_v4 }
 0x6b2   : > { %7987 = vmatmul.mubr.msk.bf16.vlgmr.msra.gmra.mrb[8].mxu0 %vm11034_vm11, %v7985_v58 }
 0x6b3   : > { %5654 = vmatprep.mubr.bf16.mxu0 %v8495_v4 }
 0x6d3   : > { %v3674_v42 = vpop.f32.mrb[4].mxu0 }
 0x6d4   : > { %v3687_v31 = vmul.f32 %v3674_v42, %v3674_v42  ;;  %v3676_v2 = vpop.f32.mrb[5].mxu0 }
 0x6d5   : > { %v3683_v41 = vadd.f32 %v3676_v2, %v3674_v42  ;;  %v3688_v19 = vmul.f32 %v3676_v2, %v3676_v2  ;;  %v3678_v35 = vpop.f32.mrb[6].mxu0 }
 0x6d6   : > { %v3679_v44 = vpop.f32.mrb[7].mxu0 }
 0x6d7   : > { %3684 = vadd.xlane.f32.xlu0 %v3683_v41  ;;  %v3689_v62 = vadd.f32 %v3688_v19, %v3687_v31 }
 0x6d9   : > { %3690 = vadd.xlane.f32.xlu1 %v3689_v62 }
 0x764   : > { %v3685_v38 = vpop.xlane.xlu0 %3684 }
 0x765   : > { %v3686_v17 = vmul.f32 0.015625, %v3685_v38 }
 0x766   : > { %v3691_v1 = vpop.xlane.xlu1 %3690 }
 0x767   : > { %v3692_v40 = vmul.f32 0.015625, %v3691_v1  ;;  %v3693_v34 = vmul.f32 %v3686_v17, %v3686_v17  ;;  %v3698_v29 = vsub.f32 %v3674_v42, %v3686_v17  ;;  %v3699_v45 = vsub.f32 %v3676_v2, %v3686_v17 }
 0x769   : > { %v3694_v30 = vsub.f32 %v3692_v40, %v3693_v34 }
 0x76b   : > { %v3695_v8 = vmax.f32 %v3694_v30, 0.0  ;;  %v7936_v30 = vld [vmem:[%s10976_s13 + $0x4] sm:$0xf] }
 0x76d   : > { %v3696_v25 = vadd.f32 1e-05, %v3695_v8 }
 0x76f   : > { %8463 = vrsqrt.f32 %v3696_v25 }
 0x779   : > { %v8464_v22 = vpop.eup %8463 }
 0x77a   : > { %v3700_v39 = vmul.f32 %v8464_v22, %v3698_v29  ;;  %v3701_v27 = vmul.f32 %v8464_v22, %v3699_v45 }
 0x77c   : > { %v3713_v10 = vmul.f32 %v9932_v47, %v3700_v39  ;;  %v3714_v23 = vmul.f32 %v9935_v54, %v3701_v27 }
 0x77e   : > { %v3717_v61 = vmul.f32 0.2, %v3713_v10  ;;  %v3718_v21 = vmul.f32 0.2, %v3714_v23  ;;  %vm3716_vm15 = vcmp.ge.f32.partialorder %v3714_v23, 0.0  ;;  %vm3715_vm2 = vcmp.ge.f32.partialorder %v3713_v10, 0.0 }
 0x780   : > { %v9939_v16 = vsel %vm3716_vm15, %v3714_v23, %v3718_v21  ;;  %v9941_v26 = vsel %vm3715_vm2, %v3713_v10, %v3717_v61  ;;  %vm3744_vm15 = vcmask 64512  }
 0x781   : > { %3734 = vrot.lane.b32.xlu1 %v9939_v16, %s11070_s4  ;;  %3732 = vrot.lane.b32.xlu0 %v9941_v26, %s11070_s4 }
 0x785   : > { %v9947_v24 = vpop.f32.mrb[8].mxu0 }
 0x786   : > { %v4914_v37 = vmul.f32 %v9947_v24, %v9947_v24  ;;  %v9951_v28 = vpop.f32.mrb[9].mxu0 }
 0x787   : > { %v4910_v58 = vadd.f32 %v9951_v28, %v9947_v24  ;;  %v4915_v42 = vmul.f32 %v9951_v28, %v9951_v28  ;;  %v4905_v31 = vpop.f32.mrb[10].mxu0 }
 0x788   : > { %v4906_v2 = vpop.f32.mrb[11].mxu0 }
 0x789   : > { %v4916_v41 = vadd.f32 %v4915_v42, %v4914_v37 }
 0x7a0   : > { %4911 = vadd.xlane.f32.xlu0 %v4910_v58 }
 0x7a5   : > { %4917 = vadd.xlane.f32.xlu1 %v4916_v41 }
 0x7b6   : > { %3723 = vrot.lane.b32.xlu1 %v9939_v16, %s11071_s11  ;;  %3721 = vrot.lane.b32.xlu0 %v9941_v26, %s11071_s11 }
 0x7ba   : > { %3847 = vrot.lane.b32.xlu1 %v9939_v16, %s11072_s5  ;;  %3845 = vrot.lane.b32.xlu0 %v9941_v26, %s11072_s5 }
 0x7be   : > { %3911 = vrot.lane.b32.xlu1 %v9939_v16, %s11073_s6  ;;  %3909 = vrot.lane.b32.xlu0 %v9941_v26, %s11073_s6 }
 0x7c2   : > { %4033 = vrot.lane.b32.xlu1 %v9939_v16, %s11074_s30  ;;  %4031 = vrot.lane.b32.xlu0 %v9941_v26, %s11074_s30 }
 0x7c6   : > { %4097 = vrot.lane.b32.xlu1 %v9939_v16, %s11075_s10  ;;  %4095 = vrot.lane.b32.xlu0 %v9941_v26, %s11075_s10 }
 0x7ca   : > { %4161 = vrot.lane.b32.xlu1 %v9939_v16, %s11076_s29  ;;  %4159 = vrot.lane.b32.xlu0 %v9941_v26, %s11076_s29 }
 0x7ce   : > { %4225 = vrot.lane.b32.xlu1 %v9939_v16, %s11077_s8  ;;  %4223 = vrot.lane.b32.xlu0 %v9941_v26, %s11077_s8 }
 0x7f3   : > { %v3735_v19 = vpop.permute.xlu1 %3734  ;;  %v3733_v35 = vpop.permute.xlu0 %3732 }
 0x7f4   : > { %v3736_v44 = vsel %vm3062_vm4, %v3733_v35, %v3735_v19  ;;  %v3737_v62 = vsel %vm3062_vm4, %v3735_v19, %v3733_v35 }
 0x7f5   : > { %v3738_v38 = vmul.f32 %v3737_v62, %v9575_v55  ;;  %v3739_v17 = vmul.f32 %v3736_v44, %v9579_v20 }
 0x7f7   : > { %v3742_v1 = vpack.c.bf16 %v3738_v38, %v3738_v38  ;;  %v3743_v40 = vpack.c.bf16 %v3739_v17, %v3739_v17  ;;  %v3729_v17 = vld [vmem:[%s10976_s13] sm:$0xf] }
 0x7f9   : > { %7937 = vmatprep.subr.msk.bf16.mxu1 %vm1259_vm8, %v3743_v40  ;;  %v3749_v34 = vsel %vm1259_vm8, %v3742_v1, 0 }
 0x7fa   : > { %3755 = vmatpush1.bf16.msra.mxu1 %v3749_v34 }
 0x7fd   : > { %7938 = vmatmul.mubr.msk.bf16.vlgmr.msra.gmra.mrb[4].mxu1 %vm3744_vm15, %v7936_v30 }
 0x7fe   : > { %3836 = vmatprep.mubr.bf16.mxu1 %v8495_v4 }
 0x82d   : > { %v4912_v8 = vpop.xlane.xlu0 %4911 }
 0x82e   : > { %v4913_v25 = vmul.f32 0.015625, %v4912_v8 }
 0x830   : > { %v4920_v22 = vmul.f32 %v4913_v25, %v4913_v25 }
 0x831   : > { %v3722_v7 = vpop.permute.xlu0 %3721 }
 0x832   : > { %v4918_v29 = vpop.xlane.xlu1 %4917 }
 0x833   : > { %v4919_v45 = vmul.f32 0.015625, %v4918_v29 }
 0x835   : > { %v4921_v39 = vsub.f32 %v4919_v45, %v4920_v22  ;;  %v3846_v21 = vpop.permute.xlu0 %3845 }
 0x836   : > { %v3724_v27 = vpop.permute.xlu1 %3723 }
 0x837   : > { %v4922_v10 = vmax.f32 %v4921_v39, 0.0  ;;  %v3725_v23 = vsel %vm3042_vm5, %v3722_v7, %v3724_v27  ;;  %v3726_v61 = vsel %vm3042_vm5, %v3724_v27, %v3722_v7  ;;  %v4925_v39 = vsub.f32 %v9947_v24, %v4913_v25  ;;  %v7941_v24 = vld [vmem:[%s10976_s13 + $0x8] sm:$0xf] }
 0x838   : > { %v3727_v37 = vmul.f32 %v3726_v61, %v9590_v50  ;;  %v3728_v58 = vmul.f32 %v3725_v23, %v9594_v49  ;;  %v4926_v27 = vsub.f32 %v9951_v28, %v4913_v25 }
 0x839   : > { %v4923_v42 = vadd.f32 1e-05, %v4922_v10  ;;  %v3910_v1 = vpop.permute.xlu0 %3909 }
 0x83a   : > { %v3730_v31 = vpack.c.bf16 %v3727_v37, %v3727_v37  ;;  %v3731_v2 = vpack.c.bf16 %v3728_v58, %v3728_v58  ;;  %v3848_v41 = vpop.permute.xlu1 %3847 }
 0x83b   : > { %8465 = vrsqrt.f32 %v4923_v42  ;;  %v3849_v19 = vsel %vm3183_vm7, %v3846_v21, %v3848_v41  ;;  %v3850_v35 = vsel %vm3183_vm7, %v3848_v41, %v3846_v21 }
 0x83c   : > { %v3851_v44 = vmul.f32 %v3850_v35, %v9616_v43  ;;  %v3852_v62 = vmul.f32 %v3849_v19, %v9607_v63  ;;  %7939 = vmatprep.subr.msk.bf16.mxu1 %vm1259_vm8, %v3731_v2  ;;  %v3799_v38 = vsel %vm1259_vm8, %v3730_v31, 0  ;;  %v3974_v31 = vmul.f32 %v9939_v16, %v9651_v6 }
 0x83d   : > { %3805 = vmatpush1.bf16.msra.mxu1 %v3799_v38 }
 0x83e   : > { %v3855_v40 = vpack.c.bf16 %v3851_v44, %v3851_v44  ;;  %v3856_v34 = vpack.c.bf16 %v3852_v62, %v3852_v62  ;;  %v3912_v30 = vpop.permute.xlu1 %3911  ;;  %v3978_v35 = vpack.c.bf16 %v3974_v31, %v3974_v31  ;;  %v4032_v44 = vpop.permute.xlu0 %4031  ;;  %v3973_v62 = vmul.f32 %v9941_v26, %v9662_v59 }
 0x83f   : > { %v3913_v8 = vsel %vm3256_vm9, %v3910_v1, %v3912_v30  ;;  %v3914_v45 = vsel %vm3256_vm9, %v3912_v30, %v3910_v1 }
 0x840   : > { %v3916_v7 = vmul.f32 %v3913_v8, %v9629_v53  ;;  %7940 = vmatmul.mubr.msk.bf16.vlgmr.msra.gmra.mrb[4].mxu1 %vm3744_vm15, %v3729_v17  ;;  %7942 = vmatprep.subr.msk.bf16.mxu1 %vm1259_vm8, %v3856_v34  ;;  %v3861_v29 = vsel %vm1259_vm8, %v3855_v40, 0  ;;  %v3915_v10 = vmul.f32 %v3914_v45, %v9640_v32  ;;  %v3977_v1 = vpack.c.bf16 %v3973_v62, %v3973_v62  ;;  %v7944_v40 = vld [vmem:[%s10976_s13 + $0xc] sm:$0xf] }
 0x841   : > { %3867 = vmatpush1.bf16.msra.mxu1 %v3861_v29  ;;  %3898 = vmatprep.mubr.bf16.mxu1 %v8495_v4 }
 0x842   : > { %v3920_v22 = vpack.c.bf16 %v3916_v7, %v3916_v7  ;;  %v3919_v42 = vpack.c.bf16 %v3915_v10, %v3915_v10  ;;  %v4034_v16 = vpop.permute.xlu1 %4033  ;;  %v3983_v34 = vsel %vm1259_vm8, %v3977_v1, 0  ;;  %v4096_v7 = vpop.permute.xlu0 %4095 }
 0x843   : > { %v4036_v38 = vsel %vm3395_vm12, %v4034_v16, %v4032_v44  ;;  %v4035_v30 = vsel %vm3395_vm12, %v4032_v44, %v4034_v16 }
 0x844   : > { %7945 = vmatprep.subr.msk.bf16.mxu1 %vm1259_vm8, %v3920_v22  ;;  %v3925_v2 = vsel %vm1259_vm8, %v3919_v42, 0  ;;  %v4038_v17 = vmul.f32 %v4036_v38, %v9692_v0  ;;  %v4037_v29 = vmul.f32 %v4035_v30, %v9688_v18 }
 0x845   : > { %v8466_v23 = vpop.eup %8465 }
 0x846   : > { %v4927_v61 = vmul.f32 %v8466_v23, %v4925_v39  ;;  %v4928_v21 = vmul.f32 %v8466_v23, %v4926_v27  ;;  %v4042_v26 = vpack.c.bf16 %v4038_v17, %v4038_v17  ;;  %v4098_v8 = vpop.permute.xlu1 %4097  ;;  %v4041_v22 = vpack.c.bf16 %v4037_v29, %v4037_v29  ;;  %v7947_v27 = vld [vmem:[%s10976_s13 + $0x10] sm:$0xf]  ;;  %v7956_v29 = vld [vmem:[%s10976_s13 + $0x1c] sm:$0xf] }
 0x847   : > { %v4100_v45 = vsel %vm3468_vm6, %v4098_v8, %v4096_v7 }
 0x848   : > { %v4929_v37 = vmul.f32 %v4927_v61, %v9932_v47  ;;  %v4930_v58 = vmul.f32 %v4928_v21, %v9935_v54  ;;  %v4102_v39 = vmul.f32 %v4100_v45, %v9705_v48  ;;  %v4047_v23 = vsel %vm1259_vm8, %v4041_v22, 0  ;;  %v7959_v22 = vld [vmem:[%s10976_s13 + $0x20] sm:$0xf] }
 0x849   : > { %v4099_v61 = vsel %vm3468_vm6, %v4096_v7, %v4098_v8 }
 0x84a   : > { %v4933_v28 = vmul.f32 0.2, %v4929_v37  ;;  %v4934_v25 = vmul.f32 0.2, %v4930_v58  ;;  %vm4932_vm2 = vcmp.ge.f32.partialorder %v4930_v58, 0.0  ;;  %vm4931_vm11 = vcmp.ge.f32.partialorder %v4929_v37, 0.0  ;;  %v4162_v21 = vpop.permute.xlu1 %4161 }
 0x84b   : > { %v4106_v10 = vpack.c.bf16 %v4102_v39, %v4102_v39 }
 0x84c   : > { %7943 = vmatmul.mubr.msk.bf16.vlgmr.msra.gmra.mrb[4].mxu1 %vm3744_vm15, %v7941_v24  ;;  %v10037_v41 = vsel %vm4932_vm2, %v4930_v58, %v4934_v25  ;;  %v10039_v19 = vsel %vm4931_vm11, %v4929_v37, %v4933_v28  ;;  %v4160_v37 = vpop.permute.xlu0 %4159  ;;  %v4101_v58 = vmul.f32 %v4099_v61, %v9701_v51  ;;  %v7950_v28 = vld [vmem:[%s10976_s13 + $0x14] sm:$0xf]  ;;  %vm5618_vm2 = vcmask 130048  }
 0x84d   : > { %3931 = vmatpush1.bf16.msra.mxu1 %v3925_v2  ;;  %4950 = vrot.lane.b32.xlu1 %v10037_v41, %s11070_s4  ;;  %v4164_v42 = vsel %vm3541_vm13, %v4162_v21, %v4160_v37 }
 0x84e   : > { %4948 = vrot.lane.b32.xlu0 %v10039_v19, %s11070_s4  ;;  %7948 = vmatprep.subr.msk.bf16.mxu1 %vm1259_vm8, %v3978_v35  ;;  %v4105_v31 = vpack.c.bf16 %v4101_v58, %v4101_v58  ;;  %v4166_v24 = vmul.f32 %v4164_v42, %v9730_v57  ;;  %v4163_v35 = vsel %vm3541_vm13, %v4160_v37, %v4162_v21  ;;  %v4226_v16 = vpop.permute.xlu1 %4225 }
 0x84f   : > { %3962 = vmatprep.mubr.bf16.mxu1 %v8495_v4  ;;  %v4165_v62 = vmul.f32 %v4163_v35, %v9743_v56  ;;  %v7988_v35 = vld [vmem:[%s10978_s15 + $0x4] sm:$0xf] }
 0x850   : > { %v4170_v25 = vpack.c.bf16 %v4166_v24, %v4166_v24  ;;  %v4111_v2 = vsel %vm1259_vm8, %v4105_v31, 0  ;;  %v4224_v44 = vpop.permute.xlu0 %4223 }
 0x851   : > { %4939 = vrot.lane.b32.xlu1 %v10037_v41, %s11071_s11  ;;  %v4228_v38 = vsel %vm3614_vm14, %v4226_v16, %v4224_v44  ;;  %v4169_v17 = vpack.c.bf16 %v4165_v62, %v4165_v62  ;;  %v4227_v30 = vsel %vm3614_vm14, %v4224_v44, %v4226_v16 }
 0x852   : > { %4937 = vrot.lane.b32.xlu0 %v10039_v19, %s11071_s11  ;;  %v4230_v1 = vmul.f32 %v9762_v33, %v4228_v38  ;;  %v4229_v8 = vmul.f32 %v9783_v11, %v4227_v30 }
 0x854   : > { %v4233_v7 = vpack.c.bf16 %v4229_v8, %v4229_v8 }
 0x855   : > { %5062 = vrot.lane.b32.xlu1 %v10037_v41, %s11072_s5 }
 0x856   : > { %5060 = vrot.lane.b32.xlu0 %v10039_v19, %s11072_s5  ;;  %v4239_v45 = vsel %vm1259_vm8, %v4233_v7, 0  ;;  %v4945_v7 = vld [vmem:[%s10978_s15] sm:$0xf] }
 0x858   : > { %7946 = vmatmul.mubr.msk.bf16.vlgmr.msra.gmra.mrb[4].mxu1 %vm3744_vm15, %v7944_v40  ;;  %v7953_v40 = vld [vmem:[%s10976_s13 + $0x18] sm:$0xf] }
 0x859   : > { %3989 = vmatpush1.bf16.msra.mxu1 %v3983_v34  ;;  %5126 = vrot.lane.b32.xlu1 %v10037_v41, %s11073_s6  ;;  %v4175_v34 = vsel %vm1259_vm8, %v4169_v17, 0 }
 0x85a   : > { %5124 = vrot.lane.b32.xlu0 %v10039_v19, %s11073_s6  ;;  %7951 = vmatprep.subr.msk.bf16.mxu1 %vm1259_vm8, %v4042_v26  ;;  %v4234_v26 = vpack.c.bf16 %v4230_v1, %v4230_v1 }
 0x85b   : > { %4020 = vmatprep.mubr.bf16.mxu1 %v8495_v4 }
 0x85d   : > { %5248 = vrot.lane.b32.xlu1 %v10037_v41, %s11074_s30 }
 0x85e   : > { %5246 = vrot.lane.b32.xlu0 %v10039_v19, %s11074_s30 }
 0x861   : > { %5312 = vrot.lane.b32.xlu1 %v10037_v41, %s11075_s10 }
 0x862   : > { %5310 = vrot.lane.b32.xlu0 %v10039_v19, %s11075_s10  ;;  %s11079_s10 = sld [smem:[#allocation15_spill]] }
 0x864   : > { %7949 = vmatmul.mubr.msk.bf16.vlgmr.msra.gmra.mrb[4].mxu1 %vm3744_vm15, %v7947_v27 }
 0x865   : > { %4053 = vmatpush1.bf16.msra.mxu1 %v4047_v23  ;;  %5376 = vrot.lane.b32.xlu1 %v10037_v41, %s11076_s29 }
 0x866   : > { %5374 = vrot.lane.b32.xlu0 %v10039_v19, %s11076_s29  ;;  %7954 = vmatprep.subr.msk.bf16.mxu1 %vm1259_vm8, %v4106_v10 }
 0x867   : > { %4084 = vmatprep.mubr.bf16.mxu1 %v8495_v4 }
 0x869   : > { %5440 = vrot.lane.b32.xlu1 %v10037_v41, %s11077_s8 }
 0x86a   : > { %5438 = vrot.lane.b32.xlu0 %v10039_v19, %s11077_s8  ;;  %s8517_s8 = smov 4  }
 0x870   : > { %7952 = vmatmul.mubr.msk.bf16.vlgmr.msra.gmra.mrb[4].mxu1 %vm3744_vm15, %v7950_v28 }
 0x871   : > { %4117 = vmatpush1.bf16.msra.mxu1 %v4111_v2  ;;  %4148 = vmatprep.mubr.bf16.mxu1 %v8495_v4 }
 0x872   : > { %7957 = vmatprep.subr.msk.bf16.mxu1 %vm1259_vm8, %v4170_v25 }
 0x87c   : > { %7955 = vmatmul.mubr.msk.bf16.vlgmr.msra.gmra.mrb[4].mxu1 %vm3744_vm15, %v7953_v40 }
 0x87d   : > { %4181 = vmatpush1.bf16.msra.mxu1 %v4175_v34  ;;  %4212 = vmatprep.mubr.bf16.mxu1 %v8495_v4 }
 0x87e   : > { %7960 = vmatprep.subr.msk.bf16.mxu1 %vm1259_vm8, %v4234_v26 }
 0x888   : > { %7958 = vmatmul.mubr.msk.bf16.vlgmr.msra.gmra.mrb[4].mxu1 %vm3744_vm15, %v7956_v29 }
 0x889   : > { %4245 = vmatpush1.bf16.msra.mxu1 %v4239_v45  ;;  %4276 = vmatprep.mubr.bf16.mxu1 %v8495_v4 }
 0x894   : > { %7961 = vmatmul.mubr.msk.bf16.vlgmr.msra.gmra.mrb[4].mxu1 %vm3744_vm15, %v7959_v22 }
 0x895   : > { %5001 = vmatprep.mubr.bf16.mxu1 %v8495_v4 }
 0x8bf   : > { %v4951_v39 = vpop.permute.xlu1 %4950 }
 0x8c0   : > { %v4949_v27 = vpop.permute.xlu0 %4948 }
 0x8c1   : > { %v4952_v10 = vsel %vm3062_vm4, %v4949_v27, %v4951_v39  ;;  %v4953_v23 = vsel %vm3062_vm4, %v4951_v39, %v4949_v27  ;;  %v5189_v39 = vmul.f32 %v10037_v41, %v9651_v6  ;;  %v7993_v27 = vld [vmem:[%s10978_s15 + $0x8] sm:$0xf] }
 0x8c2   : > { %v4954_v61 = vmul.f32 %v4953_v23, %v9575_v55  ;;  %v4955_v21 = vmul.f32 %v4952_v10, %v9579_v20 }
 0x8c3   : > { %v4940_v37 = vpop.permute.xlu1 %4939  ;;  %v5193_v23 = vpack.c.bf16 %v5189_v39, %v5189_v39 }
 0x8c4   : > { %v4958_v58 = vpack.c.bf16 %v4954_v61, %v4954_v61  ;;  %v4959_v42 = vpack.c.bf16 %v4955_v21, %v4955_v21  ;;  %v4938_v31 = vpop.permute.xlu0 %4937 }
 0x8c5   : > { %v4941_v24 = vsel %vm3042_vm5, %v4938_v31, %v4940_v37  ;;  %v4942_v28 = vsel %vm3042_vm5, %v4940_v37, %v4938_v31 }
 0x8c6   : > { %v4943_v25 = vmul.f32 %v4942_v28, %v9590_v50  ;;  %v4944_v2 = vmul.f32 %v4941_v24, %v9594_v49  ;;  %7989 = vmatprep.subr.msk.bf16.mxu1 %vm1259_vm8, %v4959_v42  ;;  %v4964_v55 = vsel %vm1259_vm8, %v4958_v58, 0  ;;  %v7996_v58 = vld [vmem:[%s10978_s15 + $0xc] sm:$0xf] }
 0x8c7   : > { %4970 = vmatpush1.bf16.msra.mxu1 %v4964_v55  ;;  %v5063_v20 = vpop.permute.xlu1 %5062  ;;  %v7999_v55 = vld [vmem:[%s10978_s15 + $0x10] sm:$0xf] }
 0x8c8   : > { %v4946_v16 = vpack.c.bf16 %v4943_v25, %v4943_v25  ;;  %v4947_v44 = vpack.c.bf16 %v4944_v2, %v4944_v2  ;;  %v5061_v62 = vpop.permute.xlu0 %5060 }
 0x8c9   : > { %v5064_v38 = vsel %vm3183_vm7, %v5061_v62, %v5063_v20  ;;  %v5065_v17 = vsel %vm3183_vm7, %v5063_v20, %v5061_v62 }
 0x8ca   : > { %v5067_v50 = vmul.f32 %v5064_v38, %v9607_v63  ;;  %7990 = vmatmul.mubr.msk.bf16.vlgmr.msra.gmra.mrb[8].mxu1 %vm3744_vm15, %v7988_v35  ;;  %7991 = vmatprep.subr.msk.bf16.mxu1 %vm1259_vm8, %v4947_v44  ;;  %v5014_v49 = vsel %vm1259_vm8, %v4946_v16, 0  ;;  %v5066_v34 = vmul.f32 %v5065_v17, %v9616_v43 }
 0x8cb   : > { %5020 = vmatpush1.bf16.msra.mxu1 %v5014_v49  ;;  %5051 = vmatprep.mubr.bf16.mxu1 %v8495_v4  ;;  %v5127_v40 = vpop.permute.xlu1 %5126  ;;  %v8002_v49 = vld [vmem:[%s10978_s15 + $0x14] sm:$0xf] }
 0x8cc   : > { %v5071_v1 = vpack.c.bf16 %v5067_v50, %v5067_v50  ;;  %v5125_v26 = vpop.permute.xlu0 %5124  ;;  %v5070_v30 = vpack.c.bf16 %v5066_v34, %v5066_v34 }
 0x8cd   : > { %v5128_v63 = vsel %vm3256_vm9, %v5125_v26, %v5127_v40  ;;  %v5129_v43 = vsel %vm3256_vm9, %v5127_v40, %v5125_v26 }
 0x8ce   : > { %7994 = vmatprep.subr.msk.bf16.mxu1 %vm1259_vm8, %v5071_v1  ;;  %v5131_v8 = vmul.f32 %v5128_v63, %v9629_v53  ;;  %v5076_v45 = vsel %vm1259_vm8, %v5070_v30, 0  ;;  %v5130_v22 = vmul.f32 %v5129_v43, %v9640_v32  ;;  %v5188_v32 = vmul.f32 %v10039_v19, %v9662_v59  ;;  %v8008_v43 = vld [vmem:[%s10978_s15 + $0x1c] sm:$0xf] }
 0x8cf   : > { %v5249_v61 = vpop.permute.xlu1 %5248 }
 0x8d0   : > { %v5135_v29 = vpack.c.bf16 %v5131_v8, %v5131_v8  ;;  %v5134_v53 = vpack.c.bf16 %v5130_v22, %v5130_v22  ;;  %v5247_v21 = vpop.permute.xlu0 %5246  ;;  %v5192_v37 = vpack.c.bf16 %v5188_v32, %v5188_v32  ;;  %v8005_v8 = vld [vmem:[%s10978_s15 + $0x18] sm:$0xf] }
 0x8d1   : > { %v5251_v6 = vsel %vm3395_vm12, %v5249_v61, %v5247_v21  ;;  %v5250_v24 = vsel %vm3395_vm12, %v5247_v21, %v5249_v61 }
 0x8d2   : > { %v5140_v10 = vsel %vm1259_vm8, %v5134_v53, 0  ;;  %v5253_v41 = vmul.f32 %v5251_v6, %v9692_v0  ;;  %v5198_v31 = vsel %vm1259_vm8, %v5192_v37, 0  ;;  %v5252_v0 = vmul.f32 %v5250_v24, %v9688_v18  ;;  %v8011_v53 = vld [vmem:[%s10978_s15 + $0x20] sm:$0xf] }
 0x8d3   : > { %v5313_v59 = vpop.permute.xlu1 %5312 }
 0x8d4   : > { %v5257_v42 = vpack.c.bf16 %v5253_v41, %v5253_v41  ;;  %v5311_v19 = vpop.permute.xlu0 %5310  ;;  %v5256_v25 = vpack.c.bf16 %v5252_v0, %v5252_v0 }
 0x8d5   : > { %v5315_v28 = vsel %vm3468_vm6, %v5313_v59, %v5311_v19  ;;  %v5314_v16 = vsel %vm3468_vm6, %v5311_v19, %v5313_v59 }
 0x8d6   : > { %7992 = vmatmul.mubr.msk.bf16.vlgmr.msra.gmra.mrb[8].mxu1 %vm3744_vm15, %v4945_v7  ;;  %v5317_v2 = vmul.f32 %v5315_v28, %v9705_v48  ;;  %v5262_v35 = vsel %vm1259_vm8, %v5256_v25, 0  ;;  %v5316_v48 = vmul.f32 %v5314_v16, %v9701_v51 }
 0x8d7   : > { %5082 = vmatpush1.bf16.msra.mxu1 %v5076_v45  ;;  %5113 = vmatprep.mubr.bf16.mxu1 %v8495_v4  ;;  %v5377_v18 = vpop.permute.xlu1 %5376 }
 0x8d8   : > { %7997 = vmatprep.subr.msk.bf16.mxu1 %vm1259_vm8, %v5135_v29  ;;  %v5321_v20 = vpack.c.bf16 %v5317_v2, %v5317_v2  ;;  %v5375_v44 = vpop.permute.xlu0 %5374  ;;  %v5320_v38 = vpack.c.bf16 %v5316_v48, %v5316_v48 }
 0x8d9   : > { %v5379_v62 = vsel %vm3541_vm13, %v5377_v18, %v5375_v44  ;;  %v5378_v40 = vsel %vm3541_vm13, %v5375_v44, %v5377_v18 }
 0x8da   : > { %v5381_v50 = vmul.f32 %v5379_v62, %v9730_v57  ;;  %v5326_v1 = vsel %vm1259_vm8, %v5320_v38, 0  ;;  %v5380_v57 = vmul.f32 %v5378_v40, %v9743_v56 }
 0x8db   : > { %v5441_v51 = vpop.permute.xlu1 %5440 }
 0x8dc   : > { %v5385_v17 = vpack.c.bf16 %v5381_v50, %v5381_v50  ;;  %v5439_v26 = vpop.permute.xlu0 %5438  ;;  %v5384_v63 = vpack.c.bf16 %v5380_v57, %v5380_v57 }
 0x8dd   : > { %v5443_v34 = vsel %vm3614_vm14, %v5441_v51, %v5439_v26  ;;  %v5442_v45 = vsel %vm3614_vm14, %v5439_v26, %v5441_v51 }
 0x8de   : > { %v5445_v30 = vmul.f32 %v9762_v33, %v5443_v34  ;;  %v5390_v29 = vsel %vm1259_vm8, %v5384_v63, 0  ;;  %v5444_v56 = vmul.f32 %v9783_v11, %v5442_v45 }
 0x8e0   : > { %v5449_v7 = vpack.c.bf16 %v5445_v30, %v5445_v30  ;;  %v5448_v33 = vpack.c.bf16 %v5444_v56, %v5444_v56 }
 0x8e2   : > { %7995 = vmatmul.mubr.msk.bf16.vlgmr.msra.gmra.mrb[8].mxu1 %vm3744_vm15, %v7993_v27  ;;  %v5454_v22 = vsel %vm1259_vm8, %v5448_v33, 0 }
 0x8e3   : > { %5146 = vmatpush1.bf16.msra.mxu1 %v5140_v10  ;;  %5177 = vmatprep.mubr.bf16.mxu1 %v8495_v4 }
 0x8e4   : > { %8000 = vmatprep.subr.msk.bf16.mxu1 %vm1259_vm8, %v5193_v23 }
 0x8ee   : > { %7998 = vmatmul.mubr.msk.bf16.vlgmr.msra.gmra.mrb[8].mxu1 %vm3744_vm15, %v7996_v58 }
 0x8ef   : > { %5204 = vmatpush1.bf16.msra.mxu1 %v5198_v31  ;;  %5235 = vmatprep.mubr.bf16.mxu1 %v8495_v4 }
 0x8f0   : > { %8003 = vmatprep.subr.msk.bf16.mxu1 %vm1259_vm8, %v5257_v42 }
 0x8fa   : > { %8001 = vmatmul.mubr.msk.bf16.vlgmr.msra.gmra.mrb[8].mxu1 %vm3744_vm15, %v7999_v55 }
 0x8fb   : > { %5268 = vmatpush1.bf16.msra.mxu1 %v5262_v35  ;;  %5299 = vmatprep.mubr.bf16.mxu1 %v8495_v4 }
 0x8fc   : > { %8006 = vmatprep.subr.msk.bf16.mxu1 %vm1259_vm8, %v5321_v20 }
 0x906   : > { %8004 = vmatmul.mubr.msk.bf16.vlgmr.msra.gmra.mrb[8].mxu1 %vm3744_vm15, %v8002_v49 }
 0x907   : > { %5332 = vmatpush1.bf16.msra.mxu1 %v5326_v1  ;;  %5363 = vmatprep.mubr.bf16.mxu1 %v8495_v4 }
 0x908   : > { %8009 = vmatprep.subr.msk.bf16.mxu1 %vm1259_vm8, %v5385_v17 }
 0x912   : > { %8007 = vmatmul.mubr.msk.bf16.vlgmr.msra.gmra.mrb[8].mxu1 %vm3744_vm15, %v8005_v8 }
 0x913   : > { %5396 = vmatpush1.bf16.msra.mxu1 %v5390_v29  ;;  %5427 = vmatprep.mubr.bf16.mxu1 %v8495_v4 }
 0x914   : > { %8012 = vmatprep.subr.msk.bf16.mxu1 %vm1259_vm8, %v5449_v7 }
 0x91e   : > { %8010 = vmatmul.mubr.msk.bf16.vlgmr.msra.gmra.mrb[8].mxu1 %vm3744_vm15, %v8008_v43 }
 0x91f   : > { %5460 = vmatpush1.bf16.msra.mxu1 %v5454_v22  ;;  %5491 = vmatprep.mubr.bf16.mxu1 %v8495_v4 }
 0x92a   : > { %8013 = vmatmul.mubr.msk.bf16.vlgmr.msra.gmra.mrb[8].mxu1 %vm3744_vm15, %v8011_v53 }
 0x92b   : > { %6405 = vmatprep.mubr.bf16.mxu1 %v8495_v4 }
 0x967   : > { %v4278_v11 = vpop.f32.mrb[4].mxu1 }
 0x968   : > { %v4291_v39 = vmul.f32 %v4278_v11, %v4278_v11  ;;  %v4280_v27 = vpop.f32.mrb[5].mxu1 }
 0x969   : > { %v4287_v10 = vadd.f32 %v4280_v27, %v4278_v11  ;;  %v4292_v23 = vmul.f32 %v4280_v27, %v4280_v27  ;;  %v4282_v61 = vpop.f32.mrb[6].mxu1 }
 0x96a   : > { %v4283_v21 = vpop.f32.mrb[7].mxu1 }
 0x96b   : > { %4288 = vadd.xlane.f32.xlu0 %v4287_v10  ;;  %v4293_v32 = vadd.f32 %v4292_v23, %v4291_v39 }
 0x96f   : > { %4294 = vadd.xlane.f32.xlu0 %v4293_v32 }
 0x9f8   : > { %v4289_v6 = vpop.xlane.xlu0 %4288 }
 0x9f9   : > { %v4290_v41 = vmul.f32 0.015625, %v4289_v6 }
 0x9fb   : > { %v4297_v58 = vmul.f32 %v4290_v41, %v4290_v41  ;;  %v4302_v16 = vsub.f32 %v4278_v11, %v4290_v41  ;;  %v4303_v18 = vsub.f32 %v4280_v27, %v4290_v41 }
 0x9fc   : > { %v4295_v37 = vpop.xlane.xlu0 %4294 }
 0x9fd   : > { %v4296_v42 = vmul.f32 0.015625, %v4295_v37  ;;  %v5493_v31 = vpop.f32.mrb[8].mxu1 }
 0x9fe   : > { %v5506_v24 = vmul.f32 %v5493_v31, %v5493_v31  ;;  %v5495_v59 = vpop.f32.mrb[9].mxu1 }
 0x9ff   : > { %v4298_v19 = vsub.f32 %v4296_v42, %v4297_v58  ;;  %v5502_v0 = vadd.f32 %v5495_v59, %v5493_v31  ;;  %v5507_v28 = vmul.f32 %v5495_v59, %v5495_v59  ;;  %v5497_v25 = vpop.f32.mrb[10].mxu1 }
 0xa00   : > { %v5498_v2 = vpop.f32.mrb[11].mxu1 }
 0xa01   : > { %v4299_v55 = vmax.f32 %v4298_v19, 0.0  ;;  %5503 = vadd.xlane.f32.xlu1 %v5502_v0  ;;  %v5508_v20 = vadd.f32 %v5507_v28, %v5506_v24  ;;  %v3037_v24 = vld [vmem:[%s11079_s10] sm:$0x3] }
 0xa02   : > { %v4336_v25 = vrot.slane %v3037_v24, %v8697_v14 }
 0xa03   : > { %v4300_v35 = vadd.f32 1e-05, %v4299_v55  ;;  %5509 = vadd.xlane.f32.xlu0 %v5508_v20 }
 0xa05   : > { %8467 = vrsqrt.f32 %v4300_v35  ;;  %v4340_v35 = vrot.slane %v3037_v24, %v8700_v15 }
 0xa0f   : > { %v8468_v44 = vpop.eup %8467 }
 0xa10   : > { %v4304_v48 = vmul.f32 %v8468_v44, %v4302_v16  ;;  %v4305_v62 = vmul.f32 %v8468_v44, %v4303_v18 }
 0xa12   : > { %v4306_v38 = vmul.f32 %v4304_v48, %v9932_v47  ;;  %v4307_v50 = vmul.f32 %v4305_v62, %v9935_v54 }
 0xa14   : > { %vm4308_vm11 = vcmp.ge.f32.partialorder %v4306_v38, 0.0  ;;  %v4310_v49 = vmul.f32 0.2, %v4306_v38  ;;  %vm4309_vm7 = vcmp.ge.f32.partialorder %v4307_v50, 0.0  ;;  %v4311_v17 = vmul.f32 0.2, %v4307_v50 }
 0xa16   : > { %v4312_v1 = vsel %vm4308_vm11, %v4306_v38, %v4310_v49  ;;  %v4313_v40 = vsel %vm4309_vm7, %v4307_v50, %v4311_v17  ;;  %v10301_v49 = vld [vmem:[%s10979_s16] sm:$0xff]  ;;  %v10306_v17 = vld [vmem:[%s10979_s16 + $0x8] sm:$0xff]  ;;  %vm5724_vm11 = vcmp.lt.s32.totalorder %v8832_v9, 60  ;;  %vm5809_vm7 = vcmp.lt.s32.totalorder %v8832_v9, 4 }
 0xa17   : > { %4314 = vrot.lane.b32.xlu1 %v4312_v1, %s11074_s30 }
 0xa19   : > { %4316 = vrot.lane.b32.xlu0 %v4313_v40, %s11074_s30 }
 0xa8e   : > { %v5504_v51 = vpop.xlane.xlu1 %5503 }
 0xa8f   : > { %v5505_v26 = vmul.f32 0.015625, %v5504_v51 }
 0xa90   : > { %v5510_v57 = vpop.xlane.xlu0 %5509 }
 0xa91   : > { %v5511_v34 = vmul.f32 0.015625, %v5510_v57  ;;  %v5512_v63 = vmul.f32 %v5505_v26, %v5505_v26  ;;  %v5517_v43 = vsub.f32 %v5493_v31, %v5505_v26  ;;  %v5518_v22 = vsub.f32 %v5495_v59, %v5505_v26 }
 0xa92   : > { %v4315_v8 = vpop.permute.xlu1 %4314  ;;  %v10310_v57 = vrot.slane %v10306_v17, %v9164_v60 }
 0xa93   : > { %v5513_v30 = vsub.f32 %v5511_v34, %v5512_v63  ;;  %v10314_v34 = vrot.slane %v10301_v49, %v9164_v60 }
 0xa94   : > { %v4317_v7 = vpop.permute.xlu0 %4316 }
 0xa95   : > { %v5514_v29 = vmax.f32 %v5513_v30, 0.0  ;;  %v4318_v45 = vsel %vm3395_vm12, %v4315_v8, %v4317_v7  ;;  %v4319_v32 = vsel %vm3395_vm12, %v4317_v7, %v4315_v8 }
 0xa96   : > { %v4320_v56 = vadd.f32 %v4318_v45, %v4312_v1  ;;  %v4321_v41 = vadd.f32 %v4319_v32, %v4313_v40 }
 0xa97   : > { %v5515_v33 = vadd.f32 1e-05, %v5514_v29 }
 0xa98   : > { %4322 = vrot.lane.b32.xlu0 %v4320_v56, %s11076_s29 }
 0xa99   : > { %8469 = vrsqrt.f32 %v5515_v33 }
 0xaa3   : > { %v8470_v53 = vpop.eup %8469 }
 0xaa4   : > { %v5519_v11 = vmul.f32 %v8470_v53, %v5517_v43  ;;  %v5520_v39 = vmul.f32 %v8470_v53, %v5518_v22 }
 0xaa6   : > { %v5521_v27 = vmul.f32 %v5519_v11, %v9932_v47  ;;  %v5522_v10 = vmul.f32 %v5520_v39, %v9935_v54  ;;  %v10345_v11 = vrot.slane %v10301_v49, %v8700_v15  ;;  %v10349_v39 = vrot.slane %v10306_v17, %v8700_v15 }
 0xaa8   : > { %vm5523_vm6 = vcmp.ge.f32.partialorder %v5521_v27, 0.0  ;;  %v5525_v23 = vmul.f32 0.2, %v5521_v27  ;;  %v5526_v21 = vmul.f32 0.2, %v5522_v10  ;;  %vm5524_vm14 = vcmp.ge.f32.partialorder %v5522_v10, 0.0 }
 0xaaa   : > { %v5527_v61 = vsel %vm5523_vm6, %v5521_v27, %v5525_v23  ;;  %v5528_v6 = vsel %vm5524_vm14, %v5522_v10, %v5526_v21  ;;  %v10353_v23 = vrot.slane %v10301_v49, %v9295_v36  ;;  %vm5966_vm6 = vcmp.lt.s32.totalorder %v8832_v9, 124 }
 0xaab   : > { %5529 = vrot.lane.b32.xlu1 %v5527_v61, %s11074_s30 }
 0xaaf   : > { %5531 = vrot.lane.b32.xlu1 %v5528_v6, %s11074_s30  ;;  %s8514_s30 = smov 64  }
 0xab3   : > { %4324 = vrot.lane.b32.xlu1 %v4321_v41, %s11076_s29 }
 0xb0a   : > { %v4323_v59 = vpop.permute.xlu0 %4322 }
 0xb1d   : > { %v5530_v37 = vpop.permute.xlu1 %5529 }
 0xb21   : > { %v5532_v47 = vpop.permute.xlu1 %5531 }
 0xb22   : > { %v5533_v54 = vsel %vm3395_vm12, %v5530_v37, %v5532_v47  ;;  %v5534_v58 = vsel %vm3395_vm12, %v5532_v47, %v5530_v37  ;;  %vm5591_vm12 = vcmp.lt.s32.totalorder %v8832_v9, 64 }
 0xb23   : > { %v5535_v42 = vadd.f32 %v5533_v54, %v5527_v61  ;;  %v5536_v31 = vadd.f32 %v5534_v58, %v5528_v6  ;;  %v10357_v61 = vrot.slane %v10306_v17, %v9295_v36 }
 0xb25   : > { %5539 = vrot.lane.b32.xlu1 %v5536_v31, %s11076_s29  ;;  %5537 = vrot.lane.b32.xlu0 %v5535_v42, %s11076_s29  ;;  %v4325_v19 = vpop.permute.xlu1 %4324  ;;  %s8515_s29 = smov 68  }
 0xb26   : > { %v4326_v0 = vsel %vm3541_vm13, %v4323_v59, %v4325_v19  ;;  %v4327_v28 = vsel %vm3541_vm13, %v4325_v19, %v4323_v59 }
 0xb27   : > { %v4328_v2 = vadd.f32 %v4326_v0, %v4320_v56  ;;  %v4329_v55 = vadd.f32 %v4327_v28, %v4321_v41 }
 0xb29   : > { %v4330_v20 = vmul.f32 0.25, %v4328_v2  ;;  %v4331_v16 = vmul.f32 0.25, %v4329_v55 }
 0xb2b   : > { %v4343_v18 = vmul.f32 %v4336_v25, %v4330_v20  ;;  %v4344_v44 = vmul.f32 %v4340_v35, %v4331_v16  ;;  %v10394_v16 = vrot.slane %v10306_v17, %v8697_v14 }
 0xb2d   : > { %5583 = vrot.lane.b32.xlu0 %v4343_v18, %s8514_s30  ;;  %v10318_v8 = vmul.f32 %v10310_v57, %v4344_v44  ;;  %v10324_v29 = vmul.f32 %v10314_v34, %v4343_v18 }
 0xb31   : > { %5587 = vrot.lane.b32.xlu0 %v4344_v44, %s8514_s30 }
 0xb35   : > { %5554 = vrot.lane.b32.xlu0 %v4343_v18, %s8515_s29 }
 0xb39   : > { %5558 = vrot.lane.b32.xlu0 %v4344_v44, %s8515_s29 }
 0xb3d   : > { %5716 = vrot.lane.b32.xlu0 %v4343_v18, %s8516_s3 }
 0xb41   : > { %5720 = vrot.lane.b32.xlu0 %v4344_v44, %s8516_s3 }
 0xb45   : > { %5801 = vrot.lane.b32.xlu0 %v4343_v18, %s8517_s8 }
 0xb49   : > { %5805 = vrot.lane.b32.xlu0 %v4344_v44, %s8517_s8 }
 0xb4d   : > { %5958 = vrot.lane.b32.xlu0 %v4343_v18, %s8518_s1  ;;  %v8437_v18 = vld [vmem:[%s10981_s18 + $0x8] sm:$0xff]  }
 0xb51   : > { %5962 = vrot.lane.b32.xlu0 %v4344_v44, %s8518_s1 }
 0xb97   : > { %v5538_v48 = vpop.permute.xlu0 %5537  ;;  %v5540_v62 = vpop.permute.xlu1 %5539 }
 0xb98   : > { %v5541_v38 = vsel %vm3541_vm13, %v5538_v48, %v5540_v62  ;;  %v5542_v50 = vsel %vm3541_vm13, %v5540_v62, %v5538_v48  ;;  %vm5562_vm13 = vcmp.lt.s32.totalorder %v8832_v9, 68 }
 0xb99   : > { %v5543_v1 = vadd.f32 %v5541_v38, %v5535_v42  ;;  %v5544_v40 = vadd.f32 %v5542_v50, %v5536_v31 }
 0xb9b   : > { %v5545_v51 = vmul.f32 0.25, %v5543_v1  ;;  %v5546_v26 = vmul.f32 0.25, %v5544_v40 }
 0xb9d   : > { %v5547_v63 = vmul.f32 %v5545_v51, %v4336_v25  ;;  %v5548_v30 = vmul.f32 %v5546_v26, %v4340_v35  ;;  %v10390_v35 = vrot.slane %v10301_v49, %v8697_v14 }
 0xb9f   : > { %5585 = vrot.lane.b32.xlu1 %v5547_v63, %s8514_s30  ;;  %v10321_v7 = vmul.f32 %v10310_v57, %v5548_v30  ;;  %v10327_v45 = vmul.f32 %v10314_v34, %v5547_v63  ;;  %v5584_v43 = vpop.permute.xlu0 %5583 }
 0xba1   : > { %v5902_v56 = vpack.c.bf16 %v10321_v7, %v10318_v8  ;;  %v5901_v33 = vpack.c.bf16 %v10327_v45, %v10324_v29  ;;  %v8440_v8 = vld [vmem:[%s10981_s18 + $0x18] sm:$0xff]  }
 0xba3   : > { %5589 = vrot.lane.b32.xlu1 %v5548_v30, %s8514_s30  ;;  %v5588_v22 = vpop.permute.xlu0 %5587 }
 0xba4   : > { %v5592_v21 = vsel %vm5591_vm12, %v5584_v43, %v5588_v22  ;;  %v5594_v32 = vsel %vm5591_vm12, %v5588_v22, %v5584_v43 }
 0xba5   : > { %v5604_v6 = vmul.f32 %v10345_v11, %v5594_v32  ;;  %v5605_v41 = vmul.f32 %v10349_v39, %v5592_v21  ;;  %v10366_v47 = vmul.f32 %v10353_v23, %v5592_v21  ;;  %v10369_v54 = vmul.f32 %v10357_v61, %v5594_v32 }
 0xba7   : > { %5556 = vrot.lane.b32.xlu1 %v5547_v63, %s8515_s29  ;;  %v5555_v53 = vpop.permute.xlu0 %5554 }
 0xbab   : > { %5560 = vrot.lane.b32.xlu1 %v5548_v30, %s8515_s29  ;;  %v5559_v27 = vpop.permute.xlu0 %5558 }
 0xbac   : > { %v10401_v44 = vsel %vm5562_vm13, %v5555_v53, %v5559_v27  ;;  %v10405_v48 = vsel %vm5562_vm13, %v5559_v27, %v5555_v53  ;;  %v10428_v53 = vrot.slane %v10301_v49, %v9153_v46  ;;  %v10432_v27 = vrot.slane %v10306_v17, %v9153_v46 }
 0xbad   : > { %v5575_v40 = vmul.f32 %v10390_v35, %v10405_v48  ;;  %v5576_v51 = vmul.f32 %v10394_v16, %v10401_v44 }
 0xbaf   : > { %5718 = vrot.lane.b32.xlu1 %v5547_v63, %s8516_s3  ;;  %v5717_v31 = vpop.permute.xlu0 %5716 }
 0xbb3   : > { %5722 = vrot.lane.b32.xlu1 %v5548_v30, %s8516_s3  ;;  %v5721_v62 = vpop.permute.xlu0 %5720 }
 0xbb4   : > { %v10438_v21 = vsel %vm5724_vm11, %v5721_v62, %v5717_v31 }
 0xbb7   : > { %5803 = vrot.lane.b32.xlu1 %v5547_v63, %s8517_s8  ;;  %v5802_v32 = vpop.permute.xlu0 %5801 }
 0xbbb   : > { %5807 = vrot.lane.b32.xlu1 %v5548_v30, %s8517_s8 }
 0xbbf   : > { %5960 = vrot.lane.b32.xlu1 %v5547_v63, %s8518_s1 }
 0xbc3   : > { %5964 = vrot.lane.b32.xlu1 %v5548_v30, %s8518_s1 }
 0xc11   : > { %v5586_v10 = vpop.permute.xlu1 %5585 }
 0xc15   : > { %v5590_v37 = vpop.permute.xlu1 %5589 }
 0xc16   : > { %v5593_v58 = vsel %vm5591_vm12, %v5586_v10, %v5590_v37  ;;  %v5595_v42 = vsel %vm5591_vm12, %v5590_v37, %v5586_v10  ;;  %v5725_v10 = vsel %vm5724_vm11, %v5717_v31, %v5721_v62  ;;  %v5737_v37 = vmul.f32 %v10428_v53, %v10438_v21 }
 0xc17   : > { %v5606_v24 = vmul.f32 %v10345_v11, %v5595_v42  ;;  %v5607_v59 = vmul.f32 %v10349_v39, %v5593_v58  ;;  %v10378_v19 = vmul.f32 %v10353_v23, %v5593_v58  ;;  %v10381_v0 = vmul.f32 %v10357_v61, %v5595_v42 }
 0xc18   : > { %v5738_v58 = vmul.f32 %v10432_v27, %v5725_v10 }
 0xc19   : > { %v5611_v28 = vpack.c.bf16 %v5606_v24, %v5604_v6  ;;  %v6130_v25 = vpack.c.bf16 %v10378_v19, %v10366_v47  ;;  %v5557_v2 = vpop.permute.xlu1 %5556  ;;  %v5612_v55 = vpack.c.bf16 %v5607_v59, %v5605_v41  ;;  %v6131_v20 = vpack.c.bf16 %v10381_v0, %v10369_v54  ;;  %v10443_v6 = vld [vmem:[%s10979_s16 + $0x10] ss:$0 sm:$0xff]  ;;  %v8444_v54 = vld [vmem:[%s10981_s18 + $0x38] sm:$0xff]   ;;  %v8445_v47 = vld [vmem:[%s10981_s18 + $0x40] sm:$0xff]  }
 0xc1a   : > { %v10455_v24 = vmul.f32 %v10443_v6, %v5725_v10 }
 0xc1b   : > { %5622 = vmatprep.subr.bf16.mxu0 %v5612_v55  ;;  %v8438_v55 = vld [vmem:[%s10981_s18] sm:$0xff]  }
 0xc1c   : > { %5623 = vmatpush1.bf16.msra.mxu0 %v5611_v28 }
 0xc1d   : > { %v5561_v38 = vpop.permute.xlu1 %5560 }
 0xc1e   : > { %v10409_v50 = vsel %vm5562_vm13, %v5557_v2, %v5561_v38  ;;  %v10413_v1 = vsel %vm5562_vm13, %v5561_v38, %v5557_v2 }
 0xc1f   : > { %v5577_v26 = vmul.f32 %v10390_v35, %v10413_v1  ;;  %v5578_v63 = vmul.f32 %v10394_v16, %v10409_v50  ;;  %8017 = vmatmul.mubr.msk.bf16.vlgmr.msra.gmra.mrb[12].mxu0 %vm5618_vm2, %v8437_v18  ;;  %v5806_v18 = vpop.permute.xlu0 %5805 }
 0xc20   : > { %5705 = vmatprep.mubr.bf16.mxu0 %v8495_v4 }
 0xc21   : > { %v5581_v30 = vpack.c.bf16 %v5577_v26, %v5575_v40  ;;  %v5719_v43 = vpop.permute.xlu1 %5718  ;;  %v5582_v22 = vpack.c.bf16 %v5578_v63, %v5576_v51  ;;  %v10471_v26 = vrot.slane %v10306_v17, %v9181_v13  ;;  %v5810_v63 = vsel %vm5809_vm7, %v5802_v32, %v5806_v18 }
 0xc23   : > { %5673 = vmatprep.subr.bf16.mxu0 %v5582_v22  ;;  %v5823_v22 = vmul.f32 %v10471_v26, %v5810_v63 }
 0xc24   : > { %5674 = vmatpush1.bf16.msra.mxu0 %v5581_v30 }
 0xc25   : > { %v5723_v41 = vpop.permute.xlu1 %5722 }
 0xc26   : > { %v5726_v42 = vsel %vm5724_vm11, %v5719_v43, %v5723_v41  ;;  %v10452_v31 = vsel %vm5724_vm11, %v5723_v41, %v5719_v43 }
 0xc27   : > { %v5739_v59 = vmul.f32 %v10428_v53, %v10452_v31  ;;  %v5740_v28 = vmul.f32 %v10432_v27, %v5726_v42  ;;  %v10461_v2 = vmul.f32 %v10443_v6, %v5726_v42 }
 0xc29   : > { %v5744_v62 = vpack.c.bf16 %v5739_v59, %v5737_v37  ;;  %v6202_v38 = vpack.c.bf16 %v10461_v2, %v10455_v24  ;;  %v5804_v40 = vpop.permute.xlu1 %5803  ;;  %v5745_v51 = vpack.c.bf16 %v5740_v28, %v5738_v58  ;;  %v10485_v37 = vrot.slane %v10301_v49, %v9181_v13 }
 0xc2a   : > { %v5812_v58 = vsel %vm5809_vm7, %v5806_v18, %v5802_v32 }
 0xc2b   : > { %8019 = vmatmul.mubr.msk.bf16.vlgmr.msra.gmra.mrb[12].mxu0 %vm5618_vm2, %v8438_v55  ;;  %5754 = vmatprep.subr.bf16.mxu0 %v5745_v51  ;;  %v8439_v55 = vld [vmem:[%s10981_s18 + $0x10] sm:$0xff]  }
 0xc2c   : > { %5755 = vmatpush1.bf16.msra.mxu0 %v5744_v62  ;;  %5786 = vmatprep.mubr.bf16.mxu0 %v8495_v4  ;;  %v5822_v62 = vmul.f32 %v10485_v37, %v5812_v58  ;;  %v10526_v58 = vrot.slane %v10306_v17, %v9262_v5 }
 0xc2d   : > { %v5808_v30 = vpop.permute.xlu1 %5807 }
 0xc2e   : > { %v5811_v43 = vsel %vm5809_vm7, %v5804_v40, %v5808_v30  ;;  %v5813_v10 = vsel %vm5809_vm7, %v5808_v30, %v5804_v40  ;;  %v5959_v40 = vpop.permute.xlu0 %5958  ;;  %v10504_v30 = vrot.slane %v10306_v17, %v9229_v12  ;;  %v6054_v45 = vmul.f32 %v10526_v58, %v10413_v1 }
 0xc2f   : > { %v5825_v41 = vmul.f32 %v10471_v26, %v5811_v43  ;;  %v5824_v59 = vmul.f32 %v10485_v37, %v5813_v10  ;;  %v10543_v1 = vrot.slane %v10301_v49, %v9262_v5 }
 0xc31   : > { %v5830_v42 = vpack.c.bf16 %v5825_v41, %v5823_v22  ;;  %v5961_v28 = vpop.permute.xlu1 %5960  ;;  %v5829_v51 = vpack.c.bf16 %v5824_v59, %v5822_v62  ;;  %v10522_v41 = vrot.slane %v10301_v49, %v9229_v12  ;;  %v6053_v62 = vmul.f32 %v10543_v1, %v10409_v50  ;;  %v10560_v49 = vld [vmem:[%s10979_s16 + $0x18] ss:$0 sm:$0xff] }
 0xc32   : > { %v5963_v32 = vpop.permute.xlu0 %5962  ;;  %v6198_v50 = vmul.f32 %v10560_v49, %v10452_v31 }
 0xc33   : > { %5839 = vmatprep.subr.bf16.mxu0 %v5830_v42  ;;  %v5969_v43 = vsel %vm5966_vm6, %v5963_v32, %v5959_v40  ;;  %v5967_v42 = vsel %vm5966_vm6, %v5959_v40, %v5963_v32  ;;  %v8442_v40 = vld [vmem:[%s10981_s18 + $0x28] sm:$0xff]  }
 0xc34   : > { %v5980_v7 = vmul.f32 %v10504_v30, %v5969_v43  ;;  %v5979_v59 = vmul.f32 %v10522_v41, %v5967_v42 }
 0xc35   : > { %v5965_v63 = vpop.permute.xlu1 %5964 }
 0xc36   : > { %v5970_v18 = vsel %vm5966_vm6, %v5965_v63, %v5961_v28  ;;  %v5968_v10 = vsel %vm5966_vm6, %v5961_v28, %v5965_v63  ;;  %v6052_v28 = vmul.f32 %v10526_v58, %v10405_v48  ;;  %v6051_v48 = vmul.f32 %v10543_v1, %v10401_v44  ;;  %v8443_v44 = vld [vmem:[%s10981_s18 + $0x30] sm:$0xff]  }
 0xc37   : > { %8023 = vmatmul.mubr.msk.bf16.vlgmr.msra.gmra.mrb[12].mxu0 %vm5618_vm2, %v8439_v55  ;;  %v5982_v22 = vmul.f32 %v10504_v30, %v5970_v18  ;;  %v5981_v29 = vmul.f32 %v10522_v41, %v5968_v10  ;;  %v6196_v63 = vmul.f32 %v10560_v49, %v10438_v21 }
 0xc38   : > { %5840 = vmatpush1.bf16.msra.mxu0 %v5829_v51  ;;  %5871 = vmatprep.mubr.bf16.mxu0 %v8495_v4  ;;  %v6059_v17 = vpack.c.bf16 %v6054_v45, %v6052_v28  ;;  %v6058_v51 = vpack.c.bf16 %v6053_v62, %v6051_v48 }
 0xc39   : > { %5911 = vmatprep.subr.bf16.mxu0 %v5902_v56  ;;  %v5987_v56 = vpack.c.bf16 %v5982_v22, %v5980_v7  ;;  %v5986_v55 = vpack.c.bf16 %v5981_v29, %v5979_v59  ;;  %v6203_v32 = vpack.c.bf16 %v6198_v50, %v6196_v63  ;;  %v5553_v50 = vld [vmem:[%s10980_s17] sm:$0x3] }
 0xc43   : > { %8027 = vmatmul.mubr.msk.bf16.vlgmr.msra.gmra.mrb[12].mxu0 %vm5618_vm2, %v8440_v8 }
 0xc44   : > { %5912 = vmatpush1.bf16.msra.mxu0 %v5901_v33  ;;  %5943 = vmatprep.mubr.bf16.mxu0 %v8495_v4  ;;  %v8441_v33 = vld [vmem:[%s10981_s18 + $0x20] sm:$0xff]  }
 0xc45   : > { %5996 = vmatprep.subr.bf16.mxu0 %v5987_v56 }
 0xc4f   : > { %8031 = vmatmul.mubr.msk.bf16.vlgmr.msra.gmra.mrb[12].mxu0 %vm5618_vm2, %v8441_v33 }
 0xc50   : > { %5997 = vmatpush1.bf16.msra.mxu0 %v5986_v55  ;;  %6028 = vmatprep.mubr.bf16.mxu0 %v8495_v4 }
 0xc51   : > { %6068 = vmatprep.subr.bf16.mxu0 %v6059_v17 }
 0xc5b   : > { %8035 = vmatmul.mubr.msk.bf16.vlgmr.msra.gmra.mrb[12].mxu0 %vm5618_vm2, %v8442_v40 }
 0xc5c   : > { %6069 = vmatpush1.bf16.msra.mxu0 %v6058_v51  ;;  %6100 = vmatprep.mubr.bf16.mxu0 %v8495_v4 }
 0xc5d   : > { %6140 = vmatprep.subr.bf16.mxu0 %v6131_v20 }
 0xc67   : > { %8039 = vmatmul.mubr.msk.bf16.vlgmr.msra.gmra.mrb[12].mxu0 %vm5618_vm2, %v8443_v44 }
 0xc68   : > { %6141 = vmatpush1.bf16.msra.mxu0 %v6130_v25  ;;  %6172 = vmatprep.mubr.bf16.mxu0 %v8495_v4 }
 0xc69   : > { %6212 = vmatprep.subr.bf16.mxu0 %v6203_v32  ;;  %v10591_v32 = vrot.slane %v5553_v50, %v8697_v14 }
 0xc73   : > { %8043 = vmatmul.mubr.msk.bf16.vlgmr.msra.gmra.mrb[12].mxu0 %vm5618_vm2, %v8444_v54  ;;  %v10594_v54 = vrot.slane %v5553_v50, %v8700_v15 }
 0xc74   : > { %6213 = vmatpush1.bf16.msra.mxu0 %v6202_v38  ;;  %6244 = vmatprep.mubr.bf16.mxu0 %v8495_v4 }
 0xc7f   : > { %8049 = vmatmul.mubr.msk.bf16.vlgmr.msra.gmra.mrb[12].mxu0 %vm5618_vm2, %v8445_v47 }
 0xc80   : > { %7045 = vmatprep.mubr.bf16.mxu0 %v8495_v4 }
 0xd52   : > { %v6246_v19 = vpop.f32.mrb[12].mxu0 }
 0xd53   : > { %v6267_v0 = vmul.f32 %v6246_v19, %v6246_v19  ;;  %v6248_v25 = vpop.f32.mrb[13].mxu0 }
 0xd54   : > { %v6259_v20 = vadd.f32 %v6248_v25, %v6246_v19  ;;  %v6268_v21 = vmul.f32 %v6248_v25, %v6248_v25  ;;  %v6250_v31 = vpop.f32.mrb[14].mxu0 }
 0xd55   : > { %v6269_v18 = vmul.f32 %v6250_v31, %v6250_v31  ;;  %v6252_v43 = vpop.f32.mrb[15].mxu0 }
 0xd56   : > { %v6262_v24 = vadd.f32 %v6252_v43, %v6250_v31  ;;  %v6270_v2 = vmul.f32 %v6252_v43, %v6252_v43  ;;  %6260 = vadd.xlane.f32.xlu0 %v6259_v20  ;;  %v6271_v38 = vadd.f32 %v6268_v21, %v6267_v0 }
 0xd58   : > { %6263 = vadd.xlane.f32.xlu1 %v6262_v24  ;;  %v6274_v22 = vadd.f32 %v6270_v2, %v6269_v18 }
 0xd5a   : > { %6272 = vadd.xlane.f32.xlu0 %v6271_v38 }
 0xd5e   : > { %6275 = vadd.xlane.f32.xlu0 %v6274_v22 }
 0xde3   : > { %v6261_v8 = vpop.xlane.xlu0 %6260 }
 0xde4   : > { %v6265_v7 = vmul.f32 0.0625, %v6261_v8 }
 0xde5   : > { %v6264_v56 = vpop.xlane.xlu1 %6263 }
 0xde6   : > { %v6266_v42 = vmul.f32 0.0625, %v6264_v56  ;;  %v6279_v29 = vmul.f32 %v6265_v7, %v6265_v7  ;;  %v6289_v44 = vsub.f32 %v6246_v19, %v6265_v7  ;;  %v6290_v63 = vsub.f32 %v6248_v25, %v6265_v7 }
 0xde7   : > { %v6273_v10 = vpop.xlane.xlu0 %6272 }
 0xde8   : > { %v6277_v45 = vmul.f32 0.0625, %v6273_v10  ;;  %v6280_v17 = vmul.f32 %v6266_v42, %v6266_v42  ;;  %v6291_v2 = vsub.f32 %v6250_v31, %v6266_v42  ;;  %v6292_v38 = vsub.f32 %v6252_v43, %v6266_v42 }
 0xdea   : > { %v6281_v33 = vsub.f32 %v6277_v45, %v6279_v29 }
 0xdeb   : > { %v6276_v59 = vpop.xlane.xlu0 %6275 }
 0xdec   : > { %v6283_v28 = vmax.f32 %v6281_v33, 0.0  ;;  %v6278_v55 = vmul.f32 0.0625, %v6276_v59 }
 0xdee   : > { %v6285_v62 = vadd.f32 1e-05, %v6283_v28  ;;  %v6282_v40 = vsub.f32 %v6278_v55, %v6280_v17 }
 0xdf0   : > { %8471 = vrsqrt.f32 %v6285_v62  ;;  %v6284_v48 = vmax.f32 %v6282_v40, 0.0 }
 0xdf2   : > { %v6286_v51 = vadd.f32 1e-05, %v6284_v48 }
 0xdf4   : > { %8473 = vrsqrt.f32 %v6286_v51 }
 0xdfa   : > { %v8472_v47 = vpop.eup %8471 }
 0xdfb   : > { %v6293_v0 = vmul.f32 %v8472_v47, %v6289_v44  ;;  %v6294_v20 = vmul.f32 %v8472_v47, %v6290_v63 }
 0xdfd   : > { %v6308_v21 = vmul.f32 %v10591_v32, %v6293_v0  ;;  %v6309_v18 = vmul.f32 %v10594_v54, %v6294_v20 }
 0xdfe   : > { %v8474_v24 = vpop.eup %8473 }
 0xdff   : > { %vm6312_vm14 = vcmp.ge.f32.partialorder %v6308_v21, 0.0  ;;  %v6316_v22 = vmul.f32 0.2, %v6308_v21  ;;  %v6317_v19 = vmul.f32 0.2, %v6309_v18  ;;  %vm6313_vm10 = vcmp.ge.f32.partialorder %v6309_v18, 0.0 }
 0xe00   : > { %v6295_v25 = vmul.f32 %v8474_v24, %v6291_v2  ;;  %v6296_v8 = vmul.f32 %v8474_v24, %v6292_v38 }
 0xe01   : > { %v6320_v7 = vsel %vm6312_vm14, %v6308_v21, %v6316_v22  ;;  %v6321_v29 = vsel %vm6313_vm10, %v6309_v18, %v6317_v19  ;;  %vm7764_vm14 = vcmp.lt.s32.totalorder %v870_v3, 256 }
 0xe02   : > { %6344 = vrot.lane.b32.xlu1 %v6320_v7, %s8514_s30  ;;  %v6310_v56 = vmul.f32 %v10591_v32, %v6295_v25  ;;  %v6311_v10 = vmul.f32 %v10594_v54, %v6296_v8  ;;  %v10604_v42 = vmul.f32 %v6321_v29, %v10310_v57  ;;  %v10610_v28 = vmul.f32 %v6320_v7, %v10314_v34 }
 0xe04   : > { %vm6314_vm1 = vcmp.ge.f32.partialorder %v6310_v56, 0.0  ;;  %v6318_v45 = vmul.f32 0.2, %v6310_v56  ;;  %vm6315_vm0 = vcmp.ge.f32.partialorder %v6311_v10, 0.0  ;;  %v6319_v33 = vmul.f32 0.2, %v6311_v10 }
 0xe06   : > { %6348 = vrot.lane.b32.xlu1 %v6321_v29, %s8514_s30  ;;  %v6322_v31 = vsel %vm6314_vm1, %v6310_v56, %v6318_v45  ;;  %v6323_v43 = vsel %vm6315_vm0, %v6311_v10, %v6319_v33 }
 0xe07   : > { %6346 = vrot.lane.b32.xlu0 %v6322_v31, %s8514_s30  ;;  %v10607_v59 = vmul.f32 %v6323_v43, %v10310_v57  ;;  %v10613_v55 = vmul.f32 %v6322_v31, %v10314_v34 }
 0xe09   : > { %v6627_v17 = vpack.c.bf16 %v10607_v59, %v10604_v42  ;;  %v6626_v62 = vpack.c.bf16 %v10613_v55, %v10610_v28 }
 0xe0a   : > { %6350 = vrot.lane.b32.xlu1 %v6323_v43, %s8514_s30 }
 0xe0b   : > { %6324 = vrot.lane.b32.xlu0 %v6320_v7, %s8515_s29 }
 0xe0e   : > { %6326 = vrot.lane.b32.xlu1 %v6322_v31, %s8515_s29 }
 0xe0f   : > { %6328 = vrot.lane.b32.xlu0 %v6321_v29, %s8515_s29 }
 0xe12   : > { %6330 = vrot.lane.b32.xlu1 %v6323_v43, %s8515_s29  ;;  %s11087_s29 = sld [smem:[#allocation17_spill]] }
 0xe13   : > { %6467 = vrot.lane.b32.xlu0 %v6320_v7, %s8516_s3 }
 0xe16   : > { %6469 = vrot.lane.b32.xlu1 %v6322_v31, %s8516_s3 }
 0xe17   : > { %6471 = vrot.lane.b32.xlu0 %v6321_v29, %s8516_s3 }
 0xe1a   : > { %6473 = vrot.lane.b32.xlu1 %v6323_v43, %s8516_s3  ;;  %s859_s3 = scalar_lea.vmem %s11087_s29, %s8694_s12 }
 0xe1b   : > { %6543 = vrot.lane.b32.xlu0 %v6320_v7, %s8517_s8 }
 0xe1e   : > { %6545 = vrot.lane.b32.xlu1 %v6322_v31, %s8517_s8 }
 0xe1f   : > { %6547 = vrot.lane.b32.xlu0 %v6321_v29, %s8517_s8 }
 0xe22   : > { %6549 = vrot.lane.b32.xlu1 %v6323_v43, %s8517_s8 }
 0xe23   : > { %6683 = vrot.lane.b32.xlu0 %v6320_v7, %s8518_s1 }
 0xe26   : > { %6685 = vrot.lane.b32.xlu1 %v6322_v31, %s8518_s1 }
 0xe27   : > { %6687 = vrot.lane.b32.xlu0 %v6321_v29, %s8518_s1 }
 0xe2a   : > { %6689 = vrot.lane.b32.xlu1 %v6323_v43, %s8518_s1 }
 0xe74   : > { %v6345_v57 = vpop.permute.xlu1 %6344 }
 0xe78   : > { %v6349_v34 = vpop.permute.xlu1 %6348 }
 0xe79   : > { %v6347_v40 = vpop.permute.xlu0 %6346  ;;  %v6352_v48 = vsel %vm5591_vm12, %v6345_v57, %v6349_v34  ;;  %v6354_v51 = vsel %vm5591_vm12, %v6349_v34, %v6345_v57 }
 0xe7a   : > { %v6356_v50 = vmul.f32 %v6354_v51, %v10345_v11  ;;  %v6357_v44 = vmul.f32 %v6352_v48, %v10349_v39  ;;  %v10643_v47 = vmul.f32 %v6352_v48, %v10353_v23  ;;  %v10646_v0 = vmul.f32 %v6354_v51, %v10357_v61 }
 0xe7c   : > { %v6351_v63 = vpop.permute.xlu1 %6350 }
 0xe7d   : > { %v6325_v20 = vpop.permute.xlu0 %6324  ;;  %v6353_v21 = vsel %vm5591_vm12, %v6347_v40, %v6351_v63  ;;  %v6355_v18 = vsel %vm5591_vm12, %v6351_v63, %v6347_v40 }
 0xe7e   : > { %v6358_v24 = vmul.f32 %v6355_v18, %v10345_v11  ;;  %v6359_v2 = vmul.f32 %v6353_v21, %v10349_v39  ;;  %v10655_v38 = vmul.f32 %v6353_v21, %v10353_v23  ;;  %v10658_v22 = vmul.f32 %v6355_v18, %v10357_v61  ;;  %v8446_v11 = vld [vmem:[%s10982_s19 + $0x8] sm:$0xff]  }
 0xe80   : > { %v6363_v19 = vpack.c.bf16 %v6358_v24, %v6356_v50  ;;  %v6830_v25 = vpack.c.bf16 %v10655_v38, %v10643_v47  ;;  %v6327_v8 = vpop.permute.xlu1 %6326  ;;  %v6364_v7 = vpack.c.bf16 %v6359_v2, %v6357_v44  ;;  %v6831_v56 = vpack.c.bf16 %v10658_v22, %v10646_v0  ;;  %v8453_v0 = vld [vmem:[%s10982_s19 + $0x38] sm:$0xff]  }
 0xe81   : > { %v6329_v10 = vpop.permute.xlu0 %6328 }
 0xe82   : > { %6373 = vmatprep.subr.bf16.mxu1 %v6364_v7  ;;  %v10669_v39 = vsel %vm5562_vm13, %v6325_v20, %v6329_v10  ;;  %v10673_v23 = vsel %vm5562_vm13, %v6329_v10, %v6325_v20  ;;  %v8447_v10 = vld [vmem:[%s10982_s19] sm:$0xff]  }
 0xe83   : > { %6374 = vmatpush1.bf16.msra.mxu1 %v6363_v19  ;;  %v6336_v31 = vmul.f32 %v10673_v23, %v10390_v35  ;;  %v6337_v43 = vmul.f32 %v10669_v39, %v10394_v16  ;;  %v6760_v55 = vmul.f32 %v10673_v23, %v10526_v58  ;;  %v8452_v23 = vld [vmem:[%s10982_s19 + $0x30] sm:$0xff]  }
 0xe84   : > { %v6331_v61 = vpop.permute.xlu1 %6330 }
 0xe85   : > { %v6468_v29 = vpop.permute.xlu0 %6467  ;;  %v10677_v45 = vsel %vm5562_vm13, %v6327_v8, %v6331_v61  ;;  %v10681_v33 = vsel %vm5562_vm13, %v6331_v61, %v6327_v8 }
 0xe86   : > { %v6338_v57 = vmul.f32 %v10681_v33, %v10390_v35  ;;  %v6339_v34 = vmul.f32 %v10677_v45, %v10394_v16  ;;  %8053 = vmatmul.mubr.msk.bf16.vlgmr.msra.gmra.mrb[12].mxu1 %vm5618_vm2, %v8446_v11 }
 0xe87   : > { %6456 = vmatprep.mubr.bf16.mxu1 %v8495_v4 }
 0xe88   : > { %v6342_v40 = vpack.c.bf16 %v6338_v57, %v6336_v31  ;;  %v6470_v48 = vpop.permute.xlu1 %6469  ;;  %v6343_v51 = vpack.c.bf16 %v6339_v34, %v6337_v43 }
 0xe89   : > { %v6472_v50 = vpop.permute.xlu0 %6471 }
 0xe8a   : > { %v6475_v44 = vsel %vm5724_vm11, %v6468_v29, %v6472_v50  ;;  %v10697_v63 = vsel %vm5724_vm11, %v6472_v50, %v6468_v29  ;;  %6424 = vmatprep.subr.bf16.mxu1 %v6343_v51 }
 0xe8b   : > { %6425 = vmatpush1.bf16.msra.mxu1 %v6342_v40  ;;  %v6479_v16 = vmul.f32 %v10697_v63, %v10428_v53  ;;  %v6480_v20 = vmul.f32 %v6475_v44, %v10432_v27  ;;  %v10709_v2 = vmul.f32 %v10443_v6, %v6475_v44 }
 0xe8c   : > { %v6474_v35 = vpop.permute.xlu1 %6473 }
 0xe8d   : > { %v6544_v21 = vpop.permute.xlu0 %6543  ;;  %v6476_v18 = vsel %vm5724_vm11, %v6470_v48, %v6474_v35  ;;  %v10706_v24 = vsel %vm5724_vm11, %v6474_v35, %v6470_v48  ;;  %v8448_v35 = vld [vmem:[%s10982_s19 + $0x10] sm:$0xff]   ;;  %vm11084_vm11 = vcmask 1041408  }
 0xe8e   : > { %v6481_v19 = vmul.f32 %v10706_v24, %v10428_v53  ;;  %v6482_v8 = vmul.f32 %v6476_v18, %v10432_v27  ;;  %v10715_v7 = vmul.f32 %v10443_v6, %v6476_v18 }
 0xe90   : > { %v6486_v11 = vpack.c.bf16 %v6481_v19, %v6479_v16  ;;  %v6894_v61 = vpack.c.bf16 %v10715_v7, %v10709_v2  ;;  %v6546_v29 = vpop.permute.xlu1 %6545  ;;  %v6487_v31 = vpack.c.bf16 %v6482_v8, %v6480_v20 }
 0xe91   : > { %v6548_v43 = vpop.permute.xlu0 %6547 }
 0xe92   : > { %8055 = vmatmul.mubr.msk.bf16.vlgmr.msra.gmra.mrb[12].mxu1 %vm5618_vm2, %v8447_v10  ;;  %6496 = vmatprep.subr.bf16.mxu1 %v6487_v31  ;;  %v6551_v53 = vsel %vm5809_vm7, %v6544_v21, %v6548_v43  ;;  %v6553_v48 = vsel %vm5809_vm7, %v6548_v43, %v6544_v21  ;;  %v8449_v10 = vld [vmem:[%s10982_s19 + $0x18] sm:$0xff]   ;;  %v8450_v31 = vld [vmem:[%s10982_s19 + $0x20] sm:$0xff]  }
 0xe93   : > { %6497 = vmatpush1.bf16.msra.mxu1 %v6486_v11  ;;  %6528 = vmatprep.mubr.bf16.mxu1 %v8495_v4  ;;  %v6556_v57 = vmul.f32 %v6551_v53, %v10471_v26  ;;  %v6555_v16 = vmul.f32 %v6553_v48, %v10485_v37  ;;  %v8451_v53 = vld [vmem:[%s10982_s19 + $0x28] sm:$0xff]  }
 0xe94   : > { %v6550_v27 = vpop.permute.xlu1 %6549 }
 0xe95   : > { %v6552_v6 = vsel %vm5809_vm7, %v6546_v29, %v6550_v27  ;;  %v6554_v34 = vsel %vm5809_vm7, %v6550_v27, %v6546_v29  ;;  %v6684_v20 = vpop.permute.xlu0 %6683  ;;  %vm11085_vm7 = vmmov %vm11084_vm11 }
 0xe96   : > { %v6558_v40 = vmul.f32 %v6552_v6, %v10471_v26  ;;  %v6557_v50 = vmul.f32 %v6554_v34, %v10485_v37 }
 0xe98   : > { %v6563_v51 = vpack.c.bf16 %v6558_v40, %v6556_v57  ;;  %v6686_v44 = vpop.permute.xlu1 %6685  ;;  %v6562_v18 = vpack.c.bf16 %v6557_v50, %v6555_v16 }
 0xe99   : > { %v6688_v21 = vpop.permute.xlu0 %6687 }
 0xe9a   : > { %6572 = vmatprep.subr.bf16.mxu1 %v6563_v51  ;;  %v6693_v8 = vsel %vm5966_vm6, %v6688_v21, %v6684_v20  ;;  %v6691_v59 = vsel %vm5966_vm6, %v6684_v20, %v6688_v21 }
 0xe9b   : > { %v6696_v11 = vmul.f32 %v6693_v8, %v10504_v30  ;;  %v6695_v28 = vmul.f32 %v6691_v59, %v10522_v41 }
 0xe9c   : > { %v6690_v26 = vpop.permute.xlu1 %6689 }
 0xe9d   : > { %v6694_v19 = vsel %vm5966_vm6, %v6690_v26, %v6686_v44  ;;  %v6692_v42 = vsel %vm5966_vm6, %v6686_v44, %v6690_v26  ;;  %vm11086_vm6 = vcmask 31744  }
 0xe9e   : > { %8059 = vmatmul.mubr.msk.bf16.vlgmr.msra.gmra.mrb[12].mxu1 %vm5618_vm2, %v8448_v35  ;;  %v6698_v37 = vmul.f32 %v6694_v19, %v10504_v30  ;;  %v6762_v30 = vmul.f32 %v10681_v33, %v10526_v58  ;;  %v6761_v33 = vmul.f32 %v10677_v45, %v10543_v1  ;;  %v6890_v58 = vmul.f32 %v10560_v49, %v10706_v24 }
 0xe9f   : > { %6573 = vmatpush1.bf16.msra.mxu1 %v6562_v18  ;;  %6604 = vmatprep.mubr.bf16.mxu1 %v8495_v4 }
 0xea0   : > { %6636 = vmatprep.subr.bf16.mxu1 %v6627_v17  ;;  %v6703_v29 = vpack.c.bf16 %v6698_v37, %v6696_v11  ;;  %v6697_v17 = vmul.f32 %v6692_v42, %v10522_v41  ;;  %v6767_v43 = vpack.c.bf16 %v6762_v30, %v6760_v55  ;;  %v6759_v41 = vmul.f32 %v10669_v39, %v10543_v1 }
 0xea1   : > { %v6888_v1 = vmul.f32 %v10560_v49, %v10697_v63  ;;  %v8454_v49 = vld [vmem:[%s10982_s19 + $0x40] sm:$0xff]  }
 0xea2   : > { %v6766_v27 = vpack.c.bf16 %v6761_v33, %v6759_v41 }
 0xea3   : > { %v6895_v39 = vpack.c.bf16 %v6890_v58, %v6888_v1 }
 0xeaa   : > { %8063 = vmatmul.mubr.msk.bf16.vlgmr.msra.gmra.mrb[12].mxu1 %vm5618_vm2, %v8449_v10 }
 0xeab   : > { %6637 = vmatpush1.bf16.msra.mxu1 %v6626_v62  ;;  %6668 = vmatprep.mubr.bf16.mxu1 %v8495_v4  ;;  %v6702_v62 = vpack.c.bf16 %v6697_v17, %v6695_v28 }
 0xeac   : > { %6712 = vmatprep.subr.bf16.mxu1 %v6703_v29 }
 0xeb6   : > { %8067 = vmatmul.mubr.msk.bf16.vlgmr.msra.gmra.mrb[12].mxu1 %vm5618_vm2, %v8450_v31 }
 0xeb7   : > { %6713 = vmatpush1.bf16.msra.mxu1 %v6702_v62  ;;  %6744 = vmatprep.mubr.bf16.mxu1 %v8495_v4 }
 0xeb8   : > { %6776 = vmatprep.subr.bf16.mxu1 %v6767_v43 }
 0xec2   : > { %8071 = vmatmul.mubr.msk.bf16.vlgmr.msra.gmra.mrb[12].mxu1 %vm5618_vm2, %v8451_v53 }
 0xec3   : > { %6777 = vmatpush1.bf16.msra.mxu1 %v6766_v27  ;;  %6808 = vmatprep.mubr.bf16.mxu1 %v8495_v4 }
 0xec4   : > { %6840 = vmatprep.subr.bf16.mxu1 %v6831_v56 }
 0xece   : > { %8075 = vmatmul.mubr.msk.bf16.vlgmr.msra.gmra.mrb[12].mxu1 %vm5618_vm2, %v8452_v23 }
 0xecf   : > { %6841 = vmatpush1.bf16.msra.mxu1 %v6830_v25  ;;  %6872 = vmatprep.mubr.bf16.mxu1 %v8495_v4 }
 0xed0   : > { %6904 = vmatprep.subr.bf16.mxu1 %v6895_v39 }
 0xeda   : > { %8079 = vmatmul.mubr.msk.bf16.vlgmr.msra.gmra.mrb[12].mxu1 %vm5618_vm2, %v8453_v0 }
 0xedb   : > { %6905 = vmatpush1.bf16.msra.mxu1 %v6894_v61  ;;  %6936 = vmatprep.mubr.bf16.mxu1 %v8495_v4 }
 0xee6   : > { %8083 = vmatmul.mubr.msk.bf16.vlgmr.msra.gmra.mrb[12].mxu1 %vm5618_vm2, %v8454_v49 }
 0xee7   : > { %7114 = vmatprep.mubr.bf16.mxu1 %v8495_v4 }
 0xfb9   : > { %v6938_v47 = vpop.f32.mrb[12].mxu1 }
 0xfba   : > { %v6959_v38 = vmul.f32 %v6938_v47, %v6938_v47  ;;  %v6940_v22 = vpop.f32.mrb[13].mxu1 }
 0xfbb   : > { %v6951_v25 = vadd.f32 %v6940_v22, %v6938_v47  ;;  %v6960_v56 = vmul.f32 %v6940_v22, %v6940_v22  ;;  %v6942_v45 = vpop.f32.mrb[14].mxu1 }
 0xfbc   : > { %v6961_v63 = vmul.f32 %v6942_v45, %v6942_v45  ;;  %v6944_v24 = vpop.f32.mrb[15].mxu1 }
 0xfbd   : > { %v6954_v2 = vadd.f32 %v6944_v24, %v6942_v45  ;;  %v6962_v7 = vmul.f32 %v6944_v24, %v6944_v24  ;;  %6952 = vadd.xlane.f32.xlu0 %v6951_v25  ;;  %v6963_v61 = vadd.f32 %v6960_v56, %v6959_v38  ;;  %v8089_v25 = vld [vmem:[%s10983_s20 + $0xc] sm:$0xf] }
 0xfbf   : > { %6955 = vadd.xlane.f32.xlu1 %v6954_v2  ;;  %v6966_v6 = vadd.f32 %v6962_v7, %v6961_v63 }
 0xfc1   : > { %6964 = vadd.xlane.f32.xlu0 %v6963_v61 }
 0xfc5   : > { %6967 = vadd.xlane.f32.xlu0 %v6966_v6 }
0x104a   : > { %v6953_v57 = vpop.xlane.xlu0 %6952 }
0x104b   : > { %v6957_v34 = vmul.f32 0.0625, %v6953_v57 }
0x104c   : > { %v6956_v40 = vpop.xlane.xlu1 %6955 }
0x104d   : > { %v6958_v51 = vmul.f32 0.0625, %v6956_v40  ;;  %v6971_v50 = vmul.f32 %v6957_v34, %v6957_v34  ;;  %v6981_v10 = vsub.f32 %v6938_v47, %v6957_v34  ;;  %v6982_v11 = vsub.f32 %v6940_v22, %v6957_v34  ;;  %v8087_v22 = vld [vmem:[%s10983_s20 + $0x8] sm:$0xf] }
0x104e   : > { %v6965_v48 = vpop.xlane.xlu0 %6964 }
0x104f   : > { %v6969_v44 = vmul.f32 0.0625, %v6965_v48  ;;  %v6972_v26 = vmul.f32 %v6958_v51, %v6958_v51  ;;  %v6983_v17 = vsub.f32 %v6942_v45, %v6958_v51  ;;  %v6984_v30 = vsub.f32 %v6944_v24, %v6958_v51 }
0x1051   : > { %v6973_v35 = vsub.f32 %v6969_v44, %v6971_v50 }
0x1052   : > { %v6968_v16 = vpop.xlane.xlu0 %6967 }
0x1053   : > { %v6975_v20 = vmax.f32 %v6973_v35, 0.0  ;;  %v6970_v18 = vmul.f32 0.0625, %v6968_v16  ;;  %v7005_v16 = vld [vmem:[%s10984_s21] sm:$0xff] }
0x1055   : > { %v6977_v21 = vadd.f32 1e-05, %v6975_v20  ;;  %v6974_v19 = vsub.f32 %v6970_v18, %v6972_v26  ;;  %v7132_v18 = vrot.slane %v7005_v16, %v8700_v15  ;;  %v7136_v26 = vrot.slane %v7005_v16, %v9229_v12 }
0x1057   : > { %8475 = vrsqrt.f32 %v6977_v21  ;;  %v6976_v8 = vmax.f32 %v6974_v19, 0.0  ;;  %v7058_v21 = vrot.slane %v7005_v16, %v8697_v14  ;;  %v7062_v19 = vrot.slane %v7005_v16, %v9164_v60 }
0x1059   : > { %v6978_v37 = vadd.f32 1e-05, %v6976_v8 }
0x105b   : > { %8477 = vrsqrt.f32 %v6978_v37  ;;  %v7206_v37 = vrot.slane %v7005_v16, %v9153_v46 }
0x1061   : > { %v8476_v29 = vpop.eup %8475 }
0x1062   : > { %v6986_v42 = vmul.f32 %v8476_v29, %v6982_v11  ;;  %v6985_v59 = vmul.f32 %v8476_v29, %v6981_v10  ;;  %v7210_v10 = vrot.slane %v7005_v16, %v9262_v5  ;;  %v7142_v11 = vrot.slane %v7132_v18, %v8700_v15 }
0x1063   : > { %v7146_v29 = vrot.slane %v7136_v26, %v8700_v15  ;;  %v7006_v26 = vld [vmem:[%s10985_s22] sm:$0x3] }
0x1064   : > { %v6990_v31 = vmul.f32 %v6986_v42, %v10594_v54  ;;  %v6989_v28 = vmul.f32 %v6985_v59, %v10591_v32  ;;  %v7068_v59 = vrot.slane %v7058_v21, %v8697_v14 }
0x1065   : > { %v8478_v55 = vpop.eup %8477 }
0x1066   : > { %v6988_v62 = vmul.f32 %v8478_v55, %v6984_v30  ;;  %v6987_v43 = vmul.f32 %v8478_v55, %v6983_v17  ;;  %v6998_v53 = vmul.f32 0.2, %v6990_v31  ;;  %v6997_v27 = vmul.f32 0.2, %v6989_v28 }
0x1067   : > { %vm6994_vm0 = vcmp.ge.f32.partialorder %v6990_v31, 0.0  ;;  %vm6993_vm1 = vcmp.ge.f32.partialorder %v6989_v28, 0.0  ;;  %v7072_v17 = vrot.slane %v7062_v19, %v8697_v14  ;;  %v7220_v55 = vrot.slane %v7210_v10, %v9153_v46 }
0x1068   : > { %v6992_v33 = vmul.f32 %v6988_v62, %v10594_v54  ;;  %v6991_v41 = vmul.f32 %v6987_v43, %v10591_v32  ;;  %v7002_v1 = vsel %vm6994_vm0, %v6990_v31, %v6998_v53  ;;  %v7001_v0 = vsel %vm6993_vm1, %v6989_v28, %v6997_v27  ;;  %v7009_v32 = vld [vmem:[%s10983_s20] sm:$0xf]  ;;  %v8085_v54 = vld [vmem:[%s10983_s20 + $0x4] sm:$0xf] }
0x1069   : > { %v7216_v28 = vrot.slane %v7206_v37, %v9153_v46  ;;  %v7280_v62 = vrot.slane %v7005_v16, %v9181_v13  ;;  %v7284_v43 = vrot.slane %v7005_v16, %v9295_v36  ;;  %v7322_v37 = vrot.slane %v7006_v26, %v8697_v14 }
0x106a   : > { %vm6996_vm10 = vcmp.ge.f32.partialorder %v6992_v33, 0.0  ;;  %v7000_v58 = vmul.f32 0.2, %v6992_v33  ;;  %vm6995_vm12 = vcmp.ge.f32.partialorder %v6991_v41, 0.0  ;;  %v6999_v23 = vmul.f32 0.2, %v6991_v41 }
0x106c   : > { %v7004_v39 = vsel %vm6996_vm10, %v6992_v33, %v7000_v58  ;;  %v7003_v49 = vsel %vm6995_vm12, %v6991_v41, %v6999_v23 }
0x106d   : > { %v7008_v47 = vpack.c.bf16 %v7004_v39, %v7002_v1  ;;  %v7007_v38 = vpack.c.bf16 %v7003_v49, %v7001_v0 }
0x106f   : > { %7013 = vmatprep.subr.bf16.mxu0 %v7008_v47  ;;  %7082 = vmatprep.subr.bf16.mxu1 %v7008_v47 }
0x1070   : > { %7014 = vmatpush1.bf16.msra.mxu0 %v7007_v38  ;;  %7083 = vmatpush1.bf16.msra.mxu1 %v7007_v38 }
0x1071   : > { %7156 = vmatprep.subr.bf16.mxu0 %v7008_v47  ;;  %7230 = vmatprep.subr.bf16.mxu1 %v7008_v47  ;;  %v7290_v47 = vrot.slane %v7280_v62, %v9181_v13 }
0x1073   : > { %8084 = vmatmul.mubr.msk.bf16.vlgmr.msra.gmra.mrb[16].mxu0 %vm5618_vm2, %v7009_v32  ;;  %8086 = vmatmul.mubr.msk.bf16.vlgmr.msra.gmra.mrb[16].mxu1 %vm5618_vm2, %v8085_v54 }
0x1074   : > { %7157 = vmatpush1.bf16.msra.mxu0 %v7007_v38  ;;  %7231 = vmatpush1.bf16.msra.mxu1 %v7007_v38  ;;  %v7294_v38 = vrot.slane %v7284_v43, %v9181_v13 }
0x1075   : > { %7188 = vmatprep.mubr.bf16.mxu0 %v8495_v4  ;;  %7262 = vmatprep.mubr.bf16.mxu1 %v8495_v4 }
0x107b   : > { %8088 = vmatmul.mubr.msk.bf16.vlgmr.msra.gmra.mrb[20].mxu0 %vm5618_vm2, %v8087_v22  ;;  %8090 = vmatmul.mubr.msk.bf16.vlgmr.msra.gmra.mrb[20].mxu1 %vm5618_vm2, %v8089_v25 }
0x107c   : > { %7383 = vmatprep.mubr.bf16.mxu0 %v8495_v4  ;;  %7452 = vmatprep.mubr.bf16.mxu1 %v8495_v4 }
0x1146   : > { %v7116_v56 = vpop.f32.mrb[16].mxu1  ;;  %v7047_v45 = vpop.f32.mrb[16].mxu0 }
0x1147   : > { %v7118_v63 = vpop.f32.mrb[17].mxu1  ;;  %7123 = vrot.lane.b32.xlu1 %v7116_v56, %s11073_s6  ;;  %v7049_v24 = vpop.f32.mrb[17].mxu0  ;;  %v7073_v27 = vmul.f32 %v7068_v59, %v7047_v45 }
0x1148   : > { %7125 = vrot.lane.b32.xlu0 %v7118_v63, %s11073_s6  ;;  %v7051_v2 = vpop.f32.mrb[18].mxu0  ;;  %v7120_v7 = vpop.f32.mrb[18].mxu1  ;;  %v7074_v58 = vmul.f32 %v7072_v17, %v7049_v24 }
0x1149   : > { %v7052_v61 = vpop.f32.mrb[19].mxu0  ;;  %v7121_v6 = vpop.f32.mrb[19].mxu1 }
0x114e   : > { %v7190_v57 = vpop.f32.mrb[20].mxu0  ;;  %v7264_v34 = vpop.f32.mrb[20].mxu1 }
0x114f   : > { %7197 = vrot.lane.b32.xlu1 %v7190_v57, %s11070_s4  ;;  %v7192_v40 = vpop.f32.mrb[21].mxu0  ;;  %v7266_v48 = vpop.f32.mrb[21].mxu1  ;;  %7271 = vrot.lane.b32.xlu0 %v7264_v34, %s11071_s11 }
0x1150   : > { %v7194_v51 = vpop.f32.mrb[22].mxu0  ;;  %v7268_v50 = vpop.f32.mrb[22].mxu1 }
0x1151   : > { %v7195_v44 = vpop.f32.mrb[23].mxu0  ;;  %v7269_v35 = vpop.f32.mrb[23].mxu1 }
0x1153   : > { %7199 = vrot.lane.b32.xlu1 %v7192_v40, %s11070_s4 }
0x1157   : > { %7273 = vrot.lane.b32.xlu1 %v7266_v48, %s11071_s11 }
0x11b9   : > { %v7124_v20 = vpop.permute.xlu1 %7123 }
0x11ba   : > { %v7126_v8 = vpop.permute.xlu0 %7125 }
0x11bb   : > { %v7127_v30 = vsel %vm3256_vm9, %v7124_v20, %v7126_v8  ;;  %v7128_v31 = vsel %vm3256_vm9, %v7126_v8, %v7124_v20  ;;  %v7326_v8 = vrot.slane %v7006_v26, %v8700_v15  ;;  %vm11080_vm9 = vcmp.lt.s32.totalorder %v8832_v9, 16 }
0x11bc   : > { %v7147_v33 = vmul.f32 %v7142_v11, %v7128_v31  ;;  %v7148_v53 = vmul.f32 %v7146_v29, %v7127_v30 }
0x11be   : > { %v7149_v32 = vadd.f32 %v7147_v33, %v7073_v27  ;;  %v7150_v54 = vadd.f32 %v7148_v53, %v7074_v58  ;;  %v7341_v33 = vld [vmem:[%s10986_s23] sm:$0x3]  ;;  %v8093_v53 = vld [vmem:[%s10986_s23 + $0x2] sm:$0x3]  ;;  %v8099_v27 = vld [vmem:[%s10986_s23 + $0x6] sm:$0x3] }
0x11c1   : > { %v7198_v42 = vpop.permute.xlu1 %7197  ;;  %v7272_v49 = vpop.permute.xlu0 %7271 }
0x11c5   : > { %v7200_v41 = vpop.permute.xlu1 %7199 }
0x11c6   : > { %v7201_v23 = vsel %vm3062_vm4, %v7198_v42, %v7200_v41  ;;  %v7202_v1 = vsel %vm3062_vm4, %v7200_v41, %v7198_v42  ;;  %v8096_v41 = vld [vmem:[%s10986_s23 + $0x4] sm:$0x3] }
0x11c7   : > { %v7221_v39 = vmul.f32 %v7216_v28, %v7202_v1  ;;  %v7222_v0 = vmul.f32 %v7220_v55, %v7201_v23 }
0x11c9   : > { %v7274_v22 = vpop.permute.xlu1 %7273  ;;  %v7223_v45 = vadd.f32 %v7221_v39, %v7149_v32  ;;  %v7224_v63 = vadd.f32 %v7222_v0, %v7150_v54 }
0x11ca   : > { %v7275_v25 = vsel %vm3042_vm5, %v7272_v49, %v7274_v22  ;;  %v7276_v56 = vsel %vm3042_vm5, %v7274_v22, %v7272_v49 }
0x11cb   : > { %v7295_v24 = vmul.f32 %v7290_v47, %v7276_v56  ;;  %v7296_v2 = vmul.f32 %v7294_v38, %v7275_v25 }
0x11cd   : > { %v7297_v7 = vadd.f32 %v7295_v24, %v7223_v45  ;;  %v7298_v61 = vadd.f32 %v7296_v2, %v7224_v63  ;;  %v7337_v24 = vld [vmem:[%s10987_s24] sm:$0xff] }
0x11ce   : > { %v7470_v2 = vrot.slane %v7337_v24, %v8700_v15 }
0x11cf   : > { %v7299_v6 = vadd.f32 %v7298_v61, %v7297_v7  ;;  %v7303_v57 = vmul.f32 %v7297_v7, %v7297_v7  ;;  %v7304_v34 = vmul.f32 %v7298_v61, %v7298_v61 }
0x11d1   : > { %7300 = vadd.xlane.f32.xlu0 %v7299_v6  ;;  %v7305_v40 = vadd.f32 %v7304_v34, %v7303_v57  ;;  %v7400_v6 = vrot.slane %v7337_v24, %v9164_v60  ;;  %v7618_v60 = vrot.slane %v7337_v24, %v9181_v13 }
0x11d3   : > { %7306 = vadd.xlane.f32.xlu1 %v7305_v40  ;;  %v7544_v40 = vrot.slane %v7337_v24, %v9153_v46 }
0x125e   : > { %v7301_v48 = vpop.xlane.xlu0 %7300 }
0x125f   : > { %v7302_v51 = vmul.f32 0.015625, %v7301_v48  ;;  %v7548_v48 = vrot.slane %v7337_v24, %v9262_v5 }
0x1260   : > { %v7307_v50 = vpop.xlane.xlu1 %7306 }
0x1261   : > { %v7308_v44 = vmul.f32 0.015625, %v7307_v50  ;;  %v7309_v35 = vmul.f32 %v7302_v51, %v7302_v51  ;;  %v7314_v21 = vsub.f32 %v7297_v7, %v7302_v51  ;;  %v7315_v19 = vsub.f32 %v7298_v61, %v7302_v51 }
0x1262   : > { %v7474_v7 = vrot.slane %v7337_v24, %v9229_v12  ;;  %v7396_v61 = vrot.slane %v7337_v24, %v8697_v14  ;;  %v7480_v51 = vrot.slane %v7470_v2, %v8700_v15  ;;  %v7558_v5 = vrot.slane %v7548_v48, %v9153_v46 }
0x1263   : > { %v7310_v16 = vsub.f32 %v7308_v44, %v7309_v35 }
0x1264   : > { %v7484_v50 = vrot.slane %v7474_v7, %v8700_v15  ;;  %v7406_v44 = vrot.slane %v7396_v61, %v8697_v14 }
0x1265   : > { %v7311_v20 = vmax.f32 %v7310_v16, 0.0  ;;  %v7410_v16 = vrot.slane %v7400_v6, %v8697_v14 }
0x1267   : > { %v7312_v18 = vadd.f32 1e-05, %v7311_v20  ;;  %v7554_v20 = vrot.slane %v7544_v40, %v9153_v46 }
0x1269   : > { %8479 = vrsqrt.f32 %v7312_v18  ;;  %v7622_v18 = vrot.slane %v7337_v24, %v9295_v36  ;;  %v7338_v24 = vld [vmem:[%s10988_s25] sm:$0x3] }
0x126a   : > { %v7668_v61 = vrot.slane %v7338_v24, %v8700_v15  ;;  %v7664_v6 = vrot.slane %v7338_v24, %v8697_v14  ;;  %v7679_v15 = vld [vmem:[%s10989_s26] sm:$0x1] }
0x126b   : > { %v7632_v46 = vrot.slane %v7622_v18, %v9181_v13 }
0x1273   : > { %v8480_v10 = vpop.eup %8479 }
0x1274   : > { %v7317_v11 = vmul.f32 %v8480_v10, %v7315_v19  ;;  %v7316_v29 = vmul.f32 %v8480_v10, %v7314_v21 }
0x1276   : > { %v7330_v42 = vmul.f32 %v7326_v8, %v7317_v11  ;;  %v7329_v59 = vmul.f32 %v7322_v37, %v7316_v29  ;;  %v7628_v29 = vrot.slane %v7618_v60, %v9181_v13 }
0x1278   : > { %vm7332_vm4 = vcmp.ge.f32.partialorder %v7330_v42, 0.0  ;;  %v7334_v17 = vmul.f32 0.2, %v7330_v42  ;;  %vm7331_vm5 = vcmp.ge.f32.partialorder %v7329_v59, 0.0  ;;  %v7333_v30 = vmul.f32 0.2, %v7329_v59 }
0x127a   : > { %v7336_v31 = vsel %vm7332_vm4, %v7330_v42, %v7334_v17  ;;  %v7335_v28 = vsel %vm7331_vm5, %v7329_v59, %v7333_v30 }
0x127b   : > { %v7340_v55 = vpack.c.bf16 %v7336_v31, %v7336_v31  ;;  %v7339_v62 = vpack.c.bf16 %v7335_v28, %v7335_v28 }
0x127d   : > { %8091 = vmatprep.subr.msk.bf16.mxu0 %vm1259_vm8, %v7340_v55  ;;  %8094 = vmatprep.subr.msk.bf16.mxu1 %vm1259_vm8, %v7340_v55  ;;  %v7346_v43 = vsel %vm1259_vm8, %v7339_v62, 0 }
0x127e   : > { %7352 = vmatpush1.bf16.msra.mxu0 %v7346_v43  ;;  %7421 = vmatpush1.bf16.msra.mxu1 %v7346_v43 }
0x127f   : > { %8097 = vmatprep.subr.msk.bf16.mxu0 %vm1259_vm8, %v7340_v55  ;;  %8100 = vmatprep.subr.msk.bf16.mxu1 %vm1259_vm8, %v7340_v55 }
0x1281   : > { %8092 = vmatmul.mubr.msk.bf16.vlgmr.msra.gmra.mrb[24].mxu0 %vm3744_vm15, %v7341_v33  ;;  %8095 = vmatmul.mubr.msk.bf16.vlgmr.msra.gmra.mrb[24].mxu1 %vm3744_vm15, %v8093_v53 }
0x1282   : > { %7495 = vmatpush1.bf16.msra.mxu0 %v7346_v43  ;;  %7569 = vmatpush1.bf16.msra.mxu1 %v7346_v43 }
0x1283   : > { %7526 = vmatprep.mubr.bf16.mxu0 %v8495_v4  ;;  %7600 = vmatprep.mubr.bf16.mxu1 %v8495_v4 }
0x1289   : > { %8098 = vmatmul.mubr.msk.bf16.vlgmr.msra.gmra.mrb[28].mxu0 %vm3744_vm15, %v8096_v41  ;;  %8101 = vmatmul.mubr.msk.bf16.vlgmr.msra.gmra.mrb[28].mxu1 %vm3744_vm15, %v8099_v27  ;;  %vm11082_vm15 = vcmp.lt.s32.totalorder %v8832_v9, 17 }
0x128a   : > { %7733 = vmatprep.mubr.bf16.mxu0 %v8495_v4  ;;  %vm11083_vm13 = vmmov %vm11082_vm15 }
0x1354   : > { %v7454_v58 = vpop.f32.mrb[24].mxu1  ;;  %v7385_v23 = vpop.f32.mrb[24].mxu0 }
0x1355   : > { %v7456_v1 = vpop.f32.mrb[25].mxu1  ;;  %7461 = vrot.lane.b32.xlu0 %v7454_v58, %s11060_s2  ;;  %v7387_v39 = vpop.f32.mrb[25].mxu0  ;;  %v7411_v37 = vmul.f32 %v7406_v44, %v7385_v23 }
0x1356   : > { %7463 = vrot.lane.b32.xlu1 %v7456_v1, %s11060_s2  ;;  %v7389_v0 = vpop.f32.mrb[26].mxu0  ;;  %v7458_v49 = vpop.f32.mrb[26].mxu1  ;;  %v7412_v42 = vmul.f32 %v7410_v16, %v7387_v39 }
0x1357   : > { %v7390_v47 = vpop.f32.mrb[27].mxu0  ;;  %v7459_v38 = vpop.f32.mrb[27].mxu1 }
0x1358   : > { %v7680_v38 = vld [vmem:[#allocation2] sm:$0x1] }
0x135c   : > { %v7528_v32 = vpop.f32.mrb[28].mxu0  ;;  %v7602_v54 = vpop.f32.mrb[28].mxu1 }
0x135d   : > { %v7530_v22 = vpop.f32.mrb[29].mxu0  ;;  %7535 = vrot.lane.b32.xlu0 %v7528_v32, %s11057_s0  ;;  %v7604_v25 = vpop.f32.mrb[29].mxu1 }
0x135e   : > { %7537 = vrot.lane.b32.xlu1 %v7530_v22, %s11057_s0  ;;  %v7532_v4 = vpop.f32.mrb[30].mxu0  ;;  %v7606_v56 = vpop.f32.mrb[30].mxu1 }
0x135f   : > { %v7533_v45 = vpop.f32.mrb[31].mxu0  ;;  %v7607_v63 = vpop.f32.mrb[31].mxu1 }
0x1361   : > { %7609 = vrot.lane.b32.xlu0 %v7602_v54, %s11064_s7 }
0x1362   : > { %7611 = vrot.lane.b32.xlu1 %v7604_v25, %s11064_s7 }
0x13c7   : > { %v7462_v57 = vpop.permute.xlu0 %7461 }
0x13c8   : > { %v7464_v34 = vpop.permute.xlu1 %7463 }
0x13c9   : > { %v7465_v35 = vsel %vm1009_vm3, %v7462_v57, %v7464_v34  ;;  %v7466_v12 = vsel %vm1009_vm3, %v7464_v34, %v7462_v57  ;;  %vm11081_vm3 = vmmov %vm11080_vm9 }
0x13ca   : > { %v7485_v21 = vmul.f32 %v7480_v51, %v7466_v12  ;;  %v7486_v19 = vmul.f32 %v7484_v50, %v7465_v35 }
0x13cc   : > { %v7487_v36 = vadd.f32 %v7485_v21, %v7411_v37  ;;  %v7488_v31 = vadd.f32 %v7486_v19, %v7412_v42 }
0x13cf   : > { %v7536_v26 = vpop.permute.xlu0 %7535 }
0x13d0   : > { %v7538_v8 = vpop.permute.xlu1 %7537 }
0x13d1   : > { %v7539_v10 = vsel %vm11080_vm9, %v7536_v26, %v7538_v8  ;;  %v7540_v11 = vsel %vm11081_vm3, %v7538_v8, %v7536_v26 }
0x13d2   : > { %v7559_v59 = vmul.f32 %v7554_v20, %v7540_v11  ;;  %v7560_v17 = vmul.f32 %v7558_v5, %v7539_v10 }
0x13d3   : > { %v7610_v30 = vpop.permute.xlu0 %7609 }
0x13d4   : > { %v7612_v28 = vpop.permute.xlu1 %7611  ;;  %v7561_v43 = vadd.f32 %v7559_v59, %v7487_v36  ;;  %v7562_v33 = vadd.f32 %v7560_v17, %v7488_v31 }
0x13d5   : > { %v7613_v55 = vsel %vm11082_vm15, %v7610_v30, %v7612_v28  ;;  %v7614_v62 = vsel %vm11083_vm13, %v7612_v28, %v7610_v30 }
0x13d6   : > { %v7633_v53 = vmul.f32 %v7628_v29, %v7614_v62  ;;  %v7634_v41 = vmul.f32 %v7632_v46, %v7613_v55 }
0x13d8   : > { %v7635_v27 = vadd.f32 %v7633_v53, %v7561_v43  ;;  %v7636_v58 = vadd.f32 %v7634_v41, %v7562_v33 }
0x13da   : > { %v7637_v23 = vsel %vm1259_vm8, %v7635_v27, 0.0  ;;  %v7638_v13 = vsel %vm1259_vm8, %v7636_v58, 0.0  ;;  %v7643_v1 = vmul.f32 %v7635_v27, %v7635_v27  ;;  %v7644_v39 = vmul.f32 %v7636_v58, %v7636_v58 }
0x13db   : > { %v7639_v0 = vadd.f32 %v7638_v13, %v7637_v23 }
0x13dc   : > { %v7645_v49 = vsel %vm1259_vm8, %v7643_v1, 0.0  ;;  %v7646_v47 = vsel %vm1259_vm8, %v7644_v39, 0.0 }
0x13dd   : > { %7640 = vadd.xlane.f32.xlu0 %v7639_v0  ;;  %v7647_v9 = vadd.f32 %v7646_v47, %v7645_v49 }
0x13df   : > { %7648 = vadd.xlane.f32.xlu1 %v7647_v9 }
0x13f3   : > { %7685 = vperm.xlu0 %8394, %v7680_v38  }
0x146a   : > { %v7641_v32 = vpop.xlane.xlu0 %7640 }
0x146b   : > { %v7642_v54 = vmul.f32 0.00390625, %v7641_v32 }
0x146c   : > { %v7649_v22 = vpop.xlane.xlu1 %7648 }
0x146d   : > { %v7650_v25 = vmul.f32 0.00390625, %v7649_v22  ;;  %v7651_v4 = vmul.f32 %v7642_v54, %v7642_v54  ;;  %v7656_v2 = vsub.f32 %v7635_v27, %v7642_v54  ;;  %v7657_v7 = vsub.f32 %v7636_v58, %v7642_v54 }
0x146f   : > { %v7652_v56 = vsub.f32 %v7650_v25, %v7651_v4 }
0x1471   : > { %v7653_v45 = vmax.f32 %v7652_v56, 0.0 }
0x1472   : > { %v7686_v5 = vpop.permute.xlu0 %7685 }
0x1473   : > { %v7654_v63 = vadd.f32 1e-05, %v7653_v45  ;;  %v7691_v18 = vrot.slane %v7686_v5, %v8697_v14 }
0x1475   : > { %8481 = vrsqrt.f32 %v7654_v63 }
0x147f   : > { %v8482_v57 = vpop.eup %8481 }
0x1480   : > { %v7659_v34 = vmul.f32 %v8482_v57, %v7657_v7  ;;  %v7658_v40 = vmul.f32 %v8482_v57, %v7656_v2 }
0x1482   : > { %v7672_v48 = vmul.f32 %v7668_v61, %v7659_v34  ;;  %v7671_v51 = vmul.f32 %v7664_v6, %v7658_v40 }
0x1484   : > { %vm7674_vm8 = vcmp.ge.f32.partialorder %v7672_v48, 0.0  ;;  %v7676_v50 = vmul.f32 0.2, %v7672_v48  ;;  %vm7673_vm2 = vcmp.ge.f32.partialorder %v7671_v51, 0.0  ;;  %v7675_v44 = vmul.f32 0.2, %v7671_v51 }
0x1486   : > { %v7678_v35 = vsel %vm7674_vm8, %v7672_v48, %v7676_v50  ;;  %v7677_v12 = vsel %vm7673_vm2, %v7671_v51, %v7675_v44 }
0x1487   : > { %v7682_v60 = vpack.c.bf16 %v7678_v35, %v7678_v35  ;;  %v7681_v16 = vpack.c.bf16 %v7677_v12, %v7677_v12 }
0x1489   : > { %8102 = vmatprep.subr.msk.bf16.mxu0 %vm11084_vm11, %v7682_v60  ;;  %v7696_v20 = vsel %vm11085_vm7, %v7681_v16, 0 }
0x148a   : > { %7702 = vmatpush1.bf16.msra.mxu0 %v7696_v20 }
0x148d   : > { %8103 = vmatmul.mubr.msk.bf16.vlgmr.msra.gmra.mrb[32].mxu0 %vm11086_vm6, %v7679_v15 }
0x1560   : > { %v7735_v26 = vpop.f32.mrb[32].mxu0 }
0x1561   : > { %v7736_v21 = vadd.f32 %v7735_v26, %v7691_v18  ;;  %v7737_v19 = vpop.f32.mrb[33].mxu0 }
0x1562   : > { %v7738_v8 = vadd.f32 %v7737_v19, %v7691_v18  ;;  %v7739_v37 = vpop.f32.mrb[34].mxu0 }
0x1563   : > { %8483 = vtanh.f32 %v7736_v21  ;;  %v7740_v10 = vpop.f32.mrb[35].mxu0 }
0x1564   : > { %8485 = vtanh.f32 %v7738_v8 }
0x156d   : > { %v8484_v11 = vpop.eup %8483 }
0x156e   : > { %v8486_v29 = vpop.eup %8485 }
0x156f   : > { %v7746_v42 = vcombine.low %v8484_v11, %v8486_v29 }
0x1571   : > { %v7753_v59 = vrot.slane %v7746_v42, %v8792_v52 }
0x1573   : > { %v7760_v14 = vrot.slane %v7753_v59, %v8792_v52 }
0x1575   : > { %7766 = vst.msk [vmem:[%s859_s3] sm:$0x3] %vm7764_vm14, %v7760_v14 }
0x1576 PF: > { %s11088_s8 = sld [smem:[#allocation3_spill]] }
0x157c   : > { %s40_s9 = sadd.s32 1, %s11088_s8  }
0x157d   : > { %p37_p4 = scmp.ge.s32.totalorder %s40_s9, 4  }
0x157f   :  { %39 = sbr.rel (!%p37_p4) target bundleno = 15 (0xf), region = 251 }

</bundles_post_ra>
